<compile_context>
chip_gen: v5e
topology: v5e:2x2
jax: 0.10.0
libtpu: 0.0.40
codegen_flags: <defaults>
</compile_context>

<pallas_src>
import functools

import jax
import jax.numpy as jnp
from jax.experimental import pallas as pl
from jax.experimental.pallas import tpu as pltpu

# Full-precision matmuls everywhere (kernel and the pure-JAX reference) so the
# correctness check below is tight.
jax.config.update("jax_default_matmul_precision", "highest")

# Module-level constants of the original file (small & consistent:
# embed_size must equal EMBED_SIZE_CHORD so the concat matches lstm input).
EMBED_SIZE_CHORD = 16          # also the vocab of chord/duration embeddings (as in source)
ROOT_VOCAB_SIZE_CHORD = 13
CHORD_VOCAB_SIZE_CHORD = 7
DURATION_VOCAB_SIZE_BASS = 9
HIDDEN_SIZE_CHORD = 32
NUM_LAYERS_CHORD = 1           # nn.LSTM(num_layers=NUM_LAYERS_CHORD * 2, bidirectional=True)

EMBED_SIZE = EMBED_SIZE_CHORD
LSTM_INPUT = EMBED_SIZE_CHORD * 3
LSTM_LAYERS = NUM_LAYERS_CHORD * 2
H = HIDDEN_SIZE_CHORD

_VMEM = pl.BlockSpec(memory_space=pltpu.MemorySpace.VMEM)


# ----------------------------------------------------------------------------
# Fused Pallas kernel: stacked bidirectional LSTM + three dense heads
# ----------------------------------------------------------------------------
def _fused_chord_kernel(x_ref, *refs, num_layers, T, B):
    """Whole Chord_Network_Full forward in one kernel invocation.

    x_ref : (T*B, 3E) time-major flattened embeddings (row t*B+b = time t, batch b).
    refs  : per layer [wih (in,8H), whh (2H,8H) block-diag, bias (1,8H)],
            then fc_root_w (2H,13), fc_root_b (1,13),
                 fc_chord_w (2H,7), fc_chord_b (1,7),
                 fc_duration_w (2H,9), fc_duration_b (1,9),
            then outputs  root (B,13), chord (B,7), duration (B,9),
            then scratch  xp_scr (T*B,8H), seq_scr (T*B,2H).
    Gate order matches PyTorch: i, f, g, o (per direction).
    """
    nw = 3 * num_layers
    layer_refs = refs[:nw]
    (w_root_ref, b_root_ref, w_chord_ref, b_chord_ref,
     w_dur_ref, b_dur_ref) = refs[nw:nw + 6]
    root_ref, chord_ref, dur_ref = refs[nw + 6:nw + 9]
    xp_scr, seq_scr = refs[nw + 9:nw + 11]

    Hh = seq_scr.shape[-1] // 2      # hidden size per direction
    G = 4 * Hh                       # gate width per direction

    def lstm_cell(g, c):
        i = jax.nn.sigmoid(g[:, 0:Hh])
        f = jax.nn.sigmoid(g[:, Hh:2 * Hh])
        gg = jnp.tanh(g[:, 2 * Hh:3 * Hh])
        o = jax.nn.sigmoid(g[:, 3 * Hh:4 * Hh])
        c_new = f * c + i * gg
        return o * jnp.tanh(c_new), c_new

    hf1 = hfT = hb1 = hbT = None
    for layer in range(num_layers):
        last = layer == num_layers - 1
        wih_ref = layer_refs[3 * layer]
        whh_ref = layer_refs[3 * layer + 1]
        b_ref = layer_refs[3 * layer + 2]

        src = x_ref[...] if layer == 0 else seq_scr[...]          # (T*B, in)
        # Hoisted input projection + summed biases for BOTH directions and all
        # timesteps in one fat MXU matmul (removed from the serial recurrence).
        xp_scr[...] = (
            jnp.dot(src, wih_ref[...], preferred_element_type=jnp.float32)
            + b_ref[...]
        )
        whh = whh_ref[...]                                        # (2H, 8H)

        h = jnp.zeros((B, 2 * Hh), jnp.float32)                   # [h_fwd | h_bwd]
        c_f = jnp.zeros((B, Hh), jnp.float32)
        c_b = jnp.zeros((B, Hh), jnp.float32)

        for t in range(T):                                        # fully unrolled
            rt = T - 1 - t                                        # backward time index
            x_f = xp_scr[t * B:(t + 1) * B, 0:G]                  # fwd proj @ time t
            x_b = xp_scr[rt * B:(rt + 1) * B, G:2 * G]            # bwd proj @ time rt
            if t == 0:
                g_f, g_b = x_f, x_b                               # h == 0: skip matmul
            else:
                # Single fattened recurrent matmul for both directions.
                hh = jnp.dot(h, whh, preferred_element_type=jnp.float32)  # (B, 8H)
                g_f = x_f + hh[:, 0:G]
                g_b = x_b + hh[:, G:2 * G]
            h_f, c_f = lstm_cell(g_f, c_f)
            h_b, c_b = lstm_cell(g_b, c_b)
            h = jnp.concatenate([h_f, h_b], axis=-1)

            if not last:
                # Bidirectional layer output: fwd state belongs to time t,
                # bwd state to time rt.  Stored time-major for the next layer.
                seq_scr[t * B:(t + 1) * B, 0:Hh] = h_f
                seq_scr[rt * B:(rt + 1) * B, Hh:2 * Hh] = h_b
            else:
                # Heads only need timesteps 1 and T-1 of the final layer.
                if t == 1:
                    hf1 = h_f
                if t == T - 1:
                    hfT = h_f
                if rt == 1:
                    hb1 = h_b
                if rt == T - 1:
                    hbT = h_b

    h1 = jnp.concatenate([hf1, hb1], axis=-1)   # LSTM output at time 1
    hT = jnp.concatenate([hfT, hbT], axis=-1)   # LSTM output at time T-1
    root_ref[...] = (
        jnp.dot(h1, w_root_ref[...], preferred_element_type=jnp.float32)
        + b_root_ref[...]
    )
    chord_ref[...] = (
        jnp.dot(hT, w_chord_ref[...], preferred_element_type=jnp.float32)
        + b_chord_ref[...]
    )
    dur_ref[...] = (
        jnp.dot(hT, w_dur_ref[...], preferred_element_type=jnp.float32)
        + b_dur_ref[...]
    )


# ----------------------------------------------------------------------------
# Wrapper
# ----------------------------------------------------------------------------
def _fuse_lstm_params(lstm_layers):
    """Pack per-layer fwd/bwd weights for the fused kernel."""
    packed = []
    for layer in lstm_layers:
        wih_f, whh_f, b_f = layer["fwd"]
        wih_b, whh_b, b_b = layer["bwd"]
        wih = jnp.concatenate([wih_f, wih_b], axis=1)              # (in, 8H)
        zeros = jnp.zeros_like(whh_f)
        whh = jnp.concatenate(                                     # block-diag (2H, 8H)
            [jnp.concatenate([whh_f, zeros], axis=1),
             jnp.concatenate([zeros, whh_b], axis=1)], axis=0)
        bias = jnp.concatenate([b_f, b_b], axis=1)                 # (1, 8H)
        packed += [wih, whh, bias]
    return packed


@jax.jit
def chord_network_full_forward(root, duration, chord, params):
    """Reproduces Chord_Network_Full.forward:
    returns (FC_root(x)[:, 1, :], FC_chord(x)[:, -1, :], FC_duration(x)[:, -1, :])."""
    B, T = root.shape
    assert T >= 2, "module indexes x[:, 1, :], needs T >= 2"

    # Embedding gathers (pure index glue).  Indices are transposed (cheap int
    # transpose) so the embedded sequence comes out time-major directly and no
    # float-sequence transpose is ever materialized.
    # TODO(synk): the nn.Embedding gathers stay in XLA (jnp.take); an in-kernel
    # one-hot-matmul gather would fold them into the fused kernel too.
    d_emb = jnp.take(params["duration_embedding"], duration.T, axis=0)
    r_emb = jnp.take(params["root_embedding"], root.T, axis=0)
    c_emb = jnp.take(params["chord_embedding"], chord.T, axis=0)
    x = jnp.concatenate([d_emb, r_emb, c_emb], axis=-1).astype(jnp.float32)  # (T,B,3E)
    x2d = x.reshape(T * B, x.shape[-1])                                      # (T*B,3E)

    fused = _fuse_lstm_params(params["lstm"])
    head = [params["fc_root_w"], params["fc_root_b"],
            params["fc_chord_w"], params["fc_chord_b"],
            params["fc_duration_w"], params["fc_duration_b"]]
    num_layers = len(params["lstm"])

    kernel = functools.partial(_fused_chord_kernel, num_layers=num_layers, T=T, B=B)
    out_shape = (
        jax.ShapeDtypeStruct((B, params["fc_root_w"].shape[1]), jnp.float32),
        jax.ShapeDtypeStruct((B, params["fc_chord_w"].shape[1]), jnp.float32),
        jax.ShapeDtypeStruct((B, params["fc_duration_w"].shape[1]), jnp.float32),
    )
    n_in = 1 + len(fused) + len(head)
    return pl.pallas_call(
        kernel,
        out_shape=out_shape,
        in_specs=[_VMEM] * n_in,
        out_specs=(_VMEM, _VMEM, _VMEM),
        scratch_shapes=[
            pltpu.VMEM((T * B, 8 * H), jnp.float32),   # hoisted input projections
            pltpu.VMEM((T * B, 2 * H), jnp.float32),   # inter-layer sequence
        ],
    )(x2d, *fused, *head)


# ----------------------------------------------------------------------------
# Pure-JAX reference (mirrors the PyTorch module) for a correctness check
# ----------------------------------------------------------------------------
def _reference_forward(root, duration, chord, params):
    Hh = HIDDEN_SIZE_CHORD
    d_emb = jnp.take(params["duration_embedding"], duration, axis=0)
    r_emb = jnp.take(params["root_embedding"], root, axis=0)
    c_emb = jnp.take(params["chord_embedding"], chord, axis=0)
    seq = jnp.concatenate([d_emb, r_emb, c_emb], axis=-1).astype(jnp.float32)  # (B,T,3E)
    for layer in params["lstm"]:
        outs = []
        for name, rev in (("fwd", False), ("bwd", True)):
            wih, whh, b = layer[name]
            xs = seq[:, ::-1, :] if rev else seq
            Bb, Tt, _ = xs.shape
            h = jnp.zeros((Bb, Hh), jnp.float32)
            c = jnp.zeros((Bb, Hh), jnp.float32)
            hs = []
            for t in range(Tt):
                g = xs[:, t, :] @ wih + h @ whh + b
                i = jax.nn.sigmoid(g[:, 0:Hh])
                f = jax.nn.sigmoid(g[:, Hh:2 * Hh])
                gg = jnp.tanh(g[:, 2 * Hh:3 * Hh])
                o = jax.nn.sigmoid(g[:, 3 * Hh:4 * Hh])
                c = f * c + i * gg
                h = o * jnp.tanh(c)
                hs.append(h)
            out = jnp.stack(hs, axis=1)
            outs.append(out[:, ::-1, :] if rev else out)
        seq = jnp.concatenate(outs, axis=-1)
    x_root = seq[:, 1, :] @ params["fc_root_w"] + params["fc_root_b"]
    x_chord = seq[:, -1, :] @ params["fc_chord_w"] + params["fc_chord_b"]
    x_dur = seq[:, -1, :] @ params["fc_duration_w"] + params["fc_duration_b"]
    return x_root, x_chord, x_dur


# ----------------------------------------------------------------------------
# Deterministic parameter construction
# ----------------------------------------------------------------------------
def init_params(key):
    keys = iter(jax.random.split(key, 64))

    def unif(shape, bound):
        return jax.random.uniform(next(keys), shape, jnp.float32, -bound, bound)

    k_lstm = 1.0 / jnp.sqrt(float(H))

    lstm_layers = []
    in_f = LSTM_INPUT
    for _ in range(LSTM_LAYERS):
        layer = {}
        for d in ("fwd", "bwd"):
            wih = unif((in_f, 4 * H), k_lstm)        # weight_ih^T
            whh = unif((H, 4 * H), k_lstm)           # weight_hh^T
            b = unif((1, 4 * H), k_lstm) + unif((1, 4 * H), k_lstm)  # b_ih + b_hh
            layer[d] = (wih, whh, b)
        lstm_layers.append(layer)
        in_f = 2 * H                                 # next layer consumes concat(fwd, bwd)

    def linear(in_f, out_f):
        k = 1.0 / jnp.sqrt(float(in_f))
        return unif((in_f, out_f), k), unif((1, out_f), k)

    fc_root_w, fc_root_b = linear(2 * H, ROOT_VOCAB_SIZE_CHORD)
    fc_chord_w, fc_chord_b = linear(2 * H, CHORD_VOCAB_SIZE_CHORD)
    fc_dur_w, fc_dur_b = linear(2 * H, DURATION_VOCAB_SIZE_BASS)

    return {
        # NB: in the source, duration_embedding is re-assigned and ends up with
        # vocab EMBED_SIZE_CHORD, same as chord_embedding.
        "duration_embedding": unif((EMBED_SIZE_CHORD, EMBED_SIZE), 1.0),
        "root_embedding": unif((ROOT_VOCAB_SIZE_CHORD, EMBED_SIZE), 1.0),
        "chord_embedding": unif((EMBED_SIZE_CHORD, EMBED_SIZE), 1.0),
        "lstm": lstm_layers,
        "fc_root_w": fc_root_w, "fc_root_b": fc_root_b,
        "fc_chord_w": fc_chord_w, "fc_chord_b": fc_chord_b,
        "fc_duration_w": fc_dur_w, "fc_duration_b": fc_dur_b,
    }


# ----------------------------------------------------------------------------
if __name__ == "__main__":
    B, T = 2, 8
    key = jax.random.PRNGKey(0)
    k_p, k_r, k_d, k_c = jax.random.split(key, 4)

    params = init_params(k_p)
    root = jax.random.randint(k_r, (B, T), 0, ROOT_VOCAB_SIZE_CHORD, jnp.int32)
    duration = jax.random.randint(k_d, (B, T), 0, EMBED_SIZE_CHORD, jnp.int32)
    chord = jax.random.randint(k_c, (B, T), 0, EMBED_SIZE_CHORD, jnp.int32)

    x_root, x_chord, x_duration = chord_network_full_forward(root, duration, chord, params)
    jax.block_until_ready((x_root, x_chord, x_duration))

    assert x_root.shape == (B, ROOT_VOCAB_SIZE_CHORD)
    assert x_chord.shape == (B, CHORD_VOCAB_SIZE_CHORD)
    assert x_duration.shape == (B, DURATION_VOCAB_SIZE_BASS)

    ref = _reference_forward(root, duration, chord, params)
    for got, want in zip((x_root, x_chord, x_duration), ref):
        err = float(jnp.max(jnp.abs(got - want)))
        assert jnp.allclose(got, want, rtol=2e-3, atol=2e-3), f"max abs err {err}"

    print("KERNEL_OK")
</pallas_src>

<mosaic_0001>
module attributes {stable_mosaic.version = 11 : i64} {
  func.func @_fused_chord_kernel(%arg0: memref<16x48xf32, #tpu.memory_space<vmem>>, %arg1: memref<48x256xf32, #tpu.memory_space<vmem>>, %arg2: memref<64x256xf32, #tpu.memory_space<vmem>>, %arg3: memref<1x256xf32, #tpu.memory_space<vmem>>, %arg4: memref<64x256xf32, #tpu.memory_space<vmem>>, %arg5: memref<64x256xf32, #tpu.memory_space<vmem>>, %arg6: memref<1x256xf32, #tpu.memory_space<vmem>>, %arg7: memref<64x13xf32, #tpu.memory_space<vmem>>, %arg8: memref<1x13xf32, #tpu.memory_space<vmem>>, %arg9: memref<64x7xf32, #tpu.memory_space<vmem>>, %arg10: memref<1x7xf32, #tpu.memory_space<vmem>>, %arg11: memref<64x9xf32, #tpu.memory_space<vmem>>, %arg12: memref<1x9xf32, #tpu.memory_space<vmem>>, %arg13: memref<2x13xf32, #tpu.memory_space<vmem>>, %arg14: memref<2x7xf32, #tpu.memory_space<vmem>>, %arg15: memref<2x9xf32, #tpu.memory_space<vmem>>, %arg16: memref<16x256xf32, #tpu.memory_space<vmem>>, %arg17: memref<16x64xf32, #tpu.memory_space<vmem>>) attributes {dimension_semantics = [], scalar_prefetch = 0 : i64, scratch_operands = 2 : i64, tpu.core_type = #tpu.core_type<tc>} {
    %c0 = arith.constant 0 : index
    %c0_0 = arith.constant 0 : index
    %0 = vector.load %arg0[%c0, %c0_0] : memref<16x48xf32, #tpu.memory_space<vmem>>, vector<16x48xf32>
    %c0_1 = arith.constant 0 : index
    %c0_2 = arith.constant 0 : index
    %1 = vector.load %arg1[%c0_1, %c0_2] : memref<48x256xf32, #tpu.memory_space<vmem>>, vector<48x256xf32>
    %cst = arith.constant dense<0.000000e+00> : vector<16x256xf32>
    %2 = tpu.matmul %0, %1, %cst {dimension_numbers = #tpu.dot_dimension_numbers<[1], [0], [0], [1], [0, 0, 1, 1], [], []>, precision = #tpu.contract_precision<fp32>} : vector<16x48xf32>, vector<48x256xf32>, vector<16x256xf32> -> vector<16x256xf32>
    %c0_3 = arith.constant 0 : index
    %c0_4 = arith.constant 0 : index
    %3 = vector.load %arg3[%c0_3, %c0_4] : memref<1x256xf32, #tpu.memory_space<vmem>>, vector<1x256xf32>
    %4 = vector.broadcast %3 : vector<1x256xf32> to vector<16x256xf32>
    %5 = arith.addf %2, %4 : vector<16x256xf32>
    %c0_5 = arith.constant 0 : index
    %c0_6 = arith.constant 0 : index
    %6 = vector.load %arg16[%c0_5, %c0_6] : memref<16x256xf32, #tpu.memory_space<vmem>>, vector<16x256xf32>
    tpu.vector_store %arg16[%c0_5, %c0_6], %5 {strides = array<i32>} : memref<16x256xf32, #tpu.memory_space<vmem>>, vector<16x256xf32>,
    %c0_7 = arith.constant 0 : index
    %c0_8 = arith.constant 0 : index
    %7 = vector.load %arg2[%c0_7, %c0_8] : memref<64x256xf32, #tpu.memory_space<vmem>>, vector<64x256xf32>
    %cst_9 = arith.constant 0.000000e+00 : f32
    %8 = vector.broadcast %cst_9 : f32 to vector<2x32xf32>
    %cst_10 = arith.constant 0.000000e+00 : f32
    %9 = vector.broadcast %cst_10 : f32 to vector<2x32xf32>
    %c0_11 = arith.constant 0 : index
    %c0_12 = arith.constant 0 : index
    %10 = vector.load %arg16[%c0_11, %c0_12] : memref<16x256xf32, #tpu.memory_space<vmem>>, vector<2x128xf32>
    %c14 = arith.constant 14 : index
    %c128 = arith.constant 128 : index
    %11 = vector.load %arg16[%c14, %c128] : memref<16x256xf32, #tpu.memory_space<vmem>>, vector<2x128xf32>
    %12 = vector.extract_strided_slice %10 {offsets = [0, 0], sizes = [2, 32], strides = [1, 1]} : vector<2x128xf32> to vector<2x32xf32>
    %13 = arith.negf %12 : vector<2x32xf32>
    %14 = math.exp %13 : vector<2x32xf32>
    %cst_13 = arith.constant 1.000000e+00 : f32
    %15 = vector.broadcast %cst_13 : f32 to vector<2x32xf32>
    %16 = arith.addf %15, %14 : vector<2x32xf32>
    %17 = arith.divf %15, %16 : vector<2x32xf32>
    %18 = vector.extract_strided_slice %10 {offsets = [0, 32], sizes = [2, 32], strides = [1, 1]} : vector<2x128xf32> to vector<2x32xf32>
    %19 = arith.negf %18 : vector<2x32xf32>
    %20 = math.exp %19 : vector<2x32xf32>
    %cst_14 = arith.constant 1.000000e+00 : f32
    %21 = vector.broadcast %cst_14 : f32 to vector<2x32xf32>
    %22 = arith.addf %21, %20 : vector<2x32xf32>
    %23 = arith.divf %21, %22 : vector<2x32xf32>
    %24 = vector.extract_strided_slice %10 {offsets = [0, 64], sizes = [2, 32], strides = [1, 1]} : vector<2x128xf32> to vector<2x32xf32>
    %25 = math.tanh %24 : vector<2x32xf32>
    %26 = vector.extract_strided_slice %10 {offsets = [0, 96], sizes = [2, 32], strides = [1, 1]} : vector<2x128xf32> to vector<2x32xf32>
    %27 = arith.negf %26 : vector<2x32xf32>
    %28 = math.exp %27 : vector<2x32xf32>
    %cst_15 = arith.constant 1.000000e+00 : f32
    %29 = vector.broadcast %cst_15 : f32 to vector<2x32xf32>
    %30 = arith.addf %29, %28 : vector<2x32xf32>
    %31 = arith.divf %29, %30 : vector<2x32xf32>
    %32 = arith.mulf %23, %8 : vector<2x32xf32>
    %33 = arith.mulf %17, %25 : vector<2x32xf32>
    %34 = arith.addf %32, %33 : vector<2x32xf32>
    %35 = math.tanh %34 : vector<2x32xf32>
    %36 = arith.mulf %31, %35 : vector<2x32xf32>
    %37 = vector.extract_strided_slice %11 {offsets = [0, 0], sizes = [2, 32], strides = [1, 1]} : vector<2x128xf32> to vector<2x32xf32>
    %38 = arith.negf %37 : vector<2x32xf32>
    %39 = math.exp %38 : vector<2x32xf32>
    %cst_16 = arith.constant 1.000000e+00 : f32
    %40 = vector.broadcast %cst_16 : f32 to vector<2x32xf32>
    %41 = arith.addf %40, %39 : vector<2x32xf32>
    %42 = arith.divf %40, %41 : vector<2x32xf32>
    %43 = vector.extract_strided_slice %11 {offsets = [0, 32], sizes = [2, 32], strides = [1, 1]} : vector<2x128xf32> to vector<2x32xf32>
    %44 = arith.negf %43 : vector<2x32xf32>
    %45 = math.exp %44 : vector<2x32xf32>
    %cst_17 = arith.constant 1.000000e+00 : f32
    %46 = vector.broadcast %cst_17 : f32 to vector<2x32xf32>
    %47 = arith.addf %46, %45 : vector<2x32xf32>
    %48 = arith.divf %46, %47 : vector<2x32xf32>
    %49 = vector.extract_strided_slice %11 {offsets = [0, 64], sizes = [2, 32], strides = [1, 1]} : vector<2x128xf32> to vector<2x32xf32>
    %50 = math.tanh %49 : vector<2x32xf32>
    %51 = vector.extract_strided_slice %11 {offsets = [0, 96], sizes = [2, 32], strides = [1, 1]} : vector<2x128xf32> to vector<2x32xf32>
    %52 = arith.negf %51 : vector<2x32xf32>
    %53 = math.exp %52 : vector<2x32xf32>
    %cst_18 = arith.constant 1.000000e+00 : f32
    %54 = vector.broadcast %cst_18 : f32 to vector<2x32xf32>
    %55 = arith.addf %54, %53 : vector<2x32xf32>
    %56 = arith.divf %54, %55 : vector<2x32xf32>
    %57 = arith.mulf %48, %9 : vector<2x32xf32>
    %58 = arith.mulf %42, %50 : vector<2x32xf32>
    %59 = arith.addf %57, %58 : vector<2x32xf32>
    %60 = math.tanh %59 : vector<2x32xf32>
    %61 = arith.mulf %56, %60 : vector<2x32xf32>
    %62 = tpu.concatenate %36, %61 in 1 : vector<2x32xf32>, vector<2x32xf32> -> vector<2x64xf32>
    %c0_19 = arith.constant 0 : index
    %c0_20 = arith.constant 0 : index
    %63 = vector.load %arg17[%c0_19, %c0_20] : memref<16x64xf32, #tpu.memory_space<vmem>>, vector<2x32xf32>
    tpu.vector_store %arg17[%c0_19, %c0_20], %36 {strides = array<i32>} : memref<16x64xf32, #tpu.memory_space<vmem>>, vector<2x32xf32>,
    %c14_21 = arith.constant 14 : index
    %c32 = arith.constant 32 : index
    %64 = vector.load %arg17[%c14_21, %c32] : memref<16x64xf32, #tpu.memory_space<vmem>>, vector<2x32xf32>
    tpu.vector_store %arg17[%c14_21, %c32], %61 {strides = array<i32>} : memref<16x64xf32, #tpu.memory_space<vmem>>, vector<2x32xf32>,
    %c2 = arith.constant 2 : index
    %c0_22 = arith.constant 0 : index
    %65 = vector.load %arg16[%c2, %c0_22] : memref<16x256xf32, #tpu.memory_space<vmem>>, vector<2x128xf32>
    %c12 = arith.constant 12 : index
    %c128_23 = arith.constant 128 : index
    %66 = vector.load %arg16[%c12, %c128_23] : memref<16x256xf32, #tpu.memory_space<vmem>>, vector<2x128xf32>
    %cst_24 = arith.constant dense<0.000000e+00> : vector<2x256xf32>
    %67 = tpu.matmul %62, %7, %cst_24 {dimension_numbers = #tpu.dot_dimension_numbers<[1], [0], [0], [1], [0, 0, 1, 1], [], []>, precision = #tpu.contract_precision<fp32>} : vector<2x64xf32>, vector<64x256xf32>, vector<2x256xf32> -> vector<2x256xf32>
    %68 = vector.extract_strided_slice %67 {offsets = [0, 0], sizes = [2, 128], strides = [1, 1]} : vector<2x256xf32> to vector<2x128xf32>
    %69 = arith.addf %65, %68 : vector<2x128xf32>
    %70 = vector.extract_strided_slice %67 {offsets = [0, 128], sizes = [2, 128], strides = [1, 1]} : vector<2x256xf32> to vector<2x128xf32>
    %71 = arith.addf %66, %70 : vector<2x128xf32>
    %72 = vector.extract_strided_slice %69 {offsets = [0, 0], sizes = [2, 32], strides = [1, 1]} : vector<2x128xf32> to vector<2x32xf32>
    %73 = arith.negf %72 : vector<2x32xf32>
    %74 = math.exp %73 : vector<2x32xf32>
    %cst_25 = arith.constant 1.000000e+00 : f32
    %75 = vector.broadcast %cst_25 : f32 to vector<2x32xf32>
    %76 = arith.addf %75, %74 : vector<2x32xf32>
    %77 = arith.divf %75, %76 : vector<2x32xf32>
    %78 = vector.extract_strided_slice %69 {offsets = [0, 32], sizes = [2, 32], strides = [1, 1]} : vector<2x128xf32> to vector<2x32xf32>
    %79 = arith.negf %78 : vector<2x32xf32>
    %80 = math.exp %79 : vector<2x32xf32>
    %cst_26 = arith.constant 1.000000e+00 : f32
    %81 = vector.broadcast %cst_26 : f32 to vector<2x32xf32>
    %82 = arith.addf %81, %80 : vector<2x32xf32>
    %83 = arith.divf %81, %82 : vector<2x32xf32>
    %84 = vector.extract_strided_slice %69 {offsets = [0, 64], sizes = [2, 32], strides = [1, 1]} : vector<2x128xf32> to vector<2x32xf32>
    %85 = math.tanh %84 : vector<2x32xf32>
    %86 = vector.extract_strided_slice %69 {offsets = [0, 96], sizes = [2, 32], strides = [1, 1]} : vector<2x128xf32> to vector<2x32xf32>
    %87 = arith.negf %86 : vector<2x32xf32>
    %88 = math.exp %87 : vector<2x32xf32>
    %cst_27 = arith.constant 1.000000e+00 : f32
    %89 = vector.broadcast %cst_27 : f32 to vector<2x32xf32>
    %90 = arith.addf %89, %88 : vector<2x32xf32>
    %91 = arith.divf %89, %90 : vector<2x32xf32>
    %92 = arith.mulf %83, %34 : vector<2x32xf32>
    %93 = arith.mulf %77, %85 : vector<2x32xf32>
    %94 = arith.addf %92, %93 : vector<2x32xf32>
    %95 = math.tanh %94 : vector<2x32xf32>
    %96 = arith.mulf %91, %95 : vector<2x32xf32>
    %97 = vector.extract_strided_slice %71 {offsets = [0, 0], sizes = [2, 32], strides = [1, 1]} : vector<2x128xf32> to vector<2x32xf32>
    %98 = arith.negf %97 : vector<2x32xf32>
    %99 = math.exp %98 : vector<2x32xf32>
    %cst_28 = arith.constant 1.000000e+00 : f32
    %100 = vector.broadcast %cst_28 : f32 to vector<2x32xf32>
    %101 = arith.addf %100, %99 : vector<2x32xf32>
    %102 = arith.divf %100, %101 : vector<2x32xf32>
    %103 = vector.extract_strided_slice %71 {offsets = [0, 32], sizes = [2, 32], strides = [1, 1]} : vector<2x128xf32> to vector<2x32xf32>
    %104 = arith.negf %103 : vector<2x32xf32>
    %105 = math.exp %104 : vector<2x32xf32>
    %cst_29 = arith.constant 1.000000e+00 : f32
    %106 = vector.broadcast %cst_29 : f32 to vector<2x32xf32>
    %107 = arith.addf %106, %105 : vector<2x32xf32>
    %108 = arith.divf %106, %107 : vector<2x32xf32>
    %109 = vector.extract_strided_slice %71 {offsets = [0, 64], sizes = [2, 32], strides = [1, 1]} : vector<2x128xf32> to vector<2x32xf32>
    %110 = math.tanh %109 : vector<2x32xf32>
    %111 = vector.extract_strided_slice %71 {offsets = [0, 96], sizes = [2, 32], strides = [1, 1]} : vector<2x128xf32> to vector<2x32xf32>
    %112 = arith.negf %111 : vector<2x32xf32>
    %113 = math.exp %112 : vector<2x32xf32>
    %cst_30 = arith.constant 1.000000e+00 : f32
    %114 = vector.broadcast %cst_30 : f32 to vector<2x32xf32>
    %115 = arith.addf %114, %113 : vector<2x32xf32>
    %116 = arith.divf %114, %115 : vector<2x32xf32>
    %117 = arith.mulf %108, %59 : vector<2x32xf32>
    %118 = arith.mulf %102, %110 : vector<2x32xf32>
    %119 = arith.addf %117, %118 : vector<2x32xf32>
    %120 = math.tanh %119 : vector<2x32xf32>
    %121 = arith.mulf %116, %120 : vector<2x32xf32>
    %122 = tpu.concatenate %96, %121 in 1 : vector<2x32xf32>, vector<2x32xf32> -> vector<2x64xf32>
    %c2_31 = arith.constant 2 : index
    %c0_32 = arith.constant 0 : index
    %123 = vector.load %arg17[%c2_31, %c0_32] : memref<16x64xf32, #tpu.memory_space<vmem>>, vector<2x32xf32>
    tpu.vector_store %arg17[%c2_31, %c0_32], %96 {strides = array<i32>} : memref<16x64xf32, #tpu.memory_space<vmem>>, vector<2x32xf32>,
    %c12_33 = arith.constant 12 : index
    %c32_34 = arith.constant 32 : index
    %124 = vector.load %arg17[%c12_33, %c32_34] : memref<16x64xf32, #tpu.memory_space<vmem>>, vector<2x32xf32>
    tpu.vector_store %arg17[%c12_33, %c32_34], %121 {strides = array<i32>} : memref<16x64xf32, #tpu.memory_space<vmem>>, vector<2x32xf32>,
    %c4 = arith.constant 4 : index
    %c0_35 = arith.constant 0 : index
    %125 = vector.load %arg16[%c4, %c0_35] : memref<16x256xf32, #tpu.memory_space<vmem>>, vector<2x128xf32>
    %c10 = arith.constant 10 : index
    %c128_36 = arith.constant 128 : index
    %126 = vector.load %arg16[%c10, %c128_36] : memref<16x256xf32, #tpu.memory_space<vmem>>, vector<2x128xf32>
    %cst_37 = arith.constant dense<0.000000e+00> : vector<2x256xf32>
    %127 = tpu.matmul %122, %7, %cst_37 {dimension_numbers = #tpu.dot_dimension_numbers<[1], [0], [0], [1], [0, 0, 1, 1], [], []>, precision = #tpu.contract_precision<fp32>} : vector<2x64xf32>, vector<64x256xf32>, vector<2x256xf32> -> vector<2x256xf32>
    %128 = vector.extract_strided_slice %127 {offsets = [0, 0], sizes = [2, 128], strides = [1, 1]} : vector<2x256xf32> to vector<2x128xf32>
    %129 = arith.addf %125, %128 : vector<2x128xf32>
    %130 = vector.extract_strided_slice %127 {offsets = [0, 128], sizes = [2, 128], strides = [1, 1]} : vector<2x256xf32> to vector<2x128xf32>
    %131 = arith.addf %126, %130 : vector<2x128xf32>
    %132 = vector.extract_strided_slice %129 {offsets = [0, 0], sizes = [2, 32], strides = [1, 1]} : vector<2x128xf32> to vector<2x32xf32>
    %133 = arith.negf %132 : vector<2x32xf32>
    %134 = math.exp %133 : vector<2x32xf32>
    %cst_38 = arith.constant 1.000000e+00 : f32
    %135 = vector.broadcast %cst_38 : f32 to vector<2x32xf32>
    %136 = arith.addf %135, %134 : vector<2x32xf32>
    %137 = arith.divf %135, %136 : vector<2x32xf32>
    %138 = vector.extract_strided_slice %129 {offsets = [0, 32], sizes = [2, 32], strides = [1, 1]} : vector<2x128xf32> to vector<2x32xf32>
    %139 = arith.negf %138 : vector<2x32xf32>
    %140 = math.exp %139 : vector<2x32xf32>
    %cst_39 = arith.constant 1.000000e+00 : f32
    %141 = vector.broadcast %cst_39 : f32 to vector<2x32xf32>
    %142 = arith.addf %141, %140 : vector<2x32xf32>
    %143 = arith.divf %141, %142 : vector<2x32xf32>
    %144 = vector.extract_strided_slice %129 {offsets = [0, 64], sizes = [2, 32], strides = [1, 1]} : vector<2x128xf32> to vector<2x32xf32>
    %145 = math.tanh %144 : vector<2x32xf32>
    %146 = vector.extract_strided_slice %129 {offsets = [0, 96], sizes = [2, 32], strides = [1, 1]} : vector<2x128xf32> to vector<2x32xf32>
    %147 = arith.negf %146 : vector<2x32xf32>
    %148 = math.exp %147 : vector<2x32xf32>
    %cst_40 = arith.constant 1.000000e+00 : f32
    %149 = vector.broadcast %cst_40 : f32 to vector<2x32xf32>
    %150 = arith.addf %149, %148 : vector<2x32xf32>
    %151 = arith.divf %149, %150 : vector<2x32xf32>
    %152 = arith.mulf %143, %94 : vector<2x32xf32>
    %153 = arith.mulf %137, %145 : vector<2x32xf32>
    %154 = arith.addf %152, %153 : vector<2x32xf32>
    %155 = math.tanh %154 : vector<2x32xf32>
    %156 = arith.mulf %151, %155 : vector<2x32xf32>
    %157 = vector.extract_strided_slice %131 {offsets = [0, 0], sizes = [2, 32], strides = [1, 1]} : vector<2x128xf32> to vector<2x32xf32>
    %158 = arith.negf %157 : vector<2x32xf32>
    %159 = math.exp %158 : vector<2x32xf32>
    %cst_41 = arith.constant 1.000000e+00 : f32
    %160 = vector.broadcast %cst_41 : f32 to vector<2x32xf32>
    %161 = arith.addf %160, %159 : vector<2x32xf32>
    %162 = arith.divf %160, %161 : vector<2x32xf32>
    %163 = vector.extract_strided_slice %131 {offsets = [0, 32], sizes = [2, 32], strides = [1, 1]} : vector<2x128xf32> to vector<2x32xf32>
    %164 = arith.negf %163 : vector<2x32xf32>
    %165 = math.exp %164 : vector<2x32xf32>
    %cst_42 = arith.constant 1.000000e+00 : f32
    %166 = vector.broadcast %cst_42 : f32 to vector<2x32xf32>
    %167 = arith.addf %166, %165 : vector<2x32xf32>
    %168 = arith.divf %166, %167 : vector<2x32xf32>
    %169 = vector.extract_strided_slice %131 {offsets = [0, 64], sizes = [2, 32], strides = [1, 1]} : vector<2x128xf32> to vector<2x32xf32>
    %170 = math.tanh %169 : vector<2x32xf32>
    %171 = vector.extract_strided_slice %131 {offsets = [0, 96], sizes = [2, 32], strides = [1, 1]} : vector<2x128xf32> to vector<2x32xf32>
    %172 = arith.negf %171 : vector<2x32xf32>
    %173 = math.exp %172 : vector<2x32xf32>
    %cst_43 = arith.constant 1.000000e+00 : f32
    %174 = vector.broadcast %cst_43 : f32 to vector<2x32xf32>
    %175 = arith.addf %174, %173 : vector<2x32xf32>
    %176 = arith.divf %174, %175 : vector<2x32xf32>
    %177 = arith.mulf %168, %119 : vector<2x32xf32>
    %178 = arith.mulf %162, %170 : vector<2x32xf32>
    %179 = arith.addf %177, %178 : vector<2x32xf32>
    %180 = math.tanh %179 : vector<2x32xf32>
    %181 = arith.mulf %176, %180 : vector<2x32xf32>
    %182 = tpu.concatenate %156, %181 in 1 : vector<2x32xf32>, vector<2x32xf32> -> vector<2x64xf32>
    %c4_44 = arith.constant 4 : index
    %c0_45 = arith.constant 0 : index
    %183 = vector.load %arg17[%c4_44, %c0_45] : memref<16x64xf32, #tpu.memory_space<vmem>>, vector<2x32xf32>
    tpu.vector_store %arg17[%c4_44, %c0_45], %156 {strides = array<i32>} : memref<16x64xf32, #tpu.memory_space<vmem>>, vector<2x32xf32>,
    %c10_46 = arith.constant 10 : index
    %c32_47 = arith.constant 32 : index
    %184 = vector.load %arg17[%c10_46, %c32_47] : memref<16x64xf32, #tpu.memory_space<vmem>>, vector<2x32xf32>
    tpu.vector_store %arg17[%c10_46, %c32_47], %181 {strides = array<i32>} : memref<16x64xf32, #tpu.memory_space<vmem>>, vector<2x32xf32>,
    %c6 = arith.constant 6 : index
    %c0_48 = arith.constant 0 : index
    %185 = vector.load %arg16[%c6, %c0_48] : memref<16x256xf32, #tpu.memory_space<vmem>>, vector<2x128xf32>
    %c8 = arith.constant 8 : index
    %c128_49 = arith.constant 128 : index
    %186 = vector.load %arg16[%c8, %c128_49] : memref<16x256xf32, #tpu.memory_space<vmem>>, vector<2x128xf32>
    %cst_50 = arith.constant dense<0.000000e+00> : vector<2x256xf32>
    %187 = tpu.matmul %182, %7, %cst_50 {dimension_numbers = #tpu.dot_dimension_numbers<[1], [0], [0], [1], [0, 0, 1, 1], [], []>, precision = #tpu.contract_precision<fp32>} : vector<2x64xf32>, vector<64x256xf32>, vector<2x256xf32> -> vector<2x256xf32>
    %188 = vector.extract_strided_slice %187 {offsets = [0, 0], sizes = [2, 128], strides = [1, 1]} : vector<2x256xf32> to vector<2x128xf32>
    %189 = arith.addf %185, %188 : vector<2x128xf32>
    %190 = vector.extract_strided_slice %187 {offsets = [0, 128], sizes = [2, 128], strides = [1, 1]} : vector<2x256xf32> to vector<2x128xf32>
    %191 = arith.addf %186, %190 : vector<2x128xf32>
    %192 = vector.extract_strided_slice %189 {offsets = [0, 0], sizes = [2, 32], strides = [1, 1]} : vector<2x128xf32> to vector<2x32xf32>
    %193 = arith.negf %192 : vector<2x32xf32>
    %194 = math.exp %193 : vector<2x32xf32>
    %cst_51 = arith.constant 1.000000e+00 : f32
    %195 = vector.broadcast %cst_51 : f32 to vector<2x32xf32>
    %196 = arith.addf %195, %194 : vector<2x32xf32>
    %197 = arith.divf %195, %196 : vector<2x32xf32>
    %198 = vector.extract_strided_slice %189 {offsets = [0, 32], sizes = [2, 32], strides = [1, 1]} : vector<2x128xf32> to vector<2x32xf32>
    %199 = arith.negf %198 : vector<2x32xf32>
    %200 = math.exp %199 : vector<2x32xf32>
    %cst_52 = arith.constant 1.000000e+00 : f32
    %201 = vector.broadcast %cst_52 : f32 to vector<2x32xf32>
    %202 = arith.addf %201, %200 : vector<2x32xf32>
    %203 = arith.divf %201, %202 : vector<2x32xf32>
    %204 = vector.extract_strided_slice %189 {offsets = [0, 64], sizes = [2, 32], strides = [1, 1]} : vector<2x128xf32> to vector<2x32xf32>
    %205 = math.tanh %204 : vector<2x32xf32>
    %206 = vector.extract_strided_slice %189 {offsets = [0, 96], sizes = [2, 32], strides = [1, 1]} : vector<2x128xf32> to vector<2x32xf32>
    %207 = arith.negf %206 : vector<2x32xf32>
    %208 = math.exp %207 : vector<2x32xf32>
    %cst_53 = arith.constant 1.000000e+00 : f32
    %209 = vector.broadcast %cst_53 : f32 to vector<2x32xf32>
    %210 = arith.addf %209, %208 : vector<2x32xf32>
    %211 = arith.divf %209, %210 : vector<2x32xf32>
    %212 = arith.mulf %203, %154 : vector<2x32xf32>
    %213 = arith.mulf %197, %205 : vector<2x32xf32>
    %214 = arith.addf %212, %213 : vector<2x32xf32>
    %215 = math.tanh %214 : vector<2x32xf32>
    %216 = arith.mulf %211, %215 : vector<2x32xf32>
    %217 = vector.extract_strided_slice %191 {offsets = [0, 0], sizes = [2, 32], strides = [1, 1]} : vector<2x128xf32> to vector<2x32xf32>
    %218 = arith.negf %217 : vector<2x32xf32>
    %219 = math.exp %218 : vector<2x32xf32>
    %cst_54 = arith.constant 1.000000e+00 : f32
    %220 = vector.broadcast %cst_54 : f32 to vector<2x32xf32>
    %221 = arith.addf %220, %219 : vector<2x32xf32>
    %222 = arith.divf %220, %221 : vector<2x32xf32>
    %223 = vector.extract_strided_slice %191 {offsets = [0, 32], sizes = [2, 32], strides = [1, 1]} : vector<2x128xf32> to vector<2x32xf32>
    %224 = arith.negf %223 : vector<2x32xf32>
    %225 = math.exp %224 : vector<2x32xf32>
    %cst_55 = arith.constant 1.000000e+00 : f32
    %226 = vector.broadcast %cst_55 : f32 to vector<2x32xf32>
    %227 = arith.addf %226, %225 : vector<2x32xf32>
    %228 = arith.divf %226, %227 : vector<2x32xf32>
    %229 = vector.extract_strided_slice %191 {offsets = [0, 64], sizes = [2, 32], strides = [1, 1]} : vector<2x128xf32> to vector<2x32xf32>
    %230 = math.tanh %229 : vector<2x32xf32>
    %231 = vector.extract_strided_slice %191 {offsets = [0, 96], sizes = [2, 32], strides = [1, 1]} : vector<2x128xf32> to vector<2x32xf32>
    %232 = arith.negf %231 : vector<2x32xf32>
    %233 = math.exp %232 : vector<2x32xf32>
    %cst_56 = arith.constant 1.000000e+00 : f32
    %234 = vector.broadcast %cst_56 : f32 to vector<2x32xf32>
    %235 = arith.addf %234, %233 : vector<2x32xf32>
    %236 = arith.divf %234, %235 : vector<2x32xf32>
    %237 = arith.mulf %228, %179 : vector<2x32xf32>
    %238 = arith.mulf %222, %230 : vector<2x32xf32>
    %239 = arith.addf %237, %238 : vector<2x32xf32>
    %240 = math.tanh %239 : vector<2x32xf32>
    %241 = arith.mulf %236, %240 : vector<2x32xf32>
    %242 = tpu.concatenate %216, %241 in 1 : vector<2x32xf32>, vector<2x32xf32> -> vector<2x64xf32>
    %c6_57 = arith.constant 6 : index
    %c0_58 = arith.constant 0 : index
    %243 = vector.load %arg17[%c6_57, %c0_58] : memref<16x64xf32, #tpu.memory_space<vmem>>, vector<2x32xf32>
    tpu.vector_store %arg17[%c6_57, %c0_58], %216 {strides = array<i32>} : memref<16x64xf32, #tpu.memory_space<vmem>>, vector<2x32xf32>,
    %c8_59 = arith.constant 8 : index
    %c32_60 = arith.constant 32 : index
    %244 = vector.load %arg17[%c8_59, %c32_60] : memref<16x64xf32, #tpu.memory_space<vmem>>, vector<2x32xf32>
    tpu.vector_store %arg17[%c8_59, %c32_60], %241 {strides = array<i32>} : memref<16x64xf32, #tpu.memory_space<vmem>>, vector<2x32xf32>,
    %c8_61 = arith.constant 8 : index
    %c0_62 = arith.constant 0 : index
    %245 = vector.load %arg16[%c8_61, %c0_62] : memref<16x256xf32, #tpu.memory_space<vmem>>, vector<2x128xf32>
    %c6_63 = arith.constant 6 : index
    %c128_64 = arith.constant 128 : index
    %246 = vector.load %arg16[%c6_63, %c128_64] : memref<16x256xf32, #tpu.memory_space<vmem>>, vector<2x128xf32>
    %cst_65 = arith.constant dense<0.000000e+00> : vector<2x256xf32>
    %247 = tpu.matmul %242, %7, %cst_65 {dimension_numbers = #tpu.dot_dimension_numbers<[1], [0], [0], [1], [0, 0, 1, 1], [], []>, precision = #tpu.contract_precision<fp32>} : vector<2x64xf32>, vector<64x256xf32>, vector<2x256xf32> -> vector<2x256xf32>
    %248 = vector.extract_strided_slice %247 {offsets = [0, 0], sizes = [2, 128], strides = [1, 1]} : vector<2x256xf32> to vector<2x128xf32>
    %249 = arith.addf %245, %248 : vector<2x128xf32>
    %250 = vector.extract_strided_slice %247 {offsets = [0, 128], sizes = [2, 128], strides = [1, 1]} : vector<2x256xf32> to vector<2x128xf32>
    %251 = arith.addf %246, %250 : vector<2x128xf32>
    %252 = vector.extract_strided_slice %249 {offsets = [0, 0], sizes = [2, 32], strides = [1, 1]} : vector<2x128xf32> to vector<2x32xf32>
    %253 = arith.negf %252 : vector<2x32xf32>
    %254 = math.exp %253 : vector<2x32xf32>
    %cst_66 = arith.constant 1.000000e+00 : f32
    %255 = vector.broadcast %cst_66 : f32 to vector<2x32xf32>
    %256 = arith.addf %255, %254 : vector<2x32xf32>
    %257 = arith.divf %255, %256 : vector<2x32xf32>
    %258 = vector.extract_strided_slice %249 {offsets = [0, 32], sizes = [2, 32], strides = [1, 1]} : vector<2x128xf32> to vector<2x32xf32>
    %259 = arith.negf %258 : vector<2x32xf32>
    %260 = math.exp %259 : vector<2x32xf32>
    %cst_67 = arith.constant 1.000000e+00 : f32
    %261 = vector.broadcast %cst_67 : f32 to vector<2x32xf32>
    %262 = arith.addf %261, %260 : vector<2x32xf32>
    %263 = arith.divf %261, %262 : vector<2x32xf32>
    %264 = vector.extract_strided_slice %249 {offsets = [0, 64], sizes = [2, 32], strides = [1, 1]} : vector<2x128xf32> to vector<2x32xf32>
    %265 = math.tanh %264 : vector<2x32xf32>
    %266 = vector.extract_strided_slice %249 {offsets = [0, 96], sizes = [2, 32], strides = [1, 1]} : vector<2x128xf32> to vector<2x32xf32>
    %267 = arith.negf %266 : vector<2x32xf32>
    %268 = math.exp %267 : vector<2x32xf32>
    %cst_68 = arith.constant 1.000000e+00 : f32
    %269 = vector.broadcast %cst_68 : f32 to vector<2x32xf32>
    %270 = arith.addf %269, %268 : vector<2x32xf32>
    %271 = arith.divf %269, %270 : vector<2x32xf32>
    %272 = arith.mulf %263, %214 : vector<2x32xf32>
    %273 = arith.mulf %257, %265 : vector<2x32xf32>
    %274 = arith.addf %272, %273 : vector<2x32xf32>
    %275 = math.tanh %274 : vector<2x32xf32>
    %276 = arith.mulf %271, %275 : vector<2x32xf32>
    %277 = vector.extract_strided_slice %251 {offsets = [0, 0], sizes = [2, 32], strides = [1, 1]} : vector<2x128xf32> to vector<2x32xf32>
    %278 = arith.negf %277 : vector<2x32xf32>
    %279 = math.exp %278 : vector<2x32xf32>
    %cst_69 = arith.constant 1.000000e+00 : f32
    %280 = vector.broadcast %cst_69 : f32 to vector<2x32xf32>
    %281 = arith.addf %280, %279 : vector<2x32xf32>
    %282 = arith.divf %280, %281 : vector<2x32xf32>
    %283 = vector.extract_strided_slice %251 {offsets = [0, 32], sizes = [2, 32], strides = [1, 1]} : vector<2x128xf32> to vector<2x32xf32>
    %284 = arith.negf %283 : vector<2x32xf32>
    %285 = math.exp %284 : vector<2x32xf32>
    %cst_70 = arith.constant 1.000000e+00 : f32
    %286 = vector.broadcast %cst_70 : f32 to vector<2x32xf32>
    %287 = arith.addf %286, %285 : vector<2x32xf32>
    %288 = arith.divf %286, %287 : vector<2x32xf32>
    %289 = vector.extract_strided_slice %251 {offsets = [0, 64], sizes = [2, 32], strides = [1, 1]} : vector<2x128xf32> to vector<2x32xf32>
    %290 = math.tanh %289 : vector<2x32xf32>
    %291 = vector.extract_strided_slice %251 {offsets = [0, 96], sizes = [2, 32], strides = [1, 1]} : vector<2x128xf32> to vector<2x32xf32>
    %292 = arith.negf %291 : vector<2x32xf32>
    %293 = math.exp %292 : vector<2x32xf32>
    %cst_71 = arith.constant 1.000000e+00 : f32
    %294 = vector.broadcast %cst_71 : f32 to vector<2x32xf32>
    %295 = arith.addf %294, %293 : vector<2x32xf32>
    %296 = arith.divf %294, %295 : vector<2x32xf32>
    %297 = arith.mulf %288, %239 : vector<2x32xf32>
    %298 = arith.mulf %282, %290 : vector<2x32xf32>
    %299 = arith.addf %297, %298 : vector<2x32xf32>
    %300 = math.tanh %299 : vector<2x32xf32>
    %301 = arith.mulf %296, %300 : vector<2x32xf32>
    %302 = tpu.concatenate %276, %301 in 1 : vector<2x32xf32>, vector<2x32xf32> -> vector<2x64xf32>
    %c8_72 = arith.constant 8 : index
    %c0_73 = arith.constant 0 : index
    %303 = vector.load %arg17[%c8_72, %c0_73] : memref<16x64xf32, #tpu.memory_space<vmem>>, vector<2x32xf32>
    tpu.vector_store %arg17[%c8_72, %c0_73], %276 {strides = array<i32>} : memref<16x64xf32, #tpu.memory_space<vmem>>, vector<2x32xf32>,
    %c6_74 = arith.constant 6 : index
    %c32_75 = arith.constant 32 : index
    %304 = vector.load %arg17[%c6_74, %c32_75] : memref<16x64xf32, #tpu.memory_space<vmem>>, vector<2x32xf32>
    tpu.vector_store %arg17[%c6_74, %c32_75], %301 {strides = array<i32>} : memref<16x64xf32, #tpu.memory_space<vmem>>, vector<2x32xf32>,
    %c10_76 = arith.constant 10 : index
    %c0_77 = arith.constant 0 : index
    %305 = vector.load %arg16[%c10_76, %c0_77] : memref<16x256xf32, #tpu.memory_space<vmem>>, vector<2x128xf32>
    %c4_78 = arith.constant 4 : index
    %c128_79 = arith.constant 128 : index
    %306 = vector.load %arg16[%c4_78, %c128_79] : memref<16x256xf32, #tpu.memory_space<vmem>>, vector<2x128xf32>
    %cst_80 = arith.constant dense<0.000000e+00> : vector<2x256xf32>
    %307 = tpu.matmul %302, %7, %cst_80 {dimension_numbers = #tpu.dot_dimension_numbers<[1], [0], [0], [1], [0, 0, 1, 1], [], []>, precision = #tpu.contract_precision<fp32>} : vector<2x64xf32>, vector<64x256xf32>, vector<2x256xf32> -> vector<2x256xf32>
    %308 = vector.extract_strided_slice %307 {offsets = [0, 0], sizes = [2, 128], strides = [1, 1]} : vector<2x256xf32> to vector<2x128xf32>
    %309 = arith.addf %305, %308 : vector<2x128xf32>
    %310 = vector.extract_strided_slice %307 {offsets = [0, 128], sizes = [2, 128], strides = [1, 1]} : vector<2x256xf32> to vector<2x128xf32>
    %311 = arith.addf %306, %310 : vector<2x128xf32>
    %312 = vector.extract_strided_slice %309 {offsets = [0, 0], sizes = [2, 32], strides = [1, 1]} : vector<2x128xf32> to vector<2x32xf32>
    %313 = arith.negf %312 : vector<2x32xf32>
    %314 = math.exp %313 : vector<2x32xf32>
    %cst_81 = arith.constant 1.000000e+00 : f32
    %315 = vector.broadcast %cst_81 : f32 to vector<2x32xf32>
    %316 = arith.addf %315, %314 : vector<2x32xf32>
    %317 = arith.divf %315, %316 : vector<2x32xf32>
    %318 = vector.extract_strided_slice %309 {offsets = [0, 32], sizes = [2, 32], strides = [1, 1]} : vector<2x128xf32> to vector<2x32xf32>
    %319 = arith.negf %318 : vector<2x32xf32>
    %320 = math.exp %319 : vector<2x32xf32>
    %cst_82 = arith.constant 1.000000e+00 : f32
    %321 = vector.broadcast %cst_82 : f32 to vector<2x32xf32>
    %322 = arith.addf %321, %320 : vector<2x32xf32>
    %323 = arith.divf %321, %322 : vector<2x32xf32>
    %324 = vector.extract_strided_slice %309 {offsets = [0, 64], sizes = [2, 32], strides = [1, 1]} : vector<2x128xf32> to vector<2x32xf32>
    %325 = math.tanh %324 : vector<2x32xf32>
    %326 = vector.extract_strided_slice %309 {offsets = [0, 96], sizes = [2, 32], strides = [1, 1]} : vector<2x128xf32> to vector<2x32xf32>
    %327 = arith.negf %326 : vector<2x32xf32>
    %328 = math.exp %327 : vector<2x32xf32>
    %cst_83 = arith.constant 1.000000e+00 : f32
    %329 = vector.broadcast %cst_83 : f32 to vector<2x32xf32>
    %330 = arith.addf %329, %328 : vector<2x32xf32>
    %331 = arith.divf %329, %330 : vector<2x32xf32>
    %332 = arith.mulf %323, %274 : vector<2x32xf32>
    %333 = arith.mulf %317, %325 : vector<2x32xf32>
    %334 = arith.addf %332, %333 : vector<2x32xf32>
    %335 = math.tanh %334 : vector<2x32xf32>
    %336 = arith.mulf %331, %335 : vector<2x32xf32>
    %337 = vector.extract_strided_slice %311 {offsets = [0, 0], sizes = [2, 32], strides = [1, 1]} : vector<2x128xf32> to vector<2x32xf32>
    %338 = arith.negf %337 : vector<2x32xf32>
    %339 = math.exp %338 : vector<2x32xf32>
    %cst_84 = arith.constant 1.000000e+00 : f32
    %340 = vector.broadcast %cst_84 : f32 to vector<2x32xf32>
    %341 = arith.addf %340, %339 : vector<2x32xf32>
    %342 = arith.divf %340, %341 : vector<2x32xf32>
    %343 = vector.extract_strided_slice %311 {offsets = [0, 32], sizes = [2, 32], strides = [1, 1]} : vector<2x128xf32> to vector<2x32xf32>
    %344 = arith.negf %343 : vector<2x32xf32>
    %345 = math.exp %344 : vector<2x32xf32>
    %cst_85 = arith.constant 1.000000e+00 : f32
    %346 = vector.broadcast %cst_85 : f32 to vector<2x32xf32>
    %347 = arith.addf %346, %345 : vector<2x32xf32>
    %348 = arith.divf %346, %347 : vector<2x32xf32>
    %349 = vector.extract_strided_slice %311 {offsets = [0, 64], sizes = [2, 32], strides = [1, 1]} : vector<2x128xf32> to vector<2x32xf32>
    %350 = math.tanh %349 : vector<2x32xf32>
    %351 = vector.extract_strided_slice %311 {offsets = [0, 96], sizes = [2, 32], strides = [1, 1]} : vector<2x128xf32> to vector<2x32xf32>
    %352 = arith.negf %351 : vector<2x32xf32>
    %353 = math.exp %352 : vector<2x32xf32>
    %cst_86 = arith.constant 1.000000e+00 : f32
    %354 = vector.broadcast %cst_86 : f32 to vector<2x32xf32>
    %355 = arith.addf %354, %353 : vector<2x32xf32>
    %356 = arith.divf %354, %355 : vector<2x32xf32>
    %357 = arith.mulf %348, %299 : vector<2x32xf32>
    %358 = arith.mulf %342, %350 : vector<2x32xf32>
    %359 = arith.addf %357, %358 : vector<2x32xf32>
    %360 = math.tanh %359 : vector<2x32xf32>
    %361 = arith.mulf %356, %360 : vector<2x32xf32>
    %362 = tpu.concatenate %336, %361 in 1 : vector<2x32xf32>, vector<2x32xf32> -> vector<2x64xf32>
    %c10_87 = arith.constant 10 : index
    %c0_88 = arith.constant 0 : index
    %363 = vector.load %arg17[%c10_87, %c0_88] : memref<16x64xf32, #tpu.memory_space<vmem>>, vector<2x32xf32>
    tpu.vector_store %arg17[%c10_87, %c0_88], %336 {strides = array<i32>} : memref<16x64xf32, #tpu.memory_space<vmem>>, vector<2x32xf32>,
    %c4_89 = arith.constant 4 : index
    %c32_90 = arith.constant 32 : index
    %364 = vector.load %arg17[%c4_89, %c32_90] : memref<16x64xf32, #tpu.memory_space<vmem>>, vector<2x32xf32>
    tpu.vector_store %arg17[%c4_89, %c32_90], %361 {strides = array<i32>} : memref<16x64xf32, #tpu.memory_space<vmem>>, vector<2x32xf32>,
    %c12_91 = arith.constant 12 : index
    %c0_92 = arith.constant 0 : index
    %365 = vector.load %arg16[%c12_91, %c0_92] : memref<16x256xf32, #tpu.memory_space<vmem>>, vector<2x128xf32>
    %c2_93 = arith.constant 2 : index
    %c128_94 = arith.constant 128 : index
    %366 = vector.load %arg16[%c2_93, %c128_94] : memref<16x256xf32, #tpu.memory_space<vmem>>, vector<2x128xf32>
    %cst_95 = arith.constant dense<0.000000e+00> : vector<2x256xf32>
    %367 = tpu.matmul %362, %7, %cst_95 {dimension_numbers = #tpu.dot_dimension_numbers<[1], [0], [0], [1], [0, 0, 1, 1], [], []>, precision = #tpu.contract_precision<fp32>} : vector<2x64xf32>, vector<64x256xf32>, vector<2x256xf32> -> vector<2x256xf32>
    %368 = vector.extract_strided_slice %367 {offsets = [0, 0], sizes = [2, 128], strides = [1, 1]} : vector<2x256xf32> to vector<2x128xf32>
    %369 = arith.addf %365, %368 : vector<2x128xf32>
    %370 = vector.extract_strided_slice %367 {offsets = [0, 128], sizes = [2, 128], strides = [1, 1]} : vector<2x256xf32> to vector<2x128xf32>
    %371 = arith.addf %366, %370 : vector<2x128xf32>
    %372 = vector.extract_strided_slice %369 {offsets = [0, 0], sizes = [2, 32], strides = [1, 1]} : vector<2x128xf32> to vector<2x32xf32>
    %373 = arith.negf %372 : vector<2x32xf32>
    %374 = math.exp %373 : vector<2x32xf32>
    %cst_96 = arith.constant 1.000000e+00 : f32
    %375 = vector.broadcast %cst_96 : f32 to vector<2x32xf32>
    %376 = arith.addf %375, %374 : vector<2x32xf32>
    %377 = arith.divf %375, %376 : vector<2x32xf32>
    %378 = vector.extract_strided_slice %369 {offsets = [0, 32], sizes = [2, 32], strides = [1, 1]} : vector<2x128xf32> to vector<2x32xf32>
    %379 = arith.negf %378 : vector<2x32xf32>
    %380 = math.exp %379 : vector<2x32xf32>
    %cst_97 = arith.constant 1.000000e+00 : f32
    %381 = vector.broadcast %cst_97 : f32 to vector<2x32xf32>
    %382 = arith.addf %381, %380 : vector<2x32xf32>
    %383 = arith.divf %381, %382 : vector<2x32xf32>
    %384 = vector.extract_strided_slice %369 {offsets = [0, 64], sizes = [2, 32], strides = [1, 1]} : vector<2x128xf32> to vector<2x32xf32>
    %385 = math.tanh %384 : vector<2x32xf32>
    %386 = vector.extract_strided_slice %369 {offsets = [0, 96], sizes = [2, 32], strides = [1, 1]} : vector<2x128xf32> to vector<2x32xf32>
    %387 = arith.negf %386 : vector<2x32xf32>
    %388 = math.exp %387 : vector<2x32xf32>
    %cst_98 = arith.constant 1.000000e+00 : f32
    %389 = vector.broadcast %cst_98 : f32 to vector<2x32xf32>
    %390 = arith.addf %389, %388 : vector<2x32xf32>
    %391 = arith.divf %389, %390 : vector<2x32xf32>
    %392 = arith.mulf %383, %334 : vector<2x32xf32>
    %393 = arith.mulf %377, %385 : vector<2x32xf32>
    %394 = arith.addf %392, %393 : vector<2x32xf32>
    %395 = math.tanh %394 : vector<2x32xf32>
    %396 = arith.mulf %391, %395 : vector<2x32xf32>
    %397 = vector.extract_strided_slice %371 {offsets = [0, 0], sizes = [2, 32], strides = [1, 1]} : vector<2x128xf32> to vector<2x32xf32>
    %398 = arith.negf %397 : vector<2x32xf32>
    %399 = math.exp %398 : vector<2x32xf32>
    %cst_99 = arith.constant 1.000000e+00 : f32
    %400 = vector.broadcast %cst_99 : f32 to vector<2x32xf32>
    %401 = arith.addf %400, %399 : vector<2x32xf32>
    %402 = arith.divf %400, %401 : vector<2x32xf32>
    %403 = vector.extract_strided_slice %371 {offsets = [0, 32], sizes = [2, 32], strides = [1, 1]} : vector<2x128xf32> to vector<2x32xf32>
    %404 = arith.negf %403 : vector<2x32xf32>
    %405 = math.exp %404 : vector<2x32xf32>
    %cst_100 = arith.constant 1.000000e+00 : f32
    %406 = vector.broadcast %cst_100 : f32 to vector<2x32xf32>
    %407 = arith.addf %406, %405 : vector<2x32xf32>
    %408 = arith.divf %406, %407 : vector<2x32xf32>
    %409 = vector.extract_strided_slice %371 {offsets = [0, 64], sizes = [2, 32], strides = [1, 1]} : vector<2x128xf32> to vector<2x32xf32>
    %410 = math.tanh %409 : vector<2x32xf32>
    %411 = vector.extract_strided_slice %371 {offsets = [0, 96], sizes = [2, 32], strides = [1, 1]} : vector<2x128xf32> to vector<2x32xf32>
    %412 = arith.negf %411 : vector<2x32xf32>
    %413 = math.exp %412 : vector<2x32xf32>
    %cst_101 = arith.constant 1.000000e+00 : f32
    %414 = vector.broadcast %cst_101 : f32 to vector<2x32xf32>
    %415 = arith.addf %414, %413 : vector<2x32xf32>
    %416 = arith.divf %414, %415 : vector<2x32xf32>
    %417 = arith.mulf %408, %359 : vector<2x32xf32>
    %418 = arith.mulf %402, %410 : vector<2x32xf32>
    %419 = arith.addf %417, %418 : vector<2x32xf32>
    %420 = math.tanh %419 : vector<2x32xf32>
    %421 = arith.mulf %416, %420 : vector<2x32xf32>
    %422 = tpu.concatenate %396, %421 in 1 : vector<2x32xf32>, vector<2x32xf32> -> vector<2x64xf32>
    %c12_102 = arith.constant 12 : index
    %c0_103 = arith.constant 0 : index
    %423 = vector.load %arg17[%c12_102, %c0_103] : memref<16x64xf32, #tpu.memory_space<vmem>>, vector<2x32xf32>
    tpu.vector_store %arg17[%c12_102, %c0_103], %396 {strides = array<i32>} : memref<16x64xf32, #tpu.memory_space<vmem>>, vector<2x32xf32>,
    %c2_104 = arith.constant 2 : index
    %c32_105 = arith.constant 32 : index
    %424 = vector.load %arg17[%c2_104, %c32_105] : memref<16x64xf32, #tpu.memory_space<vmem>>, vector<2x32xf32>
    tpu.vector_store %arg17[%c2_104, %c32_105], %421 {strides = array<i32>} : memref<16x64xf32, #tpu.memory_space<vmem>>, vector<2x32xf32>,
    %c14_106 = arith.constant 14 : index
    %c0_107 = arith.constant 0 : index
    %425 = vector.load %arg16[%c14_106, %c0_107] : memref<16x256xf32, #tpu.memory_space<vmem>>, vector<2x128xf32>
    %c0_108 = arith.constant 0 : index
    %c128_109 = arith.constant 128 : index
    %426 = vector.load %arg16[%c0_108, %c128_109] : memref<16x256xf32, #tpu.memory_space<vmem>>, vector<2x128xf32>
    %cst_110 = arith.constant dense<0.000000e+00> : vector<2x256xf32>
    %427 = tpu.matmul %422, %7, %cst_110 {dimension_numbers = #tpu.dot_dimension_numbers<[1], [0], [0], [1], [0, 0, 1, 1], [], []>, precision = #tpu.contract_precision<fp32>} : vector<2x64xf32>, vector<64x256xf32>, vector<2x256xf32> -> vector<2x256xf32>
    %428 = vector.extract_strided_slice %427 {offsets = [0, 0], sizes = [2, 128], strides = [1, 1]} : vector<2x256xf32> to vector<2x128xf32>
    %429 = arith.addf %425, %428 : vector<2x128xf32>
    %430 = vector.extract_strided_slice %427 {offsets = [0, 128], sizes = [2, 128], strides = [1, 1]} : vector<2x256xf32> to vector<2x128xf32>
    %431 = arith.addf %426, %430 : vector<2x128xf32>
    %432 = vector.extract_strided_slice %429 {offsets = [0, 0], sizes = [2, 32], strides = [1, 1]} : vector<2x128xf32> to vector<2x32xf32>
    %433 = arith.negf %432 : vector<2x32xf32>
    %434 = math.exp %433 : vector<2x32xf32>
    %cst_111 = arith.constant 1.000000e+00 : f32
    %435 = vector.broadcast %cst_111 : f32 to vector<2x32xf32>
    %436 = arith.addf %435, %434 : vector<2x32xf32>
    %437 = arith.divf %435, %436 : vector<2x32xf32>
    %438 = vector.extract_strided_slice %429 {offsets = [0, 32], sizes = [2, 32], strides = [1, 1]} : vector<2x128xf32> to vector<2x32xf32>
    %439 = arith.negf %438 : vector<2x32xf32>
    %440 = math.exp %439 : vector<2x32xf32>
    %cst_112 = arith.constant 1.000000e+00 : f32
    %441 = vector.broadcast %cst_112 : f32 to vector<2x32xf32>
    %442 = arith.addf %441, %440 : vector<2x32xf32>
    %443 = arith.divf %441, %442 : vector<2x32xf32>
    %444 = vector.extract_strided_slice %429 {offsets = [0, 64], sizes = [2, 32], strides = [1, 1]} : vector<2x128xf32> to vector<2x32xf32>
    %445 = math.tanh %444 : vector<2x32xf32>
    %446 = vector.extract_strided_slice %429 {offsets = [0, 96], sizes = [2, 32], strides = [1, 1]} : vector<2x128xf32> to vector<2x32xf32>
    %447 = arith.negf %446 : vector<2x32xf32>
    %448 = math.exp %447 : vector<2x32xf32>
    %cst_113 = arith.constant 1.000000e+00 : f32
    %449 = vector.broadcast %cst_113 : f32 to vector<2x32xf32>
    %450 = arith.addf %449, %448 : vector<2x32xf32>
    %451 = arith.divf %449, %450 : vector<2x32xf32>
    %452 = arith.mulf %443, %394 : vector<2x32xf32>
    %453 = arith.mulf %437, %445 : vector<2x32xf32>
    %454 = arith.addf %452, %453 : vector<2x32xf32>
    %455 = math.tanh %454 : vector<2x32xf32>
    %456 = arith.mulf %451, %455 : vector<2x32xf32>
    %457 = vector.extract_strided_slice %431 {offsets = [0, 0], sizes = [2, 32], strides = [1, 1]} : vector<2x128xf32> to vector<2x32xf32>
    %458 = arith.negf %457 : vector<2x32xf32>
    %459 = math.exp %458 : vector<2x32xf32>
    %cst_114 = arith.constant 1.000000e+00 : f32
    %460 = vector.broadcast %cst_114 : f32 to vector<2x32xf32>
    %461 = arith.addf %460, %459 : vector<2x32xf32>
    %462 = arith.divf %460, %461 : vector<2x32xf32>
    %463 = vector.extract_strided_slice %431 {offsets = [0, 32], sizes = [2, 32], strides = [1, 1]} : vector<2x128xf32> to vector<2x32xf32>
    %464 = arith.negf %463 : vector<2x32xf32>
    %465 = math.exp %464 : vector<2x32xf32>
    %cst_115 = arith.constant 1.000000e+00 : f32
    %466 = vector.broadcast %cst_115 : f32 to vector<2x32xf32>
    %467 = arith.addf %466, %465 : vector<2x32xf32>
    %468 = arith.divf %466, %467 : vector<2x32xf32>
    %469 = vector.extract_strided_slice %431 {offsets = [0, 64], sizes = [2, 32], strides = [1, 1]} : vector<2x128xf32> to vector<2x32xf32>
    %470 = math.tanh %469 : vector<2x32xf32>
    %471 = vector.extract_strided_slice %431 {offsets = [0, 96], sizes = [2, 32], strides = [1, 1]} : vector<2x128xf32> to vector<2x32xf32>
    %472 = arith.negf %471 : vector<2x32xf32>
    %473 = math.exp %472 : vector<2x32xf32>
    %cst_116 = arith.constant 1.000000e+00 : f32
    %474 = vector.broadcast %cst_116 : f32 to vector<2x32xf32>
    %475 = arith.addf %474, %473 : vector<2x32xf32>
    %476 = arith.divf %474, %475 : vector<2x32xf32>
    %477 = arith.mulf %468, %419 : vector<2x32xf32>
    %478 = arith.mulf %462, %470 : vector<2x32xf32>
    %479 = arith.addf %477, %478 : vector<2x32xf32>
    %480 = math.tanh %479 : vector<2x32xf32>
    %481 = arith.mulf %476, %480 : vector<2x32xf32>
    %c14_117 = arith.constant 14 : index
    %c0_118 = arith.constant 0 : index
    %482 = vector.load %arg17[%c14_117, %c0_118] : memref<16x64xf32, #tpu.memory_space<vmem>>, vector<2x32xf32>
    tpu.vector_store %arg17[%c14_117, %c0_118], %456 {strides = array<i32>} : memref<16x64xf32, #tpu.memory_space<vmem>>, vector<2x32xf32>,
    %c0_119 = arith.constant 0 : index
    %c32_120 = arith.constant 32 : index
    %483 = vector.load %arg17[%c0_119, %c32_120] : memref<16x64xf32, #tpu.memory_space<vmem>>, vector<2x32xf32>
    tpu.vector_store %arg17[%c0_119, %c32_120], %481 {strides = array<i32>} : memref<16x64xf32, #tpu.memory_space<vmem>>, vector<2x32xf32>,
    %c0_121 = arith.constant 0 : index
    %c0_122 = arith.constant 0 : index
    %484 = vector.load %arg17[%c0_121, %c0_122] : memref<16x64xf32, #tpu.memory_space<vmem>>, vector<16x64xf32>
    %c0_123 = arith.constant 0 : index
    %c0_124 = arith.constant 0 : index
    %485 = vector.load %arg4[%c0_123, %c0_124] : memref<64x256xf32, #tpu.memory_space<vmem>>, vector<64x256xf32>
    %cst_125 = arith.constant dense<0.000000e+00> : vector<16x256xf32>
    %486 = tpu.matmul %484, %485, %cst_125 {dimension_numbers = #tpu.dot_dimension_numbers<[1], [0], [0], [1], [0, 0, 1, 1], [], []>, precision = #tpu.contract_precision<fp32>} : vector<16x64xf32>, vector<64x256xf32>, vector<16x256xf32> -> vector<16x256xf32>
    %c0_126 = arith.constant 0 : index
    %c0_127 = arith.constant 0 : index
    %487 = vector.load %arg6[%c0_126, %c0_127] : memref<1x256xf32, #tpu.memory_space<vmem>>, vector<1x256xf32>
    %488 = vector.broadcast %487 : vector<1x256xf32> to vector<16x256xf32>
    %489 = arith.addf %486, %488 : vector<16x256xf32>
    %c0_128 = arith.constant 0 : index
    %c0_129 = arith.constant 0 : index
    %490 = vector.load %arg16[%c0_128, %c0_129] : memref<16x256xf32, #tpu.memory_space<vmem>>, vector<16x256xf32>
    tpu.vector_store %arg16[%c0_128, %c0_129], %489 {strides = array<i32>} : memref<16x256xf32, #tpu.memory_space<vmem>>, vector<16x256xf32>,
    %c0_130 = arith.constant 0 : index
    %c0_131 = arith.constant 0 : index
    %491 = vector.load %arg5[%c0_130, %c0_131] : memref<64x256xf32, #tpu.memory_space<vmem>>, vector<64x256xf32>
    %cst_132 = arith.constant 0.000000e+00 : f32
    %492 = vector.broadcast %cst_132 : f32 to vector<2x32xf32>
    %cst_133 = arith.constant 0.000000e+00 : f32
    %493 = vector.broadcast %cst_133 : f32 to vector<2x32xf32>
    %c0_134 = arith.constant 0 : index
    %c0_135 = arith.constant 0 : index
    %494 = vector.load %arg16[%c0_134, %c0_135] : memref<16x256xf32, #tpu.memory_space<vmem>>, vector<2x128xf32>
    %c14_136 = arith.constant 14 : index
    %c128_137 = arith.constant 128 : index
    %495 = vector.load %arg16[%c14_136, %c128_137] : memref<16x256xf32, #tpu.memory_space<vmem>>, vector<2x128xf32>
    %496 = vector.extract_strided_slice %494 {offsets = [0, 0], sizes = [2, 32], strides = [1, 1]} : vector<2x128xf32> to vector<2x32xf32>
    %497 = arith.negf %496 : vector<2x32xf32>
    %498 = math.exp %497 : vector<2x32xf32>
    %cst_138 = arith.constant 1.000000e+00 : f32
    %499 = vector.broadcast %cst_138 : f32 to vector<2x32xf32>
    %500 = arith.addf %499, %498 : vector<2x32xf32>
    %501 = arith.divf %499, %500 : vector<2x32xf32>
    %502 = vector.extract_strided_slice %494 {offsets = [0, 32], sizes = [2, 32], strides = [1, 1]} : vector<2x128xf32> to vector<2x32xf32>
    %503 = arith.negf %502 : vector<2x32xf32>
    %504 = math.exp %503 : vector<2x32xf32>
    %cst_139 = arith.constant 1.000000e+00 : f32
    %505 = vector.broadcast %cst_139 : f32 to vector<2x32xf32>
    %506 = arith.addf %505, %504 : vector<2x32xf32>
    %507 = arith.divf %505, %506 : vector<2x32xf32>
    %508 = vector.extract_strided_slice %494 {offsets = [0, 64], sizes = [2, 32], strides = [1, 1]} : vector<2x128xf32> to vector<2x32xf32>
    %509 = math.tanh %508 : vector<2x32xf32>
    %510 = vector.extract_strided_slice %494 {offsets = [0, 96], sizes = [2, 32], strides = [1, 1]} : vector<2x128xf32> to vector<2x32xf32>
    %511 = arith.negf %510 : vector<2x32xf32>
    %512 = math.exp %511 : vector<2x32xf32>
    %cst_140 = arith.constant 1.000000e+00 : f32
    %513 = vector.broadcast %cst_140 : f32 to vector<2x32xf32>
    %514 = arith.addf %513, %512 : vector<2x32xf32>
    %515 = arith.divf %513, %514 : vector<2x32xf32>
    %516 = arith.mulf %507, %492 : vector<2x32xf32>
    %517 = arith.mulf %501, %509 : vector<2x32xf32>
    %518 = arith.addf %516, %517 : vector<2x32xf32>
    %519 = math.tanh %518 : vector<2x32xf32>
    %520 = arith.mulf %515, %519 : vector<2x32xf32>
    %521 = vector.extract_strided_slice %495 {offsets = [0, 0], sizes = [2, 32], strides = [1, 1]} : vector<2x128xf32> to vector<2x32xf32>
    %522 = arith.negf %521 : vector<2x32xf32>
    %523 = math.exp %522 : vector<2x32xf32>
    %cst_141 = arith.constant 1.000000e+00 : f32
    %524 = vector.broadcast %cst_141 : f32 to vector<2x32xf32>
    %525 = arith.addf %524, %523 : vector<2x32xf32>
    %526 = arith.divf %524, %525 : vector<2x32xf32>
    %527 = vector.extract_strided_slice %495 {offsets = [0, 32], sizes = [2, 32], strides = [1, 1]} : vector<2x128xf32> to vector<2x32xf32>
    %528 = arith.negf %527 : vector<2x32xf32>
    %529 = math.exp %528 : vector<2x32xf32>
    %cst_142 = arith.constant 1.000000e+00 : f32
    %530 = vector.broadcast %cst_142 : f32 to vector<2x32xf32>
    %531 = arith.addf %530, %529 : vector<2x32xf32>
    %532 = arith.divf %530, %531 : vector<2x32xf32>
    %533 = vector.extract_strided_slice %495 {offsets = [0, 64], sizes = [2, 32], strides = [1, 1]} : vector<2x128xf32> to vector<2x32xf32>
    %534 = math.tanh %533 : vector<2x32xf32>
    %535 = vector.extract_strided_slice %495 {offsets = [0, 96], sizes = [2, 32], strides = [1, 1]} : vector<2x128xf32> to vector<2x32xf32>
    %536 = arith.negf %535 : vector<2x32xf32>
    %537 = math.exp %536 : vector<2x32xf32>
    %cst_143 = arith.constant 1.000000e+00 : f32
    %538 = vector.broadcast %cst_143 : f32 to vector<2x32xf32>
    %539 = arith.addf %538, %537 : vector<2x32xf32>
    %540 = arith.divf %538, %539 : vector<2x32xf32>
    %541 = arith.mulf %532, %493 : vector<2x32xf32>
    %542 = arith.mulf %526, %534 : vector<2x32xf32>
    %543 = arith.addf %541, %542 : vector<2x32xf32>
    %544 = math.tanh %543 : vector<2x32xf32>
    %545 = arith.mulf %540, %544 : vector<2x32xf32>
    %546 = tpu.concatenate %520, %545 in 1 : vector<2x32xf32>, vector<2x32xf32> -> vector<2x64xf32>
    %c2_144 = arith.constant 2 : index
    %c0_145 = arith.constant 0 : index
    %547 = vector.load %arg16[%c2_144, %c0_145] : memref<16x256xf32, #tpu.memory_space<vmem>>, vector<2x128xf32>
    %c12_146 = arith.constant 12 : index
    %c128_147 = arith.constant 128 : index
    %548 = vector.load %arg16[%c12_146, %c128_147] : memref<16x256xf32, #tpu.memory_space<vmem>>, vector<2x128xf32>
    %cst_148 = arith.constant dense<0.000000e+00> : vector<2x256xf32>
    %549 = tpu.matmul %546, %491, %cst_148 {dimension_numbers = #tpu.dot_dimension_numbers<[1], [0], [0], [1], [0, 0, 1, 1], [], []>, precision = #tpu.contract_precision<fp32>} : vector<2x64xf32>, vector<64x256xf32>, vector<2x256xf32> -> vector<2x256xf32>
    %550 = vector.extract_strided_slice %549 {offsets = [0, 0], sizes = [2, 128], strides = [1, 1]} : vector<2x256xf32> to vector<2x128xf32>
    %551 = arith.addf %547, %550 : vector<2x128xf32>
    %552 = vector.extract_strided_slice %549 {offsets = [0, 128], sizes = [2, 128], strides = [1, 1]} : vector<2x256xf32> to vector<2x128xf32>
    %553 = arith.addf %548, %552 : vector<2x128xf32>
    %554 = vector.extract_strided_slice %551 {offsets = [0, 0], sizes = [2, 32], strides = [1, 1]} : vector<2x128xf32> to vector<2x32xf32>
    %555 = arith.negf %554 : vector<2x32xf32>
    %556 = math.exp %555 : vector<2x32xf32>
    %cst_149 = arith.constant 1.000000e+00 : f32
    %557 = vector.broadcast %cst_149 : f32 to vector<2x32xf32>
    %558 = arith.addf %557, %556 : vector<2x32xf32>
    %559 = arith.divf %557, %558 : vector<2x32xf32>
    %560 = vector.extract_strided_slice %551 {offsets = [0, 32], sizes = [2, 32], strides = [1, 1]} : vector<2x128xf32> to vector<2x32xf32>
    %561 = arith.negf %560 : vector<2x32xf32>
    %562 = math.exp %561 : vector<2x32xf32>
    %cst_150 = arith.constant 1.000000e+00 : f32
    %563 = vector.broadcast %cst_150 : f32 to vector<2x32xf32>
    %564 = arith.addf %563, %562 : vector<2x32xf32>
    %565 = arith.divf %563, %564 : vector<2x32xf32>
    %566 = vector.extract_strided_slice %551 {offsets = [0, 64], sizes = [2, 32], strides = [1, 1]} : vector<2x128xf32> to vector<2x32xf32>
    %567 = math.tanh %566 : vector<2x32xf32>
    %568 = vector.extract_strided_slice %551 {offsets = [0, 96], sizes = [2, 32], strides = [1, 1]} : vector<2x128xf32> to vector<2x32xf32>
    %569 = arith.negf %568 : vector<2x32xf32>
    %570 = math.exp %569 : vector<2x32xf32>
    %cst_151 = arith.constant 1.000000e+00 : f32
    %571 = vector.broadcast %cst_151 : f32 to vector<2x32xf32>
    %572 = arith.addf %571, %570 : vector<2x32xf32>
    %573 = arith.divf %571, %572 : vector<2x32xf32>
    %574 = arith.mulf %565, %518 : vector<2x32xf32>
    %575 = arith.mulf %559, %567 : vector<2x32xf32>
    %576 = arith.addf %574, %575 : vector<2x32xf32>
    %577 = math.tanh %576 : vector<2x32xf32>
    %578 = arith.mulf %573, %577 : vector<2x32xf32>
    %579 = vector.extract_strided_slice %553 {offsets = [0, 0], sizes = [2, 32], strides = [1, 1]} : vector<2x128xf32> to vector<2x32xf32>
    %580 = arith.negf %579 : vector<2x32xf32>
    %581 = math.exp %580 : vector<2x32xf32>
    %cst_152 = arith.constant 1.000000e+00 : f32
    %582 = vector.broadcast %cst_152 : f32 to vector<2x32xf32>
    %583 = arith.addf %582, %581 : vector<2x32xf32>
    %584 = arith.divf %582, %583 : vector<2x32xf32>
    %585 = vector.extract_strided_slice %553 {offsets = [0, 32], sizes = [2, 32], strides = [1, 1]} : vector<2x128xf32> to vector<2x32xf32>
    %586 = arith.negf %585 : vector<2x32xf32>
    %587 = math.exp %586 : vector<2x32xf32>
    %cst_153 = arith.constant 1.000000e+00 : f32
    %588 = vector.broadcast %cst_153 : f32 to vector<2x32xf32>
    %589 = arith.addf %588, %587 : vector<2x32xf32>
    %590 = arith.divf %588, %589 : vector<2x32xf32>
    %591 = vector.extract_strided_slice %553 {offsets = [0, 64], sizes = [2, 32], strides = [1, 1]} : vector<2x128xf32> to vector<2x32xf32>
    %592 = math.tanh %591 : vector<2x32xf32>
    %593 = vector.extract_strided_slice %553 {offsets = [0, 96], sizes = [2, 32], strides = [1, 1]} : vector<2x128xf32> to vector<2x32xf32>
    %594 = arith.negf %593 : vector<2x32xf32>
    %595 = math.exp %594 : vector<2x32xf32>
    %cst_154 = arith.constant 1.000000e+00 : f32
    %596 = vector.broadcast %cst_154 : f32 to vector<2x32xf32>
    %597 = arith.addf %596, %595 : vector<2x32xf32>
    %598 = arith.divf %596, %597 : vector<2x32xf32>
    %599 = arith.mulf %590, %543 : vector<2x32xf32>
    %600 = arith.mulf %584, %592 : vector<2x32xf32>
    %601 = arith.addf %599, %600 : vector<2x32xf32>
    %602 = math.tanh %601 : vector<2x32xf32>
    %603 = arith.mulf %598, %602 : vector<2x32xf32>
    %604 = tpu.concatenate %578, %603 in 1 : vector<2x32xf32>, vector<2x32xf32> -> vector<2x64xf32>
    %c4_155 = arith.constant 4 : index
    %c0_156 = arith.constant 0 : index
    %605 = vector.load %arg16[%c4_155, %c0_156] : memref<16x256xf32, #tpu.memory_space<vmem>>, vector<2x128xf32>
    %c10_157 = arith.constant 10 : index
    %c128_158 = arith.constant 128 : index
    %606 = vector.load %arg16[%c10_157, %c128_158] : memref<16x256xf32, #tpu.memory_space<vmem>>, vector<2x128xf32>
    %cst_159 = arith.constant dense<0.000000e+00> : vector<2x256xf32>
    %607 = tpu.matmul %604, %491, %cst_159 {dimension_numbers = #tpu.dot_dimension_numbers<[1], [0], [0], [1], [0, 0, 1, 1], [], []>, precision = #tpu.contract_precision<fp32>} : vector<2x64xf32>, vector<64x256xf32>, vector<2x256xf32> -> vector<2x256xf32>
    %608 = vector.extract_strided_slice %607 {offsets = [0, 0], sizes = [2, 128], strides = [1, 1]} : vector<2x256xf32> to vector<2x128xf32>
    %609 = arith.addf %605, %608 : vector<2x128xf32>
    %610 = vector.extract_strided_slice %607 {offsets = [0, 128], sizes = [2, 128], strides = [1, 1]} : vector<2x256xf32> to vector<2x128xf32>
    %611 = arith.addf %606, %610 : vector<2x128xf32>
    %612 = vector.extract_strided_slice %609 {offsets = [0, 0], sizes = [2, 32], strides = [1, 1]} : vector<2x128xf32> to vector<2x32xf32>
    %613 = arith.negf %612 : vector<2x32xf32>
    %614 = math.exp %613 : vector<2x32xf32>
    %cst_160 = arith.constant 1.000000e+00 : f32
    %615 = vector.broadcast %cst_160 : f32 to vector<2x32xf32>
    %616 = arith.addf %615, %614 : vector<2x32xf32>
    %617 = arith.divf %615, %616 : vector<2x32xf32>
    %618 = vector.extract_strided_slice %609 {offsets = [0, 32], sizes = [2, 32], strides = [1, 1]} : vector<2x128xf32> to vector<2x32xf32>
    %619 = arith.negf %618 : vector<2x32xf32>
    %620 = math.exp %619 : vector<2x32xf32>
    %cst_161 = arith.constant 1.000000e+00 : f32
    %621 = vector.broadcast %cst_161 : f32 to vector<2x32xf32>
    %622 = arith.addf %621, %620 : vector<2x32xf32>
    %623 = arith.divf %621, %622 : vector<2x32xf32>
    %624 = vector.extract_strided_slice %609 {offsets = [0, 64], sizes = [2, 32], strides = [1, 1]} : vector<2x128xf32> to vector<2x32xf32>
    %625 = math.tanh %624 : vector<2x32xf32>
    %626 = vector.extract_strided_slice %609 {offsets = [0, 96], sizes = [2, 32], strides = [1, 1]} : vector<2x128xf32> to vector<2x32xf32>
    %627 = arith.negf %626 : vector<2x32xf32>
    %628 = math.exp %627 : vector<2x32xf32>
    %cst_162 = arith.constant 1.000000e+00 : f32
    %629 = vector.broadcast %cst_162 : f32 to vector<2x32xf32>
    %630 = arith.addf %629, %628 : vector<2x32xf32>
    %631 = arith.divf %629, %630 : vector<2x32xf32>
    %632 = arith.mulf %623, %576 : vector<2x32xf32>
    %633 = arith.mulf %617, %625 : vector<2x32xf32>
    %634 = arith.addf %632, %633 : vector<2x32xf32>
    %635 = math.tanh %634 : vector<2x32xf32>
    %636 = arith.mulf %631, %635 : vector<2x32xf32>
    %637 = vector.extract_strided_slice %611 {offsets = [0, 0], sizes = [2, 32], strides = [1, 1]} : vector<2x128xf32> to vector<2x32xf32>
    %638 = arith.negf %637 : vector<2x32xf32>
    %639 = math.exp %638 : vector<2x32xf32>
    %cst_163 = arith.constant 1.000000e+00 : f32
    %640 = vector.broadcast %cst_163 : f32 to vector<2x32xf32>
    %641 = arith.addf %640, %639 : vector<2x32xf32>
    %642 = arith.divf %640, %641 : vector<2x32xf32>
    %643 = vector.extract_strided_slice %611 {offsets = [0, 32], sizes = [2, 32], strides = [1, 1]} : vector<2x128xf32> to vector<2x32xf32>
    %644 = arith.negf %643 : vector<2x32xf32>
    %645 = math.exp %644 : vector<2x32xf32>
    %cst_164 = arith.constant 1.000000e+00 : f32
    %646 = vector.broadcast %cst_164 : f32 to vector<2x32xf32>
    %647 = arith.addf %646, %645 : vector<2x32xf32>
    %648 = arith.divf %646, %647 : vector<2x32xf32>
    %649 = vector.extract_strided_slice %611 {offsets = [0, 64], sizes = [2, 32], strides = [1, 1]} : vector<2x128xf32> to vector<2x32xf32>
    %650 = math.tanh %649 : vector<2x32xf32>
    %651 = vector.extract_strided_slice %611 {offsets = [0, 96], sizes = [2, 32], strides = [1, 1]} : vector<2x128xf32> to vector<2x32xf32>
    %652 = arith.negf %651 : vector<2x32xf32>
    %653 = math.exp %652 : vector<2x32xf32>
    %cst_165 = arith.constant 1.000000e+00 : f32
    %654 = vector.broadcast %cst_165 : f32 to vector<2x32xf32>
    %655 = arith.addf %654, %653 : vector<2x32xf32>
    %656 = arith.divf %654, %655 : vector<2x32xf32>
    %657 = arith.mulf %648, %601 : vector<2x32xf32>
    %658 = arith.mulf %642, %650 : vector<2x32xf32>
    %659 = arith.addf %657, %658 : vector<2x32xf32>
    %660 = math.tanh %659 : vector<2x32xf32>
    %661 = arith.mulf %656, %660 : vector<2x32xf32>
    %662 = tpu.concatenate %636, %661 in 1 : vector<2x32xf32>, vector<2x32xf32> -> vector<2x64xf32>
    %c6_166 = arith.constant 6 : index
    %c0_167 = arith.constant 0 : index
    %663 = vector.load %arg16[%c6_166, %c0_167] : memref<16x256xf32, #tpu.memory_space<vmem>>, vector<2x128xf32>
    %c8_168 = arith.constant 8 : index
    %c128_169 = arith.constant 128 : index
    %664 = vector.load %arg16[%c8_168, %c128_169] : memref<16x256xf32, #tpu.memory_space<vmem>>, vector<2x128xf32>
    %cst_170 = arith.constant dense<0.000000e+00> : vector<2x256xf32>
    %665 = tpu.matmul %662, %491, %cst_170 {dimension_numbers = #tpu.dot_dimension_numbers<[1], [0], [0], [1], [0, 0, 1, 1], [], []>, precision = #tpu.contract_precision<fp32>} : vector<2x64xf32>, vector<64x256xf32>, vector<2x256xf32> -> vector<2x256xf32>
    %666 = vector.extract_strided_slice %665 {offsets = [0, 0], sizes = [2, 128], strides = [1, 1]} : vector<2x256xf32> to vector<2x128xf32>
    %667 = arith.addf %663, %666 : vector<2x128xf32>
    %668 = vector.extract_strided_slice %665 {offsets = [0, 128], sizes = [2, 128], strides = [1, 1]} : vector<2x256xf32> to vector<2x128xf32>
    %669 = arith.addf %664, %668 : vector<2x128xf32>
    %670 = vector.extract_strided_slice %667 {offsets = [0, 0], sizes = [2, 32], strides = [1, 1]} : vector<2x128xf32> to vector<2x32xf32>
    %671 = arith.negf %670 : vector<2x32xf32>
    %672 = math.exp %671 : vector<2x32xf32>
    %cst_171 = arith.constant 1.000000e+00 : f32
    %673 = vector.broadcast %cst_171 : f32 to vector<2x32xf32>
    %674 = arith.addf %673, %672 : vector<2x32xf32>
    %675 = arith.divf %673, %674 : vector<2x32xf32>
    %676 = vector.extract_strided_slice %667 {offsets = [0, 32], sizes = [2, 32], strides = [1, 1]} : vector<2x128xf32> to vector<2x32xf32>
    %677 = arith.negf %676 : vector<2x32xf32>
    %678 = math.exp %677 : vector<2x32xf32>
    %cst_172 = arith.constant 1.000000e+00 : f32
    %679 = vector.broadcast %cst_172 : f32 to vector<2x32xf32>
    %680 = arith.addf %679, %678 : vector<2x32xf32>
    %681 = arith.divf %679, %680 : vector<2x32xf32>
    %682 = vector.extract_strided_slice %667 {offsets = [0, 64], sizes = [2, 32], strides = [1, 1]} : vector<2x128xf32> to vector<2x32xf32>
    %683 = math.tanh %682 : vector<2x32xf32>
    %684 = vector.extract_strided_slice %667 {offsets = [0, 96], sizes = [2, 32], strides = [1, 1]} : vector<2x128xf32> to vector<2x32xf32>
    %685 = arith.negf %684 : vector<2x32xf32>
    %686 = math.exp %685 : vector<2x32xf32>
    %cst_173 = arith.constant 1.000000e+00 : f32
    %687 = vector.broadcast %cst_173 : f32 to vector<2x32xf32>
    %688 = arith.addf %687, %686 : vector<2x32xf32>
    %689 = arith.divf %687, %688 : vector<2x32xf32>
    %690 = arith.mulf %681, %634 : vector<2x32xf32>
    %691 = arith.mulf %675, %683 : vector<2x32xf32>
    %692 = arith.addf %690, %691 : vector<2x32xf32>
    %693 = math.tanh %692 : vector<2x32xf32>
    %694 = arith.mulf %689, %693 : vector<2x32xf32>
    %695 = vector.extract_strided_slice %669 {offsets = [0, 0], sizes = [2, 32], strides = [1, 1]} : vector<2x128xf32> to vector<2x32xf32>
    %696 = arith.negf %695 : vector<2x32xf32>
    %697 = math.exp %696 : vector<2x32xf32>
    %cst_174 = arith.constant 1.000000e+00 : f32
    %698 = vector.broadcast %cst_174 : f32 to vector<2x32xf32>
    %699 = arith.addf %698, %697 : vector<2x32xf32>
    %700 = arith.divf %698, %699 : vector<2x32xf32>
    %701 = vector.extract_strided_slice %669 {offsets = [0, 32], sizes = [2, 32], strides = [1, 1]} : vector<2x128xf32> to vector<2x32xf32>
    %702 = arith.negf %701 : vector<2x32xf32>
    %703 = math.exp %702 : vector<2x32xf32>
    %cst_175 = arith.constant 1.000000e+00 : f32
    %704 = vector.broadcast %cst_175 : f32 to vector<2x32xf32>
    %705 = arith.addf %704, %703 : vector<2x32xf32>
    %706 = arith.divf %704, %705 : vector<2x32xf32>
    %707 = vector.extract_strided_slice %669 {offsets = [0, 64], sizes = [2, 32], strides = [1, 1]} : vector<2x128xf32> to vector<2x32xf32>
    %708 = math.tanh %707 : vector<2x32xf32>
    %709 = vector.extract_strided_slice %669 {offsets = [0, 96], sizes = [2, 32], strides = [1, 1]} : vector<2x128xf32> to vector<2x32xf32>
    %710 = arith.negf %709 : vector<2x32xf32>
    %711 = math.exp %710 : vector<2x32xf32>
    %cst_176 = arith.constant 1.000000e+00 : f32
    %712 = vector.broadcast %cst_176 : f32 to vector<2x32xf32>
    %713 = arith.addf %712, %711 : vector<2x32xf32>
    %714 = arith.divf %712, %713 : vector<2x32xf32>
    %715 = arith.mulf %706, %659 : vector<2x32xf32>
    %716 = arith.mulf %700, %708 : vector<2x32xf32>
    %717 = arith.addf %715, %716 : vector<2x32xf32>
    %718 = math.tanh %717 : vector<2x32xf32>
    %719 = arith.mulf %714, %718 : vector<2x32xf32>
    %720 = tpu.concatenate %694, %719 in 1 : vector<2x32xf32>, vector<2x32xf32> -> vector<2x64xf32>
    %c8_177 = arith.constant 8 : index
    %c0_178 = arith.constant 0 : index
    %721 = vector.load %arg16[%c8_177, %c0_178] : memref<16x256xf32, #tpu.memory_space<vmem>>, vector<2x128xf32>
    %c6_179 = arith.constant 6 : index
    %c128_180 = arith.constant 128 : index
    %722 = vector.load %arg16[%c6_179, %c128_180] : memref<16x256xf32, #tpu.memory_space<vmem>>, vector<2x128xf32>
    %cst_181 = arith.constant dense<0.000000e+00> : vector<2x256xf32>
    %723 = tpu.matmul %720, %491, %cst_181 {dimension_numbers = #tpu.dot_dimension_numbers<[1], [0], [0], [1], [0, 0, 1, 1], [], []>, precision = #tpu.contract_precision<fp32>} : vector<2x64xf32>, vector<64x256xf32>, vector<2x256xf32> -> vector<2x256xf32>
    %724 = vector.extract_strided_slice %723 {offsets = [0, 0], sizes = [2, 128], strides = [1, 1]} : vector<2x256xf32> to vector<2x128xf32>
    %725 = arith.addf %721, %724 : vector<2x128xf32>
    %726 = vector.extract_strided_slice %723 {offsets = [0, 128], sizes = [2, 128], strides = [1, 1]} : vector<2x256xf32> to vector<2x128xf32>
    %727 = arith.addf %722, %726 : vector<2x128xf32>
    %728 = vector.extract_strided_slice %725 {offsets = [0, 0], sizes = [2, 32], strides = [1, 1]} : vector<2x128xf32> to vector<2x32xf32>
    %729 = arith.negf %728 : vector<2x32xf32>
    %730 = math.exp %729 : vector<2x32xf32>
    %cst_182 = arith.constant 1.000000e+00 : f32
    %731 = vector.broadcast %cst_182 : f32 to vector<2x32xf32>
    %732 = arith.addf %731, %730 : vector<2x32xf32>
    %733 = arith.divf %731, %732 : vector<2x32xf32>
    %734 = vector.extract_strided_slice %725 {offsets = [0, 32], sizes = [2, 32], strides = [1, 1]} : vector<2x128xf32> to vector<2x32xf32>
    %735 = arith.negf %734 : vector<2x32xf32>
    %736 = math.exp %735 : vector<2x32xf32>
    %cst_183 = arith.constant 1.000000e+00 : f32
    %737 = vector.broadcast %cst_183 : f32 to vector<2x32xf32>
    %738 = arith.addf %737, %736 : vector<2x32xf32>
    %739 = arith.divf %737, %738 : vector<2x32xf32>
    %740 = vector.extract_strided_slice %725 {offsets = [0, 64], sizes = [2, 32], strides = [1, 1]} : vector<2x128xf32> to vector<2x32xf32>
    %741 = math.tanh %740 : vector<2x32xf32>
    %742 = vector.extract_strided_slice %725 {offsets = [0, 96], sizes = [2, 32], strides = [1, 1]} : vector<2x128xf32> to vector<2x32xf32>
    %743 = arith.negf %742 : vector<2x32xf32>
    %744 = math.exp %743 : vector<2x32xf32>
    %cst_184 = arith.constant 1.000000e+00 : f32
    %745 = vector.broadcast %cst_184 : f32 to vector<2x32xf32>
    %746 = arith.addf %745, %744 : vector<2x32xf32>
    %747 = arith.divf %745, %746 : vector<2x32xf32>
    %748 = arith.mulf %739, %692 : vector<2x32xf32>
    %749 = arith.mulf %733, %741 : vector<2x32xf32>
    %750 = arith.addf %748, %749 : vector<2x32xf32>
    %751 = math.tanh %750 : vector<2x32xf32>
    %752 = arith.mulf %747, %751 : vector<2x32xf32>
    %753 = vector.extract_strided_slice %727 {offsets = [0, 0], sizes = [2, 32], strides = [1, 1]} : vector<2x128xf32> to vector<2x32xf32>
    %754 = arith.negf %753 : vector<2x32xf32>
    %755 = math.exp %754 : vector<2x32xf32>
    %cst_185 = arith.constant 1.000000e+00 : f32
    %756 = vector.broadcast %cst_185 : f32 to vector<2x32xf32>
    %757 = arith.addf %756, %755 : vector<2x32xf32>
    %758 = arith.divf %756, %757 : vector<2x32xf32>
    %759 = vector.extract_strided_slice %727 {offsets = [0, 32], sizes = [2, 32], strides = [1, 1]} : vector<2x128xf32> to vector<2x32xf32>
    %760 = arith.negf %759 : vector<2x32xf32>
    %761 = math.exp %760 : vector<2x32xf32>
    %cst_186 = arith.constant 1.000000e+00 : f32
    %762 = vector.broadcast %cst_186 : f32 to vector<2x32xf32>
    %763 = arith.addf %762, %761 : vector<2x32xf32>
    %764 = arith.divf %762, %763 : vector<2x32xf32>
    %765 = vector.extract_strided_slice %727 {offsets = [0, 64], sizes = [2, 32], strides = [1, 1]} : vector<2x128xf32> to vector<2x32xf32>
    %766 = math.tanh %765 : vector<2x32xf32>
    %767 = vector.extract_strided_slice %727 {offsets = [0, 96], sizes = [2, 32], strides = [1, 1]} : vector<2x128xf32> to vector<2x32xf32>
    %768 = arith.negf %767 : vector<2x32xf32>
    %769 = math.exp %768 : vector<2x32xf32>
    %cst_187 = arith.constant 1.000000e+00 : f32
    %770 = vector.broadcast %cst_187 : f32 to vector<2x32xf32>
    %771 = arith.addf %770, %769 : vector<2x32xf32>
    %772 = arith.divf %770, %771 : vector<2x32xf32>
    %773 = arith.mulf %764, %717 : vector<2x32xf32>
    %774 = arith.mulf %758, %766 : vector<2x32xf32>
    %775 = arith.addf %773, %774 : vector<2x32xf32>
    %776 = math.tanh %775 : vector<2x32xf32>
    %777 = arith.mulf %772, %776 : vector<2x32xf32>
    %778 = tpu.concatenate %752, %777 in 1 : vector<2x32xf32>, vector<2x32xf32> -> vector<2x64xf32>
    %c10_188 = arith.constant 10 : index
    %c0_189 = arith.constant 0 : index
    %779 = vector.load %arg16[%c10_188, %c0_189] : memref<16x256xf32, #tpu.memory_space<vmem>>, vector<2x128xf32>
    %c4_190 = arith.constant 4 : index
    %c128_191 = arith.constant 128 : index
    %780 = vector.load %arg16[%c4_190, %c128_191] : memref<16x256xf32, #tpu.memory_space<vmem>>, vector<2x128xf32>
    %cst_192 = arith.constant dense<0.000000e+00> : vector<2x256xf32>
    %781 = tpu.matmul %778, %491, %cst_192 {dimension_numbers = #tpu.dot_dimension_numbers<[1], [0], [0], [1], [0, 0, 1, 1], [], []>, precision = #tpu.contract_precision<fp32>} : vector<2x64xf32>, vector<64x256xf32>, vector<2x256xf32> -> vector<2x256xf32>
    %782 = vector.extract_strided_slice %781 {offsets = [0, 0], sizes = [2, 128], strides = [1, 1]} : vector<2x256xf32> to vector<2x128xf32>
    %783 = arith.addf %779, %782 : vector<2x128xf32>
    %784 = vector.extract_strided_slice %781 {offsets = [0, 128], sizes = [2, 128], strides = [1, 1]} : vector<2x256xf32> to vector<2x128xf32>
    %785 = arith.addf %780, %784 : vector<2x128xf32>
    %786 = vector.extract_strided_slice %783 {offsets = [0, 0], sizes = [2, 32], strides = [1, 1]} : vector<2x128xf32> to vector<2x32xf32>
    %787 = arith.negf %786 : vector<2x32xf32>
    %788 = math.exp %787 : vector<2x32xf32>
    %cst_193 = arith.constant 1.000000e+00 : f32
    %789 = vector.broadcast %cst_193 : f32 to vector<2x32xf32>
    %790 = arith.addf %789, %788 : vector<2x32xf32>
    %791 = arith.divf %789, %790 : vector<2x32xf32>
    %792 = vector.extract_strided_slice %783 {offsets = [0, 32], sizes = [2, 32], strides = [1, 1]} : vector<2x128xf32> to vector<2x32xf32>
    %793 = arith.negf %792 : vector<2x32xf32>
    %794 = math.exp %793 : vector<2x32xf32>
    %cst_194 = arith.constant 1.000000e+00 : f32
    %795 = vector.broadcast %cst_194 : f32 to vector<2x32xf32>
    %796 = arith.addf %795, %794 : vector<2x32xf32>
    %797 = arith.divf %795, %796 : vector<2x32xf32>
    %798 = vector.extract_strided_slice %783 {offsets = [0, 64], sizes = [2, 32], strides = [1, 1]} : vector<2x128xf32> to vector<2x32xf32>
    %799 = math.tanh %798 : vector<2x32xf32>
    %800 = vector.extract_strided_slice %783 {offsets = [0, 96], sizes = [2, 32], strides = [1, 1]} : vector<2x128xf32> to vector<2x32xf32>
    %801 = arith.negf %800 : vector<2x32xf32>
    %802 = math.exp %801 : vector<2x32xf32>
    %cst_195 = arith.constant 1.000000e+00 : f32
    %803 = vector.broadcast %cst_195 : f32 to vector<2x32xf32>
    %804 = arith.addf %803, %802 : vector<2x32xf32>
    %805 = arith.divf %803, %804 : vector<2x32xf32>
    %806 = arith.mulf %797, %750 : vector<2x32xf32>
    %807 = arith.mulf %791, %799 : vector<2x32xf32>
    %808 = arith.addf %806, %807 : vector<2x32xf32>
    %809 = math.tanh %808 : vector<2x32xf32>
    %810 = arith.mulf %805, %809 : vector<2x32xf32>
    %811 = vector.extract_strided_slice %785 {offsets = [0, 0], sizes = [2, 32], strides = [1, 1]} : vector<2x128xf32> to vector<2x32xf32>
    %812 = arith.negf %811 : vector<2x32xf32>
    %813 = math.exp %812 : vector<2x32xf32>
    %cst_196 = arith.constant 1.000000e+00 : f32
    %814 = vector.broadcast %cst_196 : f32 to vector<2x32xf32>
    %815 = arith.addf %814, %813 : vector<2x32xf32>
    %816 = arith.divf %814, %815 : vector<2x32xf32>
    %817 = vector.extract_strided_slice %785 {offsets = [0, 32], sizes = [2, 32], strides = [1, 1]} : vector<2x128xf32> to vector<2x32xf32>
    %818 = arith.negf %817 : vector<2x32xf32>
    %819 = math.exp %818 : vector<2x32xf32>
    %cst_197 = arith.constant 1.000000e+00 : f32
    %820 = vector.broadcast %cst_197 : f32 to vector<2x32xf32>
    %821 = arith.addf %820, %819 : vector<2x32xf32>
    %822 = arith.divf %820, %821 : vector<2x32xf32>
    %823 = vector.extract_strided_slice %785 {offsets = [0, 64], sizes = [2, 32], strides = [1, 1]} : vector<2x128xf32> to vector<2x32xf32>
    %824 = math.tanh %823 : vector<2x32xf32>
    %825 = vector.extract_strided_slice %785 {offsets = [0, 96], sizes = [2, 32], strides = [1, 1]} : vector<2x128xf32> to vector<2x32xf32>
    %826 = arith.negf %825 : vector<2x32xf32>
    %827 = math.exp %826 : vector<2x32xf32>
    %cst_198 = arith.constant 1.000000e+00 : f32
    %828 = vector.broadcast %cst_198 : f32 to vector<2x32xf32>
    %829 = arith.addf %828, %827 : vector<2x32xf32>
    %830 = arith.divf %828, %829 : vector<2x32xf32>
    %831 = arith.mulf %822, %775 : vector<2x32xf32>
    %832 = arith.mulf %816, %824 : vector<2x32xf32>
    %833 = arith.addf %831, %832 : vector<2x32xf32>
    %834 = math.tanh %833 : vector<2x32xf32>
    %835 = arith.mulf %830, %834 : vector<2x32xf32>
    %836 = tpu.concatenate %810, %835 in 1 : vector<2x32xf32>, vector<2x32xf32> -> vector<2x64xf32>
    %c12_199 = arith.constant 12 : index
    %c0_200 = arith.constant 0 : index
    %837 = vector.load %arg16[%c12_199, %c0_200] : memref<16x256xf32, #tpu.memory_space<vmem>>, vector<2x128xf32>
    %c2_201 = arith.constant 2 : index
    %c128_202 = arith.constant 128 : index
    %838 = vector.load %arg16[%c2_201, %c128_202] : memref<16x256xf32, #tpu.memory_space<vmem>>, vector<2x128xf32>
    %cst_203 = arith.constant dense<0.000000e+00> : vector<2x256xf32>
    %839 = tpu.matmul %836, %491, %cst_203 {dimension_numbers = #tpu.dot_dimension_numbers<[1], [0], [0], [1], [0, 0, 1, 1], [], []>, precision = #tpu.contract_precision<fp32>} : vector<2x64xf32>, vector<64x256xf32>, vector<2x256xf32> -> vector<2x256xf32>
    %840 = vector.extract_strided_slice %839 {offsets = [0, 0], sizes = [2, 128], strides = [1, 1]} : vector<2x256xf32> to vector<2x128xf32>
    %841 = arith.addf %837, %840 : vector<2x128xf32>
    %842 = vector.extract_strided_slice %839 {offsets = [0, 128], sizes = [2, 128], strides = [1, 1]} : vector<2x256xf32> to vector<2x128xf32>
    %843 = arith.addf %838, %842 : vector<2x128xf32>
    %844 = vector.extract_strided_slice %841 {offsets = [0, 0], sizes = [2, 32], strides = [1, 1]} : vector<2x128xf32> to vector<2x32xf32>
    %845 = arith.negf %844 : vector<2x32xf32>
    %846 = math.exp %845 : vector<2x32xf32>
    %cst_204 = arith.constant 1.000000e+00 : f32
    %847 = vector.broadcast %cst_204 : f32 to vector<2x32xf32>
    %848 = arith.addf %847, %846 : vector<2x32xf32>
    %849 = arith.divf %847, %848 : vector<2x32xf32>
    %850 = vector.extract_strided_slice %841 {offsets = [0, 32], sizes = [2, 32], strides = [1, 1]} : vector<2x128xf32> to vector<2x32xf32>
    %851 = arith.negf %850 : vector<2x32xf32>
    %852 = math.exp %851 : vector<2x32xf32>
    %cst_205 = arith.constant 1.000000e+00 : f32
    %853 = vector.broadcast %cst_205 : f32 to vector<2x32xf32>
    %854 = arith.addf %853, %852 : vector<2x32xf32>
    %855 = arith.divf %853, %854 : vector<2x32xf32>
    %856 = vector.extract_strided_slice %841 {offsets = [0, 64], sizes = [2, 32], strides = [1, 1]} : vector<2x128xf32> to vector<2x32xf32>
    %857 = math.tanh %856 : vector<2x32xf32>
    %858 = vector.extract_strided_slice %841 {offsets = [0, 96], sizes = [2, 32], strides = [1, 1]} : vector<2x128xf32> to vector<2x32xf32>
    %859 = arith.negf %858 : vector<2x32xf32>
    %860 = math.exp %859 : vector<2x32xf32>
    %cst_206 = arith.constant 1.000000e+00 : f32
    %861 = vector.broadcast %cst_206 : f32 to vector<2x32xf32>
    %862 = arith.addf %861, %860 : vector<2x32xf32>
    %863 = arith.divf %861, %862 : vector<2x32xf32>
    %864 = arith.mulf %855, %808 : vector<2x32xf32>
    %865 = arith.mulf %849, %857 : vector<2x32xf32>
    %866 = arith.addf %864, %865 : vector<2x32xf32>
    %867 = math.tanh %866 : vector<2x32xf32>
    %868 = arith.mulf %863, %867 : vector<2x32xf32>
    %869 = vector.extract_strided_slice %843 {offsets = [0, 0], sizes = [2, 32], strides = [1, 1]} : vector<2x128xf32> to vector<2x32xf32>
    %870 = arith.negf %869 : vector<2x32xf32>
    %871 = math.exp %870 : vector<2x32xf32>
    %cst_207 = arith.constant 1.000000e+00 : f32
    %872 = vector.broadcast %cst_207 : f32 to vector<2x32xf32>
    %873 = arith.addf %872, %871 : vector<2x32xf32>
    %874 = arith.divf %872, %873 : vector<2x32xf32>
    %875 = vector.extract_strided_slice %843 {offsets = [0, 32], sizes = [2, 32], strides = [1, 1]} : vector<2x128xf32> to vector<2x32xf32>
    %876 = arith.negf %875 : vector<2x32xf32>
    %877 = math.exp %876 : vector<2x32xf32>
    %cst_208 = arith.constant 1.000000e+00 : f32
    %878 = vector.broadcast %cst_208 : f32 to vector<2x32xf32>
    %879 = arith.addf %878, %877 : vector<2x32xf32>
    %880 = arith.divf %878, %879 : vector<2x32xf32>
    %881 = vector.extract_strided_slice %843 {offsets = [0, 64], sizes = [2, 32], strides = [1, 1]} : vector<2x128xf32> to vector<2x32xf32>
    %882 = math.tanh %881 : vector<2x32xf32>
    %883 = vector.extract_strided_slice %843 {offsets = [0, 96], sizes = [2, 32], strides = [1, 1]} : vector<2x128xf32> to vector<2x32xf32>
    %884 = arith.negf %883 : vector<2x32xf32>
    %885 = math.exp %884 : vector<2x32xf32>
    %cst_209 = arith.constant 1.000000e+00 : f32
    %886 = vector.broadcast %cst_209 : f32 to vector<2x32xf32>
    %887 = arith.addf %886, %885 : vector<2x32xf32>
    %888 = arith.divf %886, %887 : vector<2x32xf32>
    %889 = arith.mulf %880, %833 : vector<2x32xf32>
    %890 = arith.mulf %874, %882 : vector<2x32xf32>
    %891 = arith.addf %889, %890 : vector<2x32xf32>
    %892 = math.tanh %891 : vector<2x32xf32>
    %893 = arith.mulf %888, %892 : vector<2x32xf32>
    %894 = tpu.concatenate %868, %893 in 1 : vector<2x32xf32>, vector<2x32xf32> -> vector<2x64xf32>
    %c14_210 = arith.constant 14 : index
    %c0_211 = arith.constant 0 : index
    %895 = vector.load %arg16[%c14_210, %c0_211] : memref<16x256xf32, #tpu.memory_space<vmem>>, vector<2x128xf32>
    %cst_212 = arith.constant dense<0.000000e+00> : vector<2x256xf32>
    %896 = tpu.matmul %894, %491, %cst_212 {dimension_numbers = #tpu.dot_dimension_numbers<[1], [0], [0], [1], [0, 0, 1, 1], [], []>, precision = #tpu.contract_precision<fp32>} : vector<2x64xf32>, vector<64x256xf32>, vector<2x256xf32> -> vector<2x256xf32>
    %897 = vector.extract_strided_slice %896 {offsets = [0, 0], sizes = [2, 128], strides = [1, 1]} : vector<2x256xf32> to vector<2x128xf32>
    %898 = arith.addf %895, %897 : vector<2x128xf32>
    %899 = vector.extract_strided_slice %898 {offsets = [0, 0], sizes = [2, 32], strides = [1, 1]} : vector<2x128xf32> to vector<2x32xf32>
    %900 = arith.negf %899 : vector<2x32xf32>
    %901 = math.exp %900 : vector<2x32xf32>
    %cst_213 = arith.constant 1.000000e+00 : f32
    %902 = vector.broadcast %cst_213 : f32 to vector<2x32xf32>
    %903 = arith.addf %902, %901 : vector<2x32xf32>
    %904 = arith.divf %902, %903 : vector<2x32xf32>
    %905 = vector.extract_strided_slice %898 {offsets = [0, 32], sizes = [2, 32], strides = [1, 1]} : vector<2x128xf32> to vector<2x32xf32>
    %906 = arith.negf %905 : vector<2x32xf32>
    %907 = math.exp %906 : vector<2x32xf32>
    %cst_214 = arith.constant 1.000000e+00 : f32
    %908 = vector.broadcast %cst_214 : f32 to vector<2x32xf32>
    %909 = arith.addf %908, %907 : vector<2x32xf32>
    %910 = arith.divf %908, %909 : vector<2x32xf32>
    %911 = vector.extract_strided_slice %898 {offsets = [0, 64], sizes = [2, 32], strides = [1, 1]} : vector<2x128xf32> to vector<2x32xf32>
    %912 = math.tanh %911 : vector<2x32xf32>
    %913 = vector.extract_strided_slice %898 {offsets = [0, 96], sizes = [2, 32], strides = [1, 1]} : vector<2x128xf32> to vector<2x32xf32>
    %914 = arith.negf %913 : vector<2x32xf32>
    %915 = math.exp %914 : vector<2x32xf32>
    %cst_215 = arith.constant 1.000000e+00 : f32
    %916 = vector.broadcast %cst_215 : f32 to vector<2x32xf32>
    %917 = arith.addf %916, %915 : vector<2x32xf32>
    %918 = arith.divf %916, %917 : vector<2x32xf32>
    %919 = arith.mulf %910, %866 : vector<2x32xf32>
    %920 = arith.mulf %904, %912 : vector<2x32xf32>
    %921 = arith.addf %919, %920 : vector<2x32xf32>
    %922 = math.tanh %921 : vector<2x32xf32>
    %923 = arith.mulf %918, %922 : vector<2x32xf32>
    %924 = tpu.concatenate %578, %893 in 1 : vector<2x32xf32>, vector<2x32xf32> -> vector<2x64xf32>
    %925 = tpu.concatenate %923, %545 in 1 : vector<2x32xf32>, vector<2x32xf32> -> vector<2x64xf32>
    %c0_216 = arith.constant 0 : index
    %c0_217 = arith.constant 0 : index
    %926 = vector.load %arg7[%c0_216, %c0_217] : memref<64x13xf32, #tpu.memory_space<vmem>>, vector<64x13xf32>
    %cst_218 = arith.constant dense<0.000000e+00> : vector<2x13xf32>
    %927 = tpu.matmul %924, %926, %cst_218 {dimension_numbers = #tpu.dot_dimension_numbers<[1], [0], [0], [1], [0, 0, 1, 1], [], []>, precision = #tpu.contract_precision<fp32>} : vector<2x64xf32>, vector<64x13xf32>, vector<2x13xf32> -> vector<2x13xf32>
    %c0_219 = arith.constant 0 : index
    %c0_220 = arith.constant 0 : index
    %928 = vector.load %arg8[%c0_219, %c0_220] : memref<1x13xf32, #tpu.memory_space<vmem>>, vector<1x13xf32>
    %929 = vector.broadcast %928 : vector<1x13xf32> to vector<2x13xf32>
    %930 = arith.addf %927, %929 : vector<2x13xf32>
    %c0_221 = arith.constant 0 : index
    %c0_222 = arith.constant 0 : index
    %931 = vector.load %arg13[%c0_221, %c0_222] : memref<2x13xf32, #tpu.memory_space<vmem>>, vector<2x13xf32>
    tpu.vector_store %arg13[%c0_221, %c0_222], %930 {strides = array<i32>} : memref<2x13xf32, #tpu.memory_space<vmem>>, vector<2x13xf32>,
    %c0_223 = arith.constant 0 : index
    %c0_224 = arith.constant 0 : index
    %932 = vector.load %arg9[%c0_223, %c0_224] : memref<64x7xf32, #tpu.memory_space<vmem>>, vector<64x7xf32>
    %cst_225 = arith.constant dense<0.000000e+00> : vector<2x7xf32>
    %933 = tpu.matmul %925, %932, %cst_225 {dimension_numbers = #tpu.dot_dimension_numbers<[1], [0], [0], [1], [0, 0, 1, 1], [], []>, precision = #tpu.contract_precision<fp32>} : vector<2x64xf32>, vector<64x7xf32>, vector<2x7xf32> -> vector<2x7xf32>
    %c0_226 = arith.constant 0 : index
    %c0_227 = arith.constant 0 : index
    %934 = vector.load %arg10[%c0_226, %c0_227] : memref<1x7xf32, #tpu.memory_space<vmem>>, vector<1x7xf32>
    %935 = vector.broadcast %934 : vector<1x7xf32> to vector<2x7xf32>
    %936 = arith.addf %933, %935 : vector<2x7xf32>
    %c0_228 = arith.constant 0 : index
    %c0_229 = arith.constant 0 : index
    %937 = vector.load %arg14[%c0_228, %c0_229] : memref<2x7xf32, #tpu.memory_space<vmem>>, vector<2x7xf32>
    tpu.vector_store %arg14[%c0_228, %c0_229], %936 {strides = array<i32>} : memref<2x7xf32, #tpu.memory_space<vmem>>, vector<2x7xf32>,
    %c0_230 = arith.constant 0 : index
    %c0_231 = arith.constant 0 : index
    %938 = vector.load %arg11[%c0_230, %c0_231] : memref<64x9xf32, #tpu.memory_space<vmem>>, vector<64x9xf32>
    %cst_232 = arith.constant dense<0.000000e+00> : vector<2x9xf32>
    %939 = tpu.matmul %925, %938, %cst_232 {dimension_numbers = #tpu.dot_dimension_numbers<[1], [0], [0], [1], [0, 0, 1, 1], [], []>, precision = #tpu.contract_precision<fp32>} : vector<2x64xf32>, vector<64x9xf32>, vector<2x9xf32> -> vector<2x9xf32>
    %c0_233 = arith.constant 0 : index
    %c0_234 = arith.constant 0 : index
    %940 = vector.load %arg12[%c0_233, %c0_234] : memref<1x9xf32, #tpu.memory_space<vmem>>, vector<1x9xf32>
    %941 = vector.broadcast %940 : vector<1x9xf32> to vector<2x9xf32>
    %942 = arith.addf %939, %941 : vector<2x9xf32>
    %c0_235 = arith.constant 0 : index
    %c0_236 = arith.constant 0 : index
    %943 = vector.load %arg15[%c0_235, %c0_236] : memref<2x9xf32, #tpu.memory_space<vmem>>, vector<2x9xf32>
    tpu.vector_store %arg15[%c0_235, %c0_236], %942 {strides = array<i32>} : memref<2x9xf32, #tpu.memory_space<vmem>>, vector<2x9xf32>,
    return
  }
}

</mosaic_0001>

<bundles_post_ra>
// kernel: chord_network_full_forward.1
= control target key start
LH: loop header
LB: loop body
LE: loop exit
PB: predicated region body
PF: predicated region fallthrough
CT: control target
= control target key end

     0   :  { %21 = vsyncpa [#allocation5], 0  ;;  %vm69_vm0 = vcmask 392192   ;;  %s13427_s0 = inlined_call_operand.vmem [shape: f32[16,48], index: 0, kind: input, shape index: {}]   ;;  %s13428_s1 = inlined_call_operand.vmem [shape: f32[48,256], index: 1, kind: input, shape index: {}]   ;;  %s13429_s2 = inlined_call_operand.vmem [shape: f32[64,256], index: 2, kind: input, shape index: {}]   ;;  %s13430_s3 = inlined_call_operand.vmem [shape: f32[1,256], index: 3, kind: input, shape index: {}]   ;;  %s13431_s4 = inlined_call_operand.vmem [shape: f32[64,256], index: 4, kind: input, shape index: {}]   ;;  %s13432_s5 = inlined_call_operand.vmem [shape: f32[64,256], index: 5, kind: input, shape index: {}]   ;;  %s13433_s6 = inlined_call_operand.vmem [shape: f32[1,256], index: 6, kind: input, shape index: {}]   ;;  %s13434_s7 = inlined_call_operand.vmem [shape: f32[64,13], index: 7, kind: input, shape index: {}]   ;;  %s13435_s8 = inlined_call_operand.vmem [shape: f32[1,13], index: 8, kind: input, shape index: {}]   ;;  %s13436_s9 = inlined_call_operand.vmem [shape: f32[64,7], index: 9, kind: input, shape index: {}]   ;;  %s13437_s10 = inlined_call_operand.vmem [shape: f32[1,7], index: 10, kind: input, shape index: {}]   ;;  %s13438_s11 = inlined_call_operand.vmem [shape: f32[64,9], index: 11, kind: input, shape index: {}]   ;;  %s13439_s12 = inlined_call_operand.vmem [shape: f32[1,9], index: 12, kind: input, shape index: {}]   ;;  %s13440_s13 = inlined_call_operand.hbm [shape: f32[2,13], index: 13, kind: output, shape index: {0}]   ;;  %s13441_s14 = inlined_call_operand.hbm [shape: f32[2,7], index: 14, kind: output, shape index: {1}]   ;;  %s13442_s15 = inlined_call_operand.hbm [shape: f32[2,9], index: 15, kind: output, shape index: {2}]  }
   0x1   :  { %v61_v0 = vld [vmem:[%s13428_s1 + $0x50] sm:$0xff]  ;;  %v59_v1 = vld [vmem:[%s13428_s1 + $0x40] sm:$0xff]  ;;  %v62_v13 = vld [vmem:[%s13428_s1 + $0x58] sm:$0xff] }
   0x2   :  { %v57_v2 = vld [vmem:[%s13428_s1 + $0x30] sm:$0xff]  ;;  %v10441_v3 = vand.u32 4294901760, %v61_v0  ;;  %v10443_v4 = vand.u32 4294901760, %v59_v1  ;;  %v55_v6 = vld [vmem:[%s13428_s1 + $0x20] sm:$0xff]  ;;  %v60_v22 = vld [vmem:[%s13428_s1 + $0x48] sm:$0xff]  ;;  %v10499_v26 = vand.u32 4294901760, %v62_v13 }
   0x3   :  { %v10445_v5 = vand.u32 4294901760, %v57_v2  ;;  %v53_v7 = vld [vmem:[%s13428_s1 + $0x10] sm:$0xff]  ;;  %v51_v8 = vld [vmem:[%s13428_s1] sm:$0xff]  ;;  %v10456_v9 = vand.u32 4294901760, %v55_v6  ;;  %v10519_v34 = vand.u32 4294901760, %v60_v22 }
   0x4   :  { %v10458_v10 = vand.u32 4294901760, %v53_v7  ;;  %v10460_v11 = vand.u32 4294901760, %v51_v8  ;;  %v49_v12 = vld [vmem:[%s13427_s0] sm:$0xff]  ;;  %87 = vmatpush.msra.mxu0 %v10441_v3  ;;  %v10470_v14 = vsub.f32 %v61_v0, %v10441_v3  ;;  %v10473_v15 = vsub.f32 %v59_v1, %v10443_v4  ;;  %220 = vmatpush.msra.mxu3 %v10441_v3 }
   0x5   :  { %v10477_v16 = vsub.f32 %v57_v2, %v10445_v5  ;;  %v71_v17 = vsel %vm69_vm0, %v49_v12, 0  ;;  %v10481_v18 = vsub.f32 %v55_v6, %v10456_v9 }
   0x6   :  { %v10483_v19 = vand.u32 4294901760, %v71_v17  ;;  %v10486_v20 = vsub.f32 %v53_v7, %v10458_v10  ;;  %v10489_v21 = vsub.f32 %v51_v8, %v10460_v11  ;;  %89 = vmatpush.msra.mxu0 %v10443_v4  ;;  %182 = vmatpush.msra.mxu2 %v10470_v14  ;;  %v127_v23 = vand.u32 4294901760, %v10470_v14 }
   0x7   :  { %v133_v24 = vand.u32 4294901760, %v10473_v15  ;;  %v139_v25 = vand.u32 4294901760, %v10477_v16  ;;  %222 = vmatpush.msra.mxu3 %v10443_v4  ;;  %v145_v28 = vand.u32 4294901760, %v10481_v18 }
   0x8   :  { %v10503_v27 = vsub.f32 %v71_v17, %v10483_v19  ;;  %v151_v29 = vand.u32 4294901760, %v10486_v20  ;;  %v157_v30 = vand.u32 4294901760, %v10489_v21  ;;  %91 = vmatpush.msra.mxu0 %v10445_v5  ;;  %185 = vmatpush.msra.mxu2 %v10473_v15  ;;  %v128_v31 = vsub.f32 %v10470_v14, %v127_v23 }
   0x9   :  { %v134_v32 = vsub.f32 %v10473_v15, %v133_v24  ;;  %v140_v33 = vsub.f32 %v10477_v16, %v139_v25 }
   0xa   :  { %22 = vsyncpa [#allocation7], 0  ;;  %224 = vmatpush.msra.mxu3 %v10445_v5  ;;  %v10523_v35 = vand.u32 4294901760, %v10503_v27  ;;  %v146_v36 = vsub.f32 %v10481_v18, %v145_v28  ;;  %v10529_v37 = vsub.f32 %v62_v13, %v10499_v26  ;;  %v50_v38 = vld [vmem:[%s13427_s0 + $0x8] sm:$0xff]  ;;  %v58_v39 = vld [vmem:[%s13428_s1 + $0x38] sm:$0xff]  ;;  %93 = vmatpush.msra.mxu0 %v10456_v9  ;;  %v129_v40 = vand.u32 4294901760, %v128_v31 }
   0xb   :  { %188 = vmatpush.msra.mxu2 %v10477_v16  ;;  %v135_v41 = vand.u32 4294901760, %v134_v32  ;;  %v152_v42 = vsub.f32 %v10486_v20, %v151_v29  ;;  %v56_v43 = vld [vmem:[%s13428_s1 + $0x28] sm:$0xff]  ;;  %v141_v45 = vand.u32 4294901760, %v140_v33  ;;  %v158_v47 = vsub.f32 %v10489_v21, %v157_v30  ;;  %v54_v48 = vld [vmem:[%s13428_s1 + $0x18] sm:$0xff]  ;;  %s10348_s16 = smov 32   ;;  %s9944_s28 = sshll.u32 %s13440_s13, 4  ;;  %s9945_s28 = int_to_ptr.hbm [resolvable:$true] %s9944_s28 }
   0xc   :  { %v101_v44 = vsub.f32 %v10503_v27, %v10523_v35  ;;  %226 = vmatpush.msra.mxu3 %v10456_v9  ;;  %v369_v46 = vand.u32 4294901760, %v10529_v37  ;;  %v52_v49 = vld [vmem:[%s13428_s1 + $0x8] sm:$0xff]  ;;  %95 = vmatpush.msra.mxu0 %v10458_v10  ;;  %v147_v50 = vand.u32 4294901760, %v146_v36  ;;  %v74_v51 = vsel %vm69_vm0, %v50_v38, 0  ;;  %s10349_s29 = smov [#allocation4]  }
   0xd   :  { %130 = vmatpush.msra.mxu1 %v129_v40  ;;  %v10561_v52 = vsub.f32 %v60_v22, %v10519_v34  ;;  %v10563_v53 = vand.u32 4294901760, %v58_v39  ;;  %191 = vmatpush.msra.mxu2 %v10481_v18  ;;  %v10572_v56 = vand.u32 4294901760, %v74_v51  ;;  %v10574_v57 = vand.u32 4294901760, %v56_v43 }
   0xe   :  { %v10566_v54 = vand.u32 4294901760, %v101_v44  ;;  %228 = vmatpush.msra.mxu3 %v10458_v10  ;;  %v370_v55 = vsub.f32 %v10529_v37, %v369_v46  ;;  %97 = vmatpush.msra.mxu0 %v10460_v11  ;;  %v10581_v60 = vand.u32 4294901760, %v54_v48  ;;  %v10583_v61 = vand.u32 4294901760, %v52_v49 }
   0xf   :  { %136 = vmatpush.msra.mxu1 %v135_v41  ;;  %v375_v58 = vand.u32 4294901760, %v10561_v52  ;;  %v10579_v59 = vsub.f32 %v58_v39, %v10563_v53  ;;  %194 = vmatpush.msra.mxu2 %v10486_v20  ;;  %v153_v62 = vand.u32 4294901760, %v152_v42  ;;  %v10588_v63 = vsub.f32 %v74_v51, %v10572_v56 }
  0x10   :  { %103 = vmatmul.f32.vlgmr.msra.gmra.mxu0 %v10566_v54  ;;  %v10591_v0 = vsub.f32 %v56_v43, %v10574_v57  ;;  %230 = vmatpush.msra.mxu3 %v10460_v11  ;;  %v371_v1 = vand.u32 4294901760, %v370_v55  ;;  %v10599_v7 = vsub.f32 %v54_v48, %v10581_v60  ;;  %v159_v13 = vand.u32 4294901760, %v158_v47 }
  0x11   :  { %142 = vmatpush.msra.mxu1 %v141_v45  ;;  %v376_v2 = vsub.f32 %v10561_v52, %v375_v58  ;;  %v381_v6 = vand.u32 4294901760, %v10579_v59  ;;  %197 = vmatpush.msra.mxu2 %v10489_v21  ;;  %v10605_v8 = vand.u32 4294901760, %v10588_v63  ;;  %v10613_v31 = vsub.f32 %v52_v49, %v10583_v61 }
  0x12   :  { %257 = vmatpush.msrb.mxu0 %v127_v23  ;;  %v387_v12 = vand.u32 4294901760, %v10591_v0  ;;  %200 = vmatmul.f32.vlgmr.msra.gmra.mxu2 %v10503_v27  ;;  %v393_v23 = vand.u32 4294901760, %v10599_v7  ;;  %vm665_vm9 = vcmask 261120   ;;  %vm667_vm10 = vcmask 254976  }
  0x13   :  { %148 = vmatpush.msra.mxu1 %v147_v50  ;;  %v377_v17 = vand.u32 4294901760, %v376_v2  ;;  %v382_v22 = vsub.f32 %v10579_v59, %v381_v6  ;;  %329 = vmatpush.msrb.mxu2 %v10499_v26  ;;  %v109_v14 = vsub.f32 %v10588_v63, %v10605_v8  ;;  %v399_v38 = vand.u32 4294901760, %v10613_v31 }
  0x14   :  { %234 = vmatmul.f32.vlgmr.msra.gmra.mxu3 %v10523_v35  ;;  %261 = vmatpush.msrb.mxu0 %v133_v24  ;;  %v388_v36 = vsub.f32 %v10591_v0, %v387_v12  ;;  %v394_v15 = vsub.f32 %v10599_v7, %v393_v23  ;;  %vm676_vm11 = vcmask 523264  }
  0x15   :  { %154 = vmatpush.msra.mxu1 %v153_v62  ;;  %372 = vmatpush.msrb.mxu3 %v371_v1  ;;  %v110_v32 = vand.u32 4294901760, %v109_v14  ;;  %v383_v33 = vand.u32 4294901760, %v382_v22  ;;  %v400_v39 = vsub.f32 %v10613_v31, %v399_v38 }
  0x16   :  { %331 = vmatpush.msrb.mxu2 %v10519_v34  ;;  %265 = vmatpush.msrb.mxu0 %v139_v25  ;;  %v389_v24 = vand.u32 4294901760, %v388_v36 }
  0x17   :  { %160 = vmatpush.msra.mxu1 %v159_v13  ;;  %378 = vmatpush.msrb.mxu3 %v377_v17 }
  0x18   :  { %111 = vmatmul.f32.gmra.mxu0 %v110_v32  ;;  %162 = vmatmul.f32.vlgmr.msra.gmra.mxu1 %v10483_v19 }
  0x19   :  { %298 = vmatpush.msrb.mxu1 %v10441_v3  ;;  %333 = vmatpush.msrb.mxu2 %v10563_v53  ;;  %v395_v3 = vand.u32 4294901760, %v394_v15 }
  0x1a   :  { %384 = vmatpush.msrb.mxu3 %v383_v33  ;;  %269 = vmatpush.msrb.mxu0 %v145_v28 }
  0x1b   :  { %300 = vmatpush.msrb.mxu1 %v10443_v4  ;;  %205 = vmatmul.f32.gmra.mxu2 %v10588_v63  ;;  %v401_v4 = vand.u32 4294901760, %v400_v39 }
  0x1c   :  { %240 = vmatmul.f32.gmra.mxu3 %v10605_v8  ;;  %335 = vmatpush.msrb.mxu2 %v10574_v57 }
  0x1d   :  { %273 = vmatpush.msrb.mxu0 %v151_v29  ;;  %302 = vmatpush.msrb.mxu1 %v10445_v5 }
  0x1e   :  { %390 = vmatpush.msrb.mxu3 %v389_v24  ;;  %337 = vmatpush.msrb.mxu2 %v10581_v60 }
  0x1f   :  { %277 = vmatpush.msrb.mxu0 %v157_v30  ;;  %304 = vmatpush.msrb.mxu1 %v10456_v9  ;;  %v63_v9 = vld [vmem:[%s13430_s3] sm:$0x3]  ;;  %s10347_s3 = smov 64  }
  0x20   :  { %166 = vmatmul.f32.gmra.mxu1 %v10572_v56  ;;  %279 = vmatmul.f32.vlgmr.msrb.gmra.mxu0 %v10483_v19  ;;  %v66_v47 = vperm.slane %v63_v9, 1 }
  0x21   :  { %396 = vmatpush.msrb.mxu3 %v395_v3  ;;  %339 = vmatpush.msrb.mxu2 %v10583_v61 }
  0x22   :  { %424 = vmatpush.msra.mxu0 %v10529_v37  ;;  %306 = vmatpush.msrb.mxu1 %v10458_v10  ;;  %v65_v10 = vperm.slane %v63_v9, 0 }
  0x23   :  { %402 = vmatpush.msrb.mxu3 %v401_v4  ;;  %345 = vmatmul.f32.vlgmr.msrb.gmra.mxu2 %v10566_v54 }
  0x24   :  { %404 = vmatmul.f32.vlgmr.msrb.gmra.mxu3 %v10483_v19  ;;  %499 = vmatpush.msra.mxu2 %v369_v46 }
  0x25   :  { %308 = vmatpush.msrb.mxu1 %v10460_v11  ;;  %540 = vmatpush.msra.mxu3 %v10499_v26 }
  0x26   :  { %427 = vmatpush.msra.mxu0 %v10561_v52  ;;  %503 = vmatpush.msra.mxu2 %v375_v58 }
  0x27   :  { %462 = vmatpush.msra.mxu1 %v10499_v26  ;;  %542 = vmatpush.msra.mxu3 %v10519_v34 }
  0x28   :  { %283 = vmatmul.f32.gmra.mxu0 %v10572_v56  ;;  %310 = vmatmul.f32.vlgmr.msrb.gmra.mxu1 %v10483_v19 }
  0x29   :  { %430 = vmatpush.msra.mxu0 %v10579_v59  ;;  %507 = vmatpush.msra.mxu2 %v381_v6 }
  0x2a   :  { %464 = vmatpush.msra.mxu1 %v10519_v34  ;;  %544 = vmatpush.msra.mxu3 %v10563_v53 }
  0x2b   :  { %433 = vmatpush.msra.mxu0 %v10591_v0  ;;  %353 = vmatmul.f32.gmra.mxu2 %v110_v32 }
  0x2c   :  { %408 = vmatmul.f32.gmra.mxu3 %v10572_v56  ;;  %511 = vmatpush.msra.mxu2 %v387_v12 }
  0x2d   :  { %436 = vmatpush.msra.mxu0 %v10599_v7  ;;  %466 = vmatpush.msra.mxu1 %v10563_v53 }
  0x2e   :  { %546 = vmatpush.msra.mxu3 %v10574_v57  ;;  %515 = vmatpush.msra.mxu2 %v393_v23 }
  0x2f   :  { %439 = vmatpush.msra.mxu0 %v10613_v31  ;;  %468 = vmatpush.msra.mxu1 %v10574_v57 }
  0x30   :  { %314 = vmatmul.f32.gmra.mxu1 %v10572_v56  ;;  %442 = vmatmul.f32.vlgmr.msra.gmra.mxu0 %v10503_v27 }
  0x31   :  { %548 = vmatpush.msra.mxu3 %v10581_v60  ;;  %519 = vmatpush.msra.mxu2 %v399_v38 }
  0x32   :  { %470 = vmatpush.msra.mxu1 %v10581_v60 }
  0x33   :  { %550 = vmatpush.msra.mxu3 %v10583_v61  ;;  %521 = vmatmul.f32.vlgmr.msra.gmra.mxu2 %v10483_v19 }
  0x34   :  { %552 = vmatmul.f32.vlgmr.msra.gmra.mxu3 %v10483_v19  ;;  %472 = vmatpush.msra.mxu1 %v10583_v61 }
  0x38   :  { %447 = vmatmul.f32.gmra.mxu0 %v10588_v63  ;;  %476 = vmatmul.f32.vlgmr.msra.gmra.mxu1 %v10523_v35 }
  0x3b   :  { %525 = vmatmul.f32.gmra.mxu2 %v10572_v56 }
  0x3c   :  { %556 = vmatmul.f32.gmra.mxu3 %v10572_v56 }
  0x40   :  { %482 = vmatmul.f32.gmra.mxu1 %v10605_v8 }
  0x8d   :  { %v104_v5 = vpop.f32.mrf.mxu0 }
  0x8e   :  { %v105_v18 = vadd.f32 %v104_v5, %v65_v10 }
  0x95   :  { %v112_v11 = vpop.f32.mrf.mxu0  ;;  %v163_v16 = vpop.f32.mrf.mxu1 }
  0x96   :  { %v201_v19 = vpop.f32.mrf.mxu2  ;;  %v164_v21 = vadd.f32 %v163_v16, %v105_v18  ;;  %v113_v27 = vadd.f32 %v112_v11, %v65_v10 }
  0x97   :  { %v235_v20 = vpop.f32.mrf.mxu3 }
  0x98   :  { %v202_v28 = vadd.f32 %v201_v19, %v164_v21 }
  0x9a   :  { %v236_v34 = vadd.f32 %v235_v20, %v202_v28 }
  0x9d   :  { %v167_v25 = vpop.f32.mrf.mxu1  ;;  %v280_v26 = vpop.f32.mrf.mxu0 }
  0x9e   :  { %v206_v29 = vpop.f32.mrf.mxu2  ;;  %v168_v35 = vadd.f32 %v167_v25, %v113_v27  ;;  %v281_v37 = vadd.f32 %v280_v26, %v236_v34 }
  0x9f   :  { %v241_v30 = vpop.f32.mrf.mxu3 }
  0xa0   :  { %v207_v42 = vadd.f32 %v206_v29, %v168_v35 }
  0xa2   :  { %v242_v46 = vadd.f32 %v241_v30, %v207_v42 }
  0xa5   :  { %v284_v40 = vpop.f32.mrf.mxu0  ;;  %v311_v41 = vpop.f32.mrf.mxu1 }
  0xa6   :  { %v312_v43 = vadd.f32 %v311_v41, %v281_v37  ;;  %v346_v44 = vpop.f32.mrf.mxu2  ;;  %v285_v48 = vadd.f32 %v284_v40, %v242_v46 }
  0xa7   :  { %v405_v45 = vpop.f32.mrf.mxu3  ;;  %v347_v50 = vadd.f32 %v346_v44, %v66_v47 }
  0xa8   :  { %560 = vst [vmem:[#allocation2 + $0x10] sm:$0xff] %v312_v43 }
  0xa9   :  { %v406_v55 = vadd.f32 %v405_v45, %v347_v50 }
  0xad   :  { %v315_v49 = vpop.f32.mrf.mxu1  ;;  %v443_v52 = vpop.f32.mrf.mxu0 }
  0xae   :  { %v316_v51 = vadd.f32 %v315_v49, %v285_v48  ;;  %v354_v53 = vpop.f32.mrf.mxu2  ;;  %v444_v56 = vadd.f32 %v443_v52, %v406_v55  ;;  %v576_v52 = vld [vmem:[%s13429_s2 + $0x60] sm:$0xff] }
  0xaf   :  { %v409_v54 = vpop.f32.mrf.mxu3  ;;  %v355_v58 = vadd.f32 %v354_v53, %v66_v47  ;;  %v580_v31 = vld [vmem:[#allocation2 + $0x10] sm:$0x3]  ;;  %v10726_v55 = vand.u32 4294901760, %v576_v52 }
  0xb0   :  { %562 = vst [vmem:[#allocation2 + $0x18] sm:$0xff] %v316_v51  ;;  %v9984_v33 = vmul.f32 -1.442695, %v580_v31  ;;  %v578_v51 = vld [vmem:[%s13429_s2 + $0x70] sm:$0xff] }
  0xb1   :  { %v410_v0 = vadd.f32 %v409_v54, %v355_v58  ;;  %v574_v53 = vld [vmem:[%s13429_s2 + $0x50] sm:$0xff]  ;;  %v10724_v54 = vand.u32 4294901760, %v578_v51 }
  0xb2   :  { %v570_v58 = vld [vmem:[%s13429_s2 + $0x30] sm:$0xff] }
  0xb3   :  { %821 = vmatpush.msrb.mxu3 %v10724_v54  ;;  %689 = vmatpush.msrb.mxu0 %v10724_v54 }
  0xb5   :  { %v477_v57 = vpop.f32.mrf.mxu1  ;;  %v448_v63 = vpop.f32.mrf.mxu0  ;;  %823 = vmatpush.msrb.mxu3 %v10726_v55  ;;  %691 = vmatpush.msrb.mxu0 %v10726_v55 }
  0xb6   :  { %v478_v59 = vadd.f32 %v477_v57, %v444_v56  ;;  %v522_v60 = vpop.f32.mrf.mxu2  ;;  %v449_v2 = vadd.f32 %v448_v63, %v410_v0  ;;  %v10728_v56 = vand.u32 4294901760, %v574_v53  ;;  %v572_v57 = vld [vmem:[%s13429_s2 + $0x40] sm:$0xff]  ;;  %v566_v63 = vld [vmem:[%s13429_s2 + $0x10] sm:$0xff] }
  0xb7   :  { %v553_v61 = vpop.f32.mrf.mxu3  ;;  %v564_v0 = vld [vmem:[%s13429_s2] sm:$0xff] }
  0xb8   :  { %v523_v62 = vadd.f32 %v522_v60, %v478_v59  ;;  %v568_v59 = vld [vmem:[%s13429_s2 + $0x20] sm:$0xff]  ;;  %v10739_v60 = vand.u32 4294901760, %v572_v57  ;;  %825 = vmatpush.msrb.mxu3 %v10728_v56  ;;  %693 = vmatpush.msrb.mxu0 %v10728_v56 }
  0xba   :  { %v554_v1 = vadd.f32 %v553_v61, %v523_v62  ;;  %v10741_v61 = vand.u32 4294901760, %v570_v58  ;;  %v10743_v62 = vand.u32 4294901760, %v568_v59  ;;  %827 = vmatpush.msrb.mxu3 %v10739_v60  ;;  %695 = vmatpush.msrb.mxu0 %v10739_v60 }
  0xbc   :  { %561 = vst [vmem:[#allocation2] sm:$0xff] %v554_v1  ;;  %v10752_v1 = vsub.f32 %v578_v51, %v10724_v54  ;;  %829 = vmatpush.msrb.mxu3 %v10741_v61  ;;  %697 = vmatpush.msrb.mxu0 %v10741_v61  ;;  %v573_v51 = vld [vmem:[%s13429_s2 + $0x48] sm:$0xff] }
  0xbd   :  { %v483_v6 = vpop.f32.mrf.mxu1  ;;  %13579 = vst [vmem:[#allocation13_spill] sm:$0xff] %v10743_v62 }
  0xbe   :  { %v484_v7 = vadd.f32 %v483_v6, %v449_v2  ;;  %v526_v8 = vpop.f32.mrf.mxu2  ;;  %v10755_v2 = vsub.f32 %v576_v52, %v10726_v55  ;;  %v10758_v6 = vsub.f32 %v574_v53, %v10728_v56  ;;  %784 = vmatpush.msrb.mxu2 %v10752_v1  ;;  %831 = vmatpush.msrb.mxu3 %v10743_v62 }
  0xbf   :  { %v557_v12 = vpop.f32.mrf.mxu3  ;;  %699 = vmatpush.msrb.mxu0 %v10743_v62 }
  0xc0   :  { %v527_v13 = vadd.f32 %v526_v8, %v484_v7  ;;  %v10762_v7 = vand.u32 4294901760, %v566_v63  ;;  %v10765_v8 = vsub.f32 %v572_v57, %v10739_v60  ;;  %787 = vmatpush.msrb.mxu2 %v10755_v2  ;;  %v10925_v57 = vand.u32 4294901760, %v573_v51 }
  0xc2   :  { %v558_v17 = vadd.f32 %v557_v12, %v527_v13  ;;  %13580 = vst [vmem:[#allocation14_spill] sm:$0xff] %v10762_v7  ;;  %v10768_v12 = vsub.f32 %v570_v58, %v10741_v61  ;;  %v10771_v13 = vsub.f32 %v568_v59, %v10743_v62  ;;  %790 = vmatpush.msrb.mxu2 %v10758_v6  ;;  %v571_v59 = vld [vmem:[%s13429_s2 + $0x38] sm:$0xff] }
  0xc3   :  { %833 = vmatpush.msrb.mxu3 %v10762_v7  ;;  %701 = vmatpush.msrb.mxu0 %v10762_v7 }
  0xc4   :  { %563 = vst [vmem:[#allocation2 + $0x8] sm:$0xff] %v558_v17  ;;  %v10774_v17 = vand.u32 4294901760, %v10752_v1  ;;  %793 = vmatpush.msrb.mxu2 %v10765_v8 }
  0xc5   :  { %13581 = vst [vmem:[#allocation15_spill] sm:$0xff] %v10771_v13 }
  0xc6   :  { %13582 = vst [vmem:[#allocation16_spill] sm:$0xff] %v10774_v17  ;;  %796 = vmatpush.msrb.mxu2 %v10768_v12 }
  0xc8   :  { %799 = vmatpush.msrb.mxu2 %v10771_v13 }
  0xcb   :  { %v581_v22 = vld [vmem:[#allocation2 + $0x8] sm:$0xc0] }
  0xcc   :  { %10023 = vtanh.f32 %v581_v22  ;;  %v9985_v32 = vmul.f32 -1.442695, %v581_v22  ;;  %v10777_v22 = vand.u32 4294901760, %v10755_v2 }
  0xcd   :  { %10025 = vtanh.f32 %v580_v31  ;;  %v10781_v31 = vand.u32 4294901760, %v10758_v6 }
  0xce   :  { %10027 = vpow2.f32 %v9985_v32  ;;  %13583 = vst [vmem:[#allocation17_spill] sm:$0xff] %v10777_v22  ;;  %v10791_v32 = vsub.f32 %v566_v63, %v10762_v7 }
  0xcf   :  { %10029 = vpow2.f32 %v9984_v33  ;;  %13584 = vst [vmem:[#allocation18_spill] sm:$0xff] %v10781_v31  ;;  %v724_v33 = vsub.f32 %v10752_v1, %v10774_v17 }
  0xd0   :  { %13587 = vst [vmem:[#allocation21_spill] sm:$0xff] %v10791_v32  ;;  %802 = vmatpush.msrb.mxu2 %v10791_v32 }
  0xd2   :  { %v10024_v14 = vpop.eup %10023 }
  0xd3   :  { %641 = vrot.lane.b32.xlu0 %v10024_v14, %s10347_s3  ;;  %v10026_v23 = vpop.eup %10025  ;;  %v10784_v14 = vand.u32 4294901760, %v564_v0 }
  0xd4   :  { %v10028_v36 = vpop.eup %10027 }
  0xd5   :  { %v622_v38 = vadd.f32 1.0, %v10028_v36  ;;  %v10030_v15 = vpop.eup %10029  ;;  %13585 = vst [vmem:[#allocation19_spill] sm:$0xff] %v10784_v14  ;;  %v730_v36 = vsub.f32 %v10755_v2, %v10777_v22  ;;  %835 = vmatpush.msrb.mxu3 %v10784_v14  ;;  %703 = vmatpush.msrb.mxu0 %v10784_v14 }
  0xd6   :  { %v585_v24 = vadd.f32 1.0, %v10030_v15  ;;  %v10801_v15 = vand.u32 4294901760, %v10768_v12 }
  0xd7   :  { %10031 = vrcp.f32 %v622_v38  ;;  %v634_v18 = vand.u32 2147483648, %v622_v38  ;;  %vm628_vm2 = vweird.f32 %v622_v38  ;;  %v632_v19 = vand.u32 2147483647, %v622_v38  ;;  %854 = vmatpush.msra.mxu0 %v10774_v17 }
  0xd8   :  { %10033 = vrcp.f32 %v585_v24  ;;  %v597_v30 = vand.u32 2147483648, %v585_v24  ;;  %vm591_vm6 = vweird.f32 %v585_v24  ;;  %v595_v34 = vand.u32 2147483647, %v585_v24  ;;  %13588 = vst [vmem:[#allocation22_spill] sm:$0xff] %v10801_v15 }
  0xd9   :  { %v635_v25 = vor.u32 1.1754944e-38, %v634_v18  ;;  %vm633_vm4 = vcmp.eq.f32.partialorder %v632_v19, 8.507059e+37  ;;  %858 = vmatpush.msra.mxu0 %v10777_v22 }
  0xda   :  { %v598_v37 = vor.u32 1.1754944e-38, %v597_v30  ;;  %vm596_vm8 = vcmp.eq.f32.partialorder %v595_v34, 8.507059e+37 }
  0xdb   :  { %604 = vrot.lane.b32.xlu0 %v10026_v23, %s10347_s3  ;;  %v10787_v23 = vand.u32 4294901760, %v10765_v8  ;;  %862 = vmatpush.msra.mxu0 %v10781_v31 }
  0xdd   :  { %v10032_v39 = vpop.eup %10031  ;;  %13586 = vst [vmem:[#allocation20_spill] sm:$0xff] %v10787_v23  ;;  %866 = vmatpush.msra.mxu0 %v10787_v23 }
  0xde   :  { %v624_v3 = vmul.f32 %v10032_v39, %v622_v38  ;;  %v10034_v5 = vpop.eup %10033  ;;  %vm629_vm1 = vweird.f32 %v10032_v39  ;;  %v736_v38 = vsub.f32 %v10758_v6, %v10781_v31 }
  0xdf   :  { %v587_v10 = vmul.f32 %v10034_v5, %v585_v24  ;;  %vm630_vm3 = vmor %vm628_vm2, %vm629_vm1  ;;  %vm592_vm5 = vweird.f32 %v10034_v5  ;;  %v10805_v24 = vand.u32 4294901760, %v10771_v13  ;;  %870 = vmatpush.msra.mxu0 %v10801_v15 }
  0xe0   :  { %v625_v4 = vsub.f32 1.0, %v624_v3  ;;  %vm593_vm7 = vmor %vm591_vm6, %vm592_vm5  ;;  %v10810_v3 = vand.u32 4294901760, %v730_v36  ;;  %v10941_v36 = vand.u32 4294901760, %v571_v59 }
  0xe1   :  { %v588_v16 = vsub.f32 1.0, %v587_v10  ;;  %13589 = vst [vmem:[#allocation23_spill] sm:$0xff] %v10805_v24  ;;  %v748_v10 = vsub.f32 %v10768_v12, %v10801_v15  ;;  %v754_v18 = vsub.f32 %v10771_v13, %v10805_v24  ;;  %874 = vmatpush.msra.mxu0 %v10805_v24 }
  0xe2   :  { %v626_v9 = vmul.f32 %v10032_v39, %v625_v4  ;;  %v742_v4 = vsub.f32 %v10765_v8, %v10787_v23 }
  0xe3   :  { %v589_v21 = vmul.f32 %v10034_v5, %v588_v16 }
  0xe4   :  { %v627_v11 = vadd.f32 %v10032_v39, %v626_v9  ;;  %v10821_v9 = vand.u32 4294901760, %v736_v38  ;;  %v10832_v16 = vand.u32 4294901760, %v742_v4  ;;  %v10944_v38 = vsub.f32 %v573_v51, %v10925_v57  ;;  %v569_v4 = vld [vmem:[%s13429_s2 + $0x28] sm:$0xff] }
  0xe5   :  { %v590_v29 = vadd.f32 %v10034_v5, %v589_v21  ;;  %v565_v51 = vld [vmem:[%s13429_s2 + $0x8] sm:$0xff] }
  0xe6   :  { %v631_v20 = vsel %vm630_vm3, %v10032_v39, %v627_v11  ;;  %v10808_v39 = vand.u32 4294901760, %v724_v33  ;;  %v10827_v11 = vand.u32 4294901760, %v10791_v32 }
  0xe7   :  { %v10697_v27 = vsel %vm633_vm4, %v635_v25, %v631_v20  ;;  %v594_v35 = vsel %vm593_vm7, %v10034_v5, %v590_v29  ;;  %v10817_v5 = vsub.f32 %v564_v0, %v10784_v14  ;;  %v10843_v20 = vand.u32 4294901760, %v748_v10  ;;  %v579_v25 = vld [vmem:[%s13429_s2 + $0x78] sm:$0xff] }
  0xe8   :  { %v10701_v41 = vsel %vm596_vm8, %v598_v37, %v594_v35  ;;  %v639_v43 = vmul.f32 0.0, %v10697_v27  ;;  %726 = vmatpush.msrb.mxu1 %v10808_v39  ;;  %13591 = vst [vmem:[#allocation25_spill] sm:$0xff] %v10827_v11  ;;  %v760_v21 = vsub.f32 %v10791_v32, %v10827_v11  ;;  %v10859_v29 = vand.u32 4294901760, %v579_v25  ;;  %878 = vmatpush.msra.mxu0 %v10827_v11 }
  0xe9   :  { %v602_v46 = vmul.f32 0.0, %v10701_v41  ;;  %13590 = vst [vmem:[#allocation24_spill] sm:$0xff] %v10817_v5  ;;  %v10838_v19 = vand.u32 4294901760, %v10817_v5  ;;  %805 = vmatpush.msrb.mxu2 %v10817_v5  ;;  %vm1252_vm4 = vcmask 257026  }
  0xea   :  { %732 = vmatpush.msrb.mxu1 %v10810_v3  ;;  %v10864_v30 = vand.u32 4294901760, %v760_v21  ;;  %v10955_v21 = vand.u32 4294901760, %v569_v4 }
  0xeb   :  { %13592 = vst [vmem:[#allocation26_spill] sm:$0xff] %v10838_v19  ;;  %926 = vmatpush.msra.mxu2 %v10859_v29  ;;  %882 = vmatpush.msra.mxu0 %v10838_v19 }
  0xec   :  { %738 = vmatpush.msrb.mxu1 %v10821_v9  ;;  %13593 = vst [vmem:[#allocation27_spill] sm:$0xff] %v10864_v30 }
  0xee   :  { %744 = vmatpush.msrb.mxu1 %v10832_v16 }
  0xf0   :  { %750 = vmatpush.msrb.mxu1 %v10843_v20 }
 0x145   :  { %v642_v26 = vpop.permute.xlu0 %641 }
 0x146   :  { %v644_v28 = vmul.f32 %v642_v26, %v10697_v27  ;;  %v10854_v26 = vand.u32 4294901760, %v754_v18 }
 0x148   :  { %646 = vrot.lane.b32.xlu1 %v644_v28, %s10348_s16  ;;  %v766_v28 = vsub.f32 %v10817_v5, %v10838_v19  ;;  %756 = vmatpush.msrb.mxu1 %v10854_v26 }
 0x14a   :  { %v10870_v35 = vand.u32 4294901760, %v766_v28  ;;  %762 = vmatpush.msrb.mxu1 %v10864_v30  ;;  %v10961_v28 = vand.u32 4294901760, %v10944_v38 }
 0x14c   :  { %13594 = vst [vmem:[#allocation28_spill] sm:$0xff] %v10870_v35  ;;  %768 = vmatpush.msrb.mxu1 %v10870_v35 }
 0x14d   :  { %v605_v40 = vpop.permute.xlu0 %604 }
 0x14e   :  { %v607_v42 = vmul.f32 %v605_v40, %v10701_v41  ;;  %897 = vmatpush.msra.mxu1 %v10724_v54 }
 0x150   :  { %609 = vrot.lane.b32.xlu1 %v607_v42, %s10348_s16  ;;  %899 = vmatpush.msra.mxu1 %v10726_v55 }
 0x152   :  { %901 = vmatpush.msra.mxu1 %v10728_v56 }
 0x154   :  { %903 = vmatpush.msra.mxu1 %v10739_v60 }
 0x156   :  { %905 = vmatpush.msra.mxu1 %v10741_v61 }
 0x158   :  { %907 = vmatpush.msra.mxu1 %v10743_v62 }
 0x15a   :  { %909 = vmatpush.msra.mxu1 %v10762_v7 }
 0x15c   :  { %911 = vmatpush.msra.mxu1 %v10784_v14 }
 0x1ba   :  { %v647_v44 = vpop.permute.xlu1 %646 }
 0x1bb   :  { %v10706_v45 = vadd.f32 %v647_v44, %v639_v43  ;;  %v10902_v44 = vsub.f32 %v579_v25, %v10859_v29  ;;  %v10958_v25 = vsub.f32 %v571_v59, %v10941_v36 }
 0x1bd   :  { %13577 = vst [vmem:[#allocation11_spill] sm:$0xff] %v10706_v45  ;;  %10035 = vtanh.f32 %v10706_v45 }
 0x1c2   :  { %v610_v47 = vpop.permute.xlu1 %609 }
 0x1c3   :  { %v10036_v48 = vpop.eup %10035  ;;  %v10710_v49 = vadd.f32 %v610_v47, %v602_v46  ;;  %v575_v46 = vld [vmem:[%s13429_s2 + $0x58] sm:$0xff]  ;;  %v10909_v47 = vand.u32 4294901760, %v10902_v44 }
 0x1c4   :  { %652 = vrot.lane.b32.xlu2 %v10036_v48, %s10347_s3  ;;  %v10911_v48 = vand.u32 4294901760, %v575_v46 }
 0x1c5   :  { %13578 = vst [vmem:[#allocation12_spill] sm:$0xff] %v10710_v49  ;;  %10037 = vtanh.f32 %v10710_v49  ;;  %v961_v52 = vsub.f32 %v10902_v44, %v10909_v47 }
 0x1c6   :  { %v10928_v58 = vsub.f32 %v575_v46, %v10911_v48  ;;  %v979_v46 = vsub.f32 %v10944_v38, %v10961_v28 }
 0x1c7   :  { %v10933_v63 = vand.u32 4294901760, %v961_v52 }
 0x1c8   :  { %v10939_v33 = vand.u32 4294901760, %v10928_v58 }
 0x1c9   :  { %13596 = vst [vmem:[#allocation30_spill] sm:$0xff] %v10933_v63  ;;  %963 = vmatpush.msra.mxu3 %v10933_v63 }
 0x1ca   :  { %v973_v18 = vsub.f32 %v10928_v58, %v10939_v33 }
 0x1cb   :  { %v10038_v50 = vpop.eup %10037 }
 0x1cc   :  { %615 = vrot.lane.b32.xlu2 %v10038_v50, %s10347_s3 }
 0x21e   :  { %v653_v34 = vpop.permute.xlu2 %652 }
 0x21f   :  { %v10873_v37 = vmul.f32 %v653_v34, %v10697_v27  ;;  %v567_v34 = vld [vmem:[%s13429_s2 + $0x18] sm:$0xff] }
 0x221   :  { %13595 = vst [vmem:[#allocation29_spill] sm:$0xff] %v10873_v37  ;;  %v661_v40 = vrot.slane %v10873_v37, 6 }
 0x223   :  { %662 = vrot.lane.b32.xlu1 %v661_v40, %s10347_s3  ;;  %v10967_v40 = vand.u32 4294901760, %v973_v18  ;;  %v10995_v18 = vand.u32 4294901760, %v979_v46 }
 0x225   :  { %13598 = vst [vmem:[#allocation32_spill] sm:$0xff] %v10967_v40 }
 0x226   :  { %v616_v27 = vpop.permute.xlu2 %615  ;;  %13599 = vst [vmem:[#allocation33_spill] sm:$0xff] %v10995_v18 }
 0x227   :  { %v618_v42 = vmul.f32 %v616_v27, %v10701_v41  ;;  %v577_v41 = vld [vmem:[%s13429_s2 + $0x68] sm:$0xff]  ;;  %v10971_v27 = vand.u32 4294901760, %v10958_v25  ;;  %s10350_s2 = smov [#allocation6]  }
 0x228   :  { %v10899_v43 = vand.u32 4294901760, %v577_v41  ;;  %s9953_s17 = sshll.u32 %s10350_s2, 4  ;;  %s9954_s17 = int_to_ptr.vmem [resolvable:$true] %s9953_s17 }
 0x229   :  { %657 = vrot.lane.b32.xlu0 %v618_v42, %s10348_s16  ;;  %v10973_v42 = vand.u32 4294901760, %v567_v34  ;;  %v985_v52 = vsub.f32 %v10958_v25, %v10971_v27 }
 0x22a   :  { %928 = vmatpush.msra.mxu2 %v10899_v43  ;;  %v10914_v50 = vsub.f32 %v577_v41, %v10899_v43  ;;  %v10976_v41 = vsub.f32 %v569_v4, %v10955_v21 }
 0x22b   :  { %v10993_v4 = vsub.f32 %v567_v34, %v10973_v42  ;;  %v10997_v37 = vand.u32 4294901760, %v985_v52 }
 0x22c   :  { %930 = vmatpush.msra.mxu2 %v10911_v48  ;;  %v10923_v53 = vand.u32 4294901760, %v10914_v50  ;;  %v10988_v59 = vand.u32 4294901760, %v10976_v41 }
 0x22d   :  { %13600 = vst [vmem:[#allocation34_spill] sm:$0xff] %v10997_v37  ;;  %v11003_v49 = vand.u32 4294901760, %v10993_v4 }
 0x22e   :  { %v967_v0 = vsub.f32 %v10914_v50, %v10923_v53  ;;  %932 = vmatpush.msra.mxu2 %v10925_v57  ;;  %v991_v45 = vsub.f32 %v10976_v41, %v10988_v59 }
 0x22f   :  { %v997_v34 = vsub.f32 %v10993_v4, %v11003_v49 }
 0x230   :  { %v10950_v10 = vand.u32 4294901760, %v967_v0  ;;  %934 = vmatpush.msra.mxu2 %v10941_v36  ;;  %v10990_v0 = vand.u32 4294901760, %v565_v51  ;;  %v11009_v11 = vand.u32 4294901760, %v991_v45 }
 0x231   :  { %v11017_v52 = vand.u32 4294901760, %v997_v34 }
 0x232   :  { %13597 = vst [vmem:[#allocation31_spill] sm:$0xff] %v10950_v10  ;;  %969 = vmatpush.msra.mxu3 %v10950_v10  ;;  %936 = vmatpush.msra.mxu2 %v10955_v21  ;;  %v11006_v19 = vsub.f32 %v565_v51, %v10990_v0 }
 0x233   :  { %13601 = vst [vmem:[#allocation35_spill] sm:$0xff] %v11009_v11 }
 0x234   :  { %975 = vmatpush.msra.mxu3 %v10967_v40  ;;  %938 = vmatpush.msra.mxu2 %v10973_v42  ;;  %v11014_v46 = vand.u32 4294901760, %v11006_v19  ;;  %13602 = vst [vmem:[#allocation36_spill] sm:$0xff] %v11017_v52 }
 0x236   :  { %940 = vmatpush.msra.mxu2 %v10990_v0  ;;  %981 = vmatpush.msra.mxu3 %v10995_v18  ;;  %v1003_v24 = vsub.f32 %v11006_v19, %v11014_v46 }
 0x238   :  { %987 = vmatpush.msra.mxu3 %v10997_v37  ;;  %v11022_v51 = vand.u32 4294901760, %v1003_v24 }
 0x23a   :  { %993 = vmatpush.msra.mxu3 %v11009_v11  ;;  %13603 = vst [vmem:[#allocation37_spill] sm:$0xff] %v11022_v51 }
 0x23c   :  { %999 = vmatpush.msra.mxu3 %v11017_v52 }
 0x23e   :  { %1005 = vmatpush.msra.mxu3 %v11022_v51 }
 0x295   :  { %v663_v45 = vpop.permute.xlu1 %662 }
 0x29b   :  { %v658_v15 = vpop.permute.xlu0 %657 }
 0x29c   :  { %v666_v23 = vsel %vm665_vm9, %v658_v15, %v663_v45  ;;  %668 = vst.msk [vmem:[#allocation3] sm:$0x3] %vm667_vm10, %v658_v15  ;;  %v13605_v15 = vld [vmem:[#allocation34_spill] sm:$0xff]  ;;  %v13608_v45 = vld [vmem:[#allocation23_spill] sm:$0xff] }
 0x29d   :  { %v678_v34 = vsel %vm676_vm11, %v666_v23, 0 }
 0x29e   :  { %v704_v37 = vand.u32 4294901760, %v678_v34 }
 0x2a0   :  { %v705_v31 = vsub.f32 %v678_v34, %v704_v37  ;;  %770 = vmatmul.f32.vlgmr.msrb.gmra.mxu1 %v704_v37  ;;  %v13609_v34 = vld [vmem:[#allocation37_spill] sm:$0xff] }
 0x2a1   :  { %1058 = vmatpush.msrb.mxu1 %v10859_v29 }
 0x2a2   :  { %808 = vmatmul.f32.vlgmr.msrb.gmra.mxu2 %v705_v31  ;;  %v706_v24 = vand.u32 4294901760, %v705_v31 }
 0x2a3   :  { %1060 = vmatpush.msrb.mxu1 %v10899_v43  ;;  %1091 = vmatpush.msrb.mxu2 %v10909_v47 }
 0x2a4   :  { %839 = vmatmul.f32.vlgmr.msrb.gmra.mxu3 %v706_v24  ;;  %v707_v51 = vsub.f32 %v705_v31, %v706_v24 }
 0x2a5   :  { %1062 = vmatpush.msrb.mxu1 %v10911_v48  ;;  %1095 = vmatpush.msrb.mxu2 %v10923_v53 }
 0x2a6   :  { %1134 = vmatpush.msrb.mxu3 %v10859_v29  ;;  %v708_v23 = vand.u32 4294901760, %v707_v51  ;;  %v13607_v51 = vld [vmem:[#allocation22_spill] sm:$0xff] }
 0x2a7   :  { %1064 = vmatpush.msrb.mxu1 %v10925_v57  ;;  %1099 = vmatpush.msrb.mxu2 %v10939_v33 }
 0x2a8   :  { %1136 = vmatpush.msrb.mxu3 %v10899_v43  ;;  %709 = vmatmul.f32.vlgmr.msrb.gmra.mxu0 %v708_v23 }
 0x2a9   :  { %913 = vmatmul.f32.vlgmr.msra.gmra.mxu1 %v704_v37  ;;  %1021 = vmatpush.msrb.mxu0 %v10902_v44 }
 0x2aa   :  { %1066 = vmatpush.msrb.mxu1 %v10941_v36  ;;  %1103 = vmatpush.msrb.mxu2 %v10961_v28 }
 0x2ab   :  { %1138 = vmatpush.msrb.mxu3 %v10911_v48  ;;  %946 = vmatmul.f32.vlgmr.msra.gmra.mxu2 %v708_v23  ;;  %v13611_v23 = vld [vmem:[#allocation26_spill] sm:$0xff] }
 0x2ac   :  { %1024 = vmatpush.msrb.mxu0 %v10914_v50  ;;  %1068 = vmatpush.msrb.mxu1 %v10955_v21 }
 0x2ad   :  { %1107 = vmatpush.msrb.mxu2 %v10971_v27  ;;  %1140 = vmatpush.msrb.mxu3 %v10925_v57 }
 0x2ae   :  { %1007 = vmatmul.f32.vlgmr.msra.gmra.mxu3 %v704_v37  ;;  %1027 = vmatpush.msrb.mxu0 %v10928_v58 }
 0x2af   :  { %1070 = vmatpush.msrb.mxu1 %v10973_v42  ;;  %1111 = vmatpush.msrb.mxu2 %v10988_v59 }
 0x2b0   :  { %1142 = vmatpush.msrb.mxu3 %v10941_v36  ;;  %1030 = vmatpush.msrb.mxu0 %v10944_v38 }
 0x2b1   :  { %1072 = vmatpush.msrb.mxu1 %v10990_v0  ;;  %1115 = vmatpush.msrb.mxu2 %v11003_v49 }
 0x2b2   :  { %1144 = vmatpush.msrb.mxu3 %v10955_v21  ;;  %884 = vmatmul.f32.vlgmr.msra.gmra.mxu0 %v704_v37 }
 0x2b3   :  { %1076 = vmatmul.f32.vlgmr.msrb.gmra.mxu1 %v706_v24  ;;  %1033 = vmatpush.msrb.mxu0 %v10958_v25  ;;  %v13610_v24 = vld [vmem:[#allocation25_spill] sm:$0xff] }
 0x2b4   :  { %1119 = vmatpush.msrb.mxu2 %v11014_v46  ;;  %1146 = vmatpush.msrb.mxu3 %v10973_v42 }
 0x2b5   :  { %1121 = vmatmul.f32.vlgmr.msrb.gmra.mxu2 %v704_v37  ;;  %1036 = vmatpush.msrb.mxu0 %v10976_v41 }
 0x2b6   :  { %1148 = vmatpush.msrb.mxu3 %v10990_v0  ;;  %1311 = vmatpush.msra.mxu1 %v10808_v39 }
 0x2b7   :  { %1150 = vmatmul.f32.vlgmr.msrb.gmra.mxu3 %v704_v37  ;;  %1039 = vmatpush.msrb.mxu0 %v10993_v4  ;;  %v13606_v37 = vld [vmem:[#allocation20_spill] sm:$0xff] }
 0x2b8   :  { %1317 = vmatpush.msra.mxu1 %v10810_v3  ;;  %1369 = vmatpush.msra.mxu2 %v10752_v1 }
 0x2b9   :  { %1042 = vmatpush.msrb.mxu0 %v11006_v19  ;;  %1406 = vmatpush.msra.mxu3 %v10724_v54 }
 0x2ba   :  { %1045 = vmatmul.f32.vlgmr.msrb.gmra.mxu0 %v705_v31  ;;  %1323 = vmatpush.msra.mxu1 %v10821_v9  ;;  %v13604_v31 = vld [vmem:[#allocation18_spill] sm:$0xff] }
 0x2bb   :  { %1372 = vmatpush.msra.mxu2 %v10755_v2  ;;  %1408 = vmatpush.msra.mxu3 %v10726_v55 }
 0x2bc   :  { %1329 = vmatpush.msra.mxu1 %v10832_v16  ;;  %1274 = vmatpush.msra.mxu0 %v10724_v54 }
 0x2bd   :  { %1375 = vmatpush.msra.mxu2 %v10758_v6  ;;  %1410 = vmatpush.msra.mxu3 %v10728_v56 }
 0x2be   :  { %1335 = vmatpush.msra.mxu1 %v10843_v20  ;;  %1276 = vmatpush.msra.mxu0 %v10726_v55 }
 0x2bf   :  { %1378 = vmatpush.msra.mxu2 %v10765_v8  ;;  %1412 = vmatpush.msra.mxu3 %v10739_v60 }
 0x2c0   :  { %1341 = vmatpush.msra.mxu1 %v10854_v26  ;;  %1278 = vmatpush.msra.mxu0 %v10728_v56 }
 0x2c1   :  { %1381 = vmatpush.msra.mxu2 %v10768_v12  ;;  %1414 = vmatpush.msra.mxu3 %v10741_v61 }
 0x2c2   :  { %1347 = vmatpush.msra.mxu1 %v10864_v30  ;;  %1280 = vmatpush.msra.mxu0 %v10739_v60 }
 0x2c3   :  { %1384 = vmatpush.msra.mxu2 %v10771_v13  ;;  %1416 = vmatpush.msra.mxu3 %v10743_v62 }
 0x2c4   :  { %1353 = vmatpush.msra.mxu1 %v10870_v35  ;;  %1282 = vmatpush.msra.mxu0 %v10741_v61 }
 0x2c5   :  { %1387 = vmatpush.msra.mxu2 %v10791_v32  ;;  %1418 = vmatpush.msra.mxu3 %v10762_v7 }
 0x2c6   :  { %1482 = vmatpush.msrb.mxu1 %v10724_v54  ;;  %1284 = vmatpush.msra.mxu0 %v10743_v62 }
 0x2c7   :  { %1390 = vmatpush.msra.mxu2 %v10817_v5  ;;  %1420 = vmatpush.msra.mxu3 %v10784_v14  ;;  %v674_v5 = vld [vmem:[#allocation2 + $0x10] sm:$0xc] }
 0x2c8   :  { %1484 = vmatpush.msrb.mxu1 %v10726_v55  ;;  %1286 = vmatpush.msra.mxu0 %v10762_v7 }
 0x2c9   :  { %1511 = vmatpush.msrb.mxu2 %v10859_v29  ;;  %1548 = vmatpush.msrb.mxu3 %v10933_v63 }
 0x2ca   :  { %1486 = vmatpush.msrb.mxu1 %v10728_v56  ;;  %1288 = vmatpush.msra.mxu0 %v10784_v14 }
 0x2cb   :  { %1513 = vmatpush.msrb.mxu2 %v10899_v43  ;;  %1554 = vmatpush.msrb.mxu3 %v10950_v10 }
 0x2cc   :  { %1488 = vmatpush.msrb.mxu1 %v10739_v60  ;;  %1439 = vmatpush.msrb.mxu0 %v10774_v17 }
 0x2cd   :  { %1515 = vmatpush.msrb.mxu2 %v10911_v48  ;;  %1560 = vmatpush.msrb.mxu3 %v10967_v40 }
 0x2ce   :  { %1490 = vmatpush.msrb.mxu1 %v10741_v61  ;;  %1443 = vmatpush.msrb.mxu0 %v10777_v22 }
 0x2cf   :  { %1517 = vmatpush.msrb.mxu2 %v10925_v57  ;;  %1566 = vmatpush.msrb.mxu3 %v10995_v18 }
 0x2d0   :  { %1492 = vmatpush.msrb.mxu1 %v10743_v62  ;;  %1447 = vmatpush.msrb.mxu0 %v13604_v31 }
 0x2d1   :  { %1519 = vmatpush.msrb.mxu2 %v10941_v36  ;;  %1572 = vmatpush.msrb.mxu3 %v13605_v15 }
 0x2d2   :  { %1494 = vmatpush.msrb.mxu1 %v10762_v7  ;;  %1451 = vmatpush.msrb.mxu0 %v13606_v37 }
 0x2d3   :  { %1521 = vmatpush.msrb.mxu2 %v10955_v21  ;;  %1578 = vmatpush.msrb.mxu3 %v11009_v11 }
 0x2d4   :  { %1496 = vmatpush.msrb.mxu1 %v10784_v14  ;;  %1455 = vmatpush.msrb.mxu0 %v13607_v51 }
 0x2d5   :  { %1523 = vmatpush.msrb.mxu2 %v10973_v42  ;;  %1584 = vmatpush.msrb.mxu3 %v11017_v52 }
 0x2d6   :  { %1459 = vmatpush.msrb.mxu0 %v13608_v45 }
 0x2d7   :  { %1525 = vmatpush.msrb.mxu2 %v10990_v0  ;;  %1590 = vmatpush.msrb.mxu3 %v13609_v34 }
 0x2d8   :  { %1463 = vmatpush.msrb.mxu0 %v13610_v24 }
 0x2da   :  { %1467 = vmatpush.msrb.mxu0 %v13611_v23 }
 0x31d   :  { %v771_v37 = vpop.f32.mrf.mxu1 }
 0x325   :  { %v710_v15 = vpop.f32.mrf.mxu0  ;;  %v809_v18 = vpop.f32.mrf.mxu2 }
 0x326   :  { %v772_v31 = vadd.f32 %v771_v37, %v710_v15  ;;  %v914_v51 = vpop.f32.mrf.mxu1 }
 0x327   :  { %v840_v22 = vpop.f32.mrf.mxu3 }
 0x328   :  { %v810_v11 = vadd.f32 %v809_v18, %v772_v31 }
 0x32a   :  { %v841_v40 = vadd.f32 %v840_v22, %v810_v11  ;;  %v675_v11 = vld [vmem:[#allocation2 + $0x8] sm:$0x30] }
 0x32e   :  { %v947_v63 = vpop.f32.mrf.mxu2 }
 0x32f   :  { %v885_v17 = vpop.f32.mrf.mxu0 }
 0x330   :  { %v886_v10 = vadd.f32 %v885_v17, %v841_v40  ;;  %v1077_v32 = vpop.f32.mrf.mxu1 }
 0x331   :  { %v1008_v14 = vpop.f32.mrf.mxu3 }
 0x332   :  { %v915_v52 = vadd.f32 %v914_v51, %v886_v10  ;;  %v1009_v7 = vadd.f32 %v1008_v14, %v947_v63 }
 0x334   :  { %v1155_v45 = vrot.slane %v915_v52, 6 }
 0x336   :  { %v1157_v34 = vadd.f32 %v1155_v45, %v674_v5 }
 0x337   :  { %v1046_v24 = vpop.f32.mrf.mxu0 }
 0x338   :  { %10039 = vtanh.f32 %v1157_v34  ;;  %v1047_v23 = vadd.f32 %v1046_v24, %v1009_v7  ;;  %v1122_v15 = vpop.f32.mrf.mxu2  ;;  %v9986_v7 = vmul.f32 -1.442695, %v1157_v34 }
 0x33a   :  { %v1078_v35 = vadd.f32 %v1077_v32, %v1047_v23  ;;  %v1151_v62 = vpop.f32.mrf.mxu3 }
 0x33c   :  { %v1123_v37 = vadd.f32 %v1122_v15, %v1078_v35 }
 0x33e   :  { %v10040_v18 = vpop.eup %10039  ;;  %v1152_v22 = vadd.f32 %v1151_v62, %v1123_v37 }
 0x33f   :  { %1187 = vrot.lane.b32.xlu0 %v10040_v18, %s10347_s3 }
 0x340   :  { %v1159_v17 = vrot.slane %v1152_v22, 4 }
 0x342   :  { %v1161_v10 = vadd.f32 %v1159_v17, %v675_v11 }
 0x344   :  { %10041 = vtanh.f32 %v1161_v10  ;;  %v9987_v14 = vmul.f32 -1.442695, %v1161_v10 }
 0x346   :  { %10043 = vpow2.f32 %v9987_v14 }
 0x347   :  { %10045 = vpow2.f32 %v9986_v7 }
 0x34a   :  { %v10042_v40 = vpop.eup %10041 }
 0x34b   :  { %1227 = vrot.lane.b32.xlu2 %v10042_v40, %s10347_s3 }
 0x34c   :  { %v10044_v5 = vpop.eup %10043 }
 0x34d   :  { %v1205_v63 = vadd.f32 1.0, %v10044_v5  ;;  %v10046_v32 = vpop.eup %10045 }
 0x34e   :  { %v1165_v52 = vadd.f32 1.0, %v10046_v32 }
 0x34f   :  { %10047 = vrcp.f32 %v1205_v63  ;;  %v1217_v15 = vand.u32 2147483648, %v1205_v63  ;;  %vm1211_vm13 = vweird.f32 %v1205_v63  ;;  %v1215_v37 = vand.u32 2147483647, %v1205_v63 }
 0x350   :  { %10049 = vrcp.f32 %v1165_v52  ;;  %v1177_v5 = vand.u32 2147483648, %v1165_v52  ;;  %vm1171_vm1 = vweird.f32 %v1165_v52  ;;  %v1175_v7 = vand.u32 2147483647, %v1165_v52 }
 0x351   :  { %v1218_v22 = vor.u32 1.1754944e-38, %v1217_v15  ;;  %vm1216_vm15 = vcmp.eq.f32.partialorder %v1215_v37, 8.507059e+37 }
 0x352   :  { %vm1176_vm3 = vcmp.eq.f32.partialorder %v1175_v7, 8.507059e+37 }
 0x355   :  { %v10048_v35 = vpop.eup %10047 }
 0x356   :  { %v1207_v62 = vmul.f32 %v10048_v35, %v1205_v63  ;;  %v10050_v45 = vpop.eup %10049  ;;  %vm1212_vm12 = vweird.f32 %v10048_v35 }
 0x357   :  { %v1167_v23 = vmul.f32 %v10050_v45, %v1165_v52  ;;  %vm1213_vm14 = vmor %vm1211_vm13, %vm1212_vm12  ;;  %vm1172_vm0 = vweird.f32 %v10050_v45 }
 0x358   :  { %v1208_v31 = vsub.f32 1.0, %v1207_v62  ;;  %vm1173_vm2 = vmor %vm1171_vm1, %vm1172_vm0  ;;  %v1178_v62 = vor.u32 1.1754944e-38, %v1177_v5  ;;  %vm1837_vm0 = vcmask 259076  }
 0x359   :  { %v1168_v34 = vsub.f32 1.0, %v1167_v23 }
 0x35a   :  { %v1209_v51 = vmul.f32 %v10048_v35, %v1208_v31 }
 0x35b   :  { %v1169_v40 = vmul.f32 %v10050_v45, %v1168_v34  ;;  %v13613_v34 = vld [vmem:[#allocation11_spill] sm:$0xff] }
 0x35c   :  { %v1210_v24 = vadd.f32 %v10048_v35, %v1209_v51  ;;  %v13612_v51 = vld [vmem:[#allocation12_spill] sm:$0xff]  ;;  %v1223_v52 = vrot.slane %v13613_v34, 2  ;;  %v13615_v34 = vld [vmem:[#allocation13_spill] sm:$0xff] }
 0x35d   :  { %v1170_v14 = vadd.f32 %v10050_v45, %v1169_v40 }
 0x35e   :  { %v1214_v18 = vsel %vm1213_vm14, %v10048_v35, %v1210_v24  ;;  %v1183_v24 = vrot.slane %v13612_v51, 6 }
 0x35f   :  { %v1219_v11 = vsel %vm1216_vm15, %v1218_v22, %v1214_v18  ;;  %v1174_v32 = vsel %vm1173_vm2, %v10050_v45, %v1170_v14 }
 0x360   :  { %v1179_v35 = vsel %vm1176_vm3, %v1178_v62, %v1174_v32  ;;  %v1225_v45 = vmul.f32 %v1223_v52, %v1219_v11  ;;  %v13616_v52 = vld [vmem:[#allocation28_spill] sm:$0xff] }
 0x361   :  { %v1185_v23 = vmul.f32 %v1183_v24, %v1179_v35 }
 0x3a5   :  { %v1228_v17 = vpop.permute.xlu2 %1227 }
 0x3a6   :  { %v1230_v10 = vmul.f32 %v1228_v17, %v1219_v11 }
 0x3a8   :  { %1232 = vrot.lane.b32.xlu1 %v1230_v10, %s10348_s16 }
 0x3b1   :  { %v1188_v63 = vpop.permute.xlu0 %1187 }
 0x3b2   :  { %v1190_v31 = vmul.f32 %v1188_v63, %v1179_v35 }
 0x3b4   :  { %1192 = vrot.lane.b32.xlu2 %v1190_v31, %s10348_s16 }
 0x40e   :  { %v1193_v15 = vpop.permute.xlu2 %1192 }
 0x40f   :  { %v11130_v37 = vadd.f32 %v1193_v15, %v1185_v23 }
 0x411   :  { %10051 = vtanh.f32 %v11130_v37 }
 0x417   :  { %v10052_v18 = vpop.eup %10051 }
 0x418   :  { %1198 = vrot.lane.b32.xlu1 %v10052_v18, %s10347_s3 }
 0x41a   :  { %v1233_v22 = vpop.permute.xlu1 %1232 }
 0x41b   :  { %v11135_v17 = vadd.f32 %v1233_v22, %v1225_v45  ;;  %v13617_v45 = vld [vmem:[#allocation21_spill] sm:$0xff]  ;;  %v13618_v22 = vld [vmem:[#allocation14_spill] sm:$0xff] }
 0x41d   :  { %10053 = vtanh.f32 %v11135_v17 }
 0x423   :  { %v10054_v10 = vpop.eup %10053 }
 0x424   :  { %1238 = vrot.lane.b32.xlu0 %v10054_v10, %s10347_s3  ;;  %v13619_v10 = vld [vmem:[#allocation24_spill] sm:$0xff] }
 0x48a   :  { %v1199_v40 = vpop.permute.xlu1 %1198 }
 0x48b   :  { %v1201_v14 = vmul.f32 %v1199_v40, %v1179_v35  ;;  %v13620_v40 = vld [vmem:[#allocation19_spill] sm:$0xff] }
 0x48d   :  { %1243 = vrot.lane.b32.xlu2 %v1201_v14, %s10348_s16  ;;  %v13621_v14 = vld [vmem:[#allocation30_spill] sm:$0xff] }
 0x496   :  { %v1239_v5 = vpop.permute.xlu0 %1238 }
 0x497   :  { %v11140_v7 = vmul.f32 %v1239_v5, %v1219_v11  ;;  %v13622_v5 = vld [vmem:[#allocation31_spill] sm:$0xff] }
 0x499   :  { %13614 = vst [vmem:[#allocation12_spill] sm:$0xff] %v11140_v7  ;;  %v1247_v32 = vrot.slane %v11140_v7, 2  ;;  %v13634_v7 = vld [vmem:[#allocation37_spill] sm:$0xff] }
 0x49b   :  { %1248 = vrot.lane.b32.xlu0 %v1247_v32, %s10347_s3  ;;  %v13623_v32 = vld [vmem:[#allocation16_spill] sm:$0xff] }
 0x4e7   :  { %v1244_v62 = vpop.permute.xlu2 %1243 }
 0x4e8   :  { %1253 = vst.msk [vmem:[#allocation3] sm:$0xc] %vm1252_vm4, %v1244_v62 }
 0x50d   :  { %v1249_v63 = vpop.permute.xlu0 %1248 }
 0x50e   :  { %v1251_v31 = vsel %vm665_vm9, %v1244_v62, %v1249_v63  ;;  %v13624_v62 = vld [vmem:[#allocation32_spill] sm:$0xff]  ;;  %v13625_v63 = vld [vmem:[#allocation17_spill] sm:$0xff] }
 0x50f   :  { %v1262_v51 = vrot.slane %v1251_v31, 2  ;;  %v13626_v31 = vld [vmem:[#allocation33_spill] sm:$0xff] }
 0x511   :  { %v1263_v24 = vsel %vm676_vm11, %v1262_v51, 0  ;;  %v13627_v51 = vld [vmem:[#allocation18_spill] sm:$0xff] }
 0x512   :  { %v1289_v35 = vand.u32 4294901760, %v1263_v24 }
 0x514   :  { %v1290_v23 = vsub.f32 %v1263_v24, %v1289_v35  ;;  %1355 = vmatmul.f32.vlgmr.msra.gmra.mxu1 %v1289_v35  ;;  %v13628_v24 = vld [vmem:[#allocation34_spill] sm:$0xff] }
 0x515   :  { %1643 = vmatpush.msra.mxu1 %v10859_v29 }
 0x516   :  { %1393 = vmatmul.f32.vlgmr.msra.gmra.mxu2 %v1290_v23  ;;  %v1291_v11 = vand.u32 4294901760, %v1290_v23 }
 0x517   :  { %1645 = vmatpush.msra.mxu1 %v10899_v43  ;;  %1676 = vmatpush.msra.mxu2 %v10909_v47 }
 0x518   :  { %1424 = vmatmul.f32.vlgmr.msra.gmra.mxu3 %v1291_v11  ;;  %v1292_v15 = vsub.f32 %v1290_v23, %v1291_v11 }
 0x519   :  { %1647 = vmatpush.msra.mxu1 %v10911_v48  ;;  %1680 = vmatpush.msra.mxu2 %v10923_v53 }
 0x51a   :  { %1719 = vmatpush.msra.mxu3 %v10859_v29  ;;  %v1293_v18 = vand.u32 4294901760, %v1292_v15  ;;  %v13632_v15 = vld [vmem:[#allocation36_spill] sm:$0xff] }
 0x51b   :  { %1649 = vmatpush.msra.mxu1 %v10925_v57  ;;  %1684 = vmatpush.msra.mxu2 %v10939_v33 }
 0x51c   :  { %1721 = vmatpush.msra.mxu3 %v10899_v43  ;;  %1294 = vmatmul.f32.vlgmr.msra.gmra.mxu0 %v1293_v18 }
 0x51d   :  { %1498 = vmatmul.f32.vlgmr.msrb.gmra.mxu1 %v1289_v35  ;;  %1606 = vmatpush.msra.mxu0 %v10902_v44 }
 0x51e   :  { %1651 = vmatpush.msra.mxu1 %v10941_v36  ;;  %1688 = vmatpush.msra.mxu2 %v10961_v28 }
 0x51f   :  { %1723 = vmatpush.msra.mxu3 %v10911_v48  ;;  %1531 = vmatmul.f32.vlgmr.msrb.gmra.mxu2 %v1293_v18  ;;  %v13633_v18 = vld [vmem:[#allocation23_spill] sm:$0xff] }
 0x520   :  { %1609 = vmatpush.msra.mxu0 %v10914_v50  ;;  %1653 = vmatpush.msra.mxu1 %v10955_v21 }
 0x521   :  { %1692 = vmatpush.msra.mxu2 %v10971_v27  ;;  %1725 = vmatpush.msra.mxu3 %v10925_v57 }
 0x522   :  { %1592 = vmatmul.f32.vlgmr.msrb.gmra.mxu3 %v1289_v35  ;;  %1612 = vmatpush.msra.mxu0 %v10928_v58 }
 0x523   :  { %1655 = vmatpush.msra.mxu1 %v10973_v42  ;;  %1696 = vmatpush.msra.mxu2 %v10988_v59 }
 0x524   :  { %1727 = vmatpush.msra.mxu3 %v10941_v36  ;;  %1615 = vmatpush.msra.mxu0 %v10944_v38 }
 0x525   :  { %1657 = vmatpush.msra.mxu1 %v10990_v0  ;;  %1700 = vmatpush.msra.mxu2 %v11003_v49 }
 0x526   :  { %1729 = vmatpush.msra.mxu3 %v10955_v21  ;;  %1469 = vmatmul.f32.vlgmr.msrb.gmra.mxu0 %v1289_v35 }
 0x527   :  { %1661 = vmatmul.f32.vlgmr.msra.gmra.mxu1 %v1291_v11  ;;  %1618 = vmatpush.msra.mxu0 %v10958_v25  ;;  %v13631_v11 = vld [vmem:[#allocation22_spill] sm:$0xff] }
 0x528   :  { %1704 = vmatpush.msra.mxu2 %v11014_v46  ;;  %1731 = vmatpush.msra.mxu3 %v10973_v42 }
 0x529   :  { %1706 = vmatmul.f32.vlgmr.msra.gmra.mxu2 %v1289_v35  ;;  %1621 = vmatpush.msra.mxu0 %v10976_v41 }
 0x52a   :  { %1733 = vmatpush.msra.mxu3 %v10990_v0  ;;  %1896 = vmatpush.msrb.mxu1 %v10808_v39 }
 0x52b   :  { %1735 = vmatmul.f32.vlgmr.msra.gmra.mxu3 %v1289_v35  ;;  %1624 = vmatpush.msra.mxu0 %v10993_v4  ;;  %v13629_v35 = vld [vmem:[#allocation20_spill] sm:$0xff] }
 0x52c   :  { %1902 = vmatpush.msrb.mxu1 %v10810_v3  ;;  %1954 = vmatpush.msrb.mxu2 %v10752_v1 }
 0x52d   :  { %1627 = vmatpush.msra.mxu0 %v11006_v19  ;;  %1991 = vmatpush.msrb.mxu3 %v10724_v54 }
 0x52e   :  { %1630 = vmatmul.f32.vlgmr.msra.gmra.mxu0 %v1290_v23  ;;  %1908 = vmatpush.msrb.mxu1 %v10821_v9  ;;  %v13630_v23 = vld [vmem:[#allocation35_spill] sm:$0xff] }
 0x52f   :  { %1957 = vmatpush.msrb.mxu2 %v10755_v2  ;;  %1993 = vmatpush.msrb.mxu3 %v10726_v55 }
 0x530   :  { %1914 = vmatpush.msrb.mxu1 %v10832_v16  ;;  %1859 = vmatpush.msrb.mxu0 %v10724_v54 }
 0x531   :  { %1960 = vmatpush.msrb.mxu2 %v10758_v6  ;;  %1995 = vmatpush.msrb.mxu3 %v10728_v56 }
 0x532   :  { %1920 = vmatpush.msrb.mxu1 %v10843_v20  ;;  %1861 = vmatpush.msrb.mxu0 %v10726_v55 }
 0x533   :  { %1963 = vmatpush.msrb.mxu2 %v10765_v8  ;;  %1997 = vmatpush.msrb.mxu3 %v10739_v60 }
 0x534   :  { %1926 = vmatpush.msrb.mxu1 %v10854_v26  ;;  %1863 = vmatpush.msrb.mxu0 %v10728_v56 }
 0x535   :  { %1966 = vmatpush.msrb.mxu2 %v10768_v12  ;;  %1999 = vmatpush.msrb.mxu3 %v10741_v61 }
 0x536   :  { %1932 = vmatpush.msrb.mxu1 %v10864_v30  ;;  %1865 = vmatpush.msrb.mxu0 %v10739_v60 }
 0x537   :  { %1969 = vmatpush.msrb.mxu2 %v10771_v13  ;;  %2001 = vmatpush.msrb.mxu3 %v13615_v34 }
 0x538   :  { %1938 = vmatpush.msrb.mxu1 %v13616_v52  ;;  %1867 = vmatpush.msrb.mxu0 %v10741_v61 }
 0x539   :  { %1972 = vmatpush.msrb.mxu2 %v13617_v45  ;;  %2003 = vmatpush.msrb.mxu3 %v13618_v22  ;;  %v1259_v45 = vld [vmem:[#allocation2 + $0x10] sm:$0x30] }
 0x53a   :  { %2067 = vmatpush.msra.mxu1 %v10724_v54  ;;  %1869 = vmatpush.msrb.mxu0 %v13615_v34 }
 0x53b   :  { %1975 = vmatpush.msrb.mxu2 %v13619_v10  ;;  %2005 = vmatpush.msrb.mxu3 %v13620_v40 }
 0x53c   :  { %2069 = vmatpush.msra.mxu1 %v10726_v55  ;;  %1871 = vmatpush.msrb.mxu0 %v13618_v22 }
 0x53d   :  { %2096 = vmatpush.msra.mxu2 %v10859_v29  ;;  %2133 = vmatpush.msra.mxu3 %v13621_v14 }
 0x53e   :  { %2071 = vmatpush.msra.mxu1 %v10728_v56  ;;  %1873 = vmatpush.msrb.mxu0 %v13620_v40 }
 0x53f   :  { %2098 = vmatpush.msra.mxu2 %v10899_v43  ;;  %2139 = vmatpush.msra.mxu3 %v13622_v5 }
 0x540   :  { %2073 = vmatpush.msra.mxu1 %v10739_v60  ;;  %2024 = vmatpush.msra.mxu0 %v13623_v32 }
 0x541   :  { %2100 = vmatpush.msra.mxu2 %v10911_v48  ;;  %2145 = vmatpush.msra.mxu3 %v13624_v62 }
 0x542   :  { %2075 = vmatpush.msra.mxu1 %v10741_v61  ;;  %2028 = vmatpush.msra.mxu0 %v13625_v63 }
 0x543   :  { %2102 = vmatpush.msra.mxu2 %v10925_v57  ;;  %2151 = vmatpush.msra.mxu3 %v13626_v31 }
 0x544   :  { %2077 = vmatpush.msra.mxu1 %v13615_v34  ;;  %2032 = vmatpush.msra.mxu0 %v13627_v51  ;;  %v13635_v51 = vld [vmem:[#allocation25_spill] sm:$0xff] }
 0x545   :  { %2104 = vmatpush.msra.mxu2 %v10941_v36  ;;  %2157 = vmatpush.msra.mxu3 %v13628_v24  ;;  %v13636_v24 = vld [vmem:[#allocation26_spill] sm:$0xff] }
 0x546   :  { %2079 = vmatpush.msra.mxu1 %v13618_v22  ;;  %2036 = vmatpush.msra.mxu0 %v13629_v35 }
 0x547   :  { %2106 = vmatpush.msra.mxu2 %v10955_v21  ;;  %2163 = vmatpush.msra.mxu3 %v13630_v23 }
 0x548   :  { %2081 = vmatpush.msra.mxu1 %v13620_v40  ;;  %2040 = vmatpush.msra.mxu0 %v13631_v11 }
 0x549   :  { %2108 = vmatpush.msra.mxu2 %v10973_v42  ;;  %2169 = vmatpush.msra.mxu3 %v13632_v15 }
 0x54a   :  { %2044 = vmatpush.msra.mxu0 %v13633_v18 }
 0x54b   :  { %2110 = vmatpush.msra.mxu2 %v10990_v0  ;;  %2175 = vmatpush.msra.mxu3 %v13634_v7 }
 0x54c   :  { %2048 = vmatpush.msra.mxu0 %v13635_v51 }
 0x54e   :  { %2052 = vmatpush.msra.mxu0 %v13636_v24 }
 0x591   :  { %v1356_v35 = vpop.f32.mrf.mxu1 }
 0x599   :  { %v1295_v31 = vpop.f32.mrf.mxu0  ;;  %v1394_v62 = vpop.f32.mrf.mxu2 }
 0x59a   :  { %v1357_v63 = vadd.f32 %v1356_v35, %v1295_v31  ;;  %v1499_v11 = vpop.f32.mrf.mxu1 }
 0x59b   :  { %v1425_v32 = vpop.f32.mrf.mxu3 }
 0x59c   :  { %v1395_v23 = vadd.f32 %v1394_v62, %v1357_v63 }
 0x59e   :  { %v1426_v5 = vadd.f32 %v1425_v32, %v1395_v23 }
 0x5a2   :  { %v1532_v10 = vpop.f32.mrf.mxu2 }
 0x5a3   :  { %v1470_v14 = vpop.f32.mrf.mxu0 }
 0x5a4   :  { %v1471_v40 = vadd.f32 %v1470_v14, %v1426_v5  ;;  %v1662_v34 = vpop.f32.mrf.mxu1  ;;  %v1260_v5 = vld [vmem:[#allocation2 + $0x8] sm:$0xc] }
 0x5a5   :  { %v1593_v22 = vpop.f32.mrf.mxu3 }
 0x5a6   :  { %v1500_v15 = vadd.f32 %v1499_v11, %v1471_v40  ;;  %v1594_v52 = vadd.f32 %v1593_v22, %v1532_v10 }
 0x5a8   :  { %v1740_v18 = vrot.slane %v1500_v15, 4 }
 0x5aa   :  { %v1742_v7 = vadd.f32 %v1740_v18, %v1259_v45 }
 0x5ab   :  { %v1631_v51 = vpop.f32.mrf.mxu0 }
 0x5ac   :  { %10055 = vtanh.f32 %v1742_v7  ;;  %v1632_v24 = vadd.f32 %v1631_v51, %v1594_v52  ;;  %v1707_v31 = vpop.f32.mrf.mxu2  ;;  %v9988_v45 = vmul.f32 -1.442695, %v1742_v7 }
 0x5ae   :  { %v1663_v13 = vadd.f32 %v1662_v34, %v1632_v24  ;;  %v1736_v30 = vpop.f32.mrf.mxu3 }
 0x5b0   :  { %v1708_v35 = vadd.f32 %v1707_v31, %v1663_v13 }
 0x5b2   :  { %v10056_v62 = vpop.eup %10055  ;;  %v1737_v32 = vadd.f32 %v1736_v30, %v1708_v35 }
 0x5b3   :  { %1772 = vrot.lane.b32.xlu2 %v10056_v62, %s10347_s3 }
 0x5b4   :  { %v1744_v14 = vrot.slane %v1737_v32, 6 }
 0x5b6   :  { %v1746_v40 = vadd.f32 %v1744_v14, %v1260_v5 }
 0x5b8   :  { %10057 = vtanh.f32 %v1746_v40  ;;  %v9989_v24 = vmul.f32 -1.442695, %v1746_v40 }
 0x5b9   :  { %10059 = vpow2.f32 %v9988_v45 }
 0x5be   :  { %v10058_v63 = vpop.eup %10057 }
 0x5bf   :  { %1812 = vrot.lane.b32.xlu1 %v10058_v63, %s10347_s3  ;;  %v10060_v22 = vpop.eup %10059 }
 0x5c0   :  { %v1750_v52 = vadd.f32 1.0, %v10060_v22 }
 0x5c2   :  { %10061 = vrcp.f32 %v1750_v52  ;;  %v1762_v23 = vand.u32 2147483648, %v1750_v52  ;;  %vm1756_vm6 = vweird.f32 %v1750_v52  ;;  %v1760_v11 = vand.u32 2147483647, %v1750_v52 }
 0x5c3   :  { %10063 = vpow2.f32 %v9989_v24 }
 0x5c4   :  { %v1763_v18 = vor.u32 1.1754944e-38, %v1762_v23  ;;  %vm1761_vm8 = vcmp.eq.f32.partialorder %v1760_v11, 8.507059e+37 }
 0x5c8   :  { %v10062_v34 = vpop.eup %10061 }
 0x5c9   :  { %v1752_v10 = vmul.f32 %v10062_v34, %v1750_v52  ;;  %vm1757_vm5 = vweird.f32 %v10062_v34  ;;  %v10064_v35 = vpop.eup %10063 }
 0x5ca   :  { %vm1758_vm7 = vmor %vm1756_vm6, %vm1757_vm5  ;;  %v1790_v32 = vadd.f32 1.0, %v10064_v35 }
 0x5cb   :  { %v1753_v13 = vsub.f32 1.0, %v1752_v10 }
 0x5cc   :  { %10065 = vrcp.f32 %v1790_v32  ;;  %v1802_v22 = vand.u32 2147483648, %v1790_v32  ;;  %vm1796_vm13 = vweird.f32 %v1790_v32  ;;  %v1800_v52 = vand.u32 2147483647, %v1790_v32 }
 0x5cd   :  { %v1754_v51 = vmul.f32 %v10062_v34, %v1753_v13 }
 0x5ce   :  { %v1803_v10 = vor.u32 1.1754944e-38, %v1802_v22  ;;  %vm1801_vm15 = vcmp.eq.f32.partialorder %v1800_v52, 8.507059e+37 }
 0x5cf   :  { %v1755_v30 = vadd.f32 %v10062_v34, %v1754_v51 }
 0x5d1   :  { %v1759_v15 = vsel %vm1758_vm7, %v10062_v34, %v1755_v30  ;;  %v1768_v30 = vrot.slane %v11130_v37, 6 }
 0x5d2   :  { %v1764_v31 = vsel %vm1761_vm8, %v1763_v18, %v1759_v15  ;;  %v10066_v14 = vpop.eup %10065 }
 0x5d3   :  { %v1792_v5 = vmul.f32 %v10066_v14, %v1790_v32  ;;  %vm1797_vm12 = vweird.f32 %v10066_v14  ;;  %v1770_v23 = vmul.f32 %v1768_v30, %v1764_v31 }
 0x5d4   :  { %vm1798_vm14 = vmor %vm1796_vm13, %vm1797_vm12  ;;  %vm2419_vm13 = vcmask 261126  }
 0x5d5   :  { %v1793_v40 = vsub.f32 1.0, %v1792_v5 }
 0x5d7   :  { %v1794_v63 = vmul.f32 %v10066_v14, %v1793_v40 }
 0x5d9   :  { %v1795_v45 = vadd.f32 %v10066_v14, %v1794_v63 }
 0x5db   :  { %v1799_v34 = vsel %vm1798_vm14, %v10066_v14, %v1795_v45 }
 0x5dc   :  { %v1804_v51 = vsel %vm1801_vm15, %v1803_v10, %v1799_v34 }
 0x60d   :  { %v1773_v7 = vpop.permute.xlu2 %1772 }
 0x60e   :  { %v1775_v62 = vmul.f32 %v1773_v7, %v1764_v31  ;;  %v1808_v7 = vrot.slane %v11135_v17, 2 }
 0x610   :  { %1777 = vrot.lane.b32.xlu1 %v1775_v62, %s10348_s16  ;;  %v1810_v35 = vmul.f32 %v1808_v7, %v1804_v51  ;;  %v13641_v7 = vld [vmem:[#allocation28_spill] sm:$0xff] }
 0x631   :  { %v1813_v13 = vpop.permute.xlu1 %1812 }
 0x632   :  { %v1815_v24 = vmul.f32 %v1813_v13, %v1804_v51 }
 0x634   :  { %1817 = vrot.lane.b32.xlu0 %v1815_v24, %s10348_s16 }
 0x682   :  { %v1778_v11 = vpop.permute.xlu1 %1777 }
 0x683   :  { %v11248_v15 = vadd.f32 %v1778_v11, %v1770_v23  ;;  %v13638_v23 = vld [vmem:[#allocation27_spill] sm:$0xff] }
 0x684   :  { %v13639_v11 = vld [vmem:[#allocation15_spill] sm:$0xff] }
 0x685   :  { %10067 = vtanh.f32 %v11248_v15 }
 0x68b   :  { %v10068_v18 = vpop.eup %10067 }
 0x68c   :  { %1783 = vrot.lane.b32.xlu0 %v10068_v18, %s10347_s3  ;;  %v13640_v18 = vld [vmem:[#allocation13_spill] sm:$0xff] }
 0x6a6   :  { %v1818_v62 = vpop.permute.xlu0 %1817 }
 0x6a7   :  { %v11253_v32 = vadd.f32 %v1818_v62, %v1810_v35  ;;  %v13642_v35 = vld [vmem:[#allocation21_spill] sm:$0xff]  ;;  %v13643_v62 = vld [vmem:[#allocation14_spill] sm:$0xff] }
 0x6a9   :  { %10069 = vtanh.f32 %v11253_v32 }
 0x6af   :  { %v10070_v14 = vpop.eup %10069 }
 0x6b0   :  { %1823 = vrot.lane.b32.xlu2 %v10070_v14, %s10347_s3  ;;  %v13644_v14 = vld [vmem:[#allocation24_spill] sm:$0xff] }
 0x6fe   :  { %v1784_v37 = vpop.permute.xlu0 %1783 }
 0x6ff   :  { %v1786_v5 = vmul.f32 %v1784_v37, %v1764_v31  ;;  %v13645_v37 = vld [vmem:[#allocation19_spill] sm:$0xff] }
 0x701   :  { %1828 = vrot.lane.b32.xlu1 %v1786_v5, %s10348_s16  ;;  %v13646_v5 = vld [vmem:[#allocation30_spill] sm:$0xff] }
 0x70a   :  { %v1824_v40 = vpop.permute.xlu2 %1823 }
 0x70b   :  { %v11258_v63 = vmul.f32 %v1824_v40, %v1804_v51  ;;  %v13647_v40 = vld [vmem:[#allocation31_spill] sm:$0xff] }
 0x70d   :  { %13637 = vst [vmem:[#allocation11_spill] sm:$0xff] %v11258_v63  ;;  %v1832_v45 = vrot.slane %v11258_v63, 6  ;;  %v13659_v63 = vld [vmem:[#allocation37_spill] sm:$0xff] }
 0x70f   :  { %1833 = vrot.lane.b32.xlu2 %v1832_v45, %s10347_s3  ;;  %v13648_v45 = vld [vmem:[#allocation16_spill] sm:$0xff] }
 0x769   :  { %v1834_v17 = vpop.permute.xlu2 %1833 }
 0x773   :  { %v1829_v22 = vpop.permute.xlu1 %1828 }
 0x774   :  { %v1836_v52 = vsel %vm665_vm9, %v1829_v22, %v1834_v17  ;;  %1838 = vst.msk [vmem:[#allocation3] sm:$0x30] %vm1837_vm0, %v1829_v22  ;;  %v13649_v17 = vld [vmem:[#allocation32_spill] sm:$0xff]  ;;  %v13650_v22 = vld [vmem:[#allocation17_spill] sm:$0xff] }
 0x775   :  { %v1847_v34 = vrot.slane %v1836_v52, 4  ;;  %v13651_v52 = vld [vmem:[#allocation33_spill] sm:$0xff] }
 0x777   :  { %v1848_v10 = vsel %vm676_vm11, %v1847_v34, 0  ;;  %v13652_v34 = vld [vmem:[#allocation18_spill] sm:$0xff] }
 0x778   :  { %v1874_v31 = vand.u32 4294901760, %v1848_v10 }
 0x77a   :  { %v1875_v13 = vsub.f32 %v1848_v10, %v1874_v31  ;;  %1940 = vmatmul.f32.vlgmr.msrb.gmra.mxu1 %v1874_v31  ;;  %v13653_v10 = vld [vmem:[#allocation34_spill] sm:$0xff] }
 0x77b   :  { %2228 = vmatpush.msrb.mxu1 %v10859_v29 }
 0x77c   :  { %1978 = vmatmul.f32.vlgmr.msrb.gmra.mxu2 %v1875_v13  ;;  %v1876_v51 = vand.u32 4294901760, %v1875_v13 }
 0x77d   :  { %2230 = vmatpush.msrb.mxu1 %v10899_v43  ;;  %2261 = vmatpush.msrb.mxu2 %v10909_v47 }
 0x77e   :  { %2009 = vmatmul.f32.vlgmr.msrb.gmra.mxu3 %v1876_v51  ;;  %v1877_v24 = vsub.f32 %v1875_v13, %v1876_v51 }
 0x77f   :  { %2232 = vmatpush.msrb.mxu1 %v10911_v48  ;;  %2265 = vmatpush.msrb.mxu2 %v10923_v53 }
 0x780   :  { %2304 = vmatpush.msrb.mxu3 %v10859_v29  ;;  %v1878_v30 = vand.u32 4294901760, %v1877_v24  ;;  %v13657_v24 = vld [vmem:[#allocation36_spill] sm:$0xff] }
 0x781   :  { %2234 = vmatpush.msrb.mxu1 %v10925_v57  ;;  %2269 = vmatpush.msrb.mxu2 %v10939_v33 }
 0x782   :  { %2306 = vmatpush.msrb.mxu3 %v10899_v43  ;;  %1879 = vmatmul.f32.vlgmr.msrb.gmra.mxu0 %v1878_v30 }
 0x783   :  { %2083 = vmatmul.f32.vlgmr.msra.gmra.mxu1 %v1874_v31  ;;  %2191 = vmatpush.msrb.mxu0 %v10902_v44 }
 0x784   :  { %2236 = vmatpush.msrb.mxu1 %v10941_v36  ;;  %2273 = vmatpush.msrb.mxu2 %v10961_v28 }
 0x785   :  { %2308 = vmatpush.msrb.mxu3 %v10911_v48  ;;  %2116 = vmatmul.f32.vlgmr.msra.gmra.mxu2 %v1878_v30  ;;  %v13658_v30 = vld [vmem:[#allocation23_spill] sm:$0xff] }
 0x786   :  { %2194 = vmatpush.msrb.mxu0 %v10914_v50  ;;  %2238 = vmatpush.msrb.mxu1 %v10955_v21 }
 0x787   :  { %2277 = vmatpush.msrb.mxu2 %v10971_v27  ;;  %2310 = vmatpush.msrb.mxu3 %v10925_v57 }
 0x788   :  { %2177 = vmatmul.f32.vlgmr.msra.gmra.mxu3 %v1874_v31  ;;  %2197 = vmatpush.msrb.mxu0 %v10928_v58 }
 0x789   :  { %2240 = vmatpush.msrb.mxu1 %v10973_v42  ;;  %2281 = vmatpush.msrb.mxu2 %v10988_v59 }
 0x78a   :  { %2312 = vmatpush.msrb.mxu3 %v10941_v36  ;;  %2200 = vmatpush.msrb.mxu0 %v10944_v38 }
 0x78b   :  { %2242 = vmatpush.msrb.mxu1 %v10990_v0  ;;  %2285 = vmatpush.msrb.mxu2 %v11003_v49 }
 0x78c   :  { %2314 = vmatpush.msrb.mxu3 %v10955_v21  ;;  %2054 = vmatmul.f32.vlgmr.msra.gmra.mxu0 %v1874_v31 }
 0x78d   :  { %2246 = vmatmul.f32.vlgmr.msrb.gmra.mxu1 %v1876_v51  ;;  %2203 = vmatpush.msrb.mxu0 %v10958_v25  ;;  %v13656_v51 = vld [vmem:[#allocation22_spill] sm:$0xff] }
 0x78e   :  { %2289 = vmatpush.msrb.mxu2 %v11014_v46  ;;  %2316 = vmatpush.msrb.mxu3 %v10973_v42 }
 0x78f   :  { %2291 = vmatmul.f32.vlgmr.msrb.gmra.mxu2 %v1874_v31  ;;  %2206 = vmatpush.msrb.mxu0 %v10976_v41 }
 0x790   :  { %2318 = vmatpush.msrb.mxu3 %v10990_v0  ;;  %2478 = vmatpush.msra.mxu1 %v10808_v39 }
 0x791   :  { %2320 = vmatmul.f32.vlgmr.msrb.gmra.mxu3 %v1874_v31  ;;  %2209 = vmatpush.msrb.mxu0 %v10993_v4  ;;  %v13654_v31 = vld [vmem:[#allocation20_spill] sm:$0xff] }
 0x792   :  { %2484 = vmatpush.msra.mxu1 %v10810_v3  ;;  %2536 = vmatpush.msra.mxu2 %v10752_v1 }
 0x793   :  { %2212 = vmatpush.msrb.mxu0 %v11006_v19  ;;  %2573 = vmatpush.msra.mxu3 %v10724_v54 }
 0x794   :  { %2215 = vmatmul.f32.vlgmr.msrb.gmra.mxu0 %v1875_v13  ;;  %2490 = vmatpush.msra.mxu1 %v10821_v9  ;;  %v13655_v13 = vld [vmem:[#allocation35_spill] sm:$0xff] }
 0x795   :  { %2539 = vmatpush.msra.mxu2 %v10755_v2  ;;  %2575 = vmatpush.msra.mxu3 %v10726_v55 }
 0x796   :  { %2496 = vmatpush.msra.mxu1 %v10832_v16  ;;  %2441 = vmatpush.msra.mxu0 %v10724_v54 }
 0x797   :  { %2542 = vmatpush.msra.mxu2 %v10758_v6  ;;  %2577 = vmatpush.msra.mxu3 %v10728_v56 }
 0x798   :  { %2502 = vmatpush.msra.mxu1 %v10843_v20  ;;  %2443 = vmatpush.msra.mxu0 %v10726_v55 }
 0x799   :  { %2545 = vmatpush.msra.mxu2 %v10765_v8  ;;  %2579 = vmatpush.msra.mxu3 %v10739_v60 }
 0x79a   :  { %2508 = vmatpush.msra.mxu1 %v10854_v26  ;;  %2445 = vmatpush.msra.mxu0 %v10728_v56 }
 0x79b   :  { %2548 = vmatpush.msra.mxu2 %v10768_v12  ;;  %2581 = vmatpush.msra.mxu3 %v10741_v61 }
 0x79c   :  { %2514 = vmatpush.msra.mxu1 %v13638_v23  ;;  %2447 = vmatpush.msra.mxu0 %v10739_v60 }
 0x79d   :  { %2551 = vmatpush.msra.mxu2 %v13639_v11  ;;  %2583 = vmatpush.msra.mxu3 %v13640_v18 }
 0x79e   :  { %2520 = vmatpush.msra.mxu1 %v13641_v7  ;;  %2449 = vmatpush.msra.mxu0 %v10741_v61 }
 0x79f   :  { %2554 = vmatpush.msra.mxu2 %v13642_v35  ;;  %2585 = vmatpush.msra.mxu3 %v13643_v62  ;;  %v1844_v35 = vld [vmem:[#allocation2 + $0x10] sm:$0xc0] }
 0x7a0   :  { %2649 = vmatpush.msrb.mxu1 %v10724_v54  ;;  %2451 = vmatpush.msra.mxu0 %v13640_v18 }
 0x7a1   :  { %2557 = vmatpush.msra.mxu2 %v13644_v14  ;;  %2587 = vmatpush.msra.mxu3 %v13645_v37 }
 0x7a2   :  { %2651 = vmatpush.msrb.mxu1 %v10726_v55  ;;  %2453 = vmatpush.msra.mxu0 %v13643_v62 }
 0x7a3   :  { %2678 = vmatpush.msrb.mxu2 %v10859_v29  ;;  %2715 = vmatpush.msrb.mxu3 %v13646_v5 }
 0x7a4   :  { %2653 = vmatpush.msrb.mxu1 %v10728_v56  ;;  %2455 = vmatpush.msra.mxu0 %v13645_v37 }
 0x7a5   :  { %2680 = vmatpush.msrb.mxu2 %v10899_v43  ;;  %2721 = vmatpush.msrb.mxu3 %v13647_v40 }
 0x7a6   :  { %2655 = vmatpush.msrb.mxu1 %v10739_v60  ;;  %2606 = vmatpush.msrb.mxu0 %v13648_v45 }
 0x7a7   :  { %2682 = vmatpush.msrb.mxu2 %v10911_v48  ;;  %2727 = vmatpush.msrb.mxu3 %v13649_v17 }
 0x7a8   :  { %2657 = vmatpush.msrb.mxu1 %v10741_v61  ;;  %2610 = vmatpush.msrb.mxu0 %v13650_v22 }
 0x7a9   :  { %2684 = vmatpush.msrb.mxu2 %v10925_v57  ;;  %2733 = vmatpush.msrb.mxu3 %v13651_v52 }
 0x7aa   :  { %2659 = vmatpush.msrb.mxu1 %v13640_v18  ;;  %2614 = vmatpush.msrb.mxu0 %v13652_v34  ;;  %v13660_v34 = vld [vmem:[#allocation25_spill] sm:$0xff] }
 0x7ab   :  { %2686 = vmatpush.msrb.mxu2 %v10941_v36  ;;  %2739 = vmatpush.msrb.mxu3 %v13653_v10  ;;  %v13661_v10 = vld [vmem:[#allocation26_spill] sm:$0xff] }
 0x7ac   :  { %2661 = vmatpush.msrb.mxu1 %v13643_v62  ;;  %2618 = vmatpush.msrb.mxu0 %v13654_v31 }
 0x7ad   :  { %2688 = vmatpush.msrb.mxu2 %v10955_v21  ;;  %2745 = vmatpush.msrb.mxu3 %v13655_v13 }
 0x7ae   :  { %2663 = vmatpush.msrb.mxu1 %v13645_v37  ;;  %2622 = vmatpush.msrb.mxu0 %v13656_v51 }
 0x7af   :  { %2690 = vmatpush.msrb.mxu2 %v10973_v42  ;;  %2751 = vmatpush.msrb.mxu3 %v13657_v24 }
 0x7b0   :  { %2626 = vmatpush.msrb.mxu0 %v13658_v30 }
 0x7b1   :  { %2692 = vmatpush.msrb.mxu2 %v10990_v0  ;;  %2757 = vmatpush.msrb.mxu3 %v13659_v63 }
 0x7b2   :  { %2630 = vmatpush.msrb.mxu0 %v13660_v34 }
 0x7b4   :  { %2634 = vmatpush.msrb.mxu0 %v13661_v10 }
 0x7f7   :  { %v1941_v31 = vpop.f32.mrf.mxu1 }
 0x7ff   :  { %v1880_v52 = vpop.f32.mrf.mxu0  ;;  %v1979_v17 = vpop.f32.mrf.mxu2 }
 0x800   :  { %v1942_v22 = vadd.f32 %v1941_v31, %v1880_v52  ;;  %v2084_v51 = vpop.f32.mrf.mxu1 }
 0x801   :  { %v2010_v45 = vpop.f32.mrf.mxu3 }
 0x802   :  { %v1980_v13 = vadd.f32 %v1979_v17, %v1942_v22  ;;  %v1845_v22 = vld [vmem:[#allocation2 + $0x8] sm:$0x3] }
 0x804   :  { %v2011_v40 = vadd.f32 %v2010_v45, %v1980_v13 }
 0x808   :  { %v2117_v14 = vpop.f32.mrf.mxu2 }
 0x809   :  { %v2055_v5 = vpop.f32.mrf.mxu0 }
 0x80a   :  { %v2056_v37 = vadd.f32 %v2055_v5, %v2011_v40  ;;  %v2247_v18 = vpop.f32.mrf.mxu1 }
 0x80b   :  { %v2178_v62 = vpop.f32.mrf.mxu3 }
 0x80c   :  { %v2085_v24 = vadd.f32 %v2084_v51, %v2056_v37  ;;  %v2179_v7 = vadd.f32 %v2178_v62, %v2117_v14 }
 0x80e   :  { %v2325_v30 = vrot.slane %v2085_v24, 2 }
 0x810   :  { %v2327_v63 = vadd.f32 %v2325_v30, %v1844_v35 }
 0x811   :  { %v2216_v34 = vpop.f32.mrf.mxu0 }
 0x812   :  { %10071 = vtanh.f32 %v2327_v63  ;;  %v2217_v10 = vadd.f32 %v2216_v34, %v2179_v7  ;;  %v2292_v52 = vpop.f32.mrf.mxu2  ;;  %v9990_v35 = vmul.f32 -1.442695, %v2327_v63 }
 0x814   :  { %v2248_v11 = vadd.f32 %v2247_v18, %v2217_v10  ;;  %v2321_v23 = vpop.f32.mrf.mxu3 }
 0x816   :  { %v2293_v31 = vadd.f32 %v2292_v52, %v2248_v11 }
 0x818   :  { %v10072_v17 = vpop.eup %10071  ;;  %v2322_v45 = vadd.f32 %v2321_v23, %v2293_v31 }
 0x819   :  { %2354 = vrot.lane.b32.xlu1 %v10072_v17, %s10347_s3 }
 0x81a   :  { %v2328_v5 = vadd.f32 %v2322_v45, %v1845_v22 }
 0x81c   :  { %10073 = vtanh.f32 %v2328_v5  ;;  %v9991_v14 = vmul.f32 -1.442695, %v2328_v5 }
 0x81d   :  { %10075 = vpow2.f32 %v9990_v35 }
 0x81e   :  { %10077 = vpow2.f32 %v9991_v14 }
 0x822   :  { %v10074_v37 = vpop.eup %10073 }
 0x823   :  { %2394 = vrot.lane.b32.xlu0 %v10074_v37, %s10347_s3  ;;  %v10076_v62 = vpop.eup %10075 }
 0x824   :  { %v2332_v7 = vadd.f32 1.0, %v10076_v62  ;;  %v10078_v18 = vpop.eup %10077 }
 0x825   :  { %v2372_v40 = vadd.f32 1.0, %v10078_v18 }
 0x826   :  { %10079 = vrcp.f32 %v2332_v7  ;;  %v2344_v30 = vand.u32 2147483648, %v2332_v7  ;;  %vm2338_vm2 = vweird.f32 %v2332_v7  ;;  %v2342_v63 = vand.u32 2147483647, %v2332_v7 }
 0x827   :  { %10081 = vrcp.f32 %v2372_v40  ;;  %v2384_v62 = vand.u32 2147483648, %v2372_v40  ;;  %vm2378_vm7 = vweird.f32 %v2372_v40  ;;  %v2382_v14 = vand.u32 2147483647, %v2372_v40 }
 0x828   :  { %v2345_v17 = vor.u32 1.1754944e-38, %v2344_v30  ;;  %vm2343_vm5 = vcmp.eq.f32.partialorder %v2342_v63, 8.507059e+37 }
 0x829   :  { %vm2383_vm12 = vcmp.eq.f32.partialorder %v2382_v14, 8.507059e+37 }
 0x82c   :  { %v10080_v11 = vpop.eup %10079 }
 0x82d   :  { %v2334_v34 = vmul.f32 %v10080_v11, %v2332_v7  ;;  %v10082_v10 = vpop.eup %10081  ;;  %vm2339_vm1 = vweird.f32 %v10080_v11 }
 0x82e   :  { %v2374_v51 = vmul.f32 %v10082_v10, %v2372_v40  ;;  %vm2340_vm3 = vmor %vm2338_vm2, %vm2339_vm1  ;;  %vm2379_vm6 = vweird.f32 %v10082_v10  ;;  %v2350_v40 = vrot.slane %v11248_v15, 6 }
 0x82f   :  { %v2335_v23 = vsub.f32 1.0, %v2334_v34  ;;  %vm2380_vm8 = vmor %vm2378_vm7, %vm2379_vm6  ;;  %v2385_v34 = vor.u32 1.1754944e-38, %v2384_v62 }
 0x830   :  { %v2375_v52 = vsub.f32 1.0, %v2374_v51 }
 0x831   :  { %v2336_v13 = vmul.f32 %v10080_v11, %v2335_v23 }
 0x832   :  { %v2376_v45 = vmul.f32 %v10082_v10, %v2375_v52 }
 0x833   :  { %v2337_v24 = vadd.f32 %v10080_v11, %v2336_v13  ;;  %v2390_v13 = vrot.slane %v11253_v32, 2 }
 0x834   :  { %v2377_v35 = vadd.f32 %v10082_v10, %v2376_v45 }
 0x835   :  { %v2341_v31 = vsel %vm2340_vm3, %v10080_v11, %v2337_v24 }
 0x836   :  { %v2346_v5 = vsel %vm2343_vm5, %v2345_v17, %v2341_v31  ;;  %v2381_v18 = vsel %vm2380_vm8, %v10082_v10, %v2377_v35 }
 0x837   :  { %v2386_v23 = vsel %vm2383_vm12, %v2385_v34, %v2381_v18  ;;  %v2352_v10 = vmul.f32 %v2350_v40, %v2346_v5  ;;  %v13666_v40 = vld [vmem:[#allocation28_spill] sm:$0xff] }
 0x838   :  { %v2392_v51 = vmul.f32 %v2390_v13, %v2386_v23 }
 0x88b   :  { %v2355_v22 = vpop.permute.xlu1 %2354 }
 0x88c   :  { %v2357_v37 = vmul.f32 %v2355_v22, %v2346_v5 }
 0x88e   :  { %2359 = vrot.lane.b32.xlu0 %v2357_v37, %s10348_s16 }
 0x895   :  { %v2395_v7 = vpop.permute.xlu0 %2394 }
 0x896   :  { %v2397_v11 = vmul.f32 %v2395_v7, %v2386_v23 }
 0x898   :  { %2399 = vrot.lane.b32.xlu2 %v2397_v11, %s10348_s16 }
 0x8f2   :  { %v2400_v24 = vpop.permute.xlu2 %2399 }
 0x8f3   :  { %v11366_v30 = vadd.f32 %v2400_v24, %v2392_v51  ;;  %v13663_v51 = vld [vmem:[#allocation27_spill] sm:$0xff] }
 0x8f4   :  { %v13664_v24 = vld [vmem:[#allocation15_spill] sm:$0xff] }
 0x8f5   :  { %10083 = vtanh.f32 %v11366_v30 }
 0x8fb   :  { %v10084_v63 = vpop.eup %10083 }
 0x8fc   :  { %2405 = vrot.lane.b32.xlu1 %v10084_v63, %s10347_s3  ;;  %v13665_v63 = vld [vmem:[#allocation13_spill] sm:$0xff] }
 0x900   :  { %v2360_v52 = vpop.permute.xlu0 %2359 }
 0x901   :  { %v11371_v31 = vadd.f32 %v2360_v52, %v2352_v10  ;;  %v13667_v10 = vld [vmem:[#allocation21_spill] sm:$0xff]  ;;  %v13668_v52 = vld [vmem:[#allocation14_spill] sm:$0xff] }
 0x903   :  { %10085 = vtanh.f32 %v11371_v31 }
 0x909   :  { %v10086_v17 = vpop.eup %10085 }
 0x90a   :  { %2365 = vrot.lane.b32.xlu2 %v10086_v17, %s10347_s3  ;;  %v13669_v17 = vld [vmem:[#allocation24_spill] sm:$0xff] }
 0x964   :  { %v2366_v32 = vpop.permute.xlu2 %2365 }
 0x965   :  { %v2368_v45 = vmul.f32 %v2366_v32, %v2346_v5  ;;  %v13670_v32 = vld [vmem:[#allocation19_spill] sm:$0xff] }
 0x967   :  { %2410 = vrot.lane.b32.xlu0 %v2368_v45, %s10348_s16  ;;  %v13671_v45 = vld [vmem:[#allocation30_spill] sm:$0xff] }
 0x96e   :  { %v2406_v22 = vpop.permute.xlu1 %2405 }
 0x96f   :  { %v11376_v37 = vmul.f32 %v2406_v22, %v2386_v23  ;;  %v13672_v22 = vld [vmem:[#allocation31_spill] sm:$0xff] }
 0x971   :  { %13662 = vst [vmem:[#allocation38_spill] sm:$0xff] %v11376_v37  ;;  %v2414_v35 = vrot.slane %v11376_v37, 2  ;;  %v13684_v37 = vld [vmem:[#allocation37_spill] sm:$0xff] }
 0x973   :  { %2415 = vrot.lane.b32.xlu1 %v2414_v35, %s10347_s3  ;;  %v13673_v35 = vld [vmem:[#allocation16_spill] sm:$0xff] }
 0x9d9   :  { %v2411_v15 = vpop.permute.xlu0 %2410 }
 0x9da   :  { %2420 = vst.msk [vmem:[#allocation3] sm:$0xc0] %vm2419_vm13, %v2411_v15 }
 0x9e5   :  { %v2416_v62 = vpop.permute.xlu1 %2415 }
 0x9e6   :  { %v2418_v14 = vsel %vm665_vm9, %v2411_v15, %v2416_v62  ;;  %v13674_v15 = vld [vmem:[#allocation32_spill] sm:$0xff]  ;;  %v13675_v62 = vld [vmem:[#allocation17_spill] sm:$0xff] }
 0x9e7   :  { %v2429_v18 = vrot.slane %v2418_v14, 6  ;;  %v13676_v14 = vld [vmem:[#allocation33_spill] sm:$0xff] }
 0x9e9   :  { %v2430_v34 = vsel %vm676_vm11, %v2429_v18, 0  ;;  %v13677_v18 = vld [vmem:[#allocation18_spill] sm:$0xff] }
 0x9ea   :  { %v2456_v5 = vand.u32 4294901760, %v2430_v34 }
 0x9ec   :  { %v2457_v7 = vsub.f32 %v2430_v34, %v2456_v5  ;;  %2522 = vmatmul.f32.vlgmr.msra.gmra.mxu1 %v2456_v5  ;;  %v13678_v34 = vld [vmem:[#allocation34_spill] sm:$0xff] }
 0x9ed   :  { %2810 = vmatpush.msra.mxu1 %v10859_v29 }
 0x9ee   :  { %2560 = vmatmul.f32.vlgmr.msra.gmra.mxu2 %v2457_v7  ;;  %v2458_v23 = vand.u32 4294901760, %v2457_v7 }
 0x9ef   :  { %2812 = vmatpush.msra.mxu1 %v10899_v43  ;;  %2843 = vmatpush.msra.mxu2 %v10909_v47 }
 0x9f0   :  { %2591 = vmatmul.f32.vlgmr.msra.gmra.mxu3 %v2458_v23  ;;  %v2459_v11 = vsub.f32 %v2457_v7, %v2458_v23 }
 0x9f1   :  { %2814 = vmatpush.msra.mxu1 %v10911_v48  ;;  %2847 = vmatpush.msra.mxu2 %v10923_v53 }
 0x9f2   :  { %2886 = vmatpush.msra.mxu3 %v10859_v29  ;;  %v2460_v13 = vand.u32 4294901760, %v2459_v11  ;;  %v13682_v11 = vld [vmem:[#allocation36_spill] sm:$0xff] }
 0x9f3   :  { %2816 = vmatpush.msra.mxu1 %v10925_v57  ;;  %2851 = vmatpush.msra.mxu2 %v10939_v33 }
 0x9f4   :  { %2888 = vmatpush.msra.mxu3 %v10899_v43  ;;  %2461 = vmatmul.f32.vlgmr.msra.gmra.mxu0 %v2460_v13 }
 0x9f5   :  { %2665 = vmatmul.f32.vlgmr.msrb.gmra.mxu1 %v2456_v5  ;;  %2773 = vmatpush.msra.mxu0 %v10902_v44 }
 0x9f6   :  { %2818 = vmatpush.msra.mxu1 %v10941_v36  ;;  %2855 = vmatpush.msra.mxu2 %v10961_v28 }
 0x9f7   :  { %2890 = vmatpush.msra.mxu3 %v10911_v48  ;;  %2698 = vmatmul.f32.vlgmr.msrb.gmra.mxu2 %v2460_v13  ;;  %v13683_v13 = vld [vmem:[#allocation23_spill] sm:$0xff] }
 0x9f8   :  { %2776 = vmatpush.msra.mxu0 %v10914_v50  ;;  %2820 = vmatpush.msra.mxu1 %v10955_v21 }
 0x9f9   :  { %2859 = vmatpush.msra.mxu2 %v10971_v27  ;;  %2892 = vmatpush.msra.mxu3 %v10925_v57 }
 0x9fa   :  { %2759 = vmatmul.f32.vlgmr.msrb.gmra.mxu3 %v2456_v5  ;;  %2779 = vmatpush.msra.mxu0 %v10928_v58 }
 0x9fb   :  { %2822 = vmatpush.msra.mxu1 %v10973_v42  ;;  %2863 = vmatpush.msra.mxu2 %v10988_v59 }
 0x9fc   :  { %2894 = vmatpush.msra.mxu3 %v10941_v36  ;;  %2782 = vmatpush.msra.mxu0 %v10944_v38 }
 0x9fd   :  { %2824 = vmatpush.msra.mxu1 %v10990_v0  ;;  %2867 = vmatpush.msra.mxu2 %v11003_v49 }
 0x9fe   :  { %2896 = vmatpush.msra.mxu3 %v10955_v21  ;;  %2636 = vmatmul.f32.vlgmr.msrb.gmra.mxu0 %v2456_v5 }
 0x9ff   :  { %2828 = vmatmul.f32.vlgmr.msra.gmra.mxu1 %v2458_v23  ;;  %2785 = vmatpush.msra.mxu0 %v10958_v25  ;;  %v13681_v23 = vld [vmem:[#allocation22_spill] sm:$0xff] }
 0xa00   :  { %2871 = vmatpush.msra.mxu2 %v11014_v46  ;;  %2898 = vmatpush.msra.mxu3 %v10973_v42 }
 0xa01   :  { %2873 = vmatmul.f32.vlgmr.msra.gmra.mxu2 %v2456_v5  ;;  %2788 = vmatpush.msra.mxu0 %v10976_v41 }
 0xa02   :  { %2900 = vmatpush.msra.mxu3 %v10990_v0  ;;  %3057 = vmatpush.msrb.mxu1 %v10808_v39 }
 0xa03   :  { %2902 = vmatmul.f32.vlgmr.msra.gmra.mxu3 %v2456_v5  ;;  %2791 = vmatpush.msra.mxu0 %v10993_v4  ;;  %v13679_v5 = vld [vmem:[#allocation20_spill] sm:$0xff] }
 0xa04   :  { %3063 = vmatpush.msrb.mxu1 %v10810_v3  ;;  %3115 = vmatpush.msrb.mxu2 %v10752_v1 }
 0xa05   :  { %2794 = vmatpush.msra.mxu0 %v11006_v19  ;;  %3152 = vmatpush.msrb.mxu3 %v10724_v54 }
 0xa06   :  { %2797 = vmatmul.f32.vlgmr.msra.gmra.mxu0 %v2457_v7  ;;  %3069 = vmatpush.msrb.mxu1 %v10821_v9  ;;  %v13680_v7 = vld [vmem:[#allocation35_spill] sm:$0xff] }
 0xa07   :  { %3118 = vmatpush.msrb.mxu2 %v10755_v2  ;;  %3154 = vmatpush.msrb.mxu3 %v10726_v55 }
 0xa08   :  { %3075 = vmatpush.msrb.mxu1 %v10832_v16  ;;  %3020 = vmatpush.msrb.mxu0 %v10724_v54 }
 0xa09   :  { %3121 = vmatpush.msrb.mxu2 %v10758_v6  ;;  %3156 = vmatpush.msrb.mxu3 %v10728_v56 }
 0xa0a   :  { %3081 = vmatpush.msrb.mxu1 %v10843_v20  ;;  %3022 = vmatpush.msrb.mxu0 %v10726_v55 }
 0xa0b   :  { %3124 = vmatpush.msrb.mxu2 %v10765_v8  ;;  %3158 = vmatpush.msrb.mxu3 %v10739_v60 }
 0xa0c   :  { %3087 = vmatpush.msrb.mxu1 %v10854_v26  ;;  %3024 = vmatpush.msrb.mxu0 %v10728_v56 }
 0xa0d   :  { %3127 = vmatpush.msrb.mxu2 %v10768_v12  ;;  %3160 = vmatpush.msrb.mxu3 %v10741_v61 }
 0xa0e   :  { %3093 = vmatpush.msrb.mxu1 %v13663_v51  ;;  %3026 = vmatpush.msrb.mxu0 %v10739_v60 }
 0xa0f   :  { %3130 = vmatpush.msrb.mxu2 %v13664_v24  ;;  %3162 = vmatpush.msrb.mxu3 %v13665_v63 }
 0xa10   :  { %3099 = vmatpush.msrb.mxu1 %v13666_v40  ;;  %3028 = vmatpush.msrb.mxu0 %v10741_v61 }
 0xa11   :  { %3133 = vmatpush.msrb.mxu2 %v13667_v10  ;;  %3164 = vmatpush.msrb.mxu3 %v13668_v52 }
 0xa12   :  { %3228 = vmatpush.msra.mxu1 %v10724_v54  ;;  %3030 = vmatpush.msrb.mxu0 %v13665_v63 }
 0xa13   :  { %3136 = vmatpush.msrb.mxu2 %v13669_v17  ;;  %3166 = vmatpush.msrb.mxu3 %v13670_v32 }
 0xa14   :  { %3230 = vmatpush.msra.mxu1 %v10726_v55  ;;  %3032 = vmatpush.msrb.mxu0 %v13668_v52 }
 0xa15   :  { %3257 = vmatpush.msra.mxu2 %v10859_v29  ;;  %3294 = vmatpush.msra.mxu3 %v13671_v45 }
 0xa16   :  { %3232 = vmatpush.msra.mxu1 %v10728_v56  ;;  %3034 = vmatpush.msrb.mxu0 %v13670_v32 }
 0xa17   :  { %3259 = vmatpush.msra.mxu2 %v10899_v43  ;;  %3300 = vmatpush.msra.mxu3 %v13672_v22 }
 0xa18   :  { %3234 = vmatpush.msra.mxu1 %v10739_v60  ;;  %3185 = vmatpush.msra.mxu0 %v13673_v35 }
 0xa19   :  { %3261 = vmatpush.msra.mxu2 %v10911_v48  ;;  %3306 = vmatpush.msra.mxu3 %v13674_v15 }
 0xa1a   :  { %3236 = vmatpush.msra.mxu1 %v10741_v61  ;;  %3189 = vmatpush.msra.mxu0 %v13675_v62 }
 0xa1b   :  { %3263 = vmatpush.msra.mxu2 %v10925_v57  ;;  %3312 = vmatpush.msra.mxu3 %v13676_v14 }
 0xa1c   :  { %3238 = vmatpush.msra.mxu1 %v13665_v63  ;;  %3193 = vmatpush.msra.mxu0 %v13677_v18  ;;  %v13685_v18 = vld [vmem:[#allocation25_spill] sm:$0xff] }
 0xa1d   :  { %3265 = vmatpush.msra.mxu2 %v10941_v36  ;;  %3318 = vmatpush.msra.mxu3 %v13678_v34  ;;  %v13686_v34 = vld [vmem:[#allocation26_spill] sm:$0xff] }
 0xa1e   :  { %3240 = vmatpush.msra.mxu1 %v13668_v52  ;;  %3197 = vmatpush.msra.mxu0 %v13679_v5  ;;  %v2426_v52 = vld [vmem:[#allocation2 + $0x18] sm:$0x3] }
 0xa1f   :  { %3267 = vmatpush.msra.mxu2 %v10955_v21  ;;  %3324 = vmatpush.msra.mxu3 %v13680_v7 }
 0xa20   :  { %3242 = vmatpush.msra.mxu1 %v13670_v32  ;;  %3201 = vmatpush.msra.mxu0 %v13681_v23 }
 0xa21   :  { %3269 = vmatpush.msra.mxu2 %v10973_v42  ;;  %3330 = vmatpush.msra.mxu3 %v13682_v11 }
 0xa22   :  { %3205 = vmatpush.msra.mxu0 %v13683_v13 }
 0xa23   :  { %3271 = vmatpush.msra.mxu2 %v10990_v0  ;;  %3336 = vmatpush.msra.mxu3 %v13684_v37 }
 0xa24   :  { %3209 = vmatpush.msra.mxu0 %v13685_v18 }
 0xa26   :  { %3213 = vmatpush.msra.mxu0 %v13686_v34 }
 0xa69   :  { %v2523_v5 = vpop.f32.mrf.mxu1 }
 0xa71   :  { %v2462_v14 = vpop.f32.mrf.mxu0  ;;  %v2561_v15 = vpop.f32.mrf.mxu2 }
 0xa72   :  { %v2524_v62 = vadd.f32 %v2523_v5, %v2462_v14  ;;  %v2666_v23 = vpop.f32.mrf.mxu1 }
 0xa73   :  { %v2592_v35 = vpop.f32.mrf.mxu3 }
 0xa74   :  { %v2562_v7 = vadd.f32 %v2561_v15, %v2524_v62 }
 0xa76   :  { %v2593_v22 = vadd.f32 %v2592_v35, %v2562_v7 }
 0xa7a   :  { %v2699_v17 = vpop.f32.mrf.mxu2 }
 0xa7b   :  { %v2637_v45 = vpop.f32.mrf.mxu0 }
 0xa7c   :  { %v2638_v32 = vadd.f32 %v2637_v45, %v2593_v22  ;;  %v2829_v34 = vpop.f32.mrf.mxu1  ;;  %v2427_v45 = vld [vmem:[#allocation2] sm:$0xc0] }
 0xa7d   :  { %v2760_v13 = vpop.f32.mrf.mxu3 }
 0xa7e   :  { %v2667_v11 = vadd.f32 %v2666_v23, %v2638_v32  ;;  %v2761_v37 = vadd.f32 %v2760_v13, %v2699_v17 }
 0xa80   :  { %v2906_v10 = vadd.f32 %v2667_v11, %v2426_v52 }
 0xa82   :  { %10087 = vtanh.f32 %v2906_v10 }
 0xa83   :  { %v2798_v18 = vpop.f32.mrf.mxu0 }
 0xa84   :  { %v2799_v40 = vadd.f32 %v2798_v18, %v2761_v37  ;;  %v2874_v24 = vpop.f32.mrf.mxu2  ;;  %v9992_v37 = vmul.f32 -1.442695, %v2906_v10 }
 0xa86   :  { %v2830_v63 = vadd.f32 %v2829_v34, %v2799_v40  ;;  %v2903_v51 = vpop.f32.mrf.mxu3 }
 0xa88   :  { %v10088_v14 = vpop.eup %10087  ;;  %v2875_v5 = vadd.f32 %v2874_v24, %v2830_v63 }
 0xa89   :  { %2936 = vrot.lane.b32.xlu0 %v10088_v14, %s10347_s3 }
 0xa8a   :  { %v2904_v35 = vadd.f32 %v2903_v51, %v2875_v5 }
 0xa8c   :  { %v2908_v15 = vrot.slane %v2904_v35, 2 }
 0xa8e   :  { %v2910_v22 = vadd.f32 %v2908_v15, %v2427_v45 }
 0xa90   :  { %10089 = vtanh.f32 %v2910_v22  ;;  %v9993_v52 = vmul.f32 -1.442695, %v2910_v22 }
 0xa92   :  { %10091 = vpow2.f32 %v9993_v52 }
 0xa93   :  { %10093 = vpow2.f32 %v9992_v37 }
 0xa96   :  { %v10090_v32 = vpop.eup %10089 }
 0xa97   :  { %2976 = vrot.lane.b32.xlu2 %v10090_v32, %s10347_s3 }
 0xa98   :  { %v10092_v17 = vpop.eup %10091 }
 0xa99   :  { %v2954_v62 = vadd.f32 1.0, %v10092_v17  ;;  %v10094_v40 = vpop.eup %10093 }
 0xa9a   :  { %v2914_v63 = vadd.f32 1.0, %v10094_v40 }
 0xa9b   :  { %10095 = vrcp.f32 %v2954_v62  ;;  %v2966_v13 = vand.u32 2147483648, %v2954_v62  ;;  %vm2960_vm15 = vweird.f32 %v2954_v62  ;;  %v2964_v14 = vand.u32 2147483647, %v2954_v62 }
 0xa9c   :  { %10097 = vrcp.f32 %v2914_v63  ;;  %v2926_v17 = vand.u32 2147483648, %v2914_v63  ;;  %vm2920_vm5 = vweird.f32 %v2914_v63  ;;  %v2924_v37 = vand.u32 2147483647, %v2914_v63 }
 0xa9d   :  { %v2967_v35 = vor.u32 1.1754944e-38, %v2966_v13  ;;  %vm2965_vm2 = vcmp.eq.f32.partialorder %v2964_v14, 8.507059e+37 }
 0xa9e   :  { %vm2925_vm7 = vcmp.eq.f32.partialorder %v2924_v37, 8.507059e+37 }
 0xaa1   :  { %v10096_v24 = vpop.eup %10095 }
 0xaa2   :  { %v2956_v18 = vmul.f32 %v10096_v24, %v2954_v62  ;;  %v10098_v34 = vpop.eup %10097  ;;  %vm2961_vm14 = vweird.f32 %v10096_v24 }
 0xaa3   :  { %v2916_v23 = vmul.f32 %v10098_v34, %v2914_v63  ;;  %vm2962_vm1 = vmor %vm2960_vm15, %vm2961_vm14  ;;  %vm2921_vm3 = vweird.f32 %v10098_v34  ;;  %v2972_v63 = vrot.slane %v11366_v30, 2 }
 0xaa4   :  { %v2957_v51 = vsub.f32 1.0, %v2956_v18  ;;  %vm2922_vm6 = vmor %vm2920_vm5, %vm2921_vm3  ;;  %v2927_v18 = vor.u32 1.1754944e-38, %v2926_v17 }
 0xaa5   :  { %v2917_v5 = vsub.f32 1.0, %v2916_v23 }
 0xaa6   :  { %v2958_v7 = vmul.f32 %v10096_v24, %v2957_v51 }
 0xaa7   :  { %v2918_v15 = vmul.f32 %v10098_v34, %v2917_v5 }
 0xaa8   :  { %v2959_v11 = vadd.f32 %v10096_v24, %v2958_v7  ;;  %v2932_v7 = vrot.slane %v11371_v31, 6 }
 0xaa9   :  { %v2919_v52 = vadd.f32 %v10098_v34, %v2918_v15 }
 0xaaa   :  { %v2963_v10 = vsel %vm2962_vm1, %v10096_v24, %v2959_v11 }
 0xaab   :  { %v2968_v22 = vsel %vm2965_vm2, %v2967_v35, %v2963_v10  ;;  %v2923_v40 = vsel %vm2922_vm6, %v10098_v34, %v2919_v52 }
 0xaac   :  { %v2928_v51 = vsel %vm2925_vm7, %v2927_v18, %v2923_v40  ;;  %v2974_v34 = vmul.f32 %v2972_v63, %v2968_v22  ;;  %v13693_v63 = vld [vmem:[#allocation21_spill] sm:$0xff] }
 0xaad   :  { %v2934_v23 = vmul.f32 %v2932_v7, %v2928_v51  ;;  %v13689_v7 = vld [vmem:[#allocation27_spill] sm:$0xff] }
 0xaf1   :  { %v2977_v45 = vpop.permute.xlu2 %2976 }
 0xaf2   :  { %v2979_v32 = vmul.f32 %v2977_v45, %v2968_v22 }
 0xaf4   :  { %2981 = vrot.lane.b32.xlu1 %v2979_v32, %s10348_s16 }
 0xafb   :  { %v2937_v62 = vpop.permute.xlu0 %2936 }
 0xafc   :  { %v2939_v24 = vmul.f32 %v2937_v62, %v2928_v51 }
 0xafe   :  { %2941 = vrot.lane.b32.xlu2 %v2939_v24, %s10348_s16 }
 0xb58   :  { %v2942_v11 = vpop.permute.xlu2 %2941 }
 0xb59   :  { %v11484_v13 = vadd.f32 %v2942_v11, %v2934_v23  ;;  %v13690_v23 = vld [vmem:[#allocation15_spill] sm:$0xff]  ;;  %v13691_v11 = vld [vmem:[#allocation13_spill] sm:$0xff] }
 0xb5b   :  { %10099 = vtanh.f32 %v11484_v13 }
 0xb61   :  { %v10100_v14 = vpop.eup %10099 }
 0xb62   :  { %2947 = vrot.lane.b32.xlu1 %v10100_v14, %s10347_s3  ;;  %v13692_v14 = vld [vmem:[#allocation28_spill] sm:$0xff] }
 0xb66   :  { %v2982_v5 = vpop.permute.xlu1 %2981 }
 0xb67   :  { %v11489_v10 = vadd.f32 %v2982_v5, %v2974_v34  ;;  %v13694_v34 = vld [vmem:[#allocation14_spill] sm:$0xff]  ;;  %v13695_v5 = vld [vmem:[#allocation24_spill] sm:$0xff] }
 0xb69   :  { %10101 = vtanh.f32 %v11489_v10 }
 0xb6f   :  { %v10102_v35 = vpop.eup %10101 }
 0xb70   :  { %2987 = vrot.lane.b32.xlu0 %v10102_v35, %s10347_s3  ;;  %v13696_v35 = vld [vmem:[#allocation19_spill] sm:$0xff] }
 0xbd4   :  { %v2948_v31 = vpop.permute.xlu1 %2947 }
 0xbd5   :  { %v2950_v15 = vmul.f32 %v2948_v31, %v2928_v51  ;;  %v13697_v31 = vld [vmem:[#allocation30_spill] sm:$0xff] }
 0xbd7   :  { %2992 = vrot.lane.b32.xlu2 %v2950_v15, %s10348_s16  ;;  %v13698_v15 = vld [vmem:[#allocation31_spill] sm:$0xff] }
 0xbe2   :  { %v2988_v45 = vpop.permute.xlu0 %2987 }
 0xbe3   :  { %v11494_v32 = vmul.f32 %v2988_v45, %v2968_v22  ;;  %v13699_v45 = vld [vmem:[#allocation16_spill] sm:$0xff] }
 0xbe5   :  { %13687 = vst [vmem:[#allocation39_spill] sm:$0xff] %v11494_v32  ;;  %v2996_v52 = vrot.slane %v11494_v32, 6  ;;  %v13710_v32 = vld [vmem:[#allocation37_spill] sm:$0xff] }
 0xbe7   :  { %2997 = vrot.lane.b32.xlu0 %v2996_v52, %s10347_s3  ;;  %v13700_v52 = vld [vmem:[#allocation32_spill] sm:$0xff] }
 0xc31   :  { %v11498_v30 = vpop.permute.xlu2 %2992 }
 0xc32   :  { %13688 = vst [vmem:[#allocation40_spill] sm:$0xff] %v11498_v30 }
 0xc59   :  { %v2998_v17 = vpop.permute.xlu0 %2997 }
 0xc5a   :  { %v3000_v37 = vsel %vm665_vm9, %v11498_v30, %v2998_v17  ;;  %v13701_v17 = vld [vmem:[#allocation17_spill] sm:$0xff]  ;;  %v13709_v30 = vld [vmem:[#allocation23_spill] sm:$0xff] }
 0xc5b   :  { %v3009_v40 = vsel %vm676_vm11, %v3000_v37, 0  ;;  %v13702_v37 = vld [vmem:[#allocation33_spill] sm:$0xff] }
 0xc5c   :  { %v3035_v18 = vand.u32 4294901760, %v3009_v40 }
 0xc5e   :  { %v3036_v62 = vsub.f32 %v3009_v40, %v3035_v18  ;;  %3101 = vmatmul.f32.vlgmr.msrb.gmra.mxu1 %v3035_v18  ;;  %v13703_v40 = vld [vmem:[#allocation18_spill] sm:$0xff] }
 0xc5f   :  { %3389 = vmatpush.msrb.mxu1 %v10859_v29 }
 0xc60   :  { %3139 = vmatmul.f32.vlgmr.msrb.gmra.mxu2 %v3036_v62  ;;  %v3037_v22 = vand.u32 4294901760, %v3036_v62 }
 0xc61   :  { %3391 = vmatpush.msrb.mxu1 %v10899_v43  ;;  %3422 = vmatpush.msrb.mxu2 %v10909_v47 }
 0xc62   :  { %3170 = vmatmul.f32.vlgmr.msrb.gmra.mxu3 %v3037_v22  ;;  %v3038_v51 = vsub.f32 %v3036_v62, %v3037_v22 }
 0xc63   :  { %3393 = vmatpush.msrb.mxu1 %v10911_v48  ;;  %3426 = vmatpush.msrb.mxu2 %v10923_v53 }
 0xc64   :  { %3465 = vmatpush.msrb.mxu3 %v10859_v29  ;;  %v3039_v24 = vand.u32 4294901760, %v3038_v51  ;;  %v13707_v51 = vld [vmem:[#allocation22_spill] sm:$0xff] }
 0xc65   :  { %3395 = vmatpush.msrb.mxu1 %v10925_v57  ;;  %3430 = vmatpush.msrb.mxu2 %v10939_v33 }
 0xc66   :  { %3467 = vmatpush.msrb.mxu3 %v10899_v43  ;;  %3040 = vmatmul.f32.vlgmr.msrb.gmra.mxu0 %v3039_v24 }
 0xc67   :  { %3244 = vmatmul.f32.vlgmr.msra.gmra.mxu1 %v3035_v18  ;;  %3352 = vmatpush.msrb.mxu0 %v10902_v44 }
 0xc68   :  { %3397 = vmatpush.msrb.mxu1 %v10941_v36  ;;  %3434 = vmatpush.msrb.mxu2 %v10961_v28 }
 0xc69   :  { %3469 = vmatpush.msrb.mxu3 %v10911_v48  ;;  %3277 = vmatmul.f32.vlgmr.msra.gmra.mxu2 %v3039_v24  ;;  %v13708_v24 = vld [vmem:[#allocation36_spill] sm:$0xff] }
 0xc6a   :  { %3355 = vmatpush.msrb.mxu0 %v10914_v50  ;;  %3399 = vmatpush.msrb.mxu1 %v10955_v21 }
 0xc6b   :  { %3438 = vmatpush.msrb.mxu2 %v10971_v27  ;;  %3471 = vmatpush.msrb.mxu3 %v10925_v57 }
 0xc6c   :  { %3338 = vmatmul.f32.vlgmr.msra.gmra.mxu3 %v3035_v18  ;;  %3358 = vmatpush.msrb.mxu0 %v10928_v58 }
 0xc6d   :  { %3401 = vmatpush.msrb.mxu1 %v10973_v42  ;;  %3442 = vmatpush.msrb.mxu2 %v10988_v59 }
 0xc6e   :  { %3473 = vmatpush.msrb.mxu3 %v10941_v36  ;;  %3361 = vmatpush.msrb.mxu0 %v10944_v38 }
 0xc6f   :  { %3403 = vmatpush.msrb.mxu1 %v10990_v0  ;;  %3446 = vmatpush.msrb.mxu2 %v11003_v49 }
 0xc70   :  { %3475 = vmatpush.msrb.mxu3 %v10955_v21  ;;  %3215 = vmatmul.f32.vlgmr.msra.gmra.mxu0 %v3035_v18 }
 0xc71   :  { %3407 = vmatmul.f32.vlgmr.msrb.gmra.mxu1 %v3037_v22  ;;  %3364 = vmatpush.msrb.mxu0 %v10958_v25  ;;  %v13706_v22 = vld [vmem:[#allocation35_spill] sm:$0xff] }
 0xc72   :  { %3450 = vmatpush.msrb.mxu2 %v11014_v46  ;;  %3477 = vmatpush.msrb.mxu3 %v10973_v42 }
 0xc73   :  { %3452 = vmatmul.f32.vlgmr.msrb.gmra.mxu2 %v3035_v18  ;;  %3367 = vmatpush.msrb.mxu0 %v10976_v41 }
 0xc74   :  { %3479 = vmatpush.msrb.mxu3 %v10990_v0  ;;  %3640 = vmatpush.msra.mxu1 %v10808_v39 }
 0xc75   :  { %3481 = vmatmul.f32.vlgmr.msrb.gmra.mxu3 %v3035_v18  ;;  %3370 = vmatpush.msrb.mxu0 %v10993_v4  ;;  %v13704_v18 = vld [vmem:[#allocation34_spill] sm:$0xff] }
 0xc76   :  { %3646 = vmatpush.msra.mxu1 %v10810_v3  ;;  %3698 = vmatpush.msra.mxu2 %v10752_v1 }
 0xc77   :  { %3373 = vmatpush.msrb.mxu0 %v11006_v19  ;;  %3735 = vmatpush.msra.mxu3 %v10724_v54 }
 0xc78   :  { %3376 = vmatmul.f32.vlgmr.msrb.gmra.mxu0 %v3036_v62  ;;  %3652 = vmatpush.msra.mxu1 %v10821_v9  ;;  %v13705_v62 = vld [vmem:[#allocation20_spill] sm:$0xff] }
 0xc79   :  { %3701 = vmatpush.msra.mxu2 %v10755_v2  ;;  %3737 = vmatpush.msra.mxu3 %v10726_v55 }
 0xc7a   :  { %3658 = vmatpush.msra.mxu1 %v10832_v16  ;;  %3603 = vmatpush.msra.mxu0 %v10724_v54 }
 0xc7b   :  { %3704 = vmatpush.msra.mxu2 %v10758_v6  ;;  %3739 = vmatpush.msra.mxu3 %v10728_v56 }
 0xc7c   :  { %3664 = vmatpush.msra.mxu1 %v10843_v20  ;;  %3605 = vmatpush.msra.mxu0 %v10726_v55 }
 0xc7d   :  { %3707 = vmatpush.msra.mxu2 %v10765_v8  ;;  %3741 = vmatpush.msra.mxu3 %v10739_v60 }
 0xc7e   :  { %3670 = vmatpush.msra.mxu1 %v10854_v26  ;;  %3607 = vmatpush.msra.mxu0 %v10728_v56 }
 0xc7f   :  { %3710 = vmatpush.msra.mxu2 %v10768_v12  ;;  %3743 = vmatpush.msra.mxu3 %v10741_v61 }
 0xc80   :  { %3676 = vmatpush.msra.mxu1 %v13689_v7  ;;  %3609 = vmatpush.msra.mxu0 %v10739_v60 }
 0xc81   :  { %3713 = vmatpush.msra.mxu2 %v13690_v23  ;;  %3745 = vmatpush.msra.mxu3 %v13691_v11 }
 0xc82   :  { %3682 = vmatpush.msra.mxu1 %v13692_v14  ;;  %3611 = vmatpush.msra.mxu0 %v10741_v61 }
 0xc83   :  { %3716 = vmatpush.msra.mxu2 %v13693_v63  ;;  %3747 = vmatpush.msra.mxu3 %v13694_v34  ;;  %v3006_v63 = vld [vmem:[#allocation2 + $0x18] sm:$0xc] }
 0xc84   :  { %3811 = vmatpush.msrb.mxu1 %v10724_v54  ;;  %3613 = vmatpush.msra.mxu0 %v13691_v11 }
 0xc85   :  { %3719 = vmatpush.msra.mxu2 %v13695_v5  ;;  %3749 = vmatpush.msra.mxu3 %v13696_v35 }
 0xc86   :  { %3813 = vmatpush.msrb.mxu1 %v10726_v55  ;;  %3615 = vmatpush.msra.mxu0 %v13694_v34 }
 0xc87   :  { %3840 = vmatpush.msrb.mxu2 %v10859_v29  ;;  %3877 = vmatpush.msrb.mxu3 %v13697_v31 }
 0xc88   :  { %3815 = vmatpush.msrb.mxu1 %v10728_v56  ;;  %3617 = vmatpush.msra.mxu0 %v13696_v35 }
 0xc89   :  { %3842 = vmatpush.msrb.mxu2 %v10899_v43  ;;  %3883 = vmatpush.msrb.mxu3 %v13698_v15 }
 0xc8a   :  { %3817 = vmatpush.msrb.mxu1 %v10739_v60  ;;  %3768 = vmatpush.msrb.mxu0 %v13699_v45 }
 0xc8b   :  { %3844 = vmatpush.msrb.mxu2 %v10911_v48  ;;  %3889 = vmatpush.msrb.mxu3 %v13700_v52 }
 0xc8c   :  { %3819 = vmatpush.msrb.mxu1 %v10741_v61  ;;  %3772 = vmatpush.msrb.mxu0 %v13701_v17 }
 0xc8d   :  { %3846 = vmatpush.msrb.mxu2 %v10925_v57  ;;  %3895 = vmatpush.msrb.mxu3 %v13702_v37 }
 0xc8e   :  { %3821 = vmatpush.msrb.mxu1 %v13691_v11  ;;  %3776 = vmatpush.msrb.mxu0 %v13703_v40  ;;  %v13711_v40 = vld [vmem:[#allocation25_spill] sm:$0xff] }
 0xc8f   :  { %3848 = vmatpush.msrb.mxu2 %v10941_v36  ;;  %3901 = vmatpush.msrb.mxu3 %v13704_v18  ;;  %v13712_v18 = vld [vmem:[#allocation26_spill] sm:$0xff] }
 0xc90   :  { %3823 = vmatpush.msrb.mxu1 %v13694_v34  ;;  %3780 = vmatpush.msrb.mxu0 %v13705_v62 }
 0xc91   :  { %3850 = vmatpush.msrb.mxu2 %v10955_v21  ;;  %3907 = vmatpush.msrb.mxu3 %v13706_v22 }
 0xc92   :  { %3825 = vmatpush.msrb.mxu1 %v13696_v35  ;;  %3784 = vmatpush.msrb.mxu0 %v13707_v51 }
 0xc93   :  { %3852 = vmatpush.msrb.mxu2 %v10973_v42  ;;  %3913 = vmatpush.msrb.mxu3 %v13708_v24 }
 0xc94   :  { %3788 = vmatpush.msrb.mxu0 %v13709_v30 }
 0xc95   :  { %3854 = vmatpush.msrb.mxu2 %v10990_v0  ;;  %3919 = vmatpush.msrb.mxu3 %v13710_v32 }
 0xc96   :  { %3792 = vmatpush.msrb.mxu0 %v13711_v40 }
 0xc98   :  { %3796 = vmatpush.msrb.mxu0 %v13712_v18 }
 0xcdb   :  { %v3102_v62 = vpop.f32.mrf.mxu1 }
 0xce3   :  { %v3041_v37 = vpop.f32.mrf.mxu0  ;;  %v3140_v52 = vpop.f32.mrf.mxu2 }
 0xce4   :  { %v3103_v17 = vadd.f32 %v3102_v62, %v3041_v37  ;;  %v3245_v51 = vpop.f32.mrf.mxu1 }
 0xce5   :  { %v3171_v45 = vpop.f32.mrf.mxu3 }
 0xce6   :  { %v3141_v22 = vadd.f32 %v3140_v52, %v3103_v17 }
 0xce8   :  { %v3172_v15 = vadd.f32 %v3171_v45, %v3141_v22 }
 0xcec   :  { %v3278_v5 = vpop.f32.mrf.mxu2 }
 0xced   :  { %v3216_v31 = vpop.f32.mrf.mxu0 }
 0xcee   :  { %v3217_v35 = vadd.f32 %v3216_v31, %v3172_v15  ;;  %v3408_v11 = vpop.f32.mrf.mxu1  ;;  %v3007_v15 = vld [vmem:[#allocation2] sm:$0x30] }
 0xcef   :  { %v3339_v34 = vpop.f32.mrf.mxu3 }
 0xcf0   :  { %v3246_v24 = vadd.f32 %v3245_v51, %v3217_v35  ;;  %v3340_v14 = vadd.f32 %v3339_v34, %v3278_v5 }
 0xcf2   :  { %v3486_v30 = vrot.slane %v3246_v24, 6 }
 0xcf4   :  { %v3488_v32 = vadd.f32 %v3486_v30, %v3006_v63 }
 0xcf5   :  { %v3377_v40 = vpop.f32.mrf.mxu0 }
 0xcf6   :  { %10103 = vtanh.f32 %v3488_v32  ;;  %v3378_v18 = vadd.f32 %v3377_v40, %v3340_v14  ;;  %v3453_v37 = vpop.f32.mrf.mxu2  ;;  %v9994_v30 = vmul.f32 -1.442695, %v3488_v32 }
 0xcf8   :  { %v3409_v23 = vadd.f32 %v3408_v11, %v3378_v18  ;;  %v3482_v7 = vpop.f32.mrf.mxu3 }
 0xcfa   :  { %v3454_v62 = vadd.f32 %v3453_v37, %v3409_v23 }
 0xcfc   :  { %v10104_v52 = vpop.eup %10103  ;;  %v3483_v45 = vadd.f32 %v3482_v7, %v3454_v62 }
 0xcfd   :  { %3518 = vrot.lane.b32.xlu2 %v10104_v52, %s10347_s3 }
 0xcfe   :  { %v3490_v31 = vrot.slane %v3483_v45, 4 }
 0xd00   :  { %v3492_v35 = vadd.f32 %v3490_v31, %v3007_v15 }
 0xd02   :  { %10105 = vtanh.f32 %v3492_v35  ;;  %v9995_v40 = vmul.f32 -1.442695, %v3492_v35 }
 0xd03   :  { %10107 = vpow2.f32 %v9994_v30 }
 0xd08   :  { %v10106_v17 = vpop.eup %10105 }
 0xd09   :  { %3558 = vrot.lane.b32.xlu1 %v10106_v17, %s10347_s3  ;;  %v10108_v63 = vpop.eup %10107 }
 0xd0a   :  { %v3496_v14 = vadd.f32 1.0, %v10108_v63 }
 0xd0c   :  { %10109 = vrcp.f32 %v3496_v14  ;;  %v3508_v18 = vand.u32 2147483648, %v3496_v14  ;;  %vm3502_vm12 = vweird.f32 %v3496_v14  ;;  %v3506_v22 = vand.u32 2147483647, %v3496_v14 }
 0xd0d   :  { %10111 = vpow2.f32 %v9995_v40 }
 0xd0e   :  { %v3509_v24 = vor.u32 1.1754944e-38, %v3508_v18  ;;  %vm3507_vm15 = vcmp.eq.f32.partialorder %v3506_v22, 8.507059e+37 }
 0xd12   :  { %v10110_v11 = vpop.eup %10109 }
 0xd13   :  { %v3498_v34 = vmul.f32 %v10110_v11, %v3496_v14  ;;  %vm3503_vm8 = vweird.f32 %v10110_v11  ;;  %v10112_v62 = vpop.eup %10111 }
 0xd14   :  { %vm3504_vm14 = vmor %vm3502_vm12, %vm3503_vm8  ;;  %v3536_v45 = vadd.f32 1.0, %v10112_v62 }
 0xd15   :  { %v3499_v23 = vsub.f32 1.0, %v3498_v34 }
 0xd16   :  { %10113 = vrcp.f32 %v3536_v45  ;;  %v3548_v63 = vand.u32 2147483648, %v3536_v45  ;;  %vm3542_vm2 = vweird.f32 %v3536_v45  ;;  %v3546_v14 = vand.u32 2147483647, %v3536_v45 }
 0xd17   :  { %v3500_v5 = vmul.f32 %v10110_v11, %v3499_v23 }
 0xd18   :  { %v3549_v34 = vor.u32 1.1754944e-38, %v3548_v63  ;;  %vm3547_vm5 = vcmp.eq.f32.partialorder %v3546_v14, 8.507059e+37 }
 0xd19   :  { %v3501_v7 = vadd.f32 %v10110_v11, %v3500_v5 }
 0xd1b   :  { %v3505_v51 = vsel %vm3504_vm14, %v10110_v11, %v3501_v7  ;;  %v3514_v7 = vrot.slane %v11484_v13, 6 }
 0xd1c   :  { %v3510_v37 = vsel %vm3507_vm15, %v3509_v24, %v3505_v51  ;;  %v10114_v31 = vpop.eup %10113 }
 0xd1d   :  { %v3538_v15 = vmul.f32 %v10114_v31, %v3536_v45  ;;  %vm3543_vm1 = vweird.f32 %v10114_v31  ;;  %v3516_v18 = vmul.f32 %v3514_v7, %v3510_v37 }
 0xd1e   :  { %vm3544_vm3 = vmor %vm3542_vm2, %vm3543_vm1 }
 0xd1f   :  { %v3539_v35 = vsub.f32 1.0, %v3538_v15 }
 0xd21   :  { %v3540_v17 = vmul.f32 %v10114_v31, %v3539_v35 }
 0xd23   :  { %v3541_v30 = vadd.f32 %v10114_v31, %v3540_v17 }
 0xd25   :  { %v3545_v11 = vsel %vm3544_vm3, %v10114_v31, %v3541_v30 }
 0xd26   :  { %v3550_v5 = vsel %vm3547_vm5, %v3549_v34, %v3545_v11 }
 0xd57   :  { %v3519_v32 = vpop.permute.xlu2 %3518 }
 0xd58   :  { %v3521_v52 = vmul.f32 %v3519_v32, %v3510_v37  ;;  %v3554_v32 = vrot.slane %v11489_v10, 2 }
 0xd5a   :  { %3523 = vrot.lane.b32.xlu1 %v3521_v52, %s10348_s16  ;;  %v3556_v62 = vmul.f32 %v3554_v32, %v3550_v5  ;;  %v13732_v32 = vld [vmem:[#allocation36_spill] sm:$0xff] }
 0xd7b   :  { %v3559_v23 = vpop.permute.xlu1 %3558 }
 0xd7c   :  { %v3561_v40 = vmul.f32 %v3559_v23, %v3550_v5 }
 0xd7e   :  { %3563 = vrot.lane.b32.xlu0 %v3561_v40, %s10348_s16 }
 0xdcc   :  { %v3524_v22 = vpop.permute.xlu1 %3523 }
 0xdcd   :  { %v11604_v51 = vadd.f32 %v3524_v22, %v3516_v18  ;;  %v13728_v18 = vld [vmem:[#allocation34_spill] sm:$0xff]  ;;  %v13730_v22 = vld [vmem:[#allocation35_spill] sm:$0xff] }
 0xdcf   :  { %10115 = vtanh.f32 %v11604_v51 }
 0xdd5   :  { %v10116_v24 = vpop.eup %10115 }
 0xdd6   :  { %3529 = vrot.lane.b32.xlu0 %v10116_v24, %s10347_s3  ;;  %v13731_v24 = vld [vmem:[#allocation22_spill] sm:$0xff] }
 0xdf0   :  { %v3564_v52 = vpop.permute.xlu0 %3563 }
 0xdf1   :  { %v11609_v45 = vadd.f32 %v3564_v52, %v3556_v62  ;;  %v13733_v62 = vld [vmem:[#allocation23_spill] sm:$0xff]  ;;  %v13734_v52 = vld [vmem:[#allocation37_spill] sm:$0xff] }
 0xdf3   :  { %10117 = vtanh.f32 %v11609_v45 }
 0xdf9   :  { %v10118_v31 = vpop.eup %10117 }
 0xdfa   :  { %3569 = vrot.lane.b32.xlu2 %v10118_v31, %s10347_s3  ;;  %v13735_v31 = vld [vmem:[#allocation25_spill] sm:$0xff] }
 0xe48   :  { %v3530_v13 = vpop.permute.xlu0 %3529 }
 0xe49   :  { %v3532_v15 = vmul.f32 %v3530_v13, %v3510_v37  ;;  %v13736_v13 = vld [vmem:[#allocation26_spill] sm:$0xff] }
 0xe4b   :  { %3574 = vrot.lane.b32.xlu1 %v3532_v15, %s10348_s16 }
 0xe54   :  { %v3570_v35 = vpop.permute.xlu2 %3569 }
 0xe55   :  { %v11614_v17 = vmul.f32 %v3570_v35, %v3550_v5 }
 0xe57   :  { %v3578_v30 = vrot.slane %v11614_v17, 2 }
 0xe59   :  { %3579 = vrot.lane.b32.xlu2 %v3578_v30, %s10347_s3 }
 0xeb3   :  { %v3580_v10 = vpop.permute.xlu2 %3579 }
 0xebd   :  { %v11618_v63 = vpop.permute.xlu1 %3574 }
 0xebe   :  { %v3582_v14 = vsel %vm665_vm9, %v11618_v63, %v3580_v10 }
 0xebf   :  { %v3591_v11 = vrot.slane %v3582_v14, 2 }
 0xec1   :  { %v3592_v34 = vsel %vm676_vm11, %v3591_v11, 0 }
 0xec2   :  { %v3618_v23 = vand.u32 4294901760, %v3592_v34 }
 0xec4   :  { %v3619_v37 = vsub.f32 %v3592_v34, %v3618_v23  ;;  %3684 = vmatmul.f32.vlgmr.msra.gmra.mxu1 %v3618_v23 }
 0xec5   :  { %3972 = vmatpush.msra.mxu1 %v10859_v29 }
 0xec6   :  { %3722 = vmatmul.f32.vlgmr.msra.gmra.mxu2 %v3619_v37  ;;  %v3620_v5 = vand.u32 4294901760, %v3619_v37 }
 0xec7   :  { %3974 = vmatpush.msra.mxu1 %v10899_v43  ;;  %4005 = vmatpush.msra.mxu2 %v10909_v47 }
 0xec8   :  { %3753 = vmatmul.f32.vlgmr.msra.gmra.mxu3 %v3620_v5  ;;  %v3621_v40 = vsub.f32 %v3619_v37, %v3620_v5 }
 0xec9   :  { %3976 = vmatpush.msra.mxu1 %v10911_v48  ;;  %4009 = vmatpush.msra.mxu2 %v10923_v53 }
 0xeca   :  { %4048 = vmatpush.msra.mxu3 %v10859_v29  ;;  %v3622_v7 = vand.u32 4294901760, %v3621_v40 }
 0xecb   :  { %3978 = vmatpush.msra.mxu1 %v10925_v57  ;;  %4013 = vmatpush.msra.mxu2 %v10939_v33 }
 0xecc   :  { %4050 = vmatpush.msra.mxu3 %v10899_v43  ;;  %3623 = vmatmul.f32.vlgmr.msra.gmra.mxu0 %v3622_v7 }
 0xecd   :  { %3827 = vmatmul.f32.vlgmr.msrb.gmra.mxu1 %v3618_v23  ;;  %3935 = vmatpush.msra.mxu0 %v10902_v44 }
 0xece   :  { %3980 = vmatpush.msra.mxu1 %v10941_v36  ;;  %4017 = vmatpush.msra.mxu2 %v10961_v28 }
 0xecf   :  { %4052 = vmatpush.msra.mxu3 %v10911_v48  ;;  %3860 = vmatmul.f32.vlgmr.msrb.gmra.mxu2 %v3622_v7 }
 0xed0   :  { %3938 = vmatpush.msra.mxu0 %v10914_v50  ;;  %3982 = vmatpush.msra.mxu1 %v10955_v21 }
 0xed1   :  { %4021 = vmatpush.msra.mxu2 %v10971_v27  ;;  %4054 = vmatpush.msra.mxu3 %v10925_v57 }
 0xed2   :  { %3921 = vmatmul.f32.vlgmr.msrb.gmra.mxu3 %v3618_v23  ;;  %3941 = vmatpush.msra.mxu0 %v10928_v58 }
 0xed3   :  { %3984 = vmatpush.msra.mxu1 %v10973_v42  ;;  %4025 = vmatpush.msra.mxu2 %v10988_v59 }
 0xed4   :  { %4056 = vmatpush.msra.mxu3 %v10941_v36  ;;  %3944 = vmatpush.msra.mxu0 %v10944_v38 }
 0xed5   :  { %3986 = vmatpush.msra.mxu1 %v10990_v0  ;;  %4029 = vmatpush.msra.mxu2 %v11003_v49 }
 0xed6   :  { %4058 = vmatpush.msra.mxu3 %v10955_v21  ;;  %3798 = vmatmul.f32.vlgmr.msrb.gmra.mxu0 %v3618_v23 }
 0xed7   :  { %3990 = vmatmul.f32.vlgmr.msra.gmra.mxu1 %v3620_v5  ;;  %3947 = vmatpush.msra.mxu0 %v10958_v25 }
 0xed8   :  { %4033 = vmatpush.msra.mxu2 %v11014_v46  ;;  %4060 = vmatpush.msra.mxu3 %v10973_v42 }
 0xed9   :  { %4035 = vmatmul.f32.vlgmr.msra.gmra.mxu2 %v3618_v23  ;;  %3950 = vmatpush.msra.mxu0 %v10976_v41 }
 0xeda   :  { %4062 = vmatpush.msra.mxu3 %v10990_v0  ;;  %4223 = vmatpush.msrb.mxu1 %v10808_v39  ;;  %v13716_v39 = vld [vmem:[#allocation28_spill] sm:$0xff] }
 0xedb   :  { %4064 = vmatmul.f32.vlgmr.msra.gmra.mxu3 %v3618_v23  ;;  %3953 = vmatpush.msra.mxu0 %v10993_v4 }
 0xedc   :  { %4229 = vmatpush.msrb.mxu1 %v10810_v3  ;;  %4281 = vmatpush.msrb.mxu2 %v10752_v1  ;;  %v13713_v1 = vld [vmem:[#allocation27_spill] sm:$0xff]  ;;  %v13718_v3 = vld [vmem:[#allocation14_spill] sm:$0xff] }
 0xedd   :  { %3956 = vmatpush.msra.mxu0 %v11006_v19  ;;  %4318 = vmatpush.msrb.mxu3 %v10724_v54 }
 0xede   :  { %3959 = vmatmul.f32.vlgmr.msra.gmra.mxu0 %v3619_v37  ;;  %4235 = vmatpush.msrb.mxu1 %v10821_v9  ;;  %v13720_v9 = vld [vmem:[#allocation19_spill] sm:$0xff] }
 0xedf   :  { %4284 = vmatpush.msrb.mxu2 %v10755_v2  ;;  %4320 = vmatpush.msrb.mxu3 %v10726_v55  ;;  %v13714_v2 = vld [vmem:[#allocation15_spill] sm:$0xff] }
 0xee0   :  { %4241 = vmatpush.msrb.mxu1 %v10832_v16  ;;  %4186 = vmatpush.msrb.mxu0 %v10724_v54  ;;  %v13721_v16 = vld [vmem:[#allocation30_spill] sm:$0xff] }
 0xee1   :  { %4287 = vmatpush.msrb.mxu2 %v10758_v6  ;;  %4322 = vmatpush.msrb.mxu3 %v10728_v56  ;;  %v13715_v6 = vld [vmem:[#allocation13_spill] sm:$0xff] }
 0xee2   :  { %4247 = vmatpush.msrb.mxu1 %v10843_v20  ;;  %4188 = vmatpush.msrb.mxu0 %v10726_v55  ;;  %v13725_v20 = vld [vmem:[#allocation17_spill] sm:$0xff] }
 0xee3   :  { %4290 = vmatpush.msrb.mxu2 %v10765_v8  ;;  %4324 = vmatpush.msrb.mxu3 %v10739_v60  ;;  %v13717_v8 = vld [vmem:[#allocation21_spill] sm:$0xff] }
 0xee4   :  { %4253 = vmatpush.msrb.mxu1 %v10854_v26  ;;  %4190 = vmatpush.msrb.mxu0 %v10728_v56  ;;  %v13727_v26 = vld [vmem:[#allocation18_spill] sm:$0xff] }
 0xee5   :  { %4293 = vmatpush.msrb.mxu2 %v10768_v12  ;;  %4326 = vmatpush.msrb.mxu3 %v10741_v61  ;;  %v13719_v12 = vld [vmem:[#allocation24_spill] sm:$0xff] }
 0xee6   :  { %4259 = vmatpush.msrb.mxu1 %v13713_v1  ;;  %4192 = vmatpush.msrb.mxu0 %v10739_v60 }
 0xee7   :  { %4296 = vmatpush.msrb.mxu2 %v13714_v2  ;;  %4328 = vmatpush.msrb.mxu3 %v13715_v6 }
 0xee8   :  { %4265 = vmatpush.msrb.mxu1 %v13716_v39  ;;  %4194 = vmatpush.msrb.mxu0 %v10741_v61 }
 0xee9   :  { %4299 = vmatpush.msrb.mxu2 %v13717_v8  ;;  %4330 = vmatpush.msrb.mxu3 %v13718_v3 }
 0xeea   :  { %4394 = vmatpush.msra.mxu1 %v10724_v54  ;;  %4196 = vmatpush.msrb.mxu0 %v13715_v6  ;;  %v13722_v54 = vld [vmem:[#allocation31_spill] sm:$0xff] }
 0xeeb   :  { %4302 = vmatpush.msrb.mxu2 %v13719_v12  ;;  %4332 = vmatpush.msrb.mxu3 %v13720_v9 }
 0xeec   :  { %4396 = vmatpush.msra.mxu1 %v10726_v55  ;;  %4198 = vmatpush.msrb.mxu0 %v13718_v3  ;;  %v13723_v55 = vld [vmem:[#allocation16_spill] sm:$0xff] }
 0xeed   :  { %4423 = vmatpush.msra.mxu2 %v10859_v29  ;;  %4460 = vmatpush.msra.mxu3 %v13721_v16 }
 0xeee   :  { %4398 = vmatpush.msra.mxu1 %v10728_v56  ;;  %4200 = vmatpush.msrb.mxu0 %v13720_v9  ;;  %v13724_v56 = vld [vmem:[#allocation32_spill] sm:$0xff] }
 0xeef   :  { %4425 = vmatpush.msra.mxu2 %v10899_v43  ;;  %4466 = vmatpush.msra.mxu3 %v13722_v54 }
 0xef0   :  { %4400 = vmatpush.msra.mxu1 %v10739_v60  ;;  %4351 = vmatpush.msra.mxu0 %v13723_v55  ;;  %v13726_v60 = vld [vmem:[#allocation33_spill] sm:$0xff] }
 0xef1   :  { %4427 = vmatpush.msra.mxu2 %v10911_v48  ;;  %4472 = vmatpush.msra.mxu3 %v13724_v56 }
 0xef2   :  { %4402 = vmatpush.msra.mxu1 %v10741_v61  ;;  %4355 = vmatpush.msra.mxu0 %v13725_v20  ;;  %v13729_v61 = vld [vmem:[#allocation20_spill] sm:$0xff] }
 0xef3   :  { %4429 = vmatpush.msra.mxu2 %v10925_v57  ;;  %4478 = vmatpush.msra.mxu3 %v13726_v60 }
 0xef4   :  { %4404 = vmatpush.msra.mxu1 %v13715_v6  ;;  %4359 = vmatpush.msra.mxu0 %v13727_v26  ;;  %v3588_v6 = vld [vmem:[#allocation2 + $0x18] sm:$0x30] }
 0xef5   :  { %4431 = vmatpush.msra.mxu2 %v10941_v36  ;;  %4484 = vmatpush.msra.mxu3 %v13728_v18  ;;  %v3589_v18 = vld [vmem:[#allocation2] sm:$0xc] }
 0xef6   :  { %4406 = vmatpush.msra.mxu1 %v13718_v3  ;;  %4363 = vmatpush.msra.mxu0 %v13729_v61 }
 0xef7   :  { %4433 = vmatpush.msra.mxu2 %v10955_v21  ;;  %4490 = vmatpush.msra.mxu3 %v13730_v22 }
 0xef8   :  { %4408 = vmatpush.msra.mxu1 %v13720_v9  ;;  %4367 = vmatpush.msra.mxu0 %v13731_v24 }
 0xef9   :  { %4435 = vmatpush.msra.mxu2 %v10973_v42  ;;  %4496 = vmatpush.msra.mxu3 %v13732_v32 }
 0xefa   :  { %4371 = vmatpush.msra.mxu0 %v13733_v62 }
 0xefb   :  { %4437 = vmatpush.msra.mxu2 %v10990_v0  ;;  %4502 = vmatpush.msra.mxu3 %v13734_v52 }
 0xefc   :  { %4375 = vmatpush.msra.mxu0 %v13735_v31 }
 0xefe   :  { %4379 = vmatpush.msra.mxu0 %v13736_v13 }
 0xf41   :  { %v3685_v15 = vpop.f32.mrf.mxu1 }
 0xf49   :  { %v3624_v35 = vpop.f32.mrf.mxu0  ;;  %v3723_v10 = vpop.f32.mrf.mxu2 }
 0xf4a   :  { %v3686_v30 = vadd.f32 %v3685_v15, %v3624_v35  ;;  %v3828_v23 = vpop.f32.mrf.mxu1 }
 0xf4b   :  { %v3754_v14 = vpop.f32.mrf.mxu3 }
 0xf4c   :  { %v3724_v11 = vadd.f32 %v3723_v10, %v3686_v30 }
 0xf4e   :  { %v3755_v34 = vadd.f32 %v3754_v14, %v3724_v11 }
 0xf52   :  { %v3861_v40 = vpop.f32.mrf.mxu2 }
 0xf53   :  { %v3799_v37 = vpop.f32.mrf.mxu0 }
 0xf54   :  { %v3800_v5 = vadd.f32 %v3799_v37, %v3755_v34  ;;  %v3991_v9 = vpop.f32.mrf.mxu1 }
 0xf55   :  { %v3922_v1 = vpop.f32.mrf.mxu3 }
 0xf56   :  { %v3829_v7 = vadd.f32 %v3828_v23, %v3800_v5  ;;  %v3923_v8 = vadd.f32 %v3922_v1, %v3861_v40 }
 0xf58   :  { %v4069_v2 = vrot.slane %v3829_v7, 4 }
 0xf5a   :  { %v4071_v39 = vadd.f32 %v4069_v2, %v3588_v6 }
 0xf5b   :  { %v3960_v3 = vpop.f32.mrf.mxu0 }
 0xf5c   :  { %10119 = vtanh.f32 %v4071_v39  ;;  %v3961_v12 = vadd.f32 %v3960_v3, %v3923_v8  ;;  %v4036_v54 = vpop.f32.mrf.mxu2  ;;  %v9996_v24 = vmul.f32 -1.442695, %v4071_v39 }
 0xf5e   :  { %v3992_v16 = vadd.f32 %v3991_v9, %v3961_v12  ;;  %v4065_v56 = vpop.f32.mrf.mxu3 }
 0xf60   :  { %v4037_v55 = vadd.f32 %v4036_v54, %v3992_v16 }
 0xf62   :  { %v10120_v20 = vpop.eup %10119  ;;  %v4066_v60 = vadd.f32 %v4065_v56, %v4037_v55 }
 0xf63   :  { %4101 = vrot.lane.b32.xlu1 %v10120_v20, %s10347_s3  ;;  %v4137_v20 = vrot.slane %v11609_v45, 2 }
 0xf64   :  { %v4073_v26 = vrot.slane %v4066_v60, 6 }
 0xf66   :  { %v4075_v61 = vadd.f32 %v4073_v26, %v3589_v18 }
 0xf68   :  { %10121 = vtanh.f32 %v4075_v61  ;;  %v9997_v62 = vmul.f32 -1.442695, %v4075_v61 }
 0xf69   :  { %10123 = vpow2.f32 %v9996_v24 }
 0xf6a   :  { %10125 = vpow2.f32 %v9997_v62 }
 0xf6e   :  { %v10122_v22 = vpop.eup %10121 }
 0xf6f   :  { %4141 = vrot.lane.b32.xlu0 %v10122_v22, %s10347_s3  ;;  %v10124_v32 = vpop.eup %10123  ;;  %v4097_v22 = vrot.slane %v11604_v51, 6 }
 0xf70   :  { %v4079_v52 = vadd.f32 1.0, %v10124_v32  ;;  %v10126_v31 = vpop.eup %10125 }
 0xf71   :  { %v4119_v15 = vadd.f32 1.0, %v10126_v31 }
 0xf72   :  { %10127 = vrcp.f32 %v4079_v52  ;;  %v4091_v23 = vand.u32 2147483648, %v4079_v52  ;;  %vm4085_vm7 = vweird.f32 %v4079_v52  ;;  %v4089_v37 = vand.u32 2147483647, %v4079_v52 }
 0xf73   :  { %10129 = vrcp.f32 %v4119_v15  ;;  %v4131_v3 = vand.u32 2147483648, %v4119_v15  ;;  %vm4125_vm15 = vweird.f32 %v4119_v15  ;;  %v4129_v12 = vand.u32 2147483647, %v4119_v15 }
 0xf74   :  { %v4092_v7 = vor.u32 1.1754944e-38, %v4091_v23  ;;  %vm4090_vm12 = vcmp.eq.f32.partialorder %v4089_v37, 8.507059e+37 }
 0xf75   :  { %v4132_v16 = vor.u32 1.1754944e-38, %v4131_v3  ;;  %vm4130_vm2 = vcmp.eq.f32.partialorder %v4129_v12, 8.507059e+37 }
 0xf78   :  { %v10128_v13 = vpop.eup %10127 }
 0xf79   :  { %v4081_v35 = vmul.f32 %v10128_v13, %v4079_v52  ;;  %v10130_v14 = vpop.eup %10129  ;;  %vm4086_vm6 = vweird.f32 %v10128_v13 }
 0xf7a   :  { %v4121_v34 = vmul.f32 %v10130_v14, %v4119_v15  ;;  %vm4087_vm8 = vmor %vm4085_vm7, %vm4086_vm6  ;;  %vm4126_vm14 = vweird.f32 %v10130_v14 }
 0xf7b   :  { %v4082_v30 = vsub.f32 1.0, %v4081_v35  ;;  %vm4127_vm1 = vmor %vm4125_vm15, %vm4126_vm14 }
 0xf7c   :  { %v4122_v40 = vsub.f32 1.0, %v4121_v34 }
 0xf7d   :  { %v4083_v10 = vmul.f32 %v10128_v13, %v4082_v30 }
 0xf7e   :  { %v4123_v39 = vmul.f32 %v10130_v14, %v4122_v40 }
 0xf7f   :  { %v4084_v11 = vadd.f32 %v10128_v13, %v4083_v10 }
 0xf80   :  { %v4124_v8 = vadd.f32 %v10130_v14, %v4123_v39 }
 0xf81   :  { %v4088_v5 = vsel %vm4087_vm8, %v10128_v13, %v4084_v11 }
 0xf82   :  { %v4093_v2 = vsel %vm4090_vm12, %v4092_v7, %v4088_v5  ;;  %v4128_v9 = vsel %vm4127_vm1, %v10130_v14, %v4124_v8  ;;  %vm672_vm1 = vcmask 523526  }
 0xf83   :  { %v4133_v55 = vsel %vm4130_vm2, %v4132_v16, %v4128_v9  ;;  %v4099_v24 = vmul.f32 %v4097_v22, %v4093_v2  ;;  %vm1842_vm2 = vcmask 519426  }
 0xf84   :  { %v4139_v60 = vmul.f32 %v4137_v20, %v4133_v55 }
 0xfd5   :  { %v4102_v1 = vpop.permute.xlu1 %4101 }
 0xfd6   :  { %v4104_v6 = vmul.f32 %v4102_v1, %v4093_v2 }
 0xfd8   :  { %4106 = vrot.lane.b32.xlu0 %v4104_v6, %s10348_s16 }
 0xfe1   :  { %v4142_v54 = vpop.permute.xlu0 %4141 }
 0xfe2   :  { %v4144_v56 = vmul.f32 %v4142_v54, %v4133_v55 }
 0xfe4   :  { %4146 = vrot.lane.b32.xlu2 %v4144_v56, %s10348_s16 }
0x103e   :  { %v4147_v26 = vpop.permute.xlu2 %4146 }
0x103f   :  { %v11724_v18 = vadd.f32 %v4147_v26, %v4139_v60 }
0x1041   :  { %10131 = vtanh.f32 %v11724_v18 }
0x1047   :  { %v10132_v61 = vpop.eup %10131 }
0x1048   :  { %4152 = vrot.lane.b32.xlu1 %v10132_v61, %s10347_s3 }
0x104a   :  { %v4107_v32 = vpop.permute.xlu0 %4106 }
0x104b   :  { %v11729_v62 = vadd.f32 %v4107_v32, %v4099_v24 }
0x104d   :  { %10133 = vtanh.f32 %v11729_v62 }
0x1053   :  { %v10134_v52 = vpop.eup %10133 }
0x1054   :  { %4112 = vrot.lane.b32.xlu2 %v10134_v52, %s10347_s3 }
0x10ae   :  { %v4113_v45 = vpop.permute.xlu2 %4112 }
0x10af   :  { %v4115_v31 = vmul.f32 %v4113_v45, %v4093_v2  ;;  %v4172_v2 = vld [vmem:[#allocation2] sm:$0x3] }
0x10b1   :  { %4157 = vrot.lane.b32.xlu0 %v4115_v31, %s10348_s16 }
0x10ba   :  { %v4153_v13 = vpop.permute.xlu1 %4152 }
0x10bb   :  { %v11734_v15 = vmul.f32 %v4153_v13, %v4133_v55 }
0x10bd   :  { %v4161_v51 = vrot.slane %v11734_v15, 6 }
0x10bf   :  { %4162 = vrot.lane.b32.xlu1 %v4161_v51, %s10347_s3 }
0x1123   :  { %v11738_v35 = vpop.permute.xlu0 %4157 }
0x1131   :  { %v4163_v30 = vpop.permute.xlu1 %4162 }
0x1132   :  { %v4165_v10 = vsel %vm665_vm9, %v11738_v35, %v4163_v30 }
0x1133   :  { %v4174_v14 = vrot.slane %v4165_v10, 4 }
0x1135   :  { %v4175_v11 = vsel %vm676_vm11, %v4174_v14, 0 }
0x1136   :  { %v4201_v34 = vand.u32 4294901760, %v4175_v11 }
0x1138   :  { %v4202_v23 = vsub.f32 %v4175_v11, %v4201_v34  ;;  %4267 = vmatmul.f32.vlgmr.msrb.gmra.mxu1 %v4201_v34 }
0x1139   :  { %4555 = vmatpush.msrb.mxu1 %v10859_v29 }
0x113a   :  { %4305 = vmatmul.f32.vlgmr.msrb.gmra.mxu2 %v4202_v23  ;;  %v4203_v37 = vand.u32 4294901760, %v4202_v23 }
0x113b   :  { %4557 = vmatpush.msrb.mxu1 %v10899_v43  ;;  %4588 = vmatpush.msrb.mxu2 %v10909_v47 }
0x113c   :  { %4336 = vmatmul.f32.vlgmr.msrb.gmra.mxu3 %v4203_v37  ;;  %v4204_v5 = vsub.f32 %v4202_v23, %v4203_v37 }
0x113d   :  { %4559 = vmatpush.msrb.mxu1 %v10911_v48  ;;  %4592 = vmatpush.msrb.mxu2 %v10923_v53 }
0x113e   :  { %4631 = vmatpush.msrb.mxu3 %v10859_v29  ;;  %v4205_v40 = vand.u32 4294901760, %v4204_v5 }
0x113f   :  { %4561 = vmatpush.msrb.mxu1 %v10925_v57  ;;  %4596 = vmatpush.msrb.mxu2 %v10939_v33 }
0x1140   :  { %4633 = vmatpush.msrb.mxu3 %v10899_v43  ;;  %4206 = vmatmul.f32.vlgmr.msrb.gmra.mxu0 %v4205_v40 }
0x1141   :  { %4410 = vmatmul.f32.vlgmr.msra.gmra.mxu1 %v4201_v34  ;;  %4518 = vmatpush.msrb.mxu0 %v10902_v44 }
0x1142   :  { %4563 = vmatpush.msrb.mxu1 %v10941_v36  ;;  %4600 = vmatpush.msrb.mxu2 %v10961_v28 }
0x1143   :  { %4635 = vmatpush.msrb.mxu3 %v10911_v48  ;;  %4443 = vmatmul.f32.vlgmr.msra.gmra.mxu2 %v4205_v40 }
0x1144   :  { %4521 = vmatpush.msrb.mxu0 %v10914_v50  ;;  %4565 = vmatpush.msrb.mxu1 %v10955_v21 }
0x1145   :  { %4604 = vmatpush.msrb.mxu2 %v10971_v27  ;;  %4637 = vmatpush.msrb.mxu3 %v10925_v57 }
0x1146   :  { %4504 = vmatmul.f32.vlgmr.msra.gmra.mxu3 %v4201_v34  ;;  %4524 = vmatpush.msrb.mxu0 %v10928_v58 }
0x1147   :  { %4567 = vmatpush.msrb.mxu1 %v10973_v42  ;;  %4608 = vmatpush.msrb.mxu2 %v10988_v59 }
0x1148   :  { %4639 = vmatpush.msrb.mxu3 %v10941_v36  ;;  %4527 = vmatpush.msrb.mxu0 %v10944_v38 }
0x1149   :  { %4569 = vmatpush.msrb.mxu1 %v10990_v0  ;;  %4612 = vmatpush.msrb.mxu2 %v11003_v49 }
0x114a   :  { %4641 = vmatpush.msrb.mxu3 %v10955_v21  ;;  %4381 = vmatmul.f32.vlgmr.msra.gmra.mxu0 %v4201_v34 }
0x114b   :  { %4573 = vmatmul.f32.vlgmr.msrb.gmra.mxu1 %v4203_v37  ;;  %4530 = vmatpush.msrb.mxu0 %v10958_v25  ;;  %v4171_v25 = vld [vmem:[#allocation2 + $0x18] sm:$0xc0] }
0x114c   :  { %4616 = vmatpush.msrb.mxu2 %v11014_v46  ;;  %4643 = vmatpush.msrb.mxu3 %v10973_v42 }
0x114d   :  { %4618 = vmatmul.f32.vlgmr.msrb.gmra.mxu2 %v4201_v34  ;;  %4533 = vmatpush.msrb.mxu0 %v10976_v41 }
0x114e   :  { %4645 = vmatpush.msrb.mxu3 %v10990_v0 }
0x114f   :  { %4647 = vmatmul.f32.vlgmr.msrb.gmra.mxu3 %v4201_v34  ;;  %4536 = vmatpush.msrb.mxu0 %v10993_v4 }
0x1151   :  { %4539 = vmatpush.msrb.mxu0 %v11006_v19 }
0x1152   :  { %4542 = vmatmul.f32.vlgmr.msrb.gmra.mxu0 %v4202_v23 }
0x11b5   :  { %v4268_v49 = vpop.f32.mrf.mxu1 }
0x11bd   :  { %v4207_v29 = vpop.f32.mrf.mxu0  ;;  %v4306_v44 = vpop.f32.mrf.mxu2 }
0x11be   :  { %v4269_v43 = vadd.f32 %v4268_v49, %v4207_v29  ;;  %v4411_v53 = vpop.f32.mrf.mxu1  ;;  %v13737_v29 = vld [vmem:[#allocation39_spill] sm:$0xff] }
0x11bf   :  { %v4337_v47 = vpop.f32.mrf.mxu3 }
0x11c0   :  { %v4307_v48 = vadd.f32 %v4306_v44, %v4269_v43  ;;  %v4677_v43 = vrot.slane %v11729_v62, 6 }
0x11c2   :  { %v4338_v50 = vadd.f32 %v4337_v47, %v4307_v48 }
0x11c6   :  { %v4444_v33 = vpop.f32.mrf.mxu2 }
0x11c7   :  { %v4382_v57 = vpop.f32.mrf.mxu0 }
0x11c8   :  { %v4383_v58 = vadd.f32 %v4382_v57, %v4338_v50  ;;  %v4574_v41 = vpop.f32.mrf.mxu1  ;;  %v4717_v50 = vrot.slane %v11724_v18, 2  ;;  %v13739_v18 = vld [vmem:[#allocation29_spill] sm:$0xff] }
0x11c9   :  { %v4505_v38 = vpop.f32.mrf.mxu3 }
0x11ca   :  { %v4412_v36 = vadd.f32 %v4411_v53, %v4383_v58  ;;  %v4506_v27 = vadd.f32 %v4505_v38, %v4444_v33  ;;  %v13738_v38 = vld [vmem:[#allocation12_spill] sm:$0xff] }
0x11cc   :  { %v4652_v21 = vrot.slane %v4412_v36, 2 }
0x11ce   :  { %v4654_v28 = vadd.f32 %v4652_v21, %v4171_v25  ;;  %v13740_v21 = vld [vmem:[#allocation38_spill] sm:$0xff] }
0x11cf   :  { %v4543_v42 = vpop.f32.mrf.mxu0 }
0x11d0   :  { %10135 = vtanh.f32 %v4654_v28  ;;  %v4544_v19 = vadd.f32 %v4543_v42, %v4506_v27  ;;  %v4619_v0 = vpop.f32.mrf.mxu2  ;;  %v9998_v9 = vmul.f32 -1.442695, %v4654_v28  ;;  %v4760_v27 = vld [vmem:[%s13431_s4 + $0x60] sm:$0xff] }
0x11d2   :  { %v4575_v59 = vadd.f32 %v4574_v41, %v4544_v19  ;;  %v4648_v46 = vpop.f32.mrf.mxu3 }
0x11d4   :  { %v4620_v4 = vadd.f32 %v4619_v0, %v4575_v59 }
0x11d6   :  { %v10136_v7 = vpop.eup %10135  ;;  %v4649_v1 = vadd.f32 %v4648_v46, %v4620_v4 }
0x11d7   :  { %4681 = vrot.lane.b32.xlu0 %v10136_v7, %s10347_s3 }
0x11d8   :  { %v4655_v6 = vadd.f32 %v4649_v1, %v4172_v2 }
0x11da   :  { %10137 = vtanh.f32 %v4655_v6  ;;  %v9999_v8 = vmul.f32 -1.442695, %v4655_v6 }
0x11dc   :  { %10139 = vpow2.f32 %v9999_v8 }
0x11e0   :  { %v10138_v39 = vpop.eup %10137 }
0x11e1   :  { %4721 = vrot.lane.b32.xlu2 %v10138_v39, %s10347_s3 }
0x11e2   :  { %v10140_v3 = vpop.eup %10139 }
0x11e3   :  { %v4699_v12 = vadd.f32 1.0, %v10140_v3 }
0x11e5   :  { %10141 = vrcp.f32 %v4699_v12  ;;  %v4711_v22 = vand.u32 2147483648, %v4699_v12  ;;  %vm4705_vm5 = vweird.f32 %v4699_v12  ;;  %v4709_v24 = vand.u32 2147483647, %v4699_v12 }
0x11e6   :  { %10143 = vpow2.f32 %v9998_v9 }
0x11e7   :  { %v4712_v45 = vor.u32 1.1754944e-38, %v4711_v22  ;;  %vm4710_vm7 = vcmp.eq.f32.partialorder %v4709_v24, 8.507059e+37 }
0x11eb   :  { %v10142_v16 = vpop.eup %10141 }
0x11ec   :  { %v10144_v54 = vpop.eup %10143  ;;  %v4701_v55 = vmul.f32 %v10142_v16, %v4699_v12  ;;  %vm4706_vm3 = vweird.f32 %v10142_v16  ;;  %v13741_v12 = vld [vmem:[#allocation11_spill] sm:$0xff] }
0x11ed   :  { %v4659_v56 = vadd.f32 1.0, %v10144_v54  ;;  %vm4707_vm6 = vmor %vm4705_vm5, %vm4706_vm3  ;;  %vm1257_vm3 = vcmask 521476   ;;  %vm2424_vm5 = vcmask 517376   ;;  %v13742_v54 = vld [vmem:[#allocation40_spill] sm:$0xff] }
0x11ee   :  { %v4702_v20 = vsub.f32 1.0, %v4701_v55  ;;  %v4758_v55 = vld [vmem:[%s13431_s4 + $0x50] sm:$0xff] }
0x11ef   :  { %10145 = vrcp.f32 %v4659_v56  ;;  %v4671_v11 = vand.u32 2147483648, %v4659_v56  ;;  %vm4665_vm12 = vweird.f32 %v4659_v56  ;;  %v4669_v34 = vand.u32 2147483647, %v4659_v56 }
0x11f0   :  { %v4703_v60 = vmul.f32 %v10142_v16, %v4702_v20 }
0x11f1   :  { %v4672_v37 = vor.u32 1.1754944e-38, %v4671_v11  ;;  %vm4670_vm15 = vcmp.eq.f32.partialorder %v4669_v34, 8.507059e+37 }
0x11f2   :  { %v4704_v61 = vadd.f32 %v10142_v16, %v4703_v60 }
0x11f4   :  { %v4708_v52 = vsel %vm4707_vm6, %v10142_v16, %v4704_v61 }
0x11f5   :  { %v10146_v26 = vpop.eup %10145  ;;  %v4713_v51 = vsel %vm4710_vm7, %v4712_v45, %v4708_v52 }
0x11f6   :  { %v4661_v32 = vmul.f32 %v10146_v26, %v4659_v56  ;;  %vm4666_vm8 = vweird.f32 %v10146_v26  ;;  %v4719_v58 = vmul.f32 %v4717_v50, %v4713_v51  ;;  %v4756_v56 = vld [vmem:[%s13431_s4 + $0x40] sm:$0xff] }
0x11f7   :  { %vm4667_vm14 = vmor %vm4665_vm12, %vm4666_vm8  ;;  %v11846_v60 = vand.u32 4294901760, %v4756_v56 }
0x11f8   :  { %v4662_v31 = vsub.f32 1.0, %v4661_v32  ;;  %v4752_v32 = vld [vmem:[%s13431_s4 + $0x20] sm:$0xff] }
0x11f9   :  { %v4844_v22 = vsub.f32 %v4756_v56, %v11846_v60 }
0x11fa   :  { %v4663_v10 = vmul.f32 %v10146_v26, %v4662_v31 }
0x11fb   :  { %v4845_v45 = vand.u32 4294901760, %v4844_v22 }
0x11fc   :  { %v4664_v14 = vadd.f32 %v10146_v26, %v4663_v10 }
0x11fd   :  { %v4846_v10 = vsub.f32 %v4844_v22, %v4845_v45 }
0x11fe   :  { %v4668_v23 = vsel %vm4667_vm14, %v10146_v26, %v4664_v14  ;;  %v4754_v26 = vld [vmem:[%s13431_s4 + $0x30] sm:$0xff] }
0x11ff   :  { %v4673_v40 = vsel %vm4670_vm15, %v4672_v37, %v4668_v23  ;;  %v11854_v24 = vand.u32 4294901760, %v4754_v26  ;;  %v4748_v23 = vld [vmem:[%s13431_s4] sm:$0xff]  ;;  %v4847_v37 = vand.u32 4294901760, %v4846_v10 }
0x1200   :  { %v4679_v44 = vmul.f32 %v4677_v43, %v4673_v40 }
0x1201   :  { %v4850_v31 = vsub.f32 %v4754_v26, %v11854_v24  ;;  %v4749_v26 = vld [vmem:[%s13431_s4 + $0x8] sm:$0xff] }
0x1203   :  { %v4851_v14 = vand.u32 4294901760, %v4850_v31 }
0x123b   :  { %v4722_v13 = vpop.permute.xlu2 %4721 }
0x123c   :  { %v4724_v30 = vmul.f32 %v4722_v13, %v4713_v51  ;;  %v11862_v13 = vand.u32 4294901760, %v4752_v32 }
0x123e   :  { %4726 = vrot.lane.b32.xlu1 %v4724_v30, %s10348_s16  ;;  %v4856_v11 = vsub.f32 %v4752_v32, %v11862_v13 }
0x1249   :  { %v4682_v5 = vpop.permute.xlu0 %4681 }
0x124a   :  { %v4684_v49 = vmul.f32 %v4682_v5, %v4673_v40  ;;  %v4852_v5 = vsub.f32 %v4850_v31, %v4851_v14 }
0x124c   :  { %4686 = vrot.lane.b32.xlu2 %v4684_v49, %s10348_s16  ;;  %v11877_v49 = vand.u32 4294901760, %v4748_v23  ;;  %v4853_v43 = vand.u32 4294901760, %v4852_v5 }
0x1254   :  { %3002 = vrot.lane.b32.xlu2 %v13737_v29, %s10347_s3 }
0x12a6   :  { %v4687_v47 = vpop.permute.xlu2 %4686 }
0x12a7   :  { %v4689_v48 = vadd.f32 %v4687_v47, %v4679_v44  ;;  %v4868_v47 = vsub.f32 %v4748_v23, %v11877_v49 }
0x12a9   :  { %10147 = vtanh.f32 %v4689_v48 }
0x12ae   :  { %v3003_v53 = vpop.permute.xlu2 %3002 }
0x12af   :  { %v10148_v57 = vpop.eup %10147  ;;  %3005 = vst.msk [vmem:[#allocation3] sm:$0xc0] %vm672_vm1, %v3003_v53  ;;  %v4869_v53 = vand.u32 4294901760, %v4868_v47 }
0x12b0   :  { %v4727_v33 = vpop.permute.xlu1 %4726  ;;  %4692 = vrot.lane.b32.xlu1 %v10148_v57, %s10347_s3 }
0x12b1   :  { %v4729_v36 = vadd.f32 %v4727_v33, %v4719_v58  ;;  %v4870_v58 = vsub.f32 %v4868_v47, %v4869_v53 }
0x12b3   :  { %10149 = vtanh.f32 %v4729_v36  ;;  %v4871_v36 = vand.u32 4294901760, %v4870_v58 }
0x12b8   :  { %4167 = vrot.lane.b32.xlu1 %v11734_v15, %s10347_s3  ;;  %v4762_v15 = vld [vmem:[%s13431_s4 + $0x70] sm:$0xff] }
0x12b9   :  { %v10150_v62 = vpop.eup %10149  ;;  %v11803_v42 = vand.u32 4294901760, %v4762_v15 }
0x12ba   :  { %4732 = vrot.lane.b32.xlu0 %v10150_v62, %s10347_s3  ;;  %v4763_v62 = vld [vmem:[%s13431_s4 + $0x78] sm:$0xff] }
0x12bb   :  { %v11808_v19 = vsub.f32 %v4762_v15, %v11803_v42  ;;  %4934 = vmatpush.msra.mxu3 %v11803_v42  ;;  %4785 = vmatpush.msra.mxu0 %v11803_v42 }
0x12bd   :  { %v4827_v0 = vand.u32 4294901760, %v11808_v19  ;;  %4892 = vmatpush.msra.mxu2 %v11808_v19 }
0x12bf   :  { %v4828_v1 = vsub.f32 %v11808_v19, %v4827_v0 }
0x12c0   :  { %1254 = vrot.lane.b32.xlu1 %v13738_v38, %s10347_s3  ;;  %v11893_v38 = vand.u32 4294901760, %v4763_v62 }
0x12c1   :  { %v4829_v6 = vand.u32 4294901760, %v4828_v1 }
0x12c2   :  { %3584 = vrot.lane.b32.xlu0 %v11614_v17, %s10347_s3  ;;  %v11805_v17 = vand.u32 4294901760, %v4760_v27 }
0x12c3   :  { %4830 = vmatpush.msra.mxu1 %v4829_v6 }
0x12c4   :  { %v11811_v41 = vsub.f32 %v4760_v27, %v11805_v17  ;;  %4936 = vmatpush.msra.mxu3 %v11805_v17  ;;  %4787 = vmatpush.msra.mxu0 %v11805_v17 }
0x12c6   :  { %v4833_v4 = vand.u32 4294901760, %v11811_v41  ;;  %4895 = vmatpush.msra.mxu2 %v11811_v41 }
0x12c8   :  { %v4834_v2 = vsub.f32 %v11811_v41, %v4833_v4 }
0x12ca   :  { %669 = vrot.lane.b32.xlu0 %v13739_v18, %s10347_s3  ;;  %v4835_v39 = vand.u32 4294901760, %v4834_v2  ;;  %v4761_v18 = vld [vmem:[%s13431_s4 + $0x68] sm:$0xff] }
0x12cc   :  { %4836 = vmatpush.msra.mxu1 %v4835_v39  ;;  %v4753_v39 = vld [vmem:[%s13431_s4 + $0x28] sm:$0xff] }
0x12d2   :  { %2421 = vrot.lane.b32.xlu0 %v13740_v21, %s10347_s3  ;;  %v11901_v21 = vsub.f32 %v4763_v62, %v11893_v38 }
0x12d4   :  { %v5095_v15 = vand.u32 4294901760, %v11901_v21 }
0x12d6   :  { %v5096_v19 = vsub.f32 %v11901_v21, %v5095_v15 }
0x1322   :  { %v4693_v25 = vpop.permute.xlu1 %4692 }
0x1323   :  { %v4695_v28 = vmul.f32 %v4693_v25, %v4673_v40  ;;  %v4857_v40 = vand.u32 4294901760, %v4856_v11  ;;  %v11903_v25 = vand.u32 4294901760, %v4761_v18 }
0x1325   :  { %4737 = vrot.lane.b32.xlu1 %v4695_v28, %s10348_s16  ;;  %v4858_v44 = vsub.f32 %v4856_v11, %v4857_v40  ;;  %v4759_v28 = vld [vmem:[%s13431_s4 + $0x58] sm:$0xff] }
0x1326   :  { %v11911_v27 = vand.u32 4294901760, %v4759_v28 }
0x1327   :  { %v4859_v50 = vand.u32 4294901760, %v4858_v44 }
0x132a   :  { %v4168_v59 = vpop.permute.xlu1 %4167 }
0x132b   :  { %4170 = vst.msk [vmem:[#allocation3] sm:$0xc] %vm1842_vm2, %v4168_v59 }
0x132c   :  { %v4733_v46 = vpop.permute.xlu0 %4732 }
0x132d   :  { %v4735_v7 = vmul.f32 %v4733_v46, %v4713_v51  ;;  %v4750_v51 = vld [vmem:[%s13431_s4 + $0x10] sm:$0xff]  ;;  %v5097_v46 = vand.u32 4294901760, %v5096_v19 }
0x132e   :  { %v11871_v34 = vand.u32 4294901760, %v4750_v51 }
0x132f   :  { %4742 = vrot.lane.b32.xlu2 %v4735_v7, %s10347_s3 }
0x1330   :  { %v4862_v29 = vsub.f32 %v4750_v51, %v11871_v34 }
0x1332   :  { %v1255_v8 = vpop.permute.xlu1 %1254  ;;  %v4863_v48 = vand.u32 4294901760, %v4862_v29 }
0x1333   :  { %1258 = vst.msk [vmem:[#allocation3 + $0x8] sm:$0x30] %vm1257_vm3, %v1255_v8 }
0x1334   :  { %4166 = vst.msk [vmem:[#allocation3 + $0x8] sm:$0x30] %vm1837_vm0, %v11738_v35  ;;  %v3585_v3 = vpop.permute.xlu0 %3584  ;;  %v11840_v35 = vand.u32 4294901760, %v4758_v55  ;;  %v4864_v57 = vsub.f32 %v4862_v29, %v4863_v48 }
0x1335   :  { %3587 = vst.msk [vmem:[#allocation3] sm:$0x30] %vm1257_vm3, %v3585_v3 }
0x1336   :  { %v4838_v20 = vsub.f32 %v4758_v55, %v11840_v35  ;;  %4938 = vmatpush.msra.mxu3 %v11840_v35  ;;  %4789 = vmatpush.msra.mxu0 %v11840_v35  ;;  %v4865_v33 = vand.u32 4294901760, %v4864_v57 }
0x1337   :  { %1839 = vrot.lane.b32.xlu2 %v13741_v12, %s10347_s3  ;;  %v11951_v12 = vand.u32 4294901760, %v4753_v39 }
0x1338   :  { %v4839_v61 = vand.u32 4294901760, %v4838_v20  ;;  %4898 = vmatpush.msra.mxu2 %v4838_v20  ;;  %4940 = vmatpush.msra.mxu3 %v11846_v60 }
0x1339   :  { %4791 = vmatpush.msra.mxu0 %v11846_v60 }
0x133a   :  { %v4840_v52 = vsub.f32 %v4838_v20, %v4839_v61  ;;  %4901 = vmatpush.msra.mxu2 %v4844_v22  ;;  %4942 = vmatpush.msra.mxu3 %v11854_v24  ;;  %v11966_v20 = vsub.f32 %v4753_v39, %v11951_v12 }
0x133b   :  { %4793 = vmatpush.msra.mxu0 %v11854_v24 }
0x133c   :  { %v670_v9 = vpop.permute.xlu0 %669  ;;  %v4841_v30 = vand.u32 4294901760, %v4840_v52  ;;  %4904 = vmatpush.msra.mxu2 %v4850_v31  ;;  %4944 = vmatpush.msra.mxu3 %v11862_v13  ;;  %v5125_v22 = vand.u32 4294901760, %v11966_v20 }
0x133d   :  { %673 = vst.msk [vmem:[#allocation3 + $0x8] sm:$0xc0] %vm672_vm1, %v670_v9  ;;  %4795 = vmatpush.msra.mxu0 %v11862_v13 }
0x133e   :  { %4842 = vmatpush.msra.mxu1 %v4841_v30  ;;  %4907 = vmatpush.msra.mxu2 %v4856_v11  ;;  %v5126_v31 = vsub.f32 %v11966_v20, %v5125_v22 }
0x133f   :  { %4946 = vmatpush.msra.mxu3 %v11871_v34  ;;  %4797 = vmatpush.msra.mxu0 %v11871_v34 }
0x1340   :  { %4848 = vmatpush.msra.mxu1 %v4847_v37  ;;  %4910 = vmatpush.msra.mxu2 %v4862_v29  ;;  %v5127_v10 = vand.u32 4294901760, %v5126_v31 }
0x1341   :  { %4948 = vmatpush.msra.mxu3 %v11877_v49  ;;  %4799 = vmatpush.msra.mxu0 %v11877_v49 }
0x1342   :  { %4854 = vmatpush.msra.mxu1 %v4853_v43  ;;  %4913 = vmatpush.msra.mxu2 %v4868_v47 }
0x1343   :  { %4973 = vmatpush.msrb.mxu0 %v4827_v0  ;;  %v11928_v0 = vsub.f32 %v4759_v28, %v11911_v27  ;;  %5098 = vmatpush.msrb.mxu3 %v5097_v46 }
0x1344   :  { %v2422_v16 = vpop.permute.xlu0 %2421  ;;  %4860 = vmatpush.msra.mxu1 %v4859_v50  ;;  %5053 = vmatpush.msrb.mxu2 %v11893_v38 }
0x1345   :  { %2425 = vst.msk [vmem:[#allocation3 + $0x8] sm:$0x3] %vm2424_vm5, %v2422_v16  ;;  %4977 = vmatpush.msrb.mxu0 %v4833_v4  ;;  %v4755_v4 = vld [vmem:[%s13431_s4 + $0x38] sm:$0xff]  ;;  %v5107_v1 = vand.u32 4294901760, %v11928_v0 }
0x1346   :  { %3001 = vst.msk [vmem:[#allocation3 + $0x8] sm:$0x3] %vm667_vm10, %v13742_v54  ;;  %4866 = vmatpush.msra.mxu1 %v4865_v33  ;;  %5055 = vmatpush.msrb.mxu2 %v11903_v25  ;;  %v11939_v2 = vand.u32 4294901760, %v4755_v4  ;;  %v4751_v54 = vld [vmem:[%s13431_s4 + $0x18] sm:$0xff] }
0x1347   :  { %4981 = vmatpush.msrb.mxu0 %v4839_v61  ;;  %v5108_v3 = vsub.f32 %v11928_v0, %v5107_v1  ;;  %v11963_v56 = vand.u32 4294901760, %v4751_v54 }
0x1348   :  { %4872 = vmatpush.msra.mxu1 %v4871_v36  ;;  %5057 = vmatpush.msrb.mxu2 %v11911_v27  ;;  %v11954_v9 = vsub.f32 %v4755_v4, %v11939_v2 }
0x1349   :  { %4985 = vmatpush.msrb.mxu0 %v4845_v45  ;;  %v5109_v55 = vand.u32 4294901760, %v5108_v3  ;;  %v11983_v32 = vsub.f32 %v4751_v54, %v11963_v56 }
0x134a   :  { %5020 = vmatpush.msrb.mxu1 %v11803_v42  ;;  %v11914_v42 = vsub.f32 %v4761_v18, %v11903_v25  ;;  %v4764_v18 = vld [vmem:[%s13433_s6] sm:$0x3] }
0x134b   :  { %4989 = vmatpush.msrb.mxu0 %v4851_v14  ;;  %v4767_v54 = vperm.slane %v4764_v18, 1 }
0x134c   :  { %5022 = vmatpush.msrb.mxu1 %v11805_v17  ;;  %v4757_v17 = vld [vmem:[%s13431_s4 + $0x48] sm:$0xff]  ;;  %v5101_v41 = vand.u32 4294901760, %v11914_v42  ;;  %s9942_s4 = sshll.u32 %s10349_s29, 4  ;;  %s9943_s4 = int_to_ptr.vmem [resolvable:$true] %s9942_s4 }
0x134d   :  { %4993 = vmatpush.msrb.mxu0 %v4857_v40  ;;  %v11925_v59 = vand.u32 4294901760, %v4757_v17 }
0x134e   :  { %5024 = vmatpush.msrb.mxu1 %v11840_v35  ;;  %v5102_v7 = vsub.f32 %v11914_v42, %v5101_v41  ;;  %v5119_v35 = vand.u32 4294901760, %v11954_v9 }
0x134f   :  { %4997 = vmatpush.msrb.mxu0 %v4863_v48  ;;  %5059 = vmatpush.msrb.mxu2 %v11925_v59  ;;  %v11942_v6 = vsub.f32 %v4757_v17, %v11925_v59 }
0x1350   :  { %5026 = vmatpush.msrb.mxu1 %v11846_v60  ;;  %v5103_v8 = vand.u32 4294901760, %v5102_v7  ;;  %v5120_v61 = vsub.f32 %v11954_v9, %v5119_v35 }
0x1351   :  { %5001 = vmatpush.msrb.mxu0 %v4869_v53  ;;  %5061 = vmatpush.msrb.mxu2 %v11939_v2  ;;  %v5113_v16 = vand.u32 4294901760, %v11942_v6 }
0x1352   :  { %5028 = vmatpush.msrb.mxu1 %v11854_v24  ;;  %5104 = vmatpush.msrb.mxu3 %v5103_v8  ;;  %v11980_v24 = vand.u32 4294901760, %v4749_v26  ;;  %v5121_v45 = vand.u32 4294901760, %v5120_v61 }
0x1353   :  { %v5114_v60 = vsub.f32 %v11942_v6, %v5113_v16  ;;  %5063 = vmatpush.msrb.mxu2 %v11951_v12 }
0x1354   :  { %5030 = vmatpush.msrb.mxu1 %v11862_v13  ;;  %5110 = vmatpush.msrb.mxu3 %v5109_v55  ;;  %v5131_v13 = vand.u32 4294901760, %v11983_v32  ;;  %v11991_v51 = vsub.f32 %v4749_v26, %v11980_v24 }
0x1355   :  { %v5115_v52 = vand.u32 4294901760, %v5114_v60  ;;  %5065 = vmatpush.msrb.mxu2 %v11963_v56 }
0x1356   :  { %5032 = vmatpush.msrb.mxu1 %v11871_v34  ;;  %v5132_v14 = vsub.f32 %v11983_v32, %v5131_v13  ;;  %v5137_v11 = vand.u32 4294901760, %v11991_v51 }
0x1357   :  { %5116 = vmatpush.msrb.mxu3 %v5115_v52  ;;  %5067 = vmatpush.msrb.mxu2 %v11980_v24 }
0x1358   :  { %5034 = vmatpush.msrb.mxu1 %v11877_v49  ;;  %v5133_v34 = vand.u32 4294901760, %v5132_v14  ;;  %v5138_v23 = vsub.f32 %v11991_v51, %v5137_v11 }
0x1359   :  { %5122 = vmatpush.msrb.mxu3 %v5121_v45 }
0x135a   :  { %v5139_v37 = vand.u32 4294901760, %v5138_v23 }
0x135b   :  { %5128 = vmatpush.msrb.mxu3 %v5127_v10 }
0x135d   :  { %5134 = vmatpush.msrb.mxu3 %v5133_v34 }
0x135f   :  { %5140 = vmatpush.msrb.mxu3 %v5139_v37 }
0x1389   :  { %v4743_v30 = vpop.permute.xlu2 %4742 }
0x138a   :  { %4745 = vst.msk [vmem:[#allocation3] sm:$0x3] %vm2424_vm5, %v4743_v30 }
0x1391   :  { %v1840_v5 = vpop.permute.xlu2 %1839  ;;  %v4746_v40 = vld [vmem:[#allocation3] sm:$0xff] }
0x1392   :  { %1843 = vst.msk [vmem:[#allocation3 + $0x8] sm:$0xc] %vm1842_vm2, %v1840_v5  ;;  %v4771_v49 = vsel %vm676_vm11, %v4746_v40, 0 }
0x1393   :  { %3583 = vst.msk [vmem:[#allocation3 + $0x8] sm:$0xc] %vm1252_vm4, %v11618_v63  ;;  %v12002_v29 = vand.u32 4294901760, %v4771_v49 }
0x1395   :  { %4874 = vmatmul.f32.vlgmr.msra.gmra.mxu1 %v12002_v29  ;;  %v4801_v43 = vsub.f32 %v4771_v49, %v12002_v29 }
0x1396   :  { %5202 = vmatpush.msra.mxu1 %v11893_v38 }
0x1397   :  { %4916 = vmatmul.f32.vlgmr.msra.gmra.mxu2 %v4801_v43  ;;  %v4738_v44 = vpop.permute.xlu1 %4737  ;;  %v4802_v47 = vand.u32 4294901760, %v4801_v43 }
0x1398   :  { %4740 = vst.msk [vmem:[#allocation3 + $0x8] sm:$0xc0] %vm2419_vm13, %v4738_v44  ;;  %5204 = vmatpush.msra.mxu1 %v11903_v25  ;;  %5241 = vmatpush.msra.mxu2 %v5095_v15 }
0x1399   :  { %4952 = vmatmul.f32.vlgmr.msra.gmra.mxu3 %v4802_v47  ;;  %v4803_v63 = vsub.f32 %v4801_v43, %v4802_v47 }
0x139a   :  { %5206 = vmatpush.msra.mxu1 %v11911_v27  ;;  %5245 = vmatpush.msra.mxu2 %v5101_v41 }
0x139b   :  { %v4804_v48 = vand.u32 4294901760, %v4803_v63  ;;  %5288 = vmatpush.msra.mxu3 %v11893_v38 }
0x139c   :  { %5208 = vmatpush.msra.mxu1 %v11925_v59  ;;  %5249 = vmatpush.msra.mxu2 %v5107_v1 }
0x139d   :  { %4805 = vmatmul.f32.vlgmr.msra.gmra.mxu0 %v4804_v48  ;;  %5290 = vmatpush.msra.mxu3 %v11903_v25 }
0x139e   :  { %5160 = vmatpush.msra.mxu0 %v11901_v21  ;;  %5210 = vmatpush.msra.mxu1 %v11939_v2  ;;  %v4766_v21 = vperm.slane %v4764_v18, 0 }
0x139f   :  { %v4747_v50 = vld [vmem:[#allocation3 + $0x8] sm:$0xff]  ;;  %5253 = vmatpush.msra.mxu2 %v5113_v16  ;;  %5292 = vmatpush.msra.mxu3 %v11911_v27 }
0x13a0   :  { %v4774_v53 = vsel %vm676_vm11, %v4747_v50, 0  ;;  %5163 = vmatpush.msra.mxu0 %v11914_v42  ;;  %5212 = vmatpush.msra.mxu1 %v11951_v12 }
0x13a1   :  { %v4808_v57 = vand.u32 4294901760, %v4774_v53  ;;  %5257 = vmatpush.msra.mxu2 %v5119_v35  ;;  %5294 = vmatpush.msra.mxu3 %v11925_v59 }
0x13a2   :  { %5166 = vmatpush.msra.mxu0 %v11928_v0  ;;  %5214 = vmatpush.msra.mxu1 %v11963_v56 }
0x13a3   :  { %4878 = vmatmul.f32.gmra.mxu1 %v4808_v57  ;;  %v4809_v58 = vsub.f32 %v4774_v53, %v4808_v57  ;;  %5261 = vmatpush.msra.mxu2 %v5125_v22 }
0x13a4   :  { %5296 = vmatpush.msra.mxu3 %v11939_v2  ;;  %5169 = vmatpush.msra.mxu0 %v11942_v6 }
0x13a5   :  { %4921 = vmatmul.f32.gmra.mxu2 %v4809_v58  ;;  %v4810_v33 = vand.u32 4294901760, %v4809_v58  ;;  %5216 = vmatpush.msra.mxu1 %v11980_v24 }
0x13a6   :  { %5265 = vmatpush.msra.mxu2 %v5131_v13  ;;  %5298 = vmatpush.msra.mxu3 %v11951_v12 }
0x13a7   :  { %4958 = vmatmul.f32.gmra.mxu3 %v4810_v33  ;;  %v4811_v36 = vsub.f32 %v4809_v58, %v4810_v33  ;;  %5172 = vmatpush.msra.mxu0 %v11954_v9 }
0x13a8   :  { %5269 = vmatpush.msra.mxu2 %v5137_v11  ;;  %5300 = vmatpush.msra.mxu3 %v11963_v56 }
0x13a9   :  { %v4812_v62 = vand.u32 4294901760, %v4811_v36  ;;  %5175 = vmatpush.msra.mxu0 %v11966_v20 }
0x13aa   :  { %5302 = vmatpush.msra.mxu3 %v11980_v24 }
0x13ab   :  { %4813 = vmatmul.f32.gmra.mxu0 %v4812_v62  ;;  %5036 = vmatmul.f32.vlgmr.msrb.gmra.mxu1 %v12002_v29 }
0x13ac   :  { %5178 = vmatpush.msra.mxu0 %v11983_v32 }
0x13ad   :  { %5073 = vmatmul.f32.vlgmr.msrb.gmra.mxu2 %v4804_v48 }
0x13ae   :  { %5181 = vmatpush.msra.mxu0 %v11991_v51 }
0x13af   :  { %5142 = vmatmul.f32.vlgmr.msrb.gmra.mxu3 %v12002_v29 }
0x13b3   :  { %5003 = vmatmul.f32.vlgmr.msrb.gmra.mxu0 %v12002_v29  ;;  %5040 = vmatmul.f32.gmra.mxu1 %v4808_v57 }
0x13b5   :  { %5081 = vmatmul.f32.gmra.mxu2 %v4812_v62 }
0x13b7   :  { %5146 = vmatmul.f32.gmra.mxu3 %v4808_v57 }
0x13bb   :  { %5007 = vmatmul.f32.gmra.mxu0 %v4808_v57  ;;  %5220 = vmatmul.f32.vlgmr.msra.gmra.mxu1 %v4802_v47 }
0x13bd   :  { %5271 = vmatmul.f32.vlgmr.msra.gmra.mxu2 %v12002_v29 }
0x13bf   :  { %5304 = vmatmul.f32.vlgmr.msra.gmra.mxu3 %v12002_v29 }
0x13c3   :  { %5184 = vmatmul.f32.vlgmr.msra.gmra.mxu0 %v4801_v43  ;;  %5226 = vmatmul.f32.gmra.mxu1 %v4810_v33 }
0x13c5   :  { %5275 = vmatmul.f32.gmra.mxu2 %v4808_v57 }
0x13c7   :  { %5308 = vmatmul.f32.gmra.mxu3 %v4808_v57 }
0x13cb   :  { %5189 = vmatmul.f32.gmra.mxu0 %v4809_v58 }
0x1412   :  { %v4875_v38 = vpop.f32.mrf.mxu1 }
0x141a   :  { %v4806_v25 = vpop.f32.mrf.mxu0  ;;  %v4917_v28 = vpop.f32.mrf.mxu2 }
0x141b   :  { %v4807_v42 = vadd.f32 %v4806_v25, %v4766_v21 }
0x141c   :  { %v4953_v15 = vpop.f32.mrf.mxu3 }
0x141d   :  { %v4876_v17 = vadd.f32 %v4875_v38, %v4807_v42 }
0x141f   :  { %v4918_v0 = vadd.f32 %v4917_v28, %v4876_v17 }
0x1420   :  { %v4879_v27 = vpop.f32.mrf.mxu1 }
0x1421   :  { %v4954_v7 = vadd.f32 %v4953_v15, %v4918_v0 }
0x1428   :  { %v4814_v19 = vpop.f32.mrf.mxu0  ;;  %v4922_v41 = vpop.f32.mrf.mxu2 }
0x1429   :  { %v4815_v4 = vadd.f32 %v4814_v19, %v4766_v21  ;;  %v5037_v46 = vpop.f32.mrf.mxu1 }
0x142a   :  { %v4959_v59 = vpop.f32.mrf.mxu3 }
0x142b   :  { %v4880_v1 = vadd.f32 %v4879_v27, %v4815_v4 }
0x142d   :  { %v4923_v3 = vadd.f32 %v4922_v41, %v4880_v1 }
0x142f   :  { %v4960_v16 = vadd.f32 %v4959_v59, %v4923_v3 }
0x1430   :  { %v5004_v2 = vpop.f32.mrf.mxu0  ;;  %v5074_v6 = vpop.f32.mrf.mxu2 }
0x1431   :  { %v5005_v39 = vadd.f32 %v5004_v2, %v4954_v7  ;;  %v5041_v9 = vpop.f32.mrf.mxu1  ;;  %v5075_v60 = vadd.f32 %v5074_v6, %v4767_v54 }
0x1432   :  { %v5143_v8 = vpop.f32.mrf.mxu3 }
0x1433   :  { %v5038_v12 = vadd.f32 %v5037_v46, %v5005_v39  ;;  %v5144_v22 = vadd.f32 %v5143_v8, %v5075_v60 }
0x1435   :  { %5312 = vst [vmem:[#allocation2 + $0x10] sm:$0xff] %v5038_v12 }
0x1438   :  { %v5008_v55 = vpop.f32.mrf.mxu0  ;;  %v5082_v35 = vpop.f32.mrf.mxu2 }
0x1439   :  { %v5009_v56 = vadd.f32 %v5008_v55, %v4960_v16  ;;  %v5221_v24 = vpop.f32.mrf.mxu1  ;;  %v5083_v13 = vadd.f32 %v5082_v35, %v4767_v54 }
0x143a   :  { %v5147_v20 = vpop.f32.mrf.mxu3 }
0x143b   :  { %v5042_v26 = vadd.f32 %v5041_v9, %v5009_v56  ;;  %v5148_v14 = vadd.f32 %v5147_v20, %v5083_v13 }
0x143c   :  { %v5332_v61 = vld [vmem:[#allocation2 + $0x10] sm:$0x3] }
0x143d   :  { %5314 = vst [vmem:[#allocation2 + $0x18] sm:$0xff] %v5042_v26  ;;  %10151 = vtanh.f32 %v5332_v61  ;;  %v10000_v63 = vmul.f32 -1.442695, %v5332_v61 }
0x1440   :  { %v5185_v32 = vpop.f32.mrf.mxu0  ;;  %v5272_v45 = vpop.f32.mrf.mxu2 }
0x1441   :  { %v5186_v52 = vadd.f32 %v5185_v32, %v5144_v22  ;;  %v5227_v37 = vpop.f32.mrf.mxu1  ;;  %v5328_v32 = vld [vmem:[%s13432_s5 + $0x60] sm:$0xff] }
0x1442   :  { %v5305_v30 = vpop.f32.mrf.mxu3 }
0x1443   :  { %v10152_v31 = vpop.eup %10151  ;;  %v5222_v51 = vadd.f32 %v5221_v24, %v5186_v52  ;;  %v5330_v24 = vld [vmem:[%s13432_s5 + $0x70] sm:$0xff] }
0x1444   :  { %5356 = vrot.lane.b32.xlu0 %v10152_v31, %s10347_s3  ;;  %v5326_v52 = vld [vmem:[%s13432_s5 + $0x50] sm:$0xff]  ;;  %v12080_v31 = vand.u32 4294901760, %v5328_v32 }
0x1445   :  { %v5273_v10 = vadd.f32 %v5272_v45, %v5222_v51  ;;  %v12078_v45 = vand.u32 4294901760, %v5330_v24  ;;  %v12082_v13 = vand.u32 4294901760, %v5326_v52  ;;  %v5324_v51 = vld [vmem:[%s13432_s5 + $0x40] sm:$0xff] }
0x1447   :  { %v5306_v11 = vadd.f32 %v5305_v30, %v5273_v10  ;;  %v5322_v30 = vld [vmem:[%s13432_s5 + $0x30] sm:$0xff]  ;;  %v5320_v10 = vld [vmem:[%s13432_s5 + $0x20] sm:$0xff]  ;;  %5564 = vmatpush.msrb.mxu3 %v12078_v45  ;;  %5432 = vmatpush.msrb.mxu0 %v12078_v45 }
0x1448   :  { %v5190_v34 = vpop.f32.mrf.mxu0  ;;  %v5276_v40 = vpop.f32.mrf.mxu2 }
0x1449   :  { %5313 = vst [vmem:[#allocation2] sm:$0xff] %v5306_v11  ;;  %v5191_v23 = vadd.f32 %v5190_v34, %v5148_v14  ;;  %v12093_v14 = vand.u32 4294901760, %v5324_v51  ;;  %v12095_v11 = vand.u32 4294901760, %v5322_v30  ;;  %v12097_v34 = vand.u32 4294901760, %v5320_v10  ;;  %5566 = vmatpush.msrb.mxu3 %v12080_v31  ;;  %5434 = vmatpush.msrb.mxu0 %v12080_v31 }
0x144a   :  { %v5309_v29 = vpop.f32.mrf.mxu3 }
0x144b   :  { %v5228_v5 = vadd.f32 %v5227_v37, %v5191_v23  ;;  %13746 = vst [vmem:[#allocation28_spill] sm:$0xff] %v12095_v11  ;;  %v5318_v23 = vld [vmem:[%s13432_s5 + $0x10] sm:$0xff]  ;;  %v5316_v37 = vld [vmem:[%s13432_s5] sm:$0xff]  ;;  %5568 = vmatpush.msrb.mxu3 %v12082_v13  ;;  %5436 = vmatpush.msrb.mxu0 %v12082_v13 }
0x144c   :  { %13747 = vst [vmem:[#allocation21_spill] sm:$0xff] %v12097_v34 }
0x144d   :  { %v5277_v49 = vadd.f32 %v5276_v40, %v5228_v5  ;;  %v12106_v5 = vsub.f32 %v5330_v24, %v12078_v45  ;;  %v12109_v40 = vsub.f32 %v5328_v32, %v12080_v31  ;;  %5570 = vmatpush.msrb.mxu3 %v12093_v14  ;;  %5438 = vmatpush.msrb.mxu0 %v12093_v14 }
0x144f   :  { %v5310_v43 = vadd.f32 %v5309_v29, %v5277_v49  ;;  %v12112_v49 = vsub.f32 %v5326_v52, %v12082_v13  ;;  %v12116_v29 = vand.u32 4294901760, %v5318_v23  ;;  %5527 = vmatpush.msrb.mxu2 %v12106_v5  ;;  %5572 = vmatpush.msrb.mxu3 %v12095_v11 }
0x1450   :  { %5440 = vmatpush.msrb.mxu0 %v12095_v11 }
0x1451   :  { %5315 = vst [vmem:[#allocation2 + $0x8] sm:$0xff] %v5310_v43  ;;  %v12119_v43 = vsub.f32 %v5324_v51, %v12093_v14  ;;  %5530 = vmatpush.msrb.mxu2 %v12109_v40  ;;  %5574 = vmatpush.msrb.mxu3 %v12097_v34 }
0x1452   :  { %13748 = vst [vmem:[#allocation14_spill] sm:$0xff] %v12116_v29  ;;  %5442 = vmatpush.msrb.mxu0 %v12097_v34 }
0x1453   :  { %5533 = vmatpush.msrb.mxu2 %v12112_v49  ;;  %5576 = vmatpush.msrb.mxu3 %v12116_v29 }
0x1454   :  { %5444 = vmatpush.msrb.mxu0 %v12116_v29 }
0x1455   :  { %5536 = vmatpush.msrb.mxu2 %v12119_v43 }
0x1458   :  { %v5333_v44 = vld [vmem:[#allocation2 + $0x8] sm:$0xc0] }
0x1459   :  { %10153 = vtanh.f32 %v5333_v44  ;;  %v10001_v48 = vmul.f32 -1.442695, %v5333_v44  ;;  %v12122_v44 = vsub.f32 %v5322_v30, %v12095_v11  ;;  %v5325_v30 = vld [vmem:[%s13432_s5 + $0x48] sm:$0xff] }
0x145a   :  { %10155 = vpow2.f32 %v10000_v63  ;;  %v12127_v63 = vand.u32 4294901760, %v5316_v37 }
0x145b   :  { %10157 = vpow2.f32 %v10001_v48  ;;  %v12130_v48 = vand.u32 4294901760, %v12106_v5  ;;  %5539 = vmatpush.msrb.mxu2 %v12122_v44 }
0x145c   :  { %13750 = vst [vmem:[#allocation19_spill] sm:$0xff] %v12127_v63  ;;  %5578 = vmatpush.msrb.mxu3 %v12127_v63  ;;  %5446 = vmatpush.msrb.mxu0 %v12127_v63 }
0x145d   :  { %13751 = vst [vmem:[#allocation30_spill] sm:$0xff] %v12130_v48 }
0x145e   :  { %5597 = vmatpush.msra.mxu0 %v12130_v48 }
0x145f   :  { %v10154_v47 = vpop.eup %10153 }
0x1460   :  { %5393 = vrot.lane.b32.xlu2 %v10154_v47, %s10347_s3  ;;  %v10156_v50 = vpop.eup %10155  ;;  %v12125_v47 = vsub.f32 %v5320_v10, %v12097_v34 }
0x1461   :  { %v5337_v53 = vadd.f32 1.0, %v10156_v50  ;;  %v10158_v57 = vpop.eup %10157  ;;  %v12133_v50 = vand.u32 4294901760, %v12109_v40 }
0x1462   :  { %v5374_v58 = vadd.f32 1.0, %v10158_v57  ;;  %13749 = vst [vmem:[#allocation24_spill] sm:$0xff] %v12125_v47  ;;  %v12141_v57 = vand.u32 4294901760, %v12119_v43  ;;  %5542 = vmatpush.msrb.mxu2 %v12125_v47 }
0x1463   :  { %10159 = vrcp.f32 %v5337_v53  ;;  %v5349_v27 = vand.u32 2147483648, %v5337_v53  ;;  %vm5343_vm4 = vweird.f32 %v5337_v53  ;;  %v5347_v42 = vand.u32 2147483647, %v5337_v53  ;;  %13752 = vst [vmem:[#allocation31_spill] sm:$0xff] %v12133_v50  ;;  %5601 = vmatpush.msra.mxu0 %v12133_v50 }
0x1464   :  { %10161 = vrcp.f32 %v5374_v58  ;;  %v5386_v59 = vand.u32 2147483648, %v5374_v58  ;;  %vm5380_vm7 = vweird.f32 %v5374_v58  ;;  %v5384_v0 = vand.u32 2147483647, %v5374_v58  ;;  %13754 = vst [vmem:[#allocation32_spill] sm:$0xff] %v12141_v57 }
0x1465   :  { %v5350_v41 = vor.u32 1.1754944e-38, %v5349_v27  ;;  %vm5348_vm6 = vcmp.eq.f32.partialorder %v5347_v42, 8.507059e+37 }
0x1466   :  { %v5387_v2 = vor.u32 1.1754944e-38, %v5386_v59  ;;  %vm5385_vm12 = vcmp.eq.f32.partialorder %v5384_v0, 8.507059e+37 }
0x1469   :  { %v10160_v33 = vpop.eup %10159 }
0x146a   :  { %v5339_v36 = vmul.f32 %v10160_v33, %v5337_v53  ;;  %v10162_v62 = vpop.eup %10161  ;;  %vm5344_vm10 = vweird.f32 %v10160_v33  ;;  %v12137_v53 = vand.u32 4294901760, %v12112_v49 }
0x146b   :  { %v5376_v18 = vmul.f32 %v10162_v62, %v5374_v58  ;;  %vm5345_vm0 = vmor %vm5343_vm4, %vm5344_vm10  ;;  %vm5381_vm13 = vweird.f32 %v10162_v62  ;;  %v12144_v58 = vand.u32 4294901760, %v12122_v44 }
0x146c   :  { %v5340_v38 = vsub.f32 1.0, %v5339_v36  ;;  %vm5382_vm8 = vmor %vm5380_vm7, %vm5381_vm13  ;;  %13753 = vst [vmem:[#allocation16_spill] sm:$0xff] %v12137_v53  ;;  %v5467_v36 = vsub.f32 %v12106_v5, %v12130_v48  ;;  %5605 = vmatpush.msra.mxu0 %v12137_v53 }
0x146d   :  { %v5377_v25 = vsub.f32 1.0, %v5376_v18  ;;  %13755 = vst [vmem:[#allocation17_spill] sm:$0xff] %v12144_v58  ;;  %v12159_v18 = vand.u32 4294901760, %v12125_v47 }
0x146e   :  { %v5341_v21 = vmul.f32 %v10160_v33, %v5340_v38  ;;  %v5479_v38 = vsub.f32 %v12112_v49, %v12137_v53  ;;  %v12174_v27 = vand.u32 4294901760, %v5467_v36  ;;  %5609 = vmatpush.msra.mxu0 %v12141_v57 }
0x146f   :  { %v5378_v15 = vmul.f32 %v10162_v62, %v5377_v25  ;;  %13757 = vst [vmem:[#allocation18_spill] sm:$0xff] %v12159_v18  ;;  %v5331_v25 = vld [vmem:[%s13432_s5 + $0x78] sm:$0xff] }
0x1470   :  { %v5342_v28 = vadd.f32 %v10160_v33, %v5341_v21  ;;  %v12163_v21 = vsub.f32 %v5316_v37, %v12127_v63  ;;  %5469 = vmatpush.msrb.mxu1 %v12174_v27  ;;  %v12189_v59 = vand.u32 4294901760, %v5479_v38  ;;  %v12192_v0 = vand.u32 4294901760, %v5331_v25  ;;  %5613 = vmatpush.msra.mxu0 %v12144_v58  ;;  %v5323_v37 = vld [vmem:[%s13432_s5 + $0x38] sm:$0xff]  ;;  %v5321_v38 = vld [vmem:[%s13432_s5 + $0x28] sm:$0xff] }
0x1471   :  { %v5379_v19 = vadd.f32 %v10162_v62, %v5378_v15  ;;  %v5327_v15 = vld [vmem:[%s13432_s5 + $0x58] sm:$0xff]  ;;  %v12297_v36 = vand.u32 4294901760, %v5323_v37 }
0x1472   :  { %v5346_v17 = vsel %vm5345_vm0, %v10160_v33, %v5342_v28  ;;  %v12148_v33 = vsub.f32 %v5318_v23, %v12116_v29  ;;  %13758 = vst [vmem:[#allocation34_spill] sm:$0xff] %v12163_v21  ;;  %v5329_v28 = vld [vmem:[%s13432_s5 + $0x68] sm:$0xff]  ;;  %v12275_v23 = vand.u32 4294901760, %v5325_v30  ;;  %5617 = vmatpush.msra.mxu0 %v12159_v18 }
0x1473   :  { %v5351_v46 = vsel %vm5348_vm6, %v5350_v41, %v5346_v17  ;;  %v5383_v1 = vsel %vm5382_vm8, %v10162_v62, %v5379_v19  ;;  %v5473_v62 = vsub.f32 %v12109_v40, %v12133_v50  ;;  %v5485_v17 = vsub.f32 %v12119_v43, %v12141_v57 }
0x1474   :  { %v5388_v39 = vsel %vm5385_vm12, %v5387_v2, %v5383_v1  ;;  %v5354_v3 = vmul.f32 0.0, %v5351_v46  ;;  %13756 = vst [vmem:[#allocation33_spill] sm:$0xff] %v12148_v33  ;;  %v5491_v19 = vsub.f32 %v12122_v44, %v12144_v58  ;;  %v12185_v41 = vand.u32 4294901760, %v12148_v33  ;;  %5545 = vmatpush.msrb.mxu2 %v12148_v33 }
0x1475   :  { %v5391_v54 = vmul.f32 0.0, %v5388_v39  ;;  %v12176_v42 = vand.u32 4294901760, %v5473_v62  ;;  %v12202_v1 = vand.u32 4294901760, %v12163_v21  ;;  %v12206_v2 = vand.u32 4294901760, %v5485_v17  ;;  %v5319_v17 = vld [vmem:[%s13432_s5 + $0x18] sm:$0xff] }
0x1476   :  { %13759 = vst [vmem:[#allocation20_spill] sm:$0xff] %v12185_v41  ;;  %5548 = vmatpush.msrb.mxu2 %v12163_v21  ;;  %5621 = vmatpush.msra.mxu0 %v12185_v41  ;;  %v12300_v62 = vsub.f32 %v5325_v30, %v12275_v23 }
0x1477   :  { %13760 = vst [vmem:[#allocation35_spill] sm:$0xff] %v12202_v1  ;;  %5475 = vmatpush.msrb.mxu1 %v12176_v42 }
0x1478   :  { %5669 = vmatpush.msra.mxu2 %v12192_v0  ;;  %5625 = vmatpush.msra.mxu0 %v12202_v1 }
0x1479   :  { %5481 = vmatpush.msrb.mxu1 %v12189_v59 }
0x147b   :  { %5487 = vmatpush.msrb.mxu1 %v12206_v2 }
0x14b6   :  { %v5357_v4 = vpop.permute.xlu0 %5356 }
0x14b7   :  { %v5359_v7 = vmul.f32 %v5357_v4, %v5351_v46  ;;  %v12194_v4 = vand.u32 4294901760, %v5329_v28 }
0x14b9   :  { %5361 = vrot.lane.b32.xlu2 %v5359_v7, %s10348_s16  ;;  %v5497_v7 = vsub.f32 %v12125_v47, %v12159_v18  ;;  %5671 = vmatpush.msra.mxu2 %v12194_v4 }
0x14ba   :  { %v5394_v6 = vpop.permute.xlu2 %5393 }
0x14bb   :  { %v5396_v8 = vmul.f32 %v5394_v6, %v5388_v39  ;;  %v12210_v6 = vsub.f32 %v5331_v25, %v12192_v0  ;;  %v12307_v25 = vand.u32 4294901760, %v12300_v62 }
0x14bd   :  { %5398 = vrot.lane.b32.xlu1 %v5396_v8, %s10348_s16 }
0x1513   :  { %v5362_v12 = vpop.permute.xlu2 %5361 }
0x1514   :  { %v12056_v9 = vadd.f32 %v5362_v12, %v5354_v3  ;;  %v5503_v3 = vsub.f32 %v12148_v33, %v12185_v41  ;;  %v12223_v12 = vand.u32 4294901760, %v5491_v19  ;;  %v5722_v19 = vsub.f32 %v12300_v62, %v12307_v25 }
0x1516   :  { %13743 = vst [vmem:[#allocation27_spill] sm:$0xff] %v12056_v9  ;;  %10163 = vtanh.f32 %v12056_v9  ;;  %5493 = vmatpush.msrb.mxu1 %v12223_v12  ;;  %v12252_v24 = vand.u32 4294901760, %v5503_v3  ;;  %v12323_v3 = vand.u32 4294901760, %v5319_v17 }
0x1518   :  { %13761 = vst [vmem:[#allocation22_spill] sm:$0xff] %v12252_v24 }
0x151c   :  { %v10164_v16 = vpop.eup %10163 }
0x151d   :  { %5367 = vrot.lane.b32.xlu1 %v10164_v16, %s10347_s3  ;;  %v12227_v16 = vand.u32 4294901760, %v12210_v6 }
0x152f   :  { %v5399_v55 = vpop.permute.xlu1 %5398 }
0x1530   :  { %v12060_v35 = vadd.f32 %v5399_v55, %v5391_v54 }
0x1532   :  { %13744 = vst [vmem:[#allocation15_spill] sm:$0xff] %v12060_v35  ;;  %10165 = vtanh.f32 %v12060_v35 }
0x1538   :  { %v10166_v56 = vpop.eup %10165 }
0x1539   :  { %5404 = vrot.lane.b32.xlu0 %v10166_v56, %s10347_s3  ;;  %v5509_v56 = vsub.f32 %v12163_v21, %v12202_v1 }
0x153b   :  { %v12262_v51 = vand.u32 4294901760, %v5509_v56 }
0x153d   :  { %13764 = vst [vmem:[#allocation37_spill] sm:$0xff] %v12262_v51 }
0x158f   :  { %v5368_v20 = vpop.permute.xlu1 %5367 }
0x1590   :  { %v5370_v60 = vmul.f32 %v5368_v20, %v5351_v46  ;;  %v12196_v46 = vand.u32 4294901760, %v5327_v15  ;;  %v12240_v20 = vand.u32 4294901760, %v5497_v7 }
0x1592   :  { %5409 = vrot.lane.b32.xlu2 %v5370_v60, %s10348_s16  ;;  %v12216_v8 = vsub.f32 %v5327_v15, %v12196_v46  ;;  %v5704_v60 = vsub.f32 %v12210_v6, %v12227_v16  ;;  %5499 = vmatpush.msrb.mxu1 %v12240_v20  ;;  %v12312_v15 = vsub.f32 %v5323_v37, %v12297_v36 }
0x1593   :  { %5673 = vmatpush.msra.mxu2 %v12196_v46 }
0x1594   :  { %v12233_v55 = vand.u32 4294901760, %v12216_v8  ;;  %v12255_v32 = vand.u32 4294901760, %v5704_v60  ;;  %5505 = vmatpush.msrb.mxu1 %v12252_v24  ;;  %v12321_v7 = vand.u32 4294901760, %v12312_v15  ;;  %v5317_v60 = vld [vmem:[%s13432_s5 + $0x8] sm:$0xff] }
0x1595   :  { %5675 = vmatpush.msra.mxu2 %v12275_v23  ;;  %v12339_v37 = vand.u32 4294901760, %v5317_v60 }
0x1596   :  { %13762 = vst [vmem:[#allocation36_spill] sm:$0xff] %v12255_v32  ;;  %5706 = vmatpush.msra.mxu3 %v12255_v32  ;;  %5511 = vmatpush.msrb.mxu1 %v12262_v51 }
0x1597   :  { %5677 = vmatpush.msra.mxu2 %v12297_v36  ;;  %v12351_v35 = vsub.f32 %v5317_v60, %v12339_v37 }
0x1598   :  { %5640 = vmatpush.msra.mxu1 %v12078_v45 }
0x159a   :  { %5642 = vmatpush.msra.mxu1 %v12080_v31 }
0x159c   :  { %5644 = vmatpush.msra.mxu1 %v12082_v13 }
0x159e   :  { %5646 = vmatpush.msra.mxu1 %v12093_v14 }
0x15a0   :  { %5648 = vmatpush.msra.mxu1 %v12095_v11 }
0x15a2   :  { %5650 = vmatpush.msra.mxu1 %v12097_v34 }
0x15a4   :  { %5652 = vmatpush.msra.mxu1 %v12116_v29 }
0x15a6   :  { %5654 = vmatpush.msra.mxu1 %v12127_v63 }
0x15ab   :  { %v5405_v26 = vpop.permute.xlu0 %5404 }
0x15ac   :  { %v12065_v61 = vmul.f32 %v5405_v26, %v5388_v39  ;;  %v12213_v39 = vsub.f32 %v5329_v28, %v12194_v4  ;;  %v12309_v28 = vand.u32 4294901760, %v5321_v38 }
0x15ae   :  { %13745 = vst [vmem:[#allocation13_spill] sm:$0xff] %v12065_v61  ;;  %v5413_v22 = vrot.slane %v12065_v61, 6  ;;  %v12230_v54 = vand.u32 4294901760, %v12213_v39  ;;  %5679 = vmatpush.msra.mxu2 %v12309_v28  ;;  %v12326_v56 = vsub.f32 %v5321_v38, %v12309_v28  ;;  %v12342_v61 = vsub.f32 %v5319_v17, %v12323_v3 }
0x15af   :  { %v12360_v17 = vand.u32 4294901760, %v12351_v35 }
0x15b0   :  { %5414 = vrot.lane.b32.xlu0 %v5413_v22, %s10347_s3  ;;  %v5710_v26 = vsub.f32 %v12213_v39, %v12230_v54  ;;  %v5716_v22 = vsub.f32 %v12216_v8, %v12233_v55  ;;  %5681 = vmatpush.msra.mxu2 %v12323_v3  ;;  %v12337_v30 = vand.u32 4294901760, %v12326_v56  ;;  %v12354_v9 = vand.u32 4294901760, %v12342_v61 }
0x15b1   :  { %v5746_v41 = vsub.f32 %v12351_v35, %v12360_v17 }
0x15b2   :  { %v12257_v52 = vand.u32 4294901760, %v5710_v26  ;;  %v12268_v10 = vand.u32 4294901760, %v5716_v22  ;;  %v12331_v26 = vand.u32 4294901760, %v5722_v19  ;;  %v5728_v22 = vsub.f32 %v12312_v15, %v12321_v7  ;;  %5683 = vmatpush.msra.mxu2 %v12339_v37 }
0x15b3   :  { %v5734_v19 = vsub.f32 %v12326_v56, %v12337_v30  ;;  %v12369_v18 = vand.u32 4294901760, %v5746_v41 }
0x15b4   :  { %13763 = vst [vmem:[#allocation23_spill] sm:$0xff] %v12257_v52  ;;  %5712 = vmatpush.msra.mxu3 %v12257_v52  ;;  %v12345_v38 = vand.u32 4294901760, %v5728_v22  ;;  %v5740_v22 = vsub.f32 %v12342_v61, %v12354_v9 }
0x15b5   :  { %13765 = vst [vmem:[#allocation25_spill] sm:$0xff] %v12268_v10  ;;  %v12357_v1 = vand.u32 4294901760, %v5734_v19 }
0x15b6   :  { %5718 = vmatpush.msra.mxu3 %v12268_v10  ;;  %13766 = vst [vmem:[#allocation26_spill] sm:$0xff] %v12331_v26  ;;  %v12367_v60 = vand.u32 4294901760, %v5740_v22  ;;  %v13776_v22 = vld [vmem:[#allocation17_spill] sm:$0xff] }
0x15b7   :  { %13767 = vst [vmem:[#allocation39_spill] sm:$0xff] %v12345_v38 }
0x15b8   :  { %5724 = vmatpush.msra.mxu3 %v12331_v26  ;;  %13768 = vst [vmem:[#allocation12_spill] sm:$0xff] %v12357_v1 }
0x15b9   :  { %13769 = vst [vmem:[#allocation29_spill] sm:$0xff] %v12367_v60 }
0x15ba   :  { %5730 = vmatpush.msra.mxu3 %v12345_v38  ;;  %13770 = vst [vmem:[#allocation38_spill] sm:$0xff] %v12369_v18 }
0x15bc   :  { %5736 = vmatpush.msra.mxu3 %v12357_v1 }
0x15be   :  { %5742 = vmatpush.msra.mxu3 %v12367_v60 }
0x15c0   :  { %5748 = vmatpush.msra.mxu3 %v12369_v18 }
0x15ec   :  { %v5410_v19 = vpop.permute.xlu2 %5409 }
0x1622   :  { %v5415_v58 = vpop.permute.xlu0 %5414 }
0x1623   :  { %v5417_v57 = vsel %vm665_vm9, %v5410_v19, %v5415_v58  ;;  %v13772_v58 = vld [vmem:[#allocation16_spill] sm:$0xff]  ;;  %v13777_v19 = vld [vmem:[#allocation18_spill] sm:$0xff] }
0x1624   :  { %v5421_v38 = vsel %vm676_vm11, %v5417_v57, 0 }
0x1625   :  { %v5447_v53 = vand.u32 4294901760, %v5421_v38 }
0x1627   :  { %v5448_v26 = vsub.f32 %v5421_v38, %v5447_v53  ;;  %5513 = vmatmul.f32.vlgmr.msrb.gmra.mxu1 %v5447_v53  ;;  %v13775_v38 = vld [vmem:[#allocation12_spill] sm:$0xff] }
0x1628   :  { %5801 = vmatpush.msrb.mxu1 %v12192_v0 }
0x1629   :  { %v5449_v1 = vand.u32 4294901760, %v5448_v26  ;;  %5551 = vmatmul.f32.vlgmr.msrb.gmra.mxu2 %v5448_v26 }
0x162a   :  { %5803 = vmatpush.msrb.mxu1 %v12194_v4  ;;  %5834 = vmatpush.msrb.mxu2 %v12227_v16 }
0x162b   :  { %v5450_v41 = vsub.f32 %v5448_v26, %v5449_v1  ;;  %5582 = vmatmul.f32.vlgmr.msrb.gmra.mxu3 %v5449_v1 }
0x162c   :  { %5805 = vmatpush.msrb.mxu1 %v12196_v46  ;;  %5838 = vmatpush.msrb.mxu2 %v12230_v54 }
0x162d   :  { %5877 = vmatpush.msrb.mxu3 %v12192_v0  ;;  %v5451_v57 = vand.u32 4294901760, %v5450_v41  ;;  %v13778_v41 = vld [vmem:[#allocation20_spill] sm:$0xff] }
0x162e   :  { %5807 = vmatpush.msrb.mxu1 %v12275_v23  ;;  %5842 = vmatpush.msrb.mxu2 %v12233_v55 }
0x162f   :  { %5879 = vmatpush.msrb.mxu3 %v12194_v4  ;;  %5452 = vmatmul.f32.vlgmr.msrb.gmra.mxu0 %v5451_v57 }
0x1630   :  { %5656 = vmatmul.f32.vlgmr.msra.gmra.mxu1 %v5447_v53  ;;  %5764 = vmatpush.msrb.mxu0 %v12210_v6 }
0x1631   :  { %5809 = vmatpush.msrb.mxu1 %v12297_v36  ;;  %5846 = vmatpush.msrb.mxu2 %v12307_v25 }
0x1632   :  { %5881 = vmatpush.msrb.mxu3 %v12196_v46  ;;  %5689 = vmatmul.f32.vlgmr.msra.gmra.mxu2 %v5451_v57  ;;  %v13779_v57 = vld [vmem:[#allocation35_spill] sm:$0xff] }
0x1633   :  { %5767 = vmatpush.msrb.mxu0 %v12213_v39  ;;  %5811 = vmatpush.msrb.mxu1 %v12309_v28 }
0x1634   :  { %5850 = vmatpush.msrb.mxu2 %v12321_v7  ;;  %5883 = vmatpush.msrb.mxu3 %v12275_v23 }
0x1635   :  { %5750 = vmatmul.f32.vlgmr.msra.gmra.mxu3 %v5447_v53  ;;  %5770 = vmatpush.msrb.mxu0 %v12216_v8 }
0x1636   :  { %5813 = vmatpush.msrb.mxu1 %v12323_v3  ;;  %5854 = vmatpush.msrb.mxu2 %v12337_v30 }
0x1637   :  { %5885 = vmatpush.msrb.mxu3 %v12297_v36  ;;  %5773 = vmatpush.msrb.mxu0 %v12300_v62 }
0x1638   :  { %5815 = vmatpush.msrb.mxu1 %v12339_v37  ;;  %5858 = vmatpush.msrb.mxu2 %v12354_v9 }
0x1639   :  { %5887 = vmatpush.msrb.mxu3 %v12309_v28  ;;  %5627 = vmatmul.f32.vlgmr.msra.gmra.mxu0 %v5447_v53 }
0x163a   :  { %5819 = vmatmul.f32.vlgmr.msrb.gmra.mxu1 %v5449_v1  ;;  %5776 = vmatpush.msrb.mxu0 %v12312_v15  ;;  %v13773_v1 = vld [vmem:[#allocation39_spill] sm:$0xff] }
0x163b   :  { %5862 = vmatpush.msrb.mxu2 %v12360_v17  ;;  %5889 = vmatpush.msrb.mxu3 %v12323_v3 }
0x163c   :  { %5864 = vmatmul.f32.vlgmr.msrb.gmra.mxu2 %v5447_v53  ;;  %5779 = vmatpush.msrb.mxu0 %v12326_v56 }
0x163d   :  { %5891 = vmatpush.msrb.mxu3 %v12339_v37  ;;  %6047 = vmatpush.msra.mxu1 %v12174_v27 }
0x163e   :  { %5893 = vmatmul.f32.vlgmr.msrb.gmra.mxu3 %v5447_v53  ;;  %5782 = vmatpush.msrb.mxu0 %v12342_v61  ;;  %v13771_v53 = vld [vmem:[#allocation26_spill] sm:$0xff] }
0x163f   :  { %6053 = vmatpush.msra.mxu1 %v12176_v42  ;;  %6105 = vmatpush.msra.mxu2 %v12106_v5 }
0x1640   :  { %5785 = vmatpush.msrb.mxu0 %v12351_v35  ;;  %6142 = vmatpush.msra.mxu3 %v12078_v45 }
0x1641   :  { %5788 = vmatmul.f32.vlgmr.msrb.gmra.mxu0 %v5448_v26  ;;  %6059 = vmatpush.msra.mxu1 %v12189_v59  ;;  %v13774_v26 = vld [vmem:[#allocation32_spill] sm:$0xff] }
0x1642   :  { %6108 = vmatpush.msra.mxu2 %v12109_v40  ;;  %6144 = vmatpush.msra.mxu3 %v12080_v31 }
0x1643   :  { %6065 = vmatpush.msra.mxu1 %v12206_v2  ;;  %6010 = vmatpush.msra.mxu0 %v12078_v45 }
0x1644   :  { %6111 = vmatpush.msra.mxu2 %v12112_v49  ;;  %6146 = vmatpush.msra.mxu3 %v12082_v13 }
0x1645   :  { %6071 = vmatpush.msra.mxu1 %v12223_v12  ;;  %6012 = vmatpush.msra.mxu0 %v12080_v31 }
0x1646   :  { %6114 = vmatpush.msra.mxu2 %v12119_v43  ;;  %6148 = vmatpush.msra.mxu3 %v12093_v14 }
0x1647   :  { %6077 = vmatpush.msra.mxu1 %v12240_v20  ;;  %6014 = vmatpush.msra.mxu0 %v12082_v13 }
0x1648   :  { %6117 = vmatpush.msra.mxu2 %v12122_v44  ;;  %6150 = vmatpush.msra.mxu3 %v12095_v11 }
0x1649   :  { %6083 = vmatpush.msra.mxu1 %v12252_v24  ;;  %6016 = vmatpush.msra.mxu0 %v12093_v14 }
0x164a   :  { %6120 = vmatpush.msra.mxu2 %v12125_v47  ;;  %6152 = vmatpush.msra.mxu3 %v12097_v34 }
0x164b   :  { %6089 = vmatpush.msra.mxu1 %v12262_v51  ;;  %6018 = vmatpush.msra.mxu0 %v12095_v11 }
0x164c   :  { %6123 = vmatpush.msra.mxu2 %v12148_v33  ;;  %6154 = vmatpush.msra.mxu3 %v12116_v29 }
0x164d   :  { %6218 = vmatpush.msrb.mxu1 %v12078_v45  ;;  %6020 = vmatpush.msra.mxu0 %v12097_v34 }
0x164e   :  { %6126 = vmatpush.msra.mxu2 %v12163_v21  ;;  %6156 = vmatpush.msra.mxu3 %v12127_v63  ;;  %v5418_v21 = vld [vmem:[#allocation2 + $0x10] sm:$0xc] }
0x164f   :  { %6220 = vmatpush.msrb.mxu1 %v12080_v31  ;;  %6022 = vmatpush.msra.mxu0 %v12116_v29 }
0x1650   :  { %6247 = vmatpush.msrb.mxu2 %v12192_v0  ;;  %6284 = vmatpush.msrb.mxu3 %v12255_v32 }
0x1651   :  { %6222 = vmatpush.msrb.mxu1 %v12082_v13  ;;  %6024 = vmatpush.msra.mxu0 %v12127_v63 }
0x1652   :  { %6249 = vmatpush.msrb.mxu2 %v12194_v4  ;;  %6290 = vmatpush.msrb.mxu3 %v12257_v52 }
0x1653   :  { %6224 = vmatpush.msrb.mxu1 %v12093_v14  ;;  %6175 = vmatpush.msrb.mxu0 %v12130_v48 }
0x1654   :  { %6251 = vmatpush.msrb.mxu2 %v12196_v46  ;;  %6296 = vmatpush.msrb.mxu3 %v12268_v10 }
0x1655   :  { %6226 = vmatpush.msrb.mxu1 %v12095_v11  ;;  %6179 = vmatpush.msrb.mxu0 %v12133_v50 }
0x1656   :  { %6253 = vmatpush.msrb.mxu2 %v12275_v23  ;;  %6302 = vmatpush.msrb.mxu3 %v13771_v53 }
0x1657   :  { %6228 = vmatpush.msrb.mxu1 %v12097_v34  ;;  %6183 = vmatpush.msrb.mxu0 %v13772_v58 }
0x1658   :  { %6255 = vmatpush.msrb.mxu2 %v12297_v36  ;;  %6308 = vmatpush.msrb.mxu3 %v13773_v1 }
0x1659   :  { %6230 = vmatpush.msrb.mxu1 %v12116_v29  ;;  %6187 = vmatpush.msrb.mxu0 %v13774_v26 }
0x165a   :  { %6257 = vmatpush.msrb.mxu2 %v12309_v28  ;;  %6314 = vmatpush.msrb.mxu3 %v13775_v38 }
0x165b   :  { %6232 = vmatpush.msrb.mxu1 %v12127_v63  ;;  %6191 = vmatpush.msrb.mxu0 %v13776_v22 }
0x165c   :  { %6259 = vmatpush.msrb.mxu2 %v12323_v3  ;;  %6320 = vmatpush.msrb.mxu3 %v12367_v60 }
0x165d   :  { %6195 = vmatpush.msrb.mxu0 %v13777_v19 }
0x165e   :  { %6261 = vmatpush.msrb.mxu2 %v12339_v37  ;;  %6326 = vmatpush.msrb.mxu3 %v12369_v18 }
0x165f   :  { %6199 = vmatpush.msrb.mxu0 %v13778_v41 }
0x1661   :  { %6203 = vmatpush.msrb.mxu0 %v13779_v57 }
0x16a4   :  { %v5514_v26 = vpop.f32.mrf.mxu1 }
0x16ac   :  { %v5453_v1 = vpop.f32.mrf.mxu0  ;;  %v5552_v53 = vpop.f32.mrf.mxu2 }
0x16ad   :  { %v5515_v58 = vadd.f32 %v5514_v26, %v5453_v1  ;;  %v5657_v22 = vpop.f32.mrf.mxu1 }
0x16ae   :  { %v5583_v50 = vpop.f32.mrf.mxu3 }
0x16af   :  { %v5553_v38 = vadd.f32 %v5552_v53, %v5515_v58 }
0x16b1   :  { %v5584_v10 = vadd.f32 %v5583_v50, %v5553_v38 }
0x16b5   :  { %v5690_v32 = vpop.f32.mrf.mxu2 }
0x16b6   :  { %v5628_v48 = vpop.f32.mrf.mxu0 }
0x16b7   :  { %v5629_v52 = vadd.f32 %v5628_v48, %v5584_v10  ;;  %v5820_v33 = vpop.f32.mrf.mxu1  ;;  %v5419_v10 = vld [vmem:[#allocation2 + $0x8] sm:$0x30] }
0x16b8   :  { %v5751_v63 = vpop.f32.mrf.mxu3 }
0x16b9   :  { %v5658_v60 = vadd.f32 %v5657_v22, %v5629_v52  ;;  %v5752_v29 = vadd.f32 %v5751_v63, %v5690_v32 }
0x16bb   :  { %v5898_v19 = vrot.slane %v5658_v60, 6 }
0x16bd   :  { %v5900_v18 = vadd.f32 %v5898_v19, %v5418_v21 }
0x16be   :  { %v5789_v41 = vpop.f32.mrf.mxu0 }
0x16bf   :  { %10167 = vtanh.f32 %v5900_v18  ;;  %v5790_v57 = vadd.f32 %v5789_v41, %v5752_v29  ;;  %v5865_v1 = vpop.f32.mrf.mxu2  ;;  %v10002_v63 = vmul.f32 -1.442695, %v5900_v18 }
0x16c1   :  { %v5821_v51 = vadd.f32 %v5820_v33, %v5790_v57  ;;  %v5894_v34 = vpop.f32.mrf.mxu3 }
0x16c3   :  { %v5866_v26 = vadd.f32 %v5865_v1, %v5821_v51 }
0x16c5   :  { %v10168_v53 = vpop.eup %10167  ;;  %v5895_v50 = vadd.f32 %v5894_v34, %v5866_v26 }
0x16c6   :  { %5930 = vrot.lane.b32.xlu2 %v10168_v53, %s10347_s3 }
0x16c7   :  { %v5902_v48 = vrot.slane %v5895_v50, 4 }
0x16c9   :  { %v5904_v52 = vadd.f32 %v5902_v48, %v5419_v10 }
0x16cb   :  { %10169 = vtanh.f32 %v5904_v52  ;;  %v10003_v38 = vmul.f32 -1.442695, %v5904_v52 }
0x16cc   :  { %10171 = vpow2.f32 %v10002_v63 }
0x16d1   :  { %v10170_v60 = vpop.eup %10169 }
0x16d2   :  { %5970 = vrot.lane.b32.xlu1 %v10170_v60, %s10347_s3  ;;  %v10172_v21 = vpop.eup %10171 }
0x16d3   :  { %v5908_v29 = vadd.f32 1.0, %v10172_v21 }
0x16d5   :  { %10173 = vrcp.f32 %v5908_v29  ;;  %v5920_v22 = vand.u32 2147483648, %v5908_v29  ;;  %vm5914_vm15 = vweird.f32 %v5908_v29  ;;  %v5918_v19 = vand.u32 2147483647, %v5908_v29 }
0x16d6   :  { %10175 = vpow2.f32 %v10003_v38 }
0x16d7   :  { %v5921_v57 = vor.u32 1.1754944e-38, %v5920_v22  ;;  %vm5919_vm2 = vcmp.eq.f32.partialorder %v5918_v19, 8.507059e+37 }
0x16db   :  { %v10174_v33 = vpop.eup %10173 }
0x16dc   :  { %v5910_v32 = vmul.f32 %v10174_v33, %v5908_v29  ;;  %vm5915_vm14 = vweird.f32 %v10174_v33  ;;  %v10176_v26 = vpop.eup %10175 }
0x16dd   :  { %vm5916_vm1 = vmor %vm5914_vm15, %vm5915_vm14  ;;  %v5948_v50 = vadd.f32 1.0, %v10176_v26  ;;  %v13781_v26 = vld [vmem:[#allocation15_spill] sm:$0xff] }
0x16de   :  { %v5911_v51 = vsub.f32 1.0, %v5910_v32 }
0x16df   :  { %10177 = vrcp.f32 %v5948_v50  ;;  %v5960_v21 = vand.u32 2147483648, %v5948_v50  ;;  %vm5954_vm5 = vweird.f32 %v5948_v50  ;;  %v5958_v29 = vand.u32 2147483647, %v5948_v50 }
0x16e0   :  { %v5912_v58 = vmul.f32 %v10174_v33, %v5911_v51 }
0x16e1   :  { %v5961_v32 = vor.u32 1.1754944e-38, %v5960_v21  ;;  %vm5959_vm4 = vcmp.eq.f32.partialorder %v5958_v29, 8.507059e+37 }
0x16e2   :  { %v5913_v34 = vadd.f32 %v10174_v33, %v5912_v58 }
0x16e4   :  { %v5917_v41 = vsel %vm5916_vm1, %v10174_v33, %v5913_v34  ;;  %v13780_v34 = vld [vmem:[#allocation27_spill] sm:$0xff] }
0x16e5   :  { %v5922_v1 = vsel %vm5919_vm2, %v5921_v57, %v5917_v41  ;;  %v10178_v48 = vpop.eup %10177  ;;  %v5926_v22 = vrot.slane %v13780_v34, 6 }
0x16e6   :  { %v5950_v10 = vmul.f32 %v10178_v48, %v5948_v50  ;;  %vm5955_vm3 = vweird.f32 %v10178_v48 }
0x16e7   :  { %vm5956_vm10 = vmor %vm5954_vm5, %vm5955_vm3  ;;  %v5928_v19 = vmul.f32 %v5926_v22, %v5922_v1 }
0x16e8   :  { %v5951_v52 = vsub.f32 1.0, %v5950_v10 }
0x16ea   :  { %v5952_v60 = vmul.f32 %v10178_v48, %v5951_v52 }
0x16ec   :  { %v5953_v63 = vadd.f32 %v10178_v48, %v5952_v60 }
0x16ee   :  { %v5957_v33 = vsel %vm5956_vm10, %v10178_v48, %v5953_v63 }
0x16ef   :  { %v5962_v58 = vsel %vm5959_vm4, %v5961_v32, %v5957_v33 }
0x1720   :  { %v5931_v18 = vpop.permute.xlu2 %5930 }
0x1721   :  { %v5933_v53 = vmul.f32 %v5931_v18, %v5922_v1 }
0x1723   :  { %5935 = vrot.lane.b32.xlu1 %v5933_v53, %s10348_s16  ;;  %v5966_v53 = vrot.slane %v13781_v26, 2  ;;  %v13783_v26 = vld [vmem:[#allocation21_spill] sm:$0xff] }
0x1725   :  { %v5968_v50 = vmul.f32 %v5966_v53, %v5962_v58  ;;  %v13784_v53 = vld [vmem:[#allocation37_spill] sm:$0xff] }
0x1744   :  { %v5971_v51 = vpop.permute.xlu1 %5970 }
0x1745   :  { %v5973_v38 = vmul.f32 %v5971_v51, %v5962_v58 }
0x1747   :  { %5975 = vrot.lane.b32.xlu0 %v5973_v38, %s10348_s16 }
0x1795   :  { %v5936_v41 = vpop.permute.xlu1 %5935 }
0x1796   :  { %v12476_v57 = vadd.f32 %v5936_v41, %v5928_v19 }
0x1798   :  { %10179 = vtanh.f32 %v12476_v57 }
0x179e   :  { %v10180_v18 = vpop.eup %10179 }
0x179f   :  { %5941 = vrot.lane.b32.xlu0 %v10180_v18, %s10347_s3 }
0x17b9   :  { %v5976_v48 = vpop.permute.xlu0 %5975 }
0x17ba   :  { %v12481_v10 = vadd.f32 %v5976_v48, %v5968_v50  ;;  %v13785_v50 = vld [vmem:[#allocation33_spill] sm:$0xff]  ;;  %v13786_v48 = vld [vmem:[#allocation14_spill] sm:$0xff] }
0x17bc   :  { %10181 = vtanh.f32 %v12481_v10 }
0x17c2   :  { %v10182_v52 = vpop.eup %10181 }
0x17c3   :  { %5981 = vrot.lane.b32.xlu2 %v10182_v52, %s10347_s3  ;;  %v13787_v52 = vld [vmem:[#allocation34_spill] sm:$0xff] }
0x1811   :  { %v5942_v60 = vpop.permute.xlu0 %5941 }
0x1812   :  { %v5944_v63 = vmul.f32 %v5942_v60, %v5922_v1  ;;  %v13788_v60 = vld [vmem:[#allocation19_spill] sm:$0xff] }
0x1814   :  { %5986 = vrot.lane.b32.xlu1 %v5944_v63, %s10348_s16  ;;  %v13789_v63 = vld [vmem:[#allocation36_spill] sm:$0xff] }
0x181d   :  { %v5982_v21 = vpop.permute.xlu2 %5981 }
0x181e   :  { %v5984_v29 = vmul.f32 %v5982_v21, %v5962_v58  ;;  %v13790_v21 = vld [vmem:[#allocation23_spill] sm:$0xff] }
0x1820   :  { %v5990_v33 = vrot.slane %v5984_v29, 2  ;;  %v13791_v29 = vld [vmem:[#allocation30_spill] sm:$0xff] }
0x1822   :  { %5991 = vrot.lane.b32.xlu2 %v5990_v33, %s10347_s3  ;;  %v13792_v33 = vld [vmem:[#allocation25_spill] sm:$0xff] }
0x187c   :  { %v5992_v32 = vpop.permute.xlu2 %5991 }
0x1886   :  { %v12487_v51 = vpop.permute.xlu1 %5986 }
0x1887   :  { %13782 = vst [vmem:[#allocation11_spill] sm:$0xff] %v12487_v51  ;;  %v5994_v38 = vsel %vm665_vm9, %v12487_v51, %v5992_v32  ;;  %v13793_v32 = vld [vmem:[#allocation31_spill] sm:$0xff]  ;;  %v13802_v51 = vld [vmem:[#allocation38_spill] sm:$0xff] }
0x1888   :  { %v5998_v34 = vrot.slane %v5994_v38, 2  ;;  %v13794_v38 = vld [vmem:[#allocation26_spill] sm:$0xff] }
0x188a   :  { %v5999_v22 = vsel %vm676_vm11, %v5998_v34, 0  ;;  %v13795_v34 = vld [vmem:[#allocation16_spill] sm:$0xff] }
0x188b   :  { %v6025_v19 = vand.u32 4294901760, %v5999_v22 }
0x188d   :  { %v6026_v41 = vsub.f32 %v5999_v22, %v6025_v19  ;;  %6091 = vmatmul.f32.vlgmr.msra.gmra.mxu1 %v6025_v19  ;;  %v13796_v22 = vld [vmem:[#allocation39_spill] sm:$0xff] }
0x188e   :  { %6379 = vmatpush.msra.mxu1 %v12192_v0 }
0x188f   :  { %6129 = vmatmul.f32.vlgmr.msra.gmra.mxu2 %v6026_v41  ;;  %v6027_v1 = vand.u32 4294901760, %v6026_v41 }
0x1890   :  { %6381 = vmatpush.msra.mxu1 %v12194_v4  ;;  %6412 = vmatpush.msra.mxu2 %v12227_v16 }
0x1891   :  { %6160 = vmatmul.f32.vlgmr.msra.gmra.mxu3 %v6027_v1  ;;  %v6028_v58 = vsub.f32 %v6026_v41, %v6027_v1 }
0x1892   :  { %6383 = vmatpush.msra.mxu1 %v12196_v46  ;;  %6416 = vmatpush.msra.mxu2 %v12230_v54 }
0x1893   :  { %6455 = vmatpush.msra.mxu3 %v12192_v0  ;;  %v6029_v18 = vand.u32 4294901760, %v6028_v58  ;;  %v13800_v58 = vld [vmem:[#allocation29_spill] sm:$0xff] }
0x1894   :  { %6385 = vmatpush.msra.mxu1 %v12275_v23  ;;  %6420 = vmatpush.msra.mxu2 %v12233_v55 }
0x1895   :  { %6457 = vmatpush.msra.mxu3 %v12194_v4  ;;  %6030 = vmatmul.f32.vlgmr.msra.gmra.mxu0 %v6029_v18 }
0x1896   :  { %6234 = vmatmul.f32.vlgmr.msrb.gmra.mxu1 %v6025_v19  ;;  %6342 = vmatpush.msra.mxu0 %v12210_v6 }
0x1897   :  { %6387 = vmatpush.msra.mxu1 %v12297_v36  ;;  %6424 = vmatpush.msra.mxu2 %v12307_v25 }
0x1898   :  { %6459 = vmatpush.msra.mxu3 %v12196_v46  ;;  %6267 = vmatmul.f32.vlgmr.msrb.gmra.mxu2 %v6029_v18  ;;  %v13801_v18 = vld [vmem:[#allocation18_spill] sm:$0xff] }
0x1899   :  { %6345 = vmatpush.msra.mxu0 %v12213_v39  ;;  %6389 = vmatpush.msra.mxu1 %v12309_v28 }
0x189a   :  { %6428 = vmatpush.msra.mxu2 %v12321_v7  ;;  %6461 = vmatpush.msra.mxu3 %v12275_v23 }
0x189b   :  { %6328 = vmatmul.f32.vlgmr.msrb.gmra.mxu3 %v6025_v19  ;;  %6348 = vmatpush.msra.mxu0 %v12216_v8 }
0x189c   :  { %6391 = vmatpush.msra.mxu1 %v12323_v3  ;;  %6432 = vmatpush.msra.mxu2 %v12337_v30 }
0x189d   :  { %6463 = vmatpush.msra.mxu3 %v12297_v36  ;;  %6351 = vmatpush.msra.mxu0 %v12300_v62 }
0x189e   :  { %6393 = vmatpush.msra.mxu1 %v12339_v37  ;;  %6436 = vmatpush.msra.mxu2 %v12354_v9 }
0x189f   :  { %6465 = vmatpush.msra.mxu3 %v12309_v28  ;;  %6205 = vmatmul.f32.vlgmr.msrb.gmra.mxu0 %v6025_v19 }
0x18a0   :  { %6397 = vmatmul.f32.vlgmr.msra.gmra.mxu1 %v6027_v1  ;;  %6354 = vmatpush.msra.mxu0 %v12312_v15  ;;  %v13799_v1 = vld [vmem:[#allocation17_spill] sm:$0xff] }
0x18a1   :  { %6440 = vmatpush.msra.mxu2 %v12360_v17  ;;  %6467 = vmatpush.msra.mxu3 %v12323_v3 }
0x18a2   :  { %6442 = vmatmul.f32.vlgmr.msra.gmra.mxu2 %v6025_v19  ;;  %6357 = vmatpush.msra.mxu0 %v12326_v56 }
0x18a3   :  { %6469 = vmatpush.msra.mxu3 %v12339_v37  ;;  %6625 = vmatpush.msrb.mxu1 %v12174_v27 }
0x18a4   :  { %6471 = vmatmul.f32.vlgmr.msra.gmra.mxu3 %v6025_v19  ;;  %6360 = vmatpush.msra.mxu0 %v12342_v61  ;;  %v13797_v19 = vld [vmem:[#allocation32_spill] sm:$0xff] }
0x18a5   :  { %6631 = vmatpush.msrb.mxu1 %v12176_v42  ;;  %6683 = vmatpush.msrb.mxu2 %v12106_v5 }
0x18a6   :  { %6363 = vmatpush.msra.mxu0 %v12351_v35  ;;  %6720 = vmatpush.msrb.mxu3 %v12078_v45 }
0x18a7   :  { %6366 = vmatmul.f32.vlgmr.msra.gmra.mxu0 %v6026_v41  ;;  %6637 = vmatpush.msrb.mxu1 %v12189_v59  ;;  %v13798_v41 = vld [vmem:[#allocation12_spill] sm:$0xff] }
0x18a8   :  { %6686 = vmatpush.msrb.mxu2 %v12109_v40  ;;  %6722 = vmatpush.msrb.mxu3 %v12080_v31 }
0x18a9   :  { %6643 = vmatpush.msrb.mxu1 %v12206_v2  ;;  %6588 = vmatpush.msrb.mxu0 %v12078_v45 }
0x18aa   :  { %6689 = vmatpush.msrb.mxu2 %v12112_v49  ;;  %6724 = vmatpush.msrb.mxu3 %v12082_v13 }
0x18ab   :  { %6649 = vmatpush.msrb.mxu1 %v12223_v12  ;;  %6590 = vmatpush.msrb.mxu0 %v12080_v31 }
0x18ac   :  { %6692 = vmatpush.msrb.mxu2 %v12119_v43  ;;  %6726 = vmatpush.msrb.mxu3 %v12093_v14 }
0x18ad   :  { %6655 = vmatpush.msrb.mxu1 %v12240_v20  ;;  %6592 = vmatpush.msrb.mxu0 %v12082_v13 }
0x18ae   :  { %6695 = vmatpush.msrb.mxu2 %v12122_v44  ;;  %6728 = vmatpush.msrb.mxu3 %v12095_v11 }
0x18af   :  { %6661 = vmatpush.msrb.mxu1 %v12252_v24  ;;  %6594 = vmatpush.msrb.mxu0 %v12093_v14 }
0x18b0   :  { %6698 = vmatpush.msrb.mxu2 %v12125_v47  ;;  %6730 = vmatpush.msrb.mxu3 %v13783_v26 }
0x18b1   :  { %6667 = vmatpush.msrb.mxu1 %v13784_v53  ;;  %6596 = vmatpush.msrb.mxu0 %v12095_v11 }
0x18b2   :  { %6701 = vmatpush.msrb.mxu2 %v13785_v50  ;;  %6732 = vmatpush.msrb.mxu3 %v13786_v48  ;;  %v5995_v50 = vld [vmem:[#allocation2 + $0x10] sm:$0x30] }
0x18b3   :  { %6796 = vmatpush.msra.mxu1 %v12078_v45  ;;  %6598 = vmatpush.msrb.mxu0 %v13783_v26 }
0x18b4   :  { %6704 = vmatpush.msrb.mxu2 %v13787_v52  ;;  %6734 = vmatpush.msrb.mxu3 %v13788_v60 }
0x18b5   :  { %6798 = vmatpush.msra.mxu1 %v12080_v31  ;;  %6600 = vmatpush.msrb.mxu0 %v13786_v48 }
0x18b6   :  { %6825 = vmatpush.msra.mxu2 %v12192_v0  ;;  %6862 = vmatpush.msra.mxu3 %v13789_v63 }
0x18b7   :  { %6800 = vmatpush.msra.mxu1 %v12082_v13  ;;  %6602 = vmatpush.msrb.mxu0 %v13788_v60 }
0x18b8   :  { %6827 = vmatpush.msra.mxu2 %v12194_v4  ;;  %6868 = vmatpush.msra.mxu3 %v13790_v21 }
0x18b9   :  { %6802 = vmatpush.msra.mxu1 %v12093_v14  ;;  %6753 = vmatpush.msra.mxu0 %v13791_v29 }
0x18ba   :  { %6829 = vmatpush.msra.mxu2 %v12196_v46  ;;  %6874 = vmatpush.msra.mxu3 %v13792_v33 }
0x18bb   :  { %6804 = vmatpush.msra.mxu1 %v12095_v11  ;;  %6757 = vmatpush.msra.mxu0 %v13793_v32 }
0x18bc   :  { %6831 = vmatpush.msra.mxu2 %v12275_v23  ;;  %6880 = vmatpush.msra.mxu3 %v13794_v38 }
0x18bd   :  { %6806 = vmatpush.msra.mxu1 %v13783_v26  ;;  %6761 = vmatpush.msra.mxu0 %v13795_v34  ;;  %v13803_v34 = vld [vmem:[#allocation20_spill] sm:$0xff] }
0x18be   :  { %6833 = vmatpush.msra.mxu2 %v12297_v36  ;;  %6886 = vmatpush.msra.mxu3 %v13796_v22  ;;  %v13804_v22 = vld [vmem:[#allocation35_spill] sm:$0xff] }
0x18bf   :  { %6808 = vmatpush.msra.mxu1 %v13786_v48  ;;  %6765 = vmatpush.msra.mxu0 %v13797_v19 }
0x18c0   :  { %6835 = vmatpush.msra.mxu2 %v12309_v28  ;;  %6892 = vmatpush.msra.mxu3 %v13798_v41 }
0x18c1   :  { %6810 = vmatpush.msra.mxu1 %v13788_v60  ;;  %6769 = vmatpush.msra.mxu0 %v13799_v1 }
0x18c2   :  { %6837 = vmatpush.msra.mxu2 %v12323_v3  ;;  %6898 = vmatpush.msra.mxu3 %v13800_v58 }
0x18c3   :  { %6773 = vmatpush.msra.mxu0 %v13801_v18 }
0x18c4   :  { %6839 = vmatpush.msra.mxu2 %v12339_v37  ;;  %6904 = vmatpush.msra.mxu3 %v13802_v51 }
0x18c5   :  { %6777 = vmatpush.msra.mxu0 %v13803_v34 }
0x18c7   :  { %6781 = vmatpush.msra.mxu0 %v13804_v22 }
0x190a   :  { %v6092_v19 = vpop.f32.mrf.mxu1 }
0x1912   :  { %v6031_v38 = vpop.f32.mrf.mxu0  ;;  %v6130_v33 = vpop.f32.mrf.mxu2 }
0x1913   :  { %v6093_v32 = vadd.f32 %v6092_v19, %v6031_v38  ;;  %v6235_v1 = vpop.f32.mrf.mxu1 }
0x1914   :  { %v6161_v29 = vpop.f32.mrf.mxu3 }
0x1915   :  { %v6131_v41 = vadd.f32 %v6130_v33, %v6093_v32 }
0x1917   :  { %v6162_v21 = vadd.f32 %v6161_v29, %v6131_v41 }
0x191b   :  { %v6268_v52 = vpop.f32.mrf.mxu2 }
0x191c   :  { %v6206_v63 = vpop.f32.mrf.mxu0 }
0x191d   :  { %v6207_v60 = vadd.f32 %v6206_v63, %v6162_v21  ;;  %v6398_v26 = vpop.f32.mrf.mxu1  ;;  %v5996_v21 = vld [vmem:[#allocation2 + $0x8] sm:$0xc] }
0x191e   :  { %v6329_v48 = vpop.f32.mrf.mxu3 }
0x191f   :  { %v6236_v58 = vadd.f32 %v6235_v1, %v6207_v60  ;;  %v6330_v53 = vadd.f32 %v6329_v48, %v6268_v52 }
0x1921   :  { %v6476_v18 = vrot.slane %v6236_v58, 4 }
0x1923   :  { %v6478_v51 = vadd.f32 %v6476_v18, %v5995_v50 }
0x1924   :  { %v6367_v34 = vpop.f32.mrf.mxu0 }
0x1925   :  { %10183 = vtanh.f32 %v6478_v51  ;;  %v6368_v22 = vadd.f32 %v6367_v34, %v6330_v53  ;;  %v6443_v38 = vpop.f32.mrf.mxu2  ;;  %v10004_v50 = vmul.f32 -1.442695, %v6478_v51 }
0x1927   :  { %v6399_v47 = vadd.f32 %v6398_v26, %v6368_v22  ;;  %v6472_v24 = vpop.f32.mrf.mxu3 }
0x1929   :  { %v6444_v19 = vadd.f32 %v6443_v38, %v6399_v47 }
0x192b   :  { %v10184_v33 = vpop.eup %10183  ;;  %v6473_v29 = vadd.f32 %v6472_v24, %v6444_v19 }
0x192c   :  { %6508 = vrot.lane.b32.xlu1 %v10184_v33, %s10347_s3 }
0x192d   :  { %v6480_v63 = vrot.slane %v6473_v29, 6 }
0x192f   :  { %v6482_v60 = vadd.f32 %v6480_v63, %v5996_v21 }
0x1931   :  { %10185 = vtanh.f32 %v6482_v60  ;;  %v10005_v53 = vmul.f32 -1.442695, %v6482_v60 }
0x1932   :  { %10187 = vpow2.f32 %v10004_v50 }
0x1933   :  { %10189 = vpow2.f32 %v10005_v53 }
0x1937   :  { %v10186_v32 = vpop.eup %10185 }
0x1938   :  { %6548 = vrot.lane.b32.xlu0 %v10186_v32, %s10347_s3  ;;  %v10188_v48 = vpop.eup %10187 }
0x1939   :  { %v6486_v52 = vadd.f32 1.0, %v10188_v48  ;;  %v10190_v47 = vpop.eup %10189 }
0x193a   :  { %v6526_v34 = vadd.f32 1.0, %v10190_v47 }
0x193b   :  { %10191 = vrcp.f32 %v6486_v52  ;;  %v6498_v38 = vand.u32 2147483648, %v6486_v52  ;;  %vm6492_vm13 = vweird.f32 %v6486_v52  ;;  %v6496_v51 = vand.u32 2147483647, %v6486_v52 }
0x193c   :  { %10193 = vrcp.f32 %v6526_v34  ;;  %v6538_v48 = vand.u32 2147483648, %v6526_v34  ;;  %vm6532_vm12 = vweird.f32 %v6526_v34  ;;  %v6536_v53 = vand.u32 2147483647, %v6526_v34 }
0x193d   :  { %v6499_v29 = vor.u32 1.1754944e-38, %v6498_v38  ;;  %vm6497_vm7 = vcmp.eq.f32.partialorder %v6496_v51, 8.507059e+37 }
0x193e   :  { %vm6537_vm15 = vcmp.eq.f32.partialorder %v6536_v53, 8.507059e+37 }
0x1941   :  { %v10192_v26 = vpop.eup %10191 }
0x1942   :  { %v6488_v24 = vmul.f32 %v10192_v26, %v6486_v52  ;;  %v10194_v1 = vpop.eup %10193  ;;  %vm6493_vm0 = vweird.f32 %v10192_v26 }
0x1943   :  { %v6528_v18 = vmul.f32 %v10194_v1, %v6526_v34  ;;  %vm6494_vm6 = vmor %vm6492_vm13, %vm6493_vm0  ;;  %vm6533_vm8 = vweird.f32 %v10194_v1  ;;  %v6504_v34 = vrot.slane %v12476_v57, 6 }
0x1944   :  { %v6489_v22 = vsub.f32 1.0, %v6488_v24  ;;  %vm6534_vm14 = vmor %vm6532_vm12, %vm6533_vm8  ;;  %v6539_v24 = vor.u32 1.1754944e-38, %v6538_v48 }
0x1945   :  { %v6529_v33 = vsub.f32 1.0, %v6528_v18 }
0x1946   :  { %v6490_v41 = vmul.f32 %v10192_v26, %v6489_v22 }
0x1947   :  { %v6530_v32 = vmul.f32 %v10194_v1, %v6529_v33 }
0x1948   :  { %v6491_v58 = vadd.f32 %v10192_v26, %v6490_v41  ;;  %v6544_v41 = vrot.slane %v12481_v10, 2 }
0x1949   :  { %v6531_v50 = vadd.f32 %v10194_v1, %v6530_v32 }
0x194a   :  { %v6495_v19 = vsel %vm6494_vm6, %v10192_v26, %v6491_v58 }
0x194b   :  { %v6500_v21 = vsel %vm6497_vm7, %v6499_v29, %v6495_v19  ;;  %v6535_v47 = vsel %vm6534_vm14, %v10194_v1, %v6531_v50 }
0x194c   :  { %v6540_v26 = vsel %vm6537_vm15, %v6539_v24, %v6535_v47  ;;  %v6506_v1 = vmul.f32 %v6504_v34, %v6500_v21  ;;  %v13808_v34 = vld [vmem:[#allocation37_spill] sm:$0xff] }
0x194d   :  { %v6546_v58 = vmul.f32 %v6544_v41, %v6540_v26 }
0x199e   :  { %v6509_v63 = vpop.permute.xlu1 %6508 }
0x199f   :  { %v6511_v60 = vmul.f32 %v6509_v63, %v6500_v21 }
0x19a1   :  { %6513 = vrot.lane.b32.xlu0 %v6511_v60, %s10348_s16 }
0x19aa   :  { %v6549_v52 = vpop.permute.xlu0 %6548 }
0x19ab   :  { %v6551_v22 = vmul.f32 %v6549_v52, %v6540_v26 }
0x19ad   :  { %6553 = vrot.lane.b32.xlu2 %v6551_v22, %s10348_s16 }
0x1a07   :  { %v6554_v18 = vpop.permute.xlu2 %6553 }
0x1a08   :  { %v12593_v38 = vadd.f32 %v6554_v18, %v6546_v58  ;;  %v13805_v58 = vld [vmem:[#allocation22_spill] sm:$0xff]  ;;  %v13806_v18 = vld [vmem:[#allocation24_spill] sm:$0xff] }
0x1a0a   :  { %10195 = vtanh.f32 %v12593_v38 }
0x1a10   :  { %v10196_v51 = vpop.eup %10195 }
0x1a11   :  { %6559 = vrot.lane.b32.xlu1 %v10196_v51, %s10347_s3  ;;  %v13807_v51 = vld [vmem:[#allocation21_spill] sm:$0xff] }
0x1a13   :  { %v6514_v19 = vpop.permute.xlu0 %6513 }
0x1a14   :  { %v12598_v33 = vadd.f32 %v6514_v19, %v6506_v1  ;;  %v13809_v1 = vld [vmem:[#allocation33_spill] sm:$0xff]  ;;  %v13810_v19 = vld [vmem:[#allocation14_spill] sm:$0xff] }
0x1a16   :  { %10197 = vtanh.f32 %v12598_v33 }
0x1a1c   :  { %v10198_v29 = vpop.eup %10197 }
0x1a1d   :  { %6519 = vrot.lane.b32.xlu2 %v10198_v29, %s10347_s3  ;;  %v13811_v29 = vld [vmem:[#allocation34_spill] sm:$0xff] }
0x1a77   :  { %v6520_v10 = vpop.permute.xlu2 %6519 }
0x1a78   :  { %v6522_v63 = vmul.f32 %v6520_v10, %v6500_v21  ;;  %v13812_v10 = vld [vmem:[#allocation19_spill] sm:$0xff] }
0x1a7a   :  { %6564 = vrot.lane.b32.xlu0 %v6522_v63, %s10348_s16  ;;  %v13813_v63 = vld [vmem:[#allocation36_spill] sm:$0xff] }
0x1a83   :  { %v6560_v60 = vpop.permute.xlu1 %6559 }
0x1a84   :  { %v6562_v32 = vmul.f32 %v6560_v60, %v6540_v26  ;;  %v13814_v60 = vld [vmem:[#allocation23_spill] sm:$0xff] }
0x1a86   :  { %v6568_v50 = vrot.slane %v6562_v32, 6  ;;  %v13815_v32 = vld [vmem:[#allocation30_spill] sm:$0xff] }
0x1a88   :  { %6569 = vrot.lane.b32.xlu1 %v6568_v50, %s10347_s3  ;;  %v13816_v50 = vld [vmem:[#allocation25_spill] sm:$0xff] }
0x1aec   :  { %v6565_v57 = vpop.permute.xlu0 %6564 }
0x1afa   :  { %v6570_v48 = vpop.permute.xlu1 %6569 }
0x1afb   :  { %v6572_v53 = vsel %vm665_vm9, %v6565_v57, %v6570_v48  ;;  %v13817_v57 = vld [vmem:[#allocation31_spill] sm:$0xff]  ;;  %v13818_v48 = vld [vmem:[#allocation26_spill] sm:$0xff] }
0x1afc   :  { %v6576_v47 = vrot.slane %v6572_v53, 4  ;;  %v13819_v53 = vld [vmem:[#allocation16_spill] sm:$0xff] }
0x1afe   :  { %v6577_v24 = vsel %vm676_vm11, %v6576_v47, 0  ;;  %v13820_v47 = vld [vmem:[#allocation39_spill] sm:$0xff] }
0x1aff   :  { %v6603_v52 = vand.u32 4294901760, %v6577_v24 }
0x1b01   :  { %v6604_v22 = vsub.f32 %v6577_v24, %v6603_v52  ;;  %6669 = vmatmul.f32.vlgmr.msrb.gmra.mxu1 %v6603_v52  ;;  %v13821_v24 = vld [vmem:[#allocation32_spill] sm:$0xff] }
0x1b02   :  { %6957 = vmatpush.msrb.mxu1 %v12192_v0 }
0x1b03   :  { %6707 = vmatmul.f32.vlgmr.msrb.gmra.mxu2 %v6604_v22  ;;  %v6605_v21 = vand.u32 4294901760, %v6604_v22 }
0x1b04   :  { %6959 = vmatpush.msrb.mxu1 %v12194_v4  ;;  %6990 = vmatpush.msrb.mxu2 %v12227_v16 }
0x1b05   :  { %6738 = vmatmul.f32.vlgmr.msrb.gmra.mxu3 %v6605_v21  ;;  %v6606_v26 = vsub.f32 %v6604_v22, %v6605_v21 }
0x1b06   :  { %6961 = vmatpush.msrb.mxu1 %v12196_v46  ;;  %6994 = vmatpush.msrb.mxu2 %v12230_v54 }
0x1b07   :  { %7033 = vmatpush.msrb.mxu3 %v12192_v0  ;;  %v6607_v41 = vand.u32 4294901760, %v6606_v26  ;;  %v13825_v26 = vld [vmem:[#allocation18_spill] sm:$0xff] }
0x1b08   :  { %6963 = vmatpush.msrb.mxu1 %v12275_v23  ;;  %6998 = vmatpush.msrb.mxu2 %v12233_v55 }
0x1b09   :  { %7035 = vmatpush.msrb.mxu3 %v12194_v4  ;;  %6608 = vmatmul.f32.vlgmr.msrb.gmra.mxu0 %v6607_v41 }
0x1b0a   :  { %6812 = vmatmul.f32.vlgmr.msra.gmra.mxu1 %v6603_v52  ;;  %6920 = vmatpush.msrb.mxu0 %v12210_v6 }
0x1b0b   :  { %6965 = vmatpush.msrb.mxu1 %v12297_v36  ;;  %7002 = vmatpush.msrb.mxu2 %v12307_v25 }
0x1b0c   :  { %7037 = vmatpush.msrb.mxu3 %v12196_v46  ;;  %6845 = vmatmul.f32.vlgmr.msra.gmra.mxu2 %v6607_v41  ;;  %v13826_v41 = vld [vmem:[#allocation38_spill] sm:$0xff] }
0x1b0d   :  { %6923 = vmatpush.msrb.mxu0 %v12213_v39  ;;  %6967 = vmatpush.msrb.mxu1 %v12309_v28 }
0x1b0e   :  { %7006 = vmatpush.msrb.mxu2 %v12321_v7  ;;  %7039 = vmatpush.msrb.mxu3 %v12275_v23 }
0x1b0f   :  { %6906 = vmatmul.f32.vlgmr.msra.gmra.mxu3 %v6603_v52  ;;  %6926 = vmatpush.msrb.mxu0 %v12216_v8 }
0x1b10   :  { %6969 = vmatpush.msrb.mxu1 %v12323_v3  ;;  %7010 = vmatpush.msrb.mxu2 %v12337_v30 }
0x1b11   :  { %7041 = vmatpush.msrb.mxu3 %v12297_v36  ;;  %6929 = vmatpush.msrb.mxu0 %v12300_v62 }
0x1b12   :  { %6971 = vmatpush.msrb.mxu1 %v12339_v37  ;;  %7014 = vmatpush.msrb.mxu2 %v12354_v9 }
0x1b13   :  { %7043 = vmatpush.msrb.mxu3 %v12309_v28  ;;  %6783 = vmatmul.f32.vlgmr.msra.gmra.mxu0 %v6603_v52 }
0x1b14   :  { %6975 = vmatmul.f32.vlgmr.msrb.gmra.mxu1 %v6605_v21  ;;  %6932 = vmatpush.msrb.mxu0 %v12312_v15  ;;  %v13824_v21 = vld [vmem:[#allocation29_spill] sm:$0xff] }
0x1b15   :  { %7018 = vmatpush.msrb.mxu2 %v12360_v17  ;;  %7045 = vmatpush.msrb.mxu3 %v12323_v3 }
0x1b16   :  { %7020 = vmatmul.f32.vlgmr.msrb.gmra.mxu2 %v6603_v52  ;;  %6935 = vmatpush.msrb.mxu0 %v12326_v56 }
0x1b17   :  { %7047 = vmatpush.msrb.mxu3 %v12339_v37  ;;  %7200 = vmatpush.msra.mxu1 %v12174_v27 }
0x1b18   :  { %7049 = vmatmul.f32.vlgmr.msrb.gmra.mxu3 %v6603_v52  ;;  %6938 = vmatpush.msrb.mxu0 %v12342_v61  ;;  %v13822_v52 = vld [vmem:[#allocation12_spill] sm:$0xff] }
0x1b19   :  { %7206 = vmatpush.msra.mxu1 %v12176_v42  ;;  %7258 = vmatpush.msra.mxu2 %v12106_v5 }
0x1b1a   :  { %6941 = vmatpush.msrb.mxu0 %v12351_v35  ;;  %7295 = vmatpush.msra.mxu3 %v12078_v45 }
0x1b1b   :  { %6944 = vmatmul.f32.vlgmr.msrb.gmra.mxu0 %v6604_v22  ;;  %7212 = vmatpush.msra.mxu1 %v12189_v59  ;;  %v13823_v22 = vld [vmem:[#allocation17_spill] sm:$0xff] }
0x1b1c   :  { %7261 = vmatpush.msra.mxu2 %v12109_v40  ;;  %7297 = vmatpush.msra.mxu3 %v12080_v31 }
0x1b1d   :  { %7218 = vmatpush.msra.mxu1 %v12206_v2  ;;  %7163 = vmatpush.msra.mxu0 %v12078_v45 }
0x1b1e   :  { %7264 = vmatpush.msra.mxu2 %v12112_v49  ;;  %7299 = vmatpush.msra.mxu3 %v12082_v13 }
0x1b1f   :  { %7224 = vmatpush.msra.mxu1 %v12223_v12  ;;  %7165 = vmatpush.msra.mxu0 %v12080_v31 }
0x1b20   :  { %7267 = vmatpush.msra.mxu2 %v12119_v43  ;;  %7301 = vmatpush.msra.mxu3 %v12093_v14 }
0x1b21   :  { %7230 = vmatpush.msra.mxu1 %v12240_v20  ;;  %7167 = vmatpush.msra.mxu0 %v12082_v13 }
0x1b22   :  { %7270 = vmatpush.msra.mxu2 %v12122_v44  ;;  %7303 = vmatpush.msra.mxu3 %v12095_v11 }
0x1b23   :  { %7236 = vmatpush.msra.mxu1 %v13805_v58  ;;  %7169 = vmatpush.msra.mxu0 %v12093_v14 }
0x1b24   :  { %7273 = vmatpush.msra.mxu2 %v13806_v18  ;;  %7305 = vmatpush.msra.mxu3 %v13807_v51 }
0x1b25   :  { %7242 = vmatpush.msra.mxu1 %v13808_v34  ;;  %7171 = vmatpush.msra.mxu0 %v12095_v11 }
0x1b26   :  { %7276 = vmatpush.msra.mxu2 %v13809_v1  ;;  %7307 = vmatpush.msra.mxu3 %v13810_v19  ;;  %v6573_v1 = vld [vmem:[#allocation2 + $0x10] sm:$0xc0] }
0x1b27   :  { %7371 = vmatpush.msrb.mxu1 %v12078_v45  ;;  %7173 = vmatpush.msra.mxu0 %v13807_v51 }
0x1b28   :  { %7279 = vmatpush.msra.mxu2 %v13811_v29  ;;  %7309 = vmatpush.msra.mxu3 %v13812_v10 }
0x1b29   :  { %7373 = vmatpush.msrb.mxu1 %v12080_v31  ;;  %7175 = vmatpush.msra.mxu0 %v13810_v19 }
0x1b2a   :  { %7400 = vmatpush.msrb.mxu2 %v12192_v0  ;;  %7437 = vmatpush.msrb.mxu3 %v13813_v63 }
0x1b2b   :  { %7375 = vmatpush.msrb.mxu1 %v12082_v13  ;;  %7177 = vmatpush.msra.mxu0 %v13812_v10 }
0x1b2c   :  { %7402 = vmatpush.msrb.mxu2 %v12194_v4  ;;  %7443 = vmatpush.msrb.mxu3 %v13814_v60 }
0x1b2d   :  { %7377 = vmatpush.msrb.mxu1 %v12093_v14  ;;  %7328 = vmatpush.msrb.mxu0 %v13815_v32 }
0x1b2e   :  { %7404 = vmatpush.msrb.mxu2 %v12196_v46  ;;  %7449 = vmatpush.msrb.mxu3 %v13816_v50 }
0x1b2f   :  { %7379 = vmatpush.msrb.mxu1 %v12095_v11  ;;  %7332 = vmatpush.msrb.mxu0 %v13817_v57 }
0x1b30   :  { %7406 = vmatpush.msrb.mxu2 %v12275_v23  ;;  %7455 = vmatpush.msrb.mxu3 %v13818_v48 }
0x1b31   :  { %7381 = vmatpush.msrb.mxu1 %v13807_v51  ;;  %7336 = vmatpush.msrb.mxu0 %v13819_v53  ;;  %v13827_v53 = vld [vmem:[#allocation20_spill] sm:$0xff] }
0x1b32   :  { %7408 = vmatpush.msrb.mxu2 %v12297_v36  ;;  %7461 = vmatpush.msrb.mxu3 %v13820_v47  ;;  %v13828_v47 = vld [vmem:[#allocation35_spill] sm:$0xff] }
0x1b33   :  { %7383 = vmatpush.msrb.mxu1 %v13810_v19  ;;  %7340 = vmatpush.msrb.mxu0 %v13821_v24 }
0x1b34   :  { %7410 = vmatpush.msrb.mxu2 %v12309_v28  ;;  %7467 = vmatpush.msrb.mxu3 %v13822_v52 }
0x1b35   :  { %7385 = vmatpush.msrb.mxu1 %v13812_v10  ;;  %7344 = vmatpush.msrb.mxu0 %v13823_v22 }
0x1b36   :  { %7412 = vmatpush.msrb.mxu2 %v12323_v3  ;;  %7473 = vmatpush.msrb.mxu3 %v13824_v21 }
0x1b37   :  { %7348 = vmatpush.msrb.mxu0 %v13825_v26 }
0x1b38   :  { %7414 = vmatpush.msrb.mxu2 %v12339_v37  ;;  %7479 = vmatpush.msrb.mxu3 %v13826_v41 }
0x1b39   :  { %7352 = vmatpush.msrb.mxu0 %v13827_v53 }
0x1b3b   :  { %7356 = vmatpush.msrb.mxu0 %v13828_v47 }
0x1b7e   :  { %v6670_v24 = vpop.f32.mrf.mxu1 }
0x1b86   :  { %v6609_v48 = vpop.f32.mrf.mxu0  ;;  %v6708_v50 = vpop.f32.mrf.mxu2 }
0x1b87   :  { %v6671_v57 = vadd.f32 %v6670_v24, %v6609_v48  ;;  %v6813_v22 = vpop.f32.mrf.mxu1 }
0x1b88   :  { %v6739_v32 = vpop.f32.mrf.mxu3 }
0x1b89   :  { %v6709_v52 = vadd.f32 %v6708_v50, %v6671_v57  ;;  %v6574_v57 = vld [vmem:[#allocation2 + $0x8] sm:$0x3] }
0x1b8b   :  { %v6740_v60 = vadd.f32 %v6739_v32, %v6709_v52 }
0x1b8f   :  { %v6846_v29 = vpop.f32.mrf.mxu2 }
0x1b90   :  { %v6784_v63 = vpop.f32.mrf.mxu0 }
0x1b91   :  { %v6785_v10 = vadd.f32 %v6784_v63, %v6740_v60  ;;  %v6976_v51 = vpop.f32.mrf.mxu1 }
0x1b92   :  { %v6907_v19 = vpop.f32.mrf.mxu3 }
0x1b93   :  { %v6814_v21 = vadd.f32 %v6813_v22, %v6785_v10  ;;  %v6908_v34 = vadd.f32 %v6907_v19, %v6846_v29 }
0x1b95   :  { %v7054_v26 = vrot.slane %v6814_v21, 2 }
0x1b97   :  { %v7056_v41 = vadd.f32 %v7054_v26, %v6573_v1 }
0x1b98   :  { %v6945_v53 = vpop.f32.mrf.mxu0 }
0x1b99   :  { %10199 = vtanh.f32 %v7056_v41  ;;  %v6946_v47 = vadd.f32 %v6945_v53, %v6908_v34  ;;  %v7021_v48 = vpop.f32.mrf.mxu2  ;;  %v10006_v34 = vmul.f32 -1.442695, %v7056_v41 }
0x1b9b   :  { %v6977_v18 = vadd.f32 %v6976_v51, %v6946_v47  ;;  %v7050_v58 = vpop.f32.mrf.mxu3 }
0x1b9d   :  { %v7022_v24 = vadd.f32 %v7021_v48, %v6977_v18 }
0x1b9f   :  { %v10200_v50 = vpop.eup %10199  ;;  %v7051_v32 = vadd.f32 %v7050_v58, %v7022_v24 }
0x1ba0   :  { %7083 = vrot.lane.b32.xlu0 %v10200_v50, %s10347_s3 }
0x1ba1   :  { %v7057_v63 = vadd.f32 %v7051_v32, %v6574_v57 }
0x1ba3   :  { %10201 = vtanh.f32 %v7057_v63  ;;  %v10007_v1 = vmul.f32 -1.442695, %v7057_v63 }
0x1ba5   :  { %10203 = vpow2.f32 %v10007_v1 }
0x1ba9   :  { %v10202_v10 = vpop.eup %10201 }
0x1baa   :  { %7123 = vrot.lane.b32.xlu2 %v10202_v10, %s10347_s3 }
0x1bab   :  { %v10204_v19 = vpop.eup %10203 }
0x1bac   :  { %v7101_v29 = vadd.f32 1.0, %v10204_v19 }
0x1bae   :  { %10205 = vrcp.f32 %v7101_v29  ;;  %v7113_v21 = vand.u32 2147483648, %v7101_v29  ;;  %vm7107_vm2 = vweird.f32 %v7101_v29  ;;  %v7111_v26 = vand.u32 2147483647, %v7101_v29 }
0x1baf   :  { %10207 = vpow2.f32 %v10006_v34 }
0x1bb0   :  { %v7114_v50 = vor.u32 1.1754944e-38, %v7113_v21  ;;  %vm7112_vm5 = vcmp.eq.f32.partialorder %v7111_v26, 8.507059e+37 }
0x1bb4   :  { %v10206_v51 = vpop.eup %10205 }
0x1bb5   :  { %v10208_v18 = vpop.eup %10207  ;;  %v7103_v60 = vmul.f32 %v10206_v51, %v7101_v29  ;;  %vm7108_vm1 = vweird.f32 %v10206_v51 }
0x1bb6   :  { %v7061_v53 = vadd.f32 1.0, %v10208_v18  ;;  %vm7109_vm3 = vmor %vm7107_vm2, %vm7108_vm1 }
0x1bb7   :  { %v7104_v58 = vsub.f32 1.0, %v7103_v60 }
0x1bb8   :  { %10209 = vrcp.f32 %v7061_v53  ;;  %v7073_v19 = vand.u32 2147483648, %v7061_v53  ;;  %vm7067_vm4 = vweird.f32 %v7061_v53  ;;  %v7071_v34 = vand.u32 2147483647, %v7061_v53 }
0x1bb9   :  { %v7105_v47 = vmul.f32 %v10206_v51, %v7104_v58 }
0x1bba   :  { %v7074_v29 = vor.u32 1.1754944e-38, %v7073_v19  ;;  %vm7072_vm13 = vcmp.eq.f32.partialorder %v7071_v34, 8.507059e+37 }
0x1bbb   :  { %v7106_v22 = vadd.f32 %v10206_v51, %v7105_v47  ;;  %v7079_v47 = vrot.slane %v12598_v33, 6 }
0x1bbd   :  { %v7110_v24 = vsel %vm7109_vm3, %v10206_v51, %v7106_v22 }
0x1bbe   :  { %v10210_v52 = vpop.eup %10209  ;;  %v7115_v57 = vsel %vm7112_vm5, %v7114_v50, %v7110_v24 }
0x1bbf   :  { %v7063_v48 = vmul.f32 %v10210_v52, %v7061_v53  ;;  %vm7068_vm10 = vweird.f32 %v10210_v52 }
0x1bc0   :  { %vm7069_vm0 = vmor %vm7067_vm4, %vm7068_vm10 }
0x1bc1   :  { %v7064_v41 = vsub.f32 1.0, %v7063_v48  ;;  %v7119_v48 = vrot.slane %v12593_v38, 2 }
0x1bc3   :  { %v7065_v10 = vmul.f32 %v10210_v52, %v7064_v41  ;;  %v7121_v24 = vmul.f32 %v7119_v48, %v7115_v57  ;;  %v13831_v48 = vld [vmem:[#allocation21_spill] sm:$0xff] }
0x1bc5   :  { %v7066_v1 = vadd.f32 %v10210_v52, %v7065_v10 }
0x1bc7   :  { %v7070_v18 = vsel %vm7069_vm0, %v10210_v52, %v7066_v1 }
0x1bc8   :  { %v7075_v51 = vsel %vm7072_vm13, %v7074_v29, %v7070_v18 }
0x1bc9   :  { %v7081_v22 = vmul.f32 %v7079_v47, %v7075_v51 }
0x1c04   :  { %v7124_v32 = vpop.permute.xlu2 %7123 }
0x1c05   :  { %v7126_v63 = vmul.f32 %v7124_v32, %v7115_v57 }
0x1c07   :  { %7128 = vrot.lane.b32.xlu1 %v7126_v63, %s10348_s16 }
0x1c12   :  { %v7084_v60 = vpop.permute.xlu0 %7083 }
0x1c13   :  { %v7086_v58 = vmul.f32 %v7084_v60, %v7075_v51 }
0x1c15   :  { %7088 = vrot.lane.b32.xlu2 %v7086_v58, %s10348_s16 }
0x1c6f   :  { %v7089_v21 = vpop.permute.xlu2 %7088 }
0x1c70   :  { %v12707_v26 = vadd.f32 %v7089_v21, %v7081_v22  ;;  %v13829_v22 = vld [vmem:[#allocation22_spill] sm:$0xff]  ;;  %v13830_v21 = vld [vmem:[#allocation24_spill] sm:$0xff] }
0x1c72   :  { %10211 = vtanh.f32 %v12707_v26 }
0x1c78   :  { %v10212_v53 = vpop.eup %10211 }
0x1c79   :  { %v7129_v52 = vpop.permute.xlu1 %7128  ;;  %7094 = vrot.lane.b32.xlu1 %v10212_v53, %s10347_s3  ;;  %v13832_v53 = vld [vmem:[#allocation37_spill] sm:$0xff] }
0x1c7a   :  { %v12712_v50 = vadd.f32 %v7129_v52, %v7121_v24  ;;  %v13833_v24 = vld [vmem:[#allocation33_spill] sm:$0xff]  ;;  %v13834_v52 = vld [vmem:[#allocation14_spill] sm:$0xff] }
0x1c7c   :  { %10213 = vtanh.f32 %v12712_v50 }
0x1c82   :  { %v10214_v41 = vpop.eup %10213 }
0x1c83   :  { %7134 = vrot.lane.b32.xlu0 %v10214_v41, %s10347_s3  ;;  %v13835_v41 = vld [vmem:[#allocation34_spill] sm:$0xff] }
0x1ceb   :  { %v7095_v33 = vpop.permute.xlu1 %7094 }
0x1cec   :  { %v7097_v32 = vmul.f32 %v7095_v33, %v7075_v51  ;;  %v13836_v33 = vld [vmem:[#allocation19_spill] sm:$0xff] }
0x1cee   :  { %7139 = vrot.lane.b32.xlu2 %v7097_v32, %s10348_s16  ;;  %v13837_v32 = vld [vmem:[#allocation36_spill] sm:$0xff] }
0x1cf5   :  { %v7135_v63 = vpop.permute.xlu0 %7134 }
0x1cf6   :  { %v7137_v10 = vmul.f32 %v7135_v63, %v7115_v57  ;;  %v13838_v63 = vld [vmem:[#allocation23_spill] sm:$0xff] }
0x1cf8   :  { %v7143_v1 = vrot.slane %v7137_v10, 2  ;;  %v13839_v10 = vld [vmem:[#allocation30_spill] sm:$0xff] }
0x1cfa   :  { %7144 = vrot.lane.b32.xlu0 %v7143_v1, %s10347_s3  ;;  %v13840_v1 = vld [vmem:[#allocation25_spill] sm:$0xff] }
0x1d48   :  { %v7140_v38 = vpop.permute.xlu2 %7139 }
0x1d6c   :  { %v7145_v19 = vpop.permute.xlu0 %7144 }
0x1d6d   :  { %v7147_v34 = vsel %vm665_vm9, %v7140_v38, %v7145_v19  ;;  %v13841_v38 = vld [vmem:[#allocation31_spill] sm:$0xff]  ;;  %v13842_v19 = vld [vmem:[#allocation26_spill] sm:$0xff] }
0x1d6e   :  { %v7151_v18 = vrot.slane %v7147_v34, 6  ;;  %v13843_v34 = vld [vmem:[#allocation16_spill] sm:$0xff] }
0x1d70   :  { %v7152_v29 = vsel %vm676_vm11, %v7151_v18, 0  ;;  %v13844_v18 = vld [vmem:[#allocation39_spill] sm:$0xff] }
0x1d71   :  { %v7178_v60 = vand.u32 4294901760, %v7152_v29 }
0x1d73   :  { %v7179_v58 = vsub.f32 %v7152_v29, %v7178_v60  ;;  %7244 = vmatmul.f32.vlgmr.msra.gmra.mxu1 %v7178_v60  ;;  %v13845_v29 = vld [vmem:[#allocation32_spill] sm:$0xff] }
0x1d74   :  { %7532 = vmatpush.msra.mxu1 %v12192_v0 }
0x1d75   :  { %7282 = vmatmul.f32.vlgmr.msra.gmra.mxu2 %v7179_v58  ;;  %v7180_v51 = vand.u32 4294901760, %v7179_v58 }
0x1d76   :  { %7534 = vmatpush.msra.mxu1 %v12194_v4  ;;  %7565 = vmatpush.msra.mxu2 %v12227_v16 }
0x1d77   :  { %7313 = vmatmul.f32.vlgmr.msra.gmra.mxu3 %v7180_v51  ;;  %v7181_v57 = vsub.f32 %v7179_v58, %v7180_v51 }
0x1d78   :  { %7536 = vmatpush.msra.mxu1 %v12196_v46  ;;  %7569 = vmatpush.msra.mxu2 %v12230_v54 }
0x1d79   :  { %7608 = vmatpush.msra.mxu3 %v12192_v0  ;;  %v7182_v47 = vand.u32 4294901760, %v7181_v57  ;;  %v13849_v57 = vld [vmem:[#allocation18_spill] sm:$0xff] }
0x1d7a   :  { %7538 = vmatpush.msra.mxu1 %v12275_v23  ;;  %7573 = vmatpush.msra.mxu2 %v12233_v55 }
0x1d7b   :  { %7610 = vmatpush.msra.mxu3 %v12194_v4  ;;  %7183 = vmatmul.f32.vlgmr.msra.gmra.mxu0 %v7182_v47 }
0x1d7c   :  { %7387 = vmatmul.f32.vlgmr.msrb.gmra.mxu1 %v7178_v60  ;;  %7495 = vmatpush.msra.mxu0 %v12210_v6 }
0x1d7d   :  { %7540 = vmatpush.msra.mxu1 %v12297_v36  ;;  %7577 = vmatpush.msra.mxu2 %v12307_v25 }
0x1d7e   :  { %7612 = vmatpush.msra.mxu3 %v12196_v46  ;;  %7420 = vmatmul.f32.vlgmr.msrb.gmra.mxu2 %v7182_v47  ;;  %v13850_v47 = vld [vmem:[#allocation38_spill] sm:$0xff] }
0x1d7f   :  { %7498 = vmatpush.msra.mxu0 %v12213_v39  ;;  %7542 = vmatpush.msra.mxu1 %v12309_v28 }
0x1d80   :  { %7581 = vmatpush.msra.mxu2 %v12321_v7  ;;  %7614 = vmatpush.msra.mxu3 %v12275_v23 }
0x1d81   :  { %7481 = vmatmul.f32.vlgmr.msrb.gmra.mxu3 %v7178_v60  ;;  %7501 = vmatpush.msra.mxu0 %v12216_v8 }
0x1d82   :  { %7544 = vmatpush.msra.mxu1 %v12323_v3  ;;  %7585 = vmatpush.msra.mxu2 %v12337_v30 }
0x1d83   :  { %7616 = vmatpush.msra.mxu3 %v12297_v36  ;;  %7504 = vmatpush.msra.mxu0 %v12300_v62 }
0x1d84   :  { %7546 = vmatpush.msra.mxu1 %v12339_v37  ;;  %7589 = vmatpush.msra.mxu2 %v12354_v9 }
0x1d85   :  { %7618 = vmatpush.msra.mxu3 %v12309_v28  ;;  %7358 = vmatmul.f32.vlgmr.msrb.gmra.mxu0 %v7178_v60 }
0x1d86   :  { %7550 = vmatmul.f32.vlgmr.msra.gmra.mxu1 %v7180_v51  ;;  %7507 = vmatpush.msra.mxu0 %v12312_v15  ;;  %v13848_v51 = vld [vmem:[#allocation29_spill] sm:$0xff] }
0x1d87   :  { %7593 = vmatpush.msra.mxu2 %v12360_v17  ;;  %7620 = vmatpush.msra.mxu3 %v12323_v3 }
0x1d88   :  { %7595 = vmatmul.f32.vlgmr.msra.gmra.mxu2 %v7178_v60  ;;  %7510 = vmatpush.msra.mxu0 %v12326_v56 }
0x1d89   :  { %7622 = vmatpush.msra.mxu3 %v12339_v37  ;;  %7774 = vmatpush.msrb.mxu1 %v12174_v27 }
0x1d8a   :  { %7624 = vmatmul.f32.vlgmr.msra.gmra.mxu3 %v7178_v60  ;;  %7513 = vmatpush.msra.mxu0 %v12342_v61  ;;  %v13846_v60 = vld [vmem:[#allocation12_spill] sm:$0xff] }
0x1d8b   :  { %7780 = vmatpush.msrb.mxu1 %v12176_v42  ;;  %7832 = vmatpush.msrb.mxu2 %v12106_v5 }
0x1d8c   :  { %7516 = vmatpush.msra.mxu0 %v12351_v35  ;;  %7869 = vmatpush.msrb.mxu3 %v12078_v45 }
0x1d8d   :  { %7519 = vmatmul.f32.vlgmr.msra.gmra.mxu0 %v7179_v58  ;;  %7786 = vmatpush.msrb.mxu1 %v12189_v59  ;;  %v13847_v58 = vld [vmem:[#allocation17_spill] sm:$0xff] }
0x1d8e   :  { %7835 = vmatpush.msrb.mxu2 %v12109_v40  ;;  %7871 = vmatpush.msrb.mxu3 %v12080_v31 }
0x1d8f   :  { %7792 = vmatpush.msrb.mxu1 %v12206_v2  ;;  %7737 = vmatpush.msrb.mxu0 %v12078_v45 }
0x1d90   :  { %7838 = vmatpush.msrb.mxu2 %v12112_v49  ;;  %7873 = vmatpush.msrb.mxu3 %v12082_v13 }
0x1d91   :  { %7798 = vmatpush.msrb.mxu1 %v12223_v12  ;;  %7739 = vmatpush.msrb.mxu0 %v12080_v31 }
0x1d92   :  { %7841 = vmatpush.msrb.mxu2 %v12119_v43  ;;  %7875 = vmatpush.msrb.mxu3 %v12093_v14 }
0x1d93   :  { %7804 = vmatpush.msrb.mxu1 %v12240_v20  ;;  %7741 = vmatpush.msrb.mxu0 %v12082_v13 }
0x1d94   :  { %7844 = vmatpush.msrb.mxu2 %v12122_v44  ;;  %7877 = vmatpush.msrb.mxu3 %v12095_v11 }
0x1d95   :  { %7810 = vmatpush.msrb.mxu1 %v13829_v22  ;;  %7743 = vmatpush.msrb.mxu0 %v12093_v14 }
0x1d96   :  { %7847 = vmatpush.msrb.mxu2 %v13830_v21  ;;  %7879 = vmatpush.msrb.mxu3 %v13831_v48 }
0x1d97   :  { %7816 = vmatpush.msrb.mxu1 %v13832_v53  ;;  %7745 = vmatpush.msrb.mxu0 %v12095_v11 }
0x1d98   :  { %7850 = vmatpush.msrb.mxu2 %v13833_v24  ;;  %7881 = vmatpush.msrb.mxu3 %v13834_v52 }
0x1d99   :  { %7945 = vmatpush.msra.mxu1 %v12078_v45  ;;  %7747 = vmatpush.msrb.mxu0 %v13831_v48 }
0x1d9a   :  { %7853 = vmatpush.msrb.mxu2 %v13835_v41  ;;  %7883 = vmatpush.msrb.mxu3 %v13836_v33 }
0x1d9b   :  { %7947 = vmatpush.msra.mxu1 %v12080_v31  ;;  %7749 = vmatpush.msrb.mxu0 %v13834_v52 }
0x1d9c   :  { %7974 = vmatpush.msra.mxu2 %v12192_v0  ;;  %8011 = vmatpush.msra.mxu3 %v13837_v32 }
0x1d9d   :  { %7949 = vmatpush.msra.mxu1 %v12082_v13  ;;  %7751 = vmatpush.msrb.mxu0 %v13836_v33 }
0x1d9e   :  { %7976 = vmatpush.msra.mxu2 %v12194_v4  ;;  %8017 = vmatpush.msra.mxu3 %v13838_v63 }
0x1d9f   :  { %7951 = vmatpush.msra.mxu1 %v12093_v14  ;;  %7902 = vmatpush.msra.mxu0 %v13839_v10 }
0x1da0   :  { %7978 = vmatpush.msra.mxu2 %v12196_v46  ;;  %8023 = vmatpush.msra.mxu3 %v13840_v1 }
0x1da1   :  { %7953 = vmatpush.msra.mxu1 %v12095_v11  ;;  %7906 = vmatpush.msra.mxu0 %v13841_v38 }
0x1da2   :  { %7980 = vmatpush.msra.mxu2 %v12275_v23  ;;  %8029 = vmatpush.msra.mxu3 %v13842_v19 }
0x1da3   :  { %7955 = vmatpush.msra.mxu1 %v13831_v48  ;;  %7910 = vmatpush.msra.mxu0 %v13843_v34  ;;  %v13851_v34 = vld [vmem:[#allocation20_spill] sm:$0xff] }
0x1da4   :  { %7982 = vmatpush.msra.mxu2 %v12297_v36  ;;  %8035 = vmatpush.msra.mxu3 %v13844_v18  ;;  %v13852_v18 = vld [vmem:[#allocation35_spill] sm:$0xff] }
0x1da5   :  { %7957 = vmatpush.msra.mxu1 %v13834_v52  ;;  %7914 = vmatpush.msra.mxu0 %v13845_v29  ;;  %v7148_v52 = vld [vmem:[#allocation2 + $0x18] sm:$0x3] }
0x1da6   :  { %7984 = vmatpush.msra.mxu2 %v12309_v28  ;;  %8041 = vmatpush.msra.mxu3 %v13846_v60 }
0x1da7   :  { %7959 = vmatpush.msra.mxu1 %v13836_v33  ;;  %7918 = vmatpush.msra.mxu0 %v13847_v58 }
0x1da8   :  { %7986 = vmatpush.msra.mxu2 %v12323_v3  ;;  %8047 = vmatpush.msra.mxu3 %v13848_v51 }
0x1da9   :  { %7922 = vmatpush.msra.mxu0 %v13849_v57 }
0x1daa   :  { %7988 = vmatpush.msra.mxu2 %v12339_v37  ;;  %8053 = vmatpush.msra.mxu3 %v13850_v47 }
0x1dab   :  { %7926 = vmatpush.msra.mxu0 %v13851_v34 }
0x1dad   :  { %7930 = vmatpush.msra.mxu0 %v13852_v18 }
0x1df0   :  { %v7245_v29 = vpop.f32.mrf.mxu1 }
0x1df8   :  { %v7184_v19 = vpop.f32.mrf.mxu0  ;;  %v7283_v1 = vpop.f32.mrf.mxu2 }
0x1df9   :  { %v7246_v38 = vadd.f32 %v7245_v29, %v7184_v19  ;;  %v7388_v58 = vpop.f32.mrf.mxu1 }
0x1dfa   :  { %v7314_v10 = vpop.f32.mrf.mxu3 }
0x1dfb   :  { %v7284_v60 = vadd.f32 %v7283_v1, %v7246_v38 }
0x1dfd   :  { %v7315_v63 = vadd.f32 %v7314_v10, %v7284_v60 }
0x1e01   :  { %v7421_v41 = vpop.f32.mrf.mxu2 }
0x1e02   :  { %v7359_v32 = vpop.f32.mrf.mxu0 }
0x1e03   :  { %v7360_v33 = vadd.f32 %v7359_v32, %v7315_v63  ;;  %v7551_v18 = vpop.f32.mrf.mxu1  ;;  %v7149_v32 = vld [vmem:[#allocation2] sm:$0xc0] }
0x1e04   :  { %v7482_v57 = vpop.f32.mrf.mxu3 }
0x1e05   :  { %v7389_v51 = vadd.f32 %v7388_v58, %v7360_v33  ;;  %v7483_v47 = vadd.f32 %v7482_v57, %v7421_v41 }
0x1e07   :  { %v7628_v24 = vadd.f32 %v7389_v51, %v7148_v52 }
0x1e09   :  { %10215 = vtanh.f32 %v7628_v24  ;;  %v10008_v52 = vmul.f32 -1.442695, %v7628_v24 }
0x1e0a   :  { %v7520_v34 = vpop.f32.mrf.mxu0 }
0x1e0b   :  { %v7521_v53 = vadd.f32 %v7520_v34, %v7483_v47  ;;  %v7596_v21 = vpop.f32.mrf.mxu2 }
0x1e0d   :  { %v7552_v48 = vadd.f32 %v7551_v18, %v7521_v53  ;;  %v7625_v22 = vpop.f32.mrf.mxu3 }
0x1e0f   :  { %v10216_v19 = vpop.eup %10215  ;;  %v7597_v29 = vadd.f32 %v7596_v21, %v7552_v48 }
0x1e10   :  { %7658 = vrot.lane.b32.xlu2 %v10216_v19, %s10347_s3 }
0x1e11   :  { %v7626_v10 = vadd.f32 %v7625_v22, %v7597_v29 }
0x1e13   :  { %v7630_v1 = vrot.slane %v7626_v10, 2 }
0x1e15   :  { %v7632_v63 = vadd.f32 %v7630_v1, %v7149_v32 }
0x1e17   :  { %10217 = vtanh.f32 %v7632_v63  ;;  %v10009_v48 = vmul.f32 -1.442695, %v7632_v63 }
0x1e18   :  { %10219 = vpow2.f32 %v10008_v52 }
0x1e1d   :  { %v10218_v33 = vpop.eup %10217 }
0x1e1e   :  { %7698 = vrot.lane.b32.xlu1 %v10218_v33, %s10347_s3  ;;  %v10220_v41 = vpop.eup %10219 }
0x1e1f   :  { %v7636_v38 = vadd.f32 1.0, %v10220_v41 }
0x1e21   :  { %10221 = vrcp.f32 %v7636_v38  ;;  %v7648_v22 = vand.u32 2147483648, %v7636_v38  ;;  %vm7642_vm7 = vweird.f32 %v7636_v38  ;;  %v7646_v58 = vand.u32 2147483647, %v7636_v38 }
0x1e22   :  { %10223 = vpow2.f32 %v10009_v48 }
0x1e23   :  { %v7649_v57 = vor.u32 1.1754944e-38, %v7648_v22  ;;  %vm7647_vm12 = vcmp.eq.f32.partialorder %v7646_v58, 8.507059e+37 }
0x1e27   :  { %v10222_v53 = vpop.eup %10221 }
0x1e28   :  { %v7638_v34 = vmul.f32 %v10222_v53, %v7636_v38  ;;  %vm7643_vm6 = vweird.f32 %v10222_v53  ;;  %v10224_v29 = vpop.eup %10223 }
0x1e29   :  { %vm7644_vm8 = vmor %vm7642_vm7, %vm7643_vm6  ;;  %v7676_v10 = vadd.f32 1.0, %v10224_v29 }
0x1e2a   :  { %v7639_v18 = vsub.f32 1.0, %v7638_v34 }
0x1e2b   :  { %10225 = vrcp.f32 %v7676_v10  ;;  %v7688_v41 = vand.u32 2147483648, %v7676_v10  ;;  %vm7682_vm15 = vweird.f32 %v7676_v10  ;;  %v7686_v38 = vand.u32 2147483647, %v7676_v10 }
0x1e2c   :  { %v7640_v21 = vmul.f32 %v10222_v53, %v7639_v18 }
0x1e2d   :  { %v7689_v34 = vor.u32 1.1754944e-38, %v7688_v41  ;;  %vm7687_vm2 = vcmp.eq.f32.partialorder %v7686_v38, 8.507059e+37 }
0x1e2e   :  { %v7641_v60 = vadd.f32 %v10222_v53, %v7640_v21 }
0x1e30   :  { %v7645_v51 = vsel %vm7644_vm8, %v10222_v53, %v7641_v60  ;;  %v7654_v60 = vrot.slane %v12707_v26, 6 }
0x1e31   :  { %v7650_v47 = vsel %vm7647_vm12, %v7649_v57, %v7645_v51  ;;  %v10226_v1 = vpop.eup %10225 }
0x1e32   :  { %v7678_v32 = vmul.f32 %v10226_v1, %v7676_v10  ;;  %vm7683_vm14 = vweird.f32 %v10226_v1  ;;  %v7656_v22 = vmul.f32 %v7654_v60, %v7650_v47  ;;  %v13853_v60 = vld [vmem:[#allocation22_spill] sm:$0xff] }
0x1e33   :  { %vm7684_vm1 = vmor %vm7682_vm15, %vm7683_vm14 }
0x1e34   :  { %v7679_v63 = vsub.f32 1.0, %v7678_v32 }
0x1e36   :  { %v7680_v33 = vmul.f32 %v10226_v1, %v7679_v63 }
0x1e38   :  { %v7681_v52 = vadd.f32 %v10226_v1, %v7680_v33 }
0x1e3a   :  { %v7685_v53 = vsel %vm7684_vm1, %v10226_v1, %v7681_v52 }
0x1e3b   :  { %v7690_v21 = vsel %vm7687_vm2, %v7689_v34, %v7685_v53 }
0x1e6a   :  { %v7659_v24 = vpop.permute.xlu2 %7658 }
0x1e6b   :  { %v7661_v19 = vmul.f32 %v7659_v24, %v7650_v47  ;;  %v7694_v24 = vrot.slane %v12712_v50, 2 }
0x1e6d   :  { %7663 = vrot.lane.b32.xlu1 %v7661_v19, %s10348_s16  ;;  %v7696_v19 = vmul.f32 %v7694_v24, %v7690_v21  ;;  %v13857_v24 = vld [vmem:[#allocation33_spill] sm:$0xff] }
0x1e90   :  { %v7699_v18 = vpop.permute.xlu1 %7698 }
0x1e91   :  { %v7701_v48 = vmul.f32 %v7699_v18, %v7690_v21 }
0x1e93   :  { %7703 = vrot.lane.b32.xlu0 %v7701_v48, %s10348_s16 }
0x1edf   :  { %v7664_v58 = vpop.permute.xlu1 %7663 }
0x1ee0   :  { %v12821_v51 = vadd.f32 %v7664_v58, %v7656_v22  ;;  %v13854_v22 = vld [vmem:[#allocation24_spill] sm:$0xff]  ;;  %v13855_v58 = vld [vmem:[#allocation21_spill] sm:$0xff] }
0x1ee2   :  { %10227 = vtanh.f32 %v12821_v51 }
0x1ee8   :  { %v10228_v57 = vpop.eup %10227 }
0x1ee9   :  { %7669 = vrot.lane.b32.xlu0 %v10228_v57, %s10347_s3  ;;  %v13856_v57 = vld [vmem:[#allocation37_spill] sm:$0xff] }
0x1f05   :  { %v7704_v29 = vpop.permute.xlu0 %7703 }
0x1f06   :  { %v12826_v10 = vadd.f32 %v7704_v29, %v7696_v19  ;;  %v13858_v19 = vld [vmem:[#allocation14_spill] sm:$0xff] }
0x1f07   :  { %v13859_v29 = vld [vmem:[#allocation34_spill] sm:$0xff] }
0x1f08   :  { %10229 = vtanh.f32 %v12826_v10 }
0x1f0e   :  { %v10230_v1 = vpop.eup %10229 }
0x1f0f   :  { %7709 = vrot.lane.b32.xlu2 %v10230_v1, %s10347_s3  ;;  %v13860_v1 = vld [vmem:[#allocation19_spill] sm:$0xff] }
0x1f5b   :  { %v7670_v26 = vpop.permute.xlu0 %7669 }
0x1f5c   :  { %v7672_v32 = vmul.f32 %v7670_v26, %v7650_v47  ;;  %v13861_v26 = vld [vmem:[#allocation36_spill] sm:$0xff] }
0x1f5e   :  { %7714 = vrot.lane.b32.xlu1 %v7672_v32, %s10348_s16  ;;  %v13862_v32 = vld [vmem:[#allocation23_spill] sm:$0xff] }
0x1f69   :  { %v7710_v63 = vpop.permute.xlu2 %7709 }
0x1f6a   :  { %v7712_v33 = vmul.f32 %v7710_v63, %v7690_v21  ;;  %v13863_v63 = vld [vmem:[#allocation30_spill] sm:$0xff] }
0x1f6c   :  { %v7718_v52 = vrot.slane %v7712_v33, 6  ;;  %v13864_v33 = vld [vmem:[#allocation25_spill] sm:$0xff] }
0x1f6e   :  { %7719 = vrot.lane.b32.xlu2 %v7718_v52, %s10347_s3  ;;  %v13865_v52 = vld [vmem:[#allocation31_spill] sm:$0xff] }
0x1fc8   :  { %v7720_v41 = vpop.permute.xlu2 %7719 }
0x1fd0   :  { %v7715_v50 = vpop.permute.xlu1 %7714 }
0x1fd1   :  { %v7722_v38 = vsel %vm665_vm9, %v7715_v50, %v7720_v41  ;;  %v13866_v41 = vld [vmem:[#allocation26_spill] sm:$0xff]  ;;  %v13867_v50 = vld [vmem:[#allocation16_spill] sm:$0xff] }
0x1fd2   :  { %v7726_v53 = vsel %vm676_vm11, %v7722_v38, 0  ;;  %v13868_v38 = vld [vmem:[#allocation39_spill] sm:$0xff] }
0x1fd3   :  { %v7752_v34 = vand.u32 4294901760, %v7726_v53 }
0x1fd5   :  { %v7753_v18 = vsub.f32 %v7726_v53, %v7752_v34  ;;  %7818 = vmatmul.f32.vlgmr.msrb.gmra.mxu1 %v7752_v34  ;;  %v13869_v53 = vld [vmem:[#allocation32_spill] sm:$0xff] }
0x1fd6   :  { %8106 = vmatpush.msrb.mxu1 %v12192_v0 }
0x1fd7   :  { %v7754_v48 = vand.u32 4294901760, %v7753_v18  ;;  %7856 = vmatmul.f32.vlgmr.msrb.gmra.mxu2 %v7753_v18 }
0x1fd8   :  { %8108 = vmatpush.msrb.mxu1 %v12194_v4  ;;  %8139 = vmatpush.msrb.mxu2 %v12227_v16 }
0x1fd9   :  { %v7755_v47 = vsub.f32 %v7753_v18, %v7754_v48  ;;  %7887 = vmatmul.f32.vlgmr.msrb.gmra.mxu3 %v7754_v48 }
0x1fda   :  { %8110 = vmatpush.msrb.mxu1 %v12196_v46  ;;  %8143 = vmatpush.msrb.mxu2 %v12230_v54 }
0x1fdb   :  { %8182 = vmatpush.msrb.mxu3 %v12192_v0  ;;  %v7756_v21 = vand.u32 4294901760, %v7755_v47  ;;  %v13873_v47 = vld [vmem:[#allocation18_spill] sm:$0xff] }
0x1fdc   :  { %8112 = vmatpush.msrb.mxu1 %v12275_v23  ;;  %8147 = vmatpush.msrb.mxu2 %v12233_v55 }
0x1fdd   :  { %8184 = vmatpush.msrb.mxu3 %v12194_v4  ;;  %7757 = vmatmul.f32.vlgmr.msrb.gmra.mxu0 %v7756_v21 }
0x1fde   :  { %7961 = vmatmul.f32.vlgmr.msra.gmra.mxu1 %v7752_v34  ;;  %8069 = vmatpush.msrb.mxu0 %v12210_v6 }
0x1fdf   :  { %8114 = vmatpush.msrb.mxu1 %v12297_v36  ;;  %8151 = vmatpush.msrb.mxu2 %v12307_v25 }
0x1fe0   :  { %8186 = vmatpush.msrb.mxu3 %v12196_v46  ;;  %7994 = vmatmul.f32.vlgmr.msra.gmra.mxu2 %v7756_v21  ;;  %v13874_v21 = vld [vmem:[#allocation38_spill] sm:$0xff] }
0x1fe1   :  { %8072 = vmatpush.msrb.mxu0 %v12213_v39  ;;  %8116 = vmatpush.msrb.mxu1 %v12309_v28 }
0x1fe2   :  { %8155 = vmatpush.msrb.mxu2 %v12321_v7  ;;  %8188 = vmatpush.msrb.mxu3 %v12275_v23 }
0x1fe3   :  { %8055 = vmatmul.f32.vlgmr.msra.gmra.mxu3 %v7752_v34  ;;  %8075 = vmatpush.msrb.mxu0 %v12216_v8 }
0x1fe4   :  { %8118 = vmatpush.msrb.mxu1 %v12323_v3  ;;  %8159 = vmatpush.msrb.mxu2 %v12337_v30 }
0x1fe5   :  { %8190 = vmatpush.msrb.mxu3 %v12297_v36  ;;  %8078 = vmatpush.msrb.mxu0 %v12300_v62 }
0x1fe6   :  { %8120 = vmatpush.msrb.mxu1 %v12339_v37  ;;  %8163 = vmatpush.msrb.mxu2 %v12354_v9 }
0x1fe7   :  { %8192 = vmatpush.msrb.mxu3 %v12309_v28  ;;  %7932 = vmatmul.f32.vlgmr.msra.gmra.mxu0 %v7752_v34 }
0x1fe8   :  { %8124 = vmatmul.f32.vlgmr.msrb.gmra.mxu1 %v7754_v48  ;;  %8081 = vmatpush.msrb.mxu0 %v12312_v15  ;;  %v13872_v48 = vld [vmem:[#allocation29_spill] sm:$0xff] }
0x1fe9   :  { %8167 = vmatpush.msrb.mxu2 %v12360_v17  ;;  %8194 = vmatpush.msrb.mxu3 %v12323_v3 }
0x1fea   :  { %8169 = vmatmul.f32.vlgmr.msrb.gmra.mxu2 %v7752_v34  ;;  %8084 = vmatpush.msrb.mxu0 %v12326_v56 }
0x1feb   :  { %8196 = vmatpush.msrb.mxu3 %v12339_v37  ;;  %8352 = vmatpush.msra.mxu1 %v12174_v27 }
0x1fec   :  { %8198 = vmatmul.f32.vlgmr.msrb.gmra.mxu3 %v7752_v34  ;;  %8087 = vmatpush.msrb.mxu0 %v12342_v61  ;;  %v13870_v34 = vld [vmem:[#allocation12_spill] sm:$0xff] }
0x1fed   :  { %8358 = vmatpush.msra.mxu1 %v12176_v42  ;;  %8410 = vmatpush.msra.mxu2 %v12106_v5 }
0x1fee   :  { %8090 = vmatpush.msrb.mxu0 %v12351_v35  ;;  %8447 = vmatpush.msra.mxu3 %v12078_v45 }
0x1fef   :  { %8093 = vmatmul.f32.vlgmr.msrb.gmra.mxu0 %v7753_v18  ;;  %8364 = vmatpush.msra.mxu1 %v12189_v59  ;;  %v13871_v18 = vld [vmem:[#allocation17_spill] sm:$0xff] }
0x1ff0   :  { %8413 = vmatpush.msra.mxu2 %v12109_v40  ;;  %8449 = vmatpush.msra.mxu3 %v12080_v31 }
0x1ff1   :  { %8370 = vmatpush.msra.mxu1 %v12206_v2  ;;  %8315 = vmatpush.msra.mxu0 %v12078_v45 }
0x1ff2   :  { %8416 = vmatpush.msra.mxu2 %v12112_v49  ;;  %8451 = vmatpush.msra.mxu3 %v12082_v13 }
0x1ff3   :  { %8376 = vmatpush.msra.mxu1 %v12223_v12  ;;  %8317 = vmatpush.msra.mxu0 %v12080_v31 }
0x1ff4   :  { %8419 = vmatpush.msra.mxu2 %v12119_v43  ;;  %8453 = vmatpush.msra.mxu3 %v12093_v14 }
0x1ff5   :  { %8382 = vmatpush.msra.mxu1 %v12240_v20  ;;  %8319 = vmatpush.msra.mxu0 %v12082_v13 }
0x1ff6   :  { %8422 = vmatpush.msra.mxu2 %v12122_v44  ;;  %8455 = vmatpush.msra.mxu3 %v12095_v11 }
0x1ff7   :  { %8388 = vmatpush.msra.mxu1 %v13853_v60  ;;  %8321 = vmatpush.msra.mxu0 %v12093_v14 }
0x1ff8   :  { %8425 = vmatpush.msra.mxu2 %v13854_v22  ;;  %8457 = vmatpush.msra.mxu3 %v13855_v58 }
0x1ff9   :  { %8394 = vmatpush.msra.mxu1 %v13856_v57  ;;  %8323 = vmatpush.msra.mxu0 %v12095_v11 }
0x1ffa   :  { %8428 = vmatpush.msra.mxu2 %v13857_v24  ;;  %8459 = vmatpush.msra.mxu3 %v13858_v19  ;;  %v7723_v24 = vld [vmem:[#allocation2 + $0x18] sm:$0xc] }
0x1ffb   :  { %8523 = vmatpush.msrb.mxu1 %v12078_v45  ;;  %8325 = vmatpush.msra.mxu0 %v13855_v58 }
0x1ffc   :  { %8431 = vmatpush.msra.mxu2 %v13859_v29  ;;  %8461 = vmatpush.msra.mxu3 %v13860_v1 }
0x1ffd   :  { %8525 = vmatpush.msrb.mxu1 %v12080_v31  ;;  %8327 = vmatpush.msra.mxu0 %v13858_v19 }
0x1ffe   :  { %8552 = vmatpush.msrb.mxu2 %v12192_v0  ;;  %8589 = vmatpush.msrb.mxu3 %v13861_v26  ;;  %v13875_v26 = vld [vmem:[#allocation20_spill] sm:$0xff] }
0x1fff   :  { %8527 = vmatpush.msrb.mxu1 %v12082_v13  ;;  %8329 = vmatpush.msra.mxu0 %v13860_v1 }
0x2000   :  { %8554 = vmatpush.msrb.mxu2 %v12194_v4  ;;  %8595 = vmatpush.msrb.mxu3 %v13862_v32  ;;  %v13876_v32 = vld [vmem:[#allocation35_spill] sm:$0xff] }
0x2001   :  { %8529 = vmatpush.msrb.mxu1 %v12093_v14  ;;  %8480 = vmatpush.msrb.mxu0 %v13863_v63 }
0x2002   :  { %8556 = vmatpush.msrb.mxu2 %v12196_v46  ;;  %8601 = vmatpush.msrb.mxu3 %v13864_v33 }
0x2003   :  { %8531 = vmatpush.msrb.mxu1 %v12095_v11  ;;  %8484 = vmatpush.msrb.mxu0 %v13865_v52 }
0x2004   :  { %8558 = vmatpush.msrb.mxu2 %v12275_v23  ;;  %8607 = vmatpush.msrb.mxu3 %v13866_v41 }
0x2005   :  { %8533 = vmatpush.msrb.mxu1 %v13855_v58  ;;  %8488 = vmatpush.msrb.mxu0 %v13867_v50 }
0x2006   :  { %8560 = vmatpush.msrb.mxu2 %v12297_v36  ;;  %8613 = vmatpush.msrb.mxu3 %v13868_v38 }
0x2007   :  { %8535 = vmatpush.msrb.mxu1 %v13858_v19  ;;  %8492 = vmatpush.msrb.mxu0 %v13869_v53 }
0x2008   :  { %8562 = vmatpush.msrb.mxu2 %v12309_v28  ;;  %8619 = vmatpush.msrb.mxu3 %v13870_v34 }
0x2009   :  { %8537 = vmatpush.msrb.mxu1 %v13860_v1  ;;  %8496 = vmatpush.msrb.mxu0 %v13871_v18 }
0x200a   :  { %8564 = vmatpush.msrb.mxu2 %v12323_v3  ;;  %8625 = vmatpush.msrb.mxu3 %v13872_v48 }
0x200b   :  { %8500 = vmatpush.msrb.mxu0 %v13873_v47 }
0x200c   :  { %8566 = vmatpush.msrb.mxu2 %v12339_v37  ;;  %8631 = vmatpush.msrb.mxu3 %v13874_v21 }
0x200d   :  { %8504 = vmatpush.msrb.mxu0 %v13875_v26 }
0x200f   :  { %8508 = vmatpush.msrb.mxu0 %v13876_v32 }
0x2052   :  { %v7819_v33 = vpop.f32.mrf.mxu1 }
0x205a   :  { %v7758_v41 = vpop.f32.mrf.mxu0  ;;  %v7857_v53 = vpop.f32.mrf.mxu2 }
0x205b   :  { %v7820_v38 = vadd.f32 %v7819_v33, %v7758_v41  ;;  %v7962_v18 = vpop.f32.mrf.mxu1 }
0x205c   :  { %v7888_v50 = vpop.f32.mrf.mxu3 }
0x205d   :  { %v7858_v34 = vadd.f32 %v7857_v53, %v7820_v38 }
0x205f   :  { %v7889_v52 = vadd.f32 %v7888_v50, %v7858_v34 }
0x2063   :  { %v7995_v29 = vpop.f32.mrf.mxu2 }
0x2064   :  { %v7933_v63 = vpop.f32.mrf.mxu0 }
0x2065   :  { %v7934_v1 = vadd.f32 %v7933_v63, %v7889_v52  ;;  %v8125_v57 = vpop.f32.mrf.mxu1  ;;  %v7724_v52 = vld [vmem:[#allocation2] sm:$0x30] }
0x2066   :  { %v8056_v19 = vpop.f32.mrf.mxu3 }
0x2067   :  { %v7963_v48 = vadd.f32 %v7962_v18, %v7934_v1  ;;  %v8057_v58 = vadd.f32 %v8056_v19, %v7995_v29 }
0x2069   :  { %v8203_v47 = vrot.slane %v7963_v48, 6 }
0x206b   :  { %v8205_v21 = vadd.f32 %v8203_v47, %v7723_v24 }
0x206c   :  { %v8094_v26 = vpop.f32.mrf.mxu0 }
0x206d   :  { %10231 = vtanh.f32 %v8205_v21  ;;  %v8095_v32 = vadd.f32 %v8094_v26, %v8057_v58  ;;  %v8170_v33 = vpop.f32.mrf.mxu2  ;;  %v10010_v24 = vmul.f32 -1.442695, %v8205_v21 }
0x206f   :  { %v8126_v22 = vadd.f32 %v8125_v57, %v8095_v32  ;;  %v8199_v11 = vpop.f32.mrf.mxu3 }
0x2071   :  { %v8171_v41 = vadd.f32 %v8170_v33, %v8126_v22 }
0x2073   :  { %v10232_v53 = vpop.eup %10231  ;;  %v8200_v50 = vadd.f32 %v8199_v11, %v8171_v41 }
0x2074   :  { %8235 = vrot.lane.b32.xlu1 %v10232_v53, %s10347_s3 }
0x2075   :  { %v8207_v63 = vrot.slane %v8200_v50, 4 }
0x2077   :  { %v8209_v1 = vadd.f32 %v8207_v63, %v7724_v52 }
0x2079   :  { %10233 = vtanh.f32 %v8209_v1  ;;  %v10011_v58 = vmul.f32 -1.442695, %v8209_v1 }
0x207a   :  { %10235 = vpow2.f32 %v10010_v24 }
0x207b   :  { %10237 = vpow2.f32 %v10011_v58 }
0x207f   :  { %v10234_v18 = vpop.eup %10233 }
0x2080   :  { %8275 = vrot.lane.b32.xlu0 %v10234_v18, %s10347_s3  ;;  %v10236_v19 = vpop.eup %10235 }
0x2081   :  { %v8213_v29 = vadd.f32 1.0, %v10236_v19  ;;  %v10238_v22 = vpop.eup %10237 }
0x2082   :  { %v8253_v47 = vadd.f32 1.0, %v10238_v22 }
0x2083   :  { %10239 = vrcp.f32 %v8213_v29  ;;  %v8225_v33 = vand.u32 2147483648, %v8213_v29  ;;  %vm8219_vm5 = vweird.f32 %v8213_v29  ;;  %v8223_v21 = vand.u32 2147483647, %v8213_v29 }
0x2084   :  { %10241 = vrcp.f32 %v8253_v47  ;;  %v8265_v19 = vand.u32 2147483648, %v8253_v47  ;;  %vm8259_vm13 = vweird.f32 %v8253_v47  ;;  %v8263_v58 = vand.u32 2147483647, %v8253_v47 }
0x2085   :  { %v8226_v50 = vor.u32 1.1754944e-38, %v8225_v33  ;;  %vm8224_vm4 = vcmp.eq.f32.partialorder %v8223_v21, 8.507059e+37 }
0x2086   :  { %vm8264_vm7 = vcmp.eq.f32.partialorder %v8263_v58, 8.507059e+37 }
0x2089   :  { %v10240_v57 = vpop.eup %10239 }
0x208a   :  { %v8215_v11 = vmul.f32 %v10240_v57, %v8213_v29  ;;  %v10242_v38 = vpop.eup %10241  ;;  %vm8220_vm3 = vweird.f32 %v10240_v57 }
0x208b   :  { %v8255_v48 = vmul.f32 %v10242_v38, %v8253_v47  ;;  %vm8221_vm10 = vmor %vm8219_vm5, %vm8220_vm3  ;;  %vm8260_vm0 = vweird.f32 %v10242_v38  ;;  %v8231_v47 = vrot.slane %v12821_v51, 6 }
0x208c   :  { %v8216_v26 = vsub.f32 1.0, %v8215_v11  ;;  %vm8261_vm6 = vmor %vm8259_vm13, %vm8260_vm0  ;;  %v8266_v11 = vor.u32 1.1754944e-38, %v8265_v19 }
0x208d   :  { %v8256_v53 = vsub.f32 1.0, %v8255_v48 }
0x208e   :  { %v8217_v32 = vmul.f32 %v10240_v57, %v8216_v26 }
0x208f   :  { %v8257_v18 = vmul.f32 %v10242_v38, %v8256_v53 }
0x2090   :  { %v8218_v34 = vadd.f32 %v10240_v57, %v8217_v32  ;;  %v8271_v32 = vrot.slane %v12826_v10, 2 }
0x2091   :  { %v8258_v24 = vadd.f32 %v10242_v38, %v8257_v18 }
0x2092   :  { %v8222_v41 = vsel %vm8221_vm10, %v10240_v57, %v8218_v34 }
0x2093   :  { %v8227_v52 = vsel %vm8224_vm4, %v8226_v50, %v8222_v41  ;;  %v8262_v22 = vsel %vm8261_vm6, %v10242_v38, %v8258_v24  ;;  %vm9429_vm6 = vcmask 99328  }
0x2094   :  { %v8267_v57 = vsel %vm8264_vm7, %v8266_v11, %v8262_v22  ;;  %v8233_v38 = vmul.f32 %v8231_v47, %v8227_v52  ;;  %v8301_v47 = vld [vmem:[#allocation2] sm:$0xc] }
0x2095   :  { %v8273_v34 = vmul.f32 %v8271_v32, %v8267_v57 }
0x20e6   :  { %v8236_v63 = vpop.permute.xlu1 %8235 }
0x20e7   :  { %v8238_v1 = vmul.f32 %v8236_v63, %v8227_v52 }
0x20e9   :  { %8240 = vrot.lane.b32.xlu0 %v8238_v1, %s10348_s16 }
0x20f2   :  { %v8276_v29 = vpop.permute.xlu0 %8275 }
0x20f3   :  { %v8278_v26 = vmul.f32 %v8276_v29, %v8267_v57 }
0x20f5   :  { %8280 = vrot.lane.b32.xlu2 %v8278_v26, %s10348_s16 }
0x214f   :  { %v8281_v48 = vpop.permute.xlu2 %8280 }
0x2150   :  { %v12935_v33 = vadd.f32 %v8281_v48, %v8273_v34 }
0x2152   :  { %10243 = vtanh.f32 %v12935_v33 }
0x2158   :  { %v10244_v21 = vpop.eup %10243 }
0x2159   :  { %8286 = vrot.lane.b32.xlu1 %v10244_v21, %s10347_s3 }
0x215b   :  { %v8241_v41 = vpop.permute.xlu0 %8240 }
0x215c   :  { %v12940_v53 = vadd.f32 %v8241_v41, %v8233_v38 }
0x215e   :  { %10245 = vtanh.f32 %v12940_v53 }
0x2164   :  { %v10246_v50 = vpop.eup %10245 }
0x2165   :  { %8246 = vrot.lane.b32.xlu2 %v10246_v50, %s10347_s3 }
0x21bf   :  { %v8247_v10 = vpop.permute.xlu2 %8246 }
0x21c0   :  { %v8249_v63 = vmul.f32 %v8247_v10, %v8227_v52 }
0x21c2   :  { %8291 = vrot.lane.b32.xlu0 %v8249_v63, %s10348_s16 }
0x21cb   :  { %v8287_v1 = vpop.permute.xlu1 %8286 }
0x21cc   :  { %v8289_v18 = vmul.f32 %v8287_v1, %v8267_v57 }
0x21ce   :  { %v8295_v24 = vrot.slane %v8289_v18, 2 }
0x21d0   :  { %8296 = vrot.lane.b32.xlu1 %v8295_v24, %s10347_s3 }
0x2234   :  { %v8292_v51 = vpop.permute.xlu0 %8291 }
0x2242   :  { %v8297_v19 = vpop.permute.xlu1 %8296 }
0x2243   :  { %v8299_v58 = vsel %vm665_vm9, %v8292_v51, %v8297_v19 }
0x2244   :  { %v8303_v22 = vrot.slane %v8299_v58, 2 }
0x2246   :  { %v8304_v11 = vsel %vm676_vm11, %v8303_v22, 0 }
0x2247   :  { %v8330_v29 = vand.u32 4294901760, %v8304_v11 }
0x2249   :  { %v8331_v26 = vsub.f32 %v8304_v11, %v8330_v29  ;;  %8396 = vmatmul.f32.vlgmr.msra.gmra.mxu1 %v8330_v29 }
0x224a   :  { %8684 = vmatpush.msra.mxu1 %v12192_v0 }
0x224b   :  { %8434 = vmatmul.f32.vlgmr.msra.gmra.mxu2 %v8331_v26  ;;  %v8332_v52 = vand.u32 4294901760, %v8331_v26 }
0x224c   :  { %8686 = vmatpush.msra.mxu1 %v12194_v4  ;;  %8717 = vmatpush.msra.mxu2 %v12227_v16 }
0x224d   :  { %8465 = vmatmul.f32.vlgmr.msra.gmra.mxu3 %v8332_v52  ;;  %v8333_v57 = vsub.f32 %v8331_v26, %v8332_v52 }
0x224e   :  { %8688 = vmatpush.msra.mxu1 %v12196_v46  ;;  %8721 = vmatpush.msra.mxu2 %v12230_v54 }
0x224f   :  { %8760 = vmatpush.msra.mxu3 %v12192_v0  ;;  %v8334_v32 = vand.u32 4294901760, %v8333_v57  ;;  %v13891_v0 = vld [vmem:[#allocation20_spill] sm:$0xff] }
0x2250   :  { %8690 = vmatpush.msra.mxu1 %v12275_v23  ;;  %8725 = vmatpush.msra.mxu2 %v12233_v55 }
0x2251   :  { %8762 = vmatpush.msra.mxu3 %v12194_v4  ;;  %8335 = vmatmul.f32.vlgmr.msra.gmra.mxu0 %v8334_v32 }
0x2252   :  { %8539 = vmatmul.f32.vlgmr.msrb.gmra.mxu1 %v8330_v29  ;;  %8647 = vmatpush.msra.mxu0 %v12210_v6 }
0x2253   :  { %8692 = vmatpush.msra.mxu1 %v12297_v36  ;;  %8729 = vmatpush.msra.mxu2 %v12307_v25  ;;  %v8300_v25 = vld [vmem:[#allocation2 + $0x18] sm:$0x30] }
0x2254   :  { %8764 = vmatpush.msra.mxu3 %v12196_v46  ;;  %8572 = vmatmul.f32.vlgmr.msrb.gmra.mxu2 %v8334_v32 }
0x2255   :  { %8650 = vmatpush.msra.mxu0 %v12213_v39  ;;  %8694 = vmatpush.msra.mxu1 %v12309_v28 }
0x2256   :  { %8733 = vmatpush.msra.mxu2 %v12321_v7  ;;  %8766 = vmatpush.msra.mxu3 %v12275_v23 }
0x2257   :  { %8633 = vmatmul.f32.vlgmr.msrb.gmra.mxu3 %v8330_v29  ;;  %8653 = vmatpush.msra.mxu0 %v12216_v8 }
0x2258   :  { %8696 = vmatpush.msra.mxu1 %v12323_v3  ;;  %8737 = vmatpush.msra.mxu2 %v12337_v30 }
0x2259   :  { %8768 = vmatpush.msra.mxu3 %v12297_v36  ;;  %8656 = vmatpush.msra.mxu0 %v12300_v62 }
0x225a   :  { %8698 = vmatpush.msra.mxu1 %v12339_v37  ;;  %8741 = vmatpush.msra.mxu2 %v12354_v9  ;;  %v13877_v9 = vld [vmem:[#allocation28_spill] sm:$0xff] }
0x225b   :  { %8770 = vmatpush.msra.mxu3 %v12309_v28  ;;  %8510 = vmatmul.f32.vlgmr.msrb.gmra.mxu0 %v8330_v29 }
0x225c   :  { %8702 = vmatmul.f32.vlgmr.msra.gmra.mxu1 %v8332_v52  ;;  %8659 = vmatpush.msra.mxu0 %v12312_v15 }
0x225d   :  { %8745 = vmatpush.msra.mxu2 %v12360_v17  ;;  %8772 = vmatpush.msra.mxu3 %v12323_v3 }
0x225e   :  { %8747 = vmatmul.f32.vlgmr.msra.gmra.mxu2 %v8330_v29  ;;  %8662 = vmatpush.msra.mxu0 %v12326_v56 }
0x225f   :  { %8774 = vmatpush.msra.mxu3 %v12339_v37  ;;  %8929 = vmatpush.msrb.mxu1 %v12174_v27  ;;  %v13885_v27 = vld [vmem:[#allocation30_spill] sm:$0xff] }
0x2260   :  { %8776 = vmatmul.f32.vlgmr.msra.gmra.mxu3 %v8330_v29  ;;  %8665 = vmatpush.msra.mxu0 %v12342_v61  ;;  %v13879_v61 = vld [vmem:[#allocation37_spill] sm:$0xff] }
0x2261   :  { %8935 = vmatpush.msrb.mxu1 %v12176_v42  ;;  %8987 = vmatpush.msrb.mxu2 %v12106_v5  ;;  %v13880_v5 = vld [vmem:[#allocation21_spill] sm:$0xff]  ;;  %v13887_v42 = vld [vmem:[#allocation16_spill] sm:$0xff] }
0x2262   :  { %8668 = vmatpush.msra.mxu0 %v12351_v35  ;;  %9024 = vmatpush.msrb.mxu3 %v12078_v45  ;;  %v13878_v35 = vld [vmem:[#allocation24_spill] sm:$0xff] }
0x2263   :  { %8671 = vmatmul.f32.vlgmr.msra.gmra.mxu0 %v8331_v26  ;;  %8941 = vmatpush.msrb.mxu1 %v12189_v59  ;;  %v13889_v59 = vld [vmem:[#allocation17_spill] sm:$0xff] }
0x2264   :  { %8892 = vmatpush.msrb.mxu0 %v12078_v45  ;;  %8990 = vmatpush.msrb.mxu2 %v12109_v40  ;;  %v13881_v40 = vld [vmem:[#allocation33_spill] sm:$0xff] }
0x2265   :  { %8947 = vmatpush.msrb.mxu1 %v12206_v2  ;;  %9026 = vmatpush.msrb.mxu3 %v12080_v31 }
0x2266   :  { %8894 = vmatpush.msrb.mxu0 %v12080_v31  ;;  %8993 = vmatpush.msrb.mxu2 %v12112_v49  ;;  %v13882_v49 = vld [vmem:[#allocation14_spill] sm:$0xff] }
0x2267   :  { %8953 = vmatpush.msrb.mxu1 %v12223_v12  ;;  %9028 = vmatpush.msrb.mxu3 %v12082_v13 }
0x2268   :  { %8896 = vmatpush.msrb.mxu0 %v12082_v13  ;;  %8996 = vmatpush.msrb.mxu2 %v12119_v43  ;;  %v13883_v43 = vld [vmem:[#allocation34_spill] sm:$0xff] }
0x2269   :  { %8959 = vmatpush.msrb.mxu1 %v12240_v20  ;;  %9030 = vmatpush.msrb.mxu3 %v12093_v14 }
0x226a   :  { %8898 = vmatpush.msrb.mxu0 %v12093_v14  ;;  %8999 = vmatpush.msrb.mxu2 %v12122_v44  ;;  %v13884_v44 = vld [vmem:[#allocation19_spill] sm:$0xff] }
0x226b   :  { %8965 = vmatpush.msrb.mxu1 %v13853_v60  ;;  %9032 = vmatpush.msrb.mxu3 %v13877_v9 }
0x226c   :  { %8900 = vmatpush.msrb.mxu0 %v13877_v9  ;;  %9002 = vmatpush.msrb.mxu2 %v13878_v35 }
0x226d   :  { %8971 = vmatpush.msrb.mxu1 %v13879_v61  ;;  %9034 = vmatpush.msrb.mxu3 %v13880_v5 }
0x226e   :  { %8902 = vmatpush.msrb.mxu0 %v13880_v5  ;;  %9005 = vmatpush.msrb.mxu2 %v13881_v40 }
0x226f   :  { %9100 = vmatpush.msra.mxu1 %v12078_v45  ;;  %9036 = vmatpush.msrb.mxu3 %v13882_v49  ;;  %v13886_v45 = vld [vmem:[#allocation31_spill] sm:$0xff] }
0x2270   :  { %8904 = vmatpush.msrb.mxu0 %v13882_v49  ;;  %9008 = vmatpush.msrb.mxu2 %v13883_v43 }
0x2271   :  { %9102 = vmatpush.msra.mxu1 %v12080_v31  ;;  %9038 = vmatpush.msrb.mxu3 %v13884_v44  ;;  %v13888_v31 = vld [vmem:[#allocation32_spill] sm:$0xff] }
0x2272   :  { %8906 = vmatpush.msrb.mxu0 %v13884_v44 }
0x2273   :  { %9104 = vmatpush.msra.mxu1 %v12082_v13  ;;  %v13890_v13 = vld [vmem:[#allocation18_spill] sm:$0xff] }
0x2274   :  { %9057 = vmatpush.msra.mxu0 %v13885_v27 }
0x2275   :  { %9106 = vmatpush.msra.mxu1 %v12093_v14  ;;  %v13892_v14 = vld [vmem:[#allocation35_spill] sm:$0xff] }
0x2276   :  { %9061 = vmatpush.msra.mxu0 %v13886_v45 }
0x2277   :  { %9108 = vmatpush.msra.mxu1 %v13877_v9 }
0x2278   :  { %9065 = vmatpush.msra.mxu0 %v13887_v42 }
0x2279   :  { %9110 = vmatpush.msra.mxu1 %v13880_v5 }
0x227a   :  { %9069 = vmatpush.msra.mxu0 %v13888_v31 }
0x227b   :  { %9112 = vmatpush.msra.mxu1 %v13882_v49 }
0x227c   :  { %9073 = vmatpush.msra.mxu0 %v13889_v59 }
0x227d   :  { %9114 = vmatpush.msra.mxu1 %v13884_v44 }
0x227e   :  { %9077 = vmatpush.msra.mxu0 %v13890_v13 }
0x2280   :  { %9081 = vmatpush.msra.mxu0 %v13891_v0  ;;  %v8809_v0 = vrot.slane %v12940_v53, 6 }
0x2282   :  { %9085 = vmatpush.msra.mxu0 %v13892_v14 }
0x22c6   :  { %v8397_v4 = vpop.f32.mrf.mxu1 }
0x22ce   :  { %v8336_v46 = vpop.f32.mrf.mxu0  ;;  %v8435_v6 = vpop.f32.mrf.mxu2 }
0x22cf   :  { %v8398_v2 = vadd.f32 %v8397_v4, %v8336_v46  ;;  %v8540_v16 = vpop.f32.mrf.mxu1 }
0x22d0   :  { %v8466_v39 = vpop.f32.mrf.mxu3 }
0x22d1   :  { %v8436_v8 = vadd.f32 %v8435_v6, %v8398_v2  ;;  %v8849_v6 = vrot.slane %v12935_v33, 2 }
0x22d3   :  { %v8467_v12 = vadd.f32 %v8466_v39, %v8436_v8 }
0x22d7   :  { %v8573_v20 = vpop.f32.mrf.mxu2 }
0x22d8   :  { %v8511_v54 = vpop.f32.mrf.mxu0 }
0x22d9   :  { %v8512_v55 = vadd.f32 %v8511_v54, %v8467_v12  ;;  %v8703_v56 = vpop.f32.mrf.mxu1 }
0x22da   :  { %v8634_v36 = vpop.f32.mrf.mxu3 }
0x22db   :  { %v8541_v23 = vadd.f32 %v8540_v16, %v8512_v55  ;;  %v8635_v15 = vadd.f32 %v8634_v36, %v8573_v20 }
0x22dd   :  { %v8781_v62 = vrot.slane %v8541_v23, 4 }
0x22df   :  { %v8783_v28 = vadd.f32 %v8781_v62, %v8300_v25 }
0x22e0   :  { %v8672_v7 = vpop.f32.mrf.mxu0 }
0x22e1   :  { %10247 = vtanh.f32 %v8783_v28  ;;  %v8673_v3 = vadd.f32 %v8672_v7, %v8635_v15  ;;  %v8748_v37 = vpop.f32.mrf.mxu2  ;;  %v10012_v63 = vmul.f32 -1.442695, %v8783_v28 }
0x22e3   :  { %v8704_v30 = vadd.f32 %v8703_v56, %v8673_v3  ;;  %v8777_v60 = vpop.f32.mrf.mxu3 }
0x22e5   :  { %v8749_v17 = vadd.f32 %v8748_v37, %v8704_v30 }
0x22e7   :  { %v10248_v34 = vpop.eup %10247  ;;  %v8778_v48 = vadd.f32 %v8777_v60, %v8749_v17  ;;  %v9183_v60 = vld [vmem:[%s13434_s7 + $0x38] sm:$0xff] }
0x22e8   :  { %8813 = vrot.lane.b32.xlu0 %v10248_v34, %s10347_s3  ;;  %v9182_v34 = vld [vmem:[%s13434_s7 + $0x30] sm:$0xff] }
0x22e9   :  { %v8785_v21 = vrot.slane %v8778_v48, 6  ;;  %v9181_v48 = vld [vmem:[%s13434_s7 + $0x28] sm:$0xff] }
0x22eb   :  { %v8787_v38 = vadd.f32 %v8785_v21, %v8301_v47  ;;  %v13055_v47 = vand.u32 4294901760, %v9183_v60 }
0x22ed   :  { %10249 = vtanh.f32 %v8787_v38  ;;  %v10013_v50 = vmul.f32 -1.442695, %v8787_v38  ;;  %v13057_v38 = vand.u32 4294901760, %v9182_v34  ;;  %9201 = vmatpush.msra.mxu2 %v13055_v47 }
0x22ef   :  { %10251 = vpow2.f32 %v10013_v50  ;;  %v9180_v50 = vld [vmem:[%s13434_s7 + $0x20] sm:$0xff]  ;;  %9203 = vmatpush.msra.mxu2 %v13057_v38 }
0x22f0   :  { %10253 = vpow2.f32 %v10012_v63  ;;  %v13064_v63 = vand.u32 4294901760, %v9180_v50 }
0x22f3   :  { %v10250_v41 = vpop.eup %10249 }
0x22f4   :  { %8853 = vrot.lane.b32.xlu2 %v10250_v41, %s10347_s3  ;;  %v13059_v41 = vand.u32 4294901760, %v9181_v48 }
0x22f5   :  { %v10252_v10 = vpop.eup %10251 }
0x22f6   :  { %v8831_v1 = vadd.f32 1.0, %v10252_v10  ;;  %v10254_v18 = vpop.eup %10253  ;;  %9205 = vmatpush.msra.mxu2 %v13059_v41 }
0x22f7   :  { %v8791_v51 = vadd.f32 1.0, %v10254_v18  ;;  %v13067_v18 = vsub.f32 %v9183_v60, %v13055_v47 }
0x22f8   :  { %10255 = vrcp.f32 %v8831_v1  ;;  %v8843_v52 = vand.u32 2147483648, %v8831_v1  ;;  %vm8837_vm12 = vweird.f32 %v8831_v1  ;;  %v8841_v57 = vand.u32 2147483647, %v8831_v1  ;;  %9207 = vmatpush.msra.mxu2 %v13064_v63 }
0x22f9   :  { %10257 = vrcp.f32 %v8791_v51  ;;  %v8803_v44 = vand.u32 2147483648, %v8791_v51  ;;  %vm8797_vm2 = vweird.f32 %v8791_v51  ;;  %v8801_v27 = vand.u32 2147483647, %v8791_v51 }
0x22fa   :  { %v8844_v35 = vor.u32 1.1754944e-38, %v8843_v52  ;;  %vm8842_vm15 = vcmp.eq.f32.partialorder %v8841_v57, 8.507059e+37 }
0x22fb   :  { %v8804_v42 = vor.u32 1.1754944e-38, %v8803_v44  ;;  %vm8802_vm5 = vcmp.eq.f32.partialorder %v8801_v27, 8.507059e+37 }
0x22fe   :  { %v10256_v24 = vpop.eup %10255 }
0x22ff   :  { %v8833_v19 = vmul.f32 %v10256_v24, %v8831_v1  ;;  %v10258_v11 = vpop.eup %10257  ;;  %vm8838_vm8 = vweird.f32 %v10256_v24 }
0x2300   :  { %v8793_v26 = vmul.f32 %v10258_v11, %v8791_v51  ;;  %vm8839_vm14 = vmor %vm8837_vm12, %vm8838_vm8  ;;  %vm8798_vm1 = vweird.f32 %v10258_v11  ;;  %v13073_v51 = vsub.f32 %v9181_v48, %v13059_v41 }
0x2301   :  { %v8834_v58 = vsub.f32 1.0, %v8833_v19  ;;  %vm8799_vm3 = vmor %vm8797_vm2, %vm8798_vm1  ;;  %v13077_v19 = vsub.f32 %v9180_v50, %v13064_v63 }
0x2302   :  { %v8794_v9 = vsub.f32 1.0, %v8793_v26 }
0x2303   :  { %v8835_v22 = vmul.f32 %v10256_v24, %v8834_v58  ;;  %v9253_v52 = vand.u32 4294901760, %v13077_v19 }
0x2304   :  { %v8795_v49 = vmul.f32 %v10258_v11, %v8794_v9 }
0x2305   :  { %v8836_v29 = vadd.f32 %v10256_v24, %v8835_v22  ;;  %v9235_v22 = vand.u32 4294901760, %v13067_v18 }
0x2306   :  { %v8796_v43 = vadd.f32 %v10258_v11, %v8795_v49  ;;  %v9254_v49 = vsub.f32 %v13077_v19, %v9253_v52 }
0x2307   :  { %v8840_v32 = vsel %vm8839_vm14, %v10256_v24, %v8836_v29  ;;  %v13070_v24 = vsub.f32 %v9182_v34, %v13057_v38  ;;  %v9247_v29 = vand.u32 4294901760, %v13073_v51  ;;  %v9236_v57 = vsub.f32 %v13067_v18, %v9235_v22 }
0x2308   :  { %v8845_v5 = vsel %vm8842_vm15, %v8844_v35, %v8840_v32  ;;  %v8800_v45 = vsel %vm8799_vm3, %v10258_v11, %v8796_v43 }
0x2309   :  { %v8805_v59 = vsel %vm8802_vm5, %v8804_v42, %v8800_v45  ;;  %v8851_v39 = vmul.f32 %v8849_v6, %v8845_v5  ;;  %v9241_v11 = vand.u32 4294901760, %v13070_v24  ;;  %v9248_v9 = vsub.f32 %v13073_v51, %v9247_v29 }
0x230a   :  { %v8811_v14 = vmul.f32 %v8809_v0, %v8805_v59  ;;  %v9255_v42 = vand.u32 4294901760, %v9254_v49  ;;  %v13894_v49 = vld [vmem:[#allocation13_spill] sm:$0xff] }
0x230b   :  { %v9242_v32 = vsub.f32 %v13070_v24, %v9241_v11  ;;  %v9249_v27 = vand.u32 4294901760, %v9248_v9 }
0x234e   :  { %v8854_v61 = vpop.permute.xlu2 %8853 }
0x234f   :  { %v8856_v40 = vmul.f32 %v8854_v61, %v8845_v5 }
0x2351   :  { %8858 = vrot.lane.b32.xlu1 %v8856_v40, %s10348_s16  ;;  %v9243_v40 = vand.u32 4294901760, %v9242_v32 }
0x235a   :  { %v8814_v31 = vpop.permute.xlu0 %8813 }
0x235b   :  { %v8816_v13 = vmul.f32 %v8814_v31, %v8805_v59  ;;  %v8878_v31 = vld [vmem:[#allocation2 + $0x18] sm:$0xc0] }
0x235d   :  { %8818 = vrot.lane.b32.xlu2 %v8816_v13, %s10348_s16 }
0x23b7   :  { %v8819_v4 = vpop.permute.xlu2 %8818 }
0x23b8   :  { %v13033_v46 = vadd.f32 %v8819_v4, %v8811_v14  ;;  %v9179_v14 = vld [vmem:[%s13434_s7 + $0x18] sm:$0xff] }
0x23b9   :  { %v9208_v4 = vand.u32 4294901760, %v9179_v14 }
0x23ba   :  { %10259 = vtanh.f32 %v13033_v46  ;;  %v9145_v9 = vrot.slane %v13033_v46, 6 }
0x23bb   :  { %v9258_v6 = vsub.f32 %v9179_v14, %v9208_v4  ;;  %9209 = vmatpush.msra.mxu2 %v9208_v4 }
0x23c0   :  { %v10260_v2 = vpop.eup %10259 }
0x23c1   :  { %8824 = vrot.lane.b32.xlu1 %v10260_v2, %s10347_s3  ;;  %v9178_v2 = vld [vmem:[%s13434_s7 + $0x10] sm:$0xff] }
0x23c3   :  { %v8859_v8 = vpop.permute.xlu1 %8858 }
0x23c4   :  { %v8861_v12 = vadd.f32 %v8859_v8, %v8851_v39  ;;  %v9210_v39 = vand.u32 4294901760, %v9178_v2  ;;  %v9177_v8 = vld [vmem:[%s13434_s7 + $0x8] sm:$0xff] }
0x23c6   :  { %10261 = vtanh.f32 %v8861_v12  ;;  %9211 = vmatpush.msra.mxu2 %v9210_v39 }
0x23cc   :  { %v10262_v16 = vpop.eup %10261 }
0x23cd   :  { %8864 = vrot.lane.b32.xlu0 %v10262_v16, %s10347_s3  ;;  %v9259_v16 = vand.u32 4294901760, %v9258_v6 }
0x2433   :  { %v8825_v54 = vpop.permute.xlu1 %8824 }
0x2434   :  { %v8827_v53 = vmul.f32 %v8825_v54, %v8805_v59  ;;  %v9264_v54 = vsub.f32 %v9178_v2, %v9210_v39 }
0x2436   :  { %8869 = vrot.lane.b32.xlu2 %v8827_v53, %s10348_s16  ;;  %v9212_v53 = vand.u32 4294901760, %v9177_v8 }
0x2438   :  { %9213 = vmatpush.msra.mxu2 %v9212_v53 }
0x243f   :  { %v8865_v55 = vpop.permute.xlu0 %8864 }
0x2440   :  { %v13040_v20 = vmul.f32 %v8865_v55, %v8845_v5  ;;  %v9237_v5 = vand.u32 4294901760, %v9236_v57  ;;  %v9176_v55 = vld [vmem:[%s13434_s7] sm:$0xff] }
0x2442   :  { %v8873_v23 = vrot.slane %v13040_v20, 6  ;;  %9238 = vmatpush.msra.mxu3 %v9237_v5 }
0x2444   :  { %8874 = vrot.lane.b32.xlu0 %v8873_v23, %s10347_s3  ;;  %9244 = vmatpush.msra.mxu3 %v9243_v40  ;;  %v9265_v23 = vand.u32 4294901760, %v9264_v54 }
0x2446   :  { %9250 = vmatpush.msra.mxu3 %v9249_v27 }
0x2448   :  { %9256 = vmatpush.msra.mxu3 %v9255_v42 }
0x2490   :  { %v8870_v33 = vpop.permute.xlu2 %8869 }
0x24b6   :  { %v8875_v36 = vpop.permute.xlu0 %8874 }
0x24b7   :  { %v8877_v62 = vsel %vm665_vm9, %v8870_v33, %v8875_v36  ;;  %v9270_v33 = vsub.f32 %v9177_v8, %v9212_v53  ;;  %v9214_v36 = vand.u32 4294901760, %v9176_v55  ;;  %v9436_v8 = vld [vmem:[%s13436_s9 + $0x28] sm:$0xff] }
0x24b8   :  { %v8880_v25 = vrot.slane %v8877_v62, 4 }
0x24b9   :  { %9215 = vmatpush.msra.mxu2 %v9214_v36 }
0x24ba   :  { %v8881_v28 = vsel %vm676_vm11, %v8880_v25, 0 }
0x24bb   :  { %v8907_v15 = vand.u32 4294901760, %v8881_v28 }
0x24bd   :  { %v8908_v7 = vsub.f32 %v8881_v28, %v8907_v15  ;;  %8973 = vmatmul.f32.vlgmr.msrb.gmra.mxu1 %v8907_v15  ;;  %v9266_v28 = vsub.f32 %v9264_v54, %v9265_v23 }
0x24be   :  { %9333 = vmatpush.msrb.mxu1 %v13055_v47 }
0x24bf   :  { %v8909_v3 = vand.u32 4294901760, %v8908_v7  ;;  %9011 = vmatmul.f32.vlgmr.msrb.gmra.mxu2 %v8908_v7 }
0x24c0   :  { %9335 = vmatpush.msrb.mxu1 %v13057_v38  ;;  %9366 = vmatpush.msrb.mxu2 %v9235_v22 }
0x24c1   :  { %v8910_v56 = vsub.f32 %v8908_v7, %v8909_v3  ;;  %9042 = vmatmul.f32.vlgmr.msrb.gmra.mxu3 %v8909_v3  ;;  %v9276_v7 = vsub.f32 %v9176_v55, %v9214_v36  ;;  %v9267_v3 = vand.u32 4294901760, %v9266_v28  ;;  %v9434_v55 = vld [vmem:[%s13436_s9 + $0x18] sm:$0xff] }
0x24c2   :  { %9337 = vmatpush.msrb.mxu1 %v13059_v41  ;;  %9370 = vmatpush.msrb.mxu2 %v9241_v11 }
0x24c3   :  { %v8911_v30 = vand.u32 4294901760, %v8910_v56 }
0x24c4   :  { %9339 = vmatpush.msrb.mxu1 %v13064_v63  ;;  %9374 = vmatpush.msrb.mxu2 %v9247_v29 }
0x24c5   :  { %8912 = vmatmul.f32.vlgmr.msrb.gmra.mxu0 %v8911_v30  ;;  %9116 = vmatmul.f32.vlgmr.msra.gmra.mxu1 %v8907_v15  ;;  %v9277_v30 = vand.u32 4294901760, %v9276_v7 }
0x24c6   :  { %9296 = vmatpush.msrb.mxu0 %v13067_v18  ;;  %9341 = vmatpush.msrb.mxu1 %v9208_v4 }
0x24c7   :  { %9378 = vmatpush.msrb.mxu2 %v9253_v52 }
0x24c8   :  { %9299 = vmatpush.msrb.mxu0 %v13070_v24  ;;  %9343 = vmatpush.msrb.mxu1 %v9210_v39 }
0x24c9   :  { %9382 = vmatpush.msrb.mxu2 %v9259_v16 }
0x24ca   :  { %9302 = vmatpush.msrb.mxu0 %v13073_v51  ;;  %9345 = vmatpush.msrb.mxu1 %v9212_v53 }
0x24cb   :  { %9386 = vmatpush.msrb.mxu2 %v9265_v23 }
0x24cc   :  { %9305 = vmatpush.msrb.mxu0 %v13077_v19  ;;  %9347 = vmatpush.msrb.mxu1 %v9214_v36  ;;  %v13893_v19 = vld [vmem:[#allocation11_spill] sm:$0xff] }
0x24cd   :  { %9087 = vmatmul.f32.vlgmr.msra.gmra.mxu0 %v8907_v15  ;;  %v9271_v15 = vand.u32 4294901760, %v9270_v33 }
0x24ce   :  { %9308 = vmatpush.msrb.mxu0 %v9258_v6 }
0x24cf   :  { %v9272_v56 = vsub.f32 %v9270_v33, %v9271_v15  ;;  %9390 = vmatpush.msrb.mxu2 %v9271_v15 }
0x24d0   :  { %9311 = vmatpush.msrb.mxu0 %v9264_v54  ;;  %v13161_v54 = vand.u32 4294901760, %v9436_v8 }
0x24d1   :  { %9394 = vmatpush.msrb.mxu2 %v9277_v30 }
0x24d2   :  { %9314 = vmatpush.msrb.mxu0 %v9270_v33  ;;  %v13174_v33 = vand.u32 4294901760, %v9434_v55 }
0x24d4   :  { %9317 = vmatpush.msrb.mxu0 %v9276_v7 }
0x253a   :  { %v8974_v37 = vpop.f32.mrf.mxu1 }
0x2542   :  { %v8913_v17 = vpop.f32.mrf.mxu0  ;;  %v9012_v10 = vpop.f32.mrf.mxu2 }
0x2543   :  { %v8975_v21 = vadd.f32 %v8974_v37, %v8913_v17  ;;  %v9117_v43 = vpop.f32.mrf.mxu1  ;;  %v9273_v37 = vand.u32 4294901760, %v9272_v56  ;;  %v9278_v17 = vsub.f32 %v9276_v7, %v9277_v30  ;;  %v13191_v7 = vsub.f32 %v9436_v8, %v13161_v54 }
0x2544   :  { %v9043_v58 = vpop.f32.mrf.mxu3  ;;  %v13201_v30 = vsub.f32 %v9434_v55, %v13174_v33  ;;  %v9688_v55 = vld [vmem:[%s13438_s11 + $0x10] sm:$0xff] }
0x2545   :  { %v9013_v1 = vadd.f32 %v9012_v10, %v8975_v21  ;;  %v9279_v60 = vand.u32 4294901760, %v9278_v17 }
0x2547   :  { %v9044_v26 = vadd.f32 %v9043_v58, %v9013_v1 }
0x254a   :  { %v9088_v35 = vpop.f32.mrf.mxu0 }
0x254b   :  { %v9089_v61 = vadd.f32 %v9088_v35, %v9044_v26 }
0x254d   :  { %v9118_v44 = vadd.f32 %v9117_v43, %v9089_v61  ;;  %v10020_v43 = vld [vmem:[%s13435_s8] ss:$0 sm:$0xff] }
0x254f   :  { %v9121_v45 = vrot.slane %v9118_v44, 2 }
0x2551   :  { %v9123_v59 = vadd.f32 %v9121_v45, %v8878_v31 }
0x2553   :  { %10263 = vtanh.f32 %v9123_v59  ;;  %v10014_v0 = vmul.f32 -1.442695, %v9123_v59 }
0x2555   :  { %10265 = vpow2.f32 %v10014_v0 }
0x2559   :  { %v10264_v13 = vpop.eup %10263 }
0x255a   :  { %9149 = vrot.lane.b32.xlu1 %v10264_v13, %s10347_s3 }
0x255b   :  { %v10266_v12 = vpop.eup %10265 }
0x255c   :  { %v9127_v62 = vadd.f32 1.0, %v10266_v12 }
0x255e   :  { %10267 = vrcp.f32 %v9127_v62  ;;  %vm9133_vm4 = vweird.f32 %v9127_v62  ;;  %v9137_v1 = vand.u32 2147483647, %v9127_v62 }
0x2560   :  { %vm9138_vm13 = vcmp.eq.f32.partialorder %v9137_v1, 8.507059e+37 }
0x2562   :  { %9164 = vrot.lane.b32.xlu1 %v13040_v20, %s10347_s3  ;;  %v9260_v20 = vsub.f32 %v9258_v6, %v9259_v16  ;;  %v9438_v6 = vld [vmem:[%s13436_s9 + $0x38] sm:$0xff] }
0x2563   :  { %v13157_v12 = vand.u32 4294901760, %v9438_v6 }
0x2564   :  { %v9261_v25 = vand.u32 4294901760, %v9260_v20  ;;  %v10268_v34 = vpop.eup %10267  ;;  %v9433_v20 = vld [vmem:[%s13436_s9 + $0x10] sm:$0xff] }
0x2565   :  { %v9129_v48 = vmul.f32 %v10268_v34, %v9127_v62  ;;  %vm9134_vm10 = vweird.f32 %v10268_v34  ;;  %v13185_v28 = vsub.f32 %v9438_v6, %v13157_v12  ;;  %9456 = vmatpush.msra.mxu0 %v13157_v12 }
0x2566   :  { %9262 = vmatpush.msra.mxu3 %v9261_v25  ;;  %vm9135_vm0 = vmor %vm9133_vm4, %vm9134_vm10  ;;  %v9431_v25 = vld [vmem:[%s13436_s9] sm:$0xff] }
0x2567   :  { %v9130_v21 = vsub.f32 1.0, %v9129_v48  ;;  %v9490_v17 = vand.u32 4294901760, %v13185_v28  ;;  %v13211_v48 = vand.u32 4294901760, %v9431_v25 }
0x2568   :  { %9268 = vmatpush.msra.mxu3 %v9267_v3 }
0x2569   :  { %v9131_v50 = vmul.f32 %v10268_v34, %v9130_v21 }
0x256a   :  { %9274 = vmatpush.msra.mxu3 %v9273_v37 }
0x256b   :  { %v9132_v10 = vadd.f32 %v10268_v34, %v9131_v50 }
0x256c   :  { %9280 = vmatpush.msra.mxu3 %v9279_v60 }
0x256e   :  { %9409 = vmatpush.msrb.mxu3 %v13055_v47  ;;  %v9139_v47 = vand.u32 2147483648, %v9127_v62  ;;  %v9432_v62 = vld [vmem:[%s13436_s9 + $0x8] sm:$0xff] }
0x256f   :  { %v13195_v3 = vand.u32 4294901760, %v9432_v62 }
0x2570   :  { %9411 = vmatpush.msrb.mxu3 %v13057_v38  ;;  %v9136_v38 = vsel %vm9135_vm0, %v10268_v34, %v9132_v10  ;;  %v9140_v18 = vor.u32 1.1754944e-38, %v9139_v47  ;;  %v9502_v34 = vand.u32 4294901760, %v13191_v7  ;;  %v9491_v10 = vsub.f32 %v13185_v28, %v9490_v17 }
0x2571   :  { %v13216_v50 = vsub.f32 %v9432_v62, %v13195_v3  ;;  %v9687_v62 = vld [vmem:[%s13438_s11 + $0x8] sm:$0xff] }
0x2572   :  { %9413 = vmatpush.msrb.mxu3 %v13059_v41  ;;  %v13133_v24 = vsel %vm9138_vm13, %v9140_v18, %v9136_v38  ;;  %v9503_v1 = vsub.f32 %v13191_v7, %v9502_v34  ;;  %v9514_v38 = vand.u32 4294901760, %v13201_v30 }
0x2573   :  { %v9147_v35 = vmul.f32 %v9145_v9, %v13133_v24 }
0x2574   :  { %9415 = vmatpush.msrb.mxu3 %v13064_v63 }
0x2576   :  { %9417 = vmatpush.msrb.mxu3 %v9208_v4 }
0x2578   :  { %9419 = vmatpush.msrb.mxu3 %v9210_v39  ;;  %v9437_v39 = vld [vmem:[%s13436_s9 + $0x30] sm:$0xff] }
0x2579   :  { %v13159_v16 = vand.u32 4294901760, %v9437_v39 }
0x257a   :  { %9421 = vmatpush.msrb.mxu3 %v9212_v53  ;;  %v9435_v53 = vld [vmem:[%s13436_s9 + $0x20] sm:$0xff] }
0x257b   :  { %v13172_v23 = vand.u32 4294901760, %v9435_v53  ;;  %v13188_v15 = vsub.f32 %v9437_v39, %v13159_v16  ;;  %9458 = vmatpush.msra.mxu0 %v13159_v16 }
0x257c   :  { %9423 = vmatpush.msrb.mxu3 %v9214_v36  ;;  %v13176_v36 = vand.u32 4294901760, %v9433_v20 }
0x257d   :  { %v13198_v56 = vsub.f32 %v9435_v53, %v13172_v23  ;;  %v9496_v60 = vand.u32 4294901760, %v13188_v15  ;;  %9460 = vmatpush.msra.mxu0 %v13161_v54 }
0x257e   :  { %v13204_v37 = vsub.f32 %v9433_v20, %v13176_v36 }
0x257f   :  { %v9508_v21 = vand.u32 4294901760, %v13198_v56  ;;  %v9497_v47 = vsub.f32 %v13188_v15, %v9496_v60  ;;  %9462 = vmatpush.msra.mxu0 %v13172_v23 }
0x2580   :  { %v9520_v18 = vand.u32 4294901760, %v13204_v37 }
0x2581   :  { %9464 = vmatpush.msra.mxu0 %v13174_v33 }
0x2583   :  { %9466 = vmatpush.msra.mxu0 %v13176_v36 }
0x2585   :  { %9468 = vmatpush.msra.mxu0 %v13195_v3 }
0x2587   :  { %9470 = vmatpush.msra.mxu0 %v13211_v48 }
0x25cc   :  { %v9150_v41 = vpop.permute.xlu1 %9149 }
0x25cd   :  { %v9152_v63 = vmul.f32 %v9150_v41, %v13133_v24  ;;  %v9693_v41 = vld [vmem:[%s13438_s11 + $0x38] sm:$0xff] }
0x25cf   :  { %9154 = vrot.lane.b32.xlu2 %v9152_v63, %s10348_s16  ;;  %v9692_v63 = vld [vmem:[%s13438_s11 + $0x30] sm:$0xff] }
0x25d4   :  { %v9165_v51 = vpop.permute.xlu1 %9164 }
0x25d5   :  { %v9167_v58 = vsel %vm665_vm9, %v13893_v19, %v9165_v51  ;;  %v9492_v51 = vand.u32 4294901760, %v9491_v10  ;;  %v9498_v19 = vand.u32 4294901760, %v9497_v47 }
0x25d6   :  { %v9189_v22 = vrot.slane %v9167_v58, 2  ;;  %v9509_v58 = vsub.f32 %v13198_v56, %v9508_v21 }
0x25d7   :  { %9493 = vmatpush.msra.mxu1 %v9492_v51 }
0x25d8   :  { %v9190_v11 = vsel %vm676_vm11, %v9189_v22, 0  ;;  %v13244_v22 = vsub.f32 %v9431_v25, %v13211_v48  ;;  %v9510_v9 = vand.u32 4294901760, %v9509_v58 }
0x25d9   :  { %v9216_v29 = vand.u32 4294901760, %v9190_v11  ;;  %9499 = vmatpush.msra.mxu1 %v9498_v19 }
0x25db   :  { %v9217_v26 = vsub.f32 %v9190_v11, %v9216_v29  ;;  %9282 = vmatmul.f32.vlgmr.msra.gmra.mxu3 %v9216_v29  ;;  %v9526_v11 = vand.u32 4294901760, %v13216_v50 }
0x25dc   :  { %9588 = vmatpush.msra.mxu3 %v13157_v12 }
0x25dd   :  { %v9218_v52 = vand.u32 4294901760, %v9217_v26  ;;  %9320 = vmatmul.f32.vlgmr.msrb.gmra.mxu0 %v9217_v26 }
0x25de   :  { %9590 = vmatpush.msra.mxu3 %v13159_v16  ;;  %9621 = vmatpush.msrb.mxu0 %v9490_v17 }
0x25df   :  { %v9219_v57 = vsub.f32 %v9217_v26, %v9218_v52  ;;  %9351 = vmatmul.f32.vlgmr.msrb.gmra.mxu1 %v9218_v52  ;;  %v9515_v26 = vsub.f32 %v13201_v30, %v9514_v38  ;;  %v13252_v52 = vand.u32 4294901760, %v9693_v41 }
0x25e0   :  { %9592 = vmatpush.msra.mxu3 %v13161_v54  ;;  %9625 = vmatpush.msrb.mxu0 %v9496_v60 }
0x25e1   :  { %v9220_v32 = vand.u32 4294901760, %v9219_v57  ;;  %v13254_v57 = vand.u32 4294901760, %v9692_v63 }
0x25e2   :  { %9594 = vmatpush.msra.mxu3 %v13172_v23  ;;  %9629 = vmatpush.msrb.mxu0 %v9502_v34 }
0x25e3   :  { %9221 = vmatmul.f32.vlgmr.msra.gmra.mxu2 %v9220_v32  ;;  %9425 = vmatmul.f32.vlgmr.msrb.gmra.mxu3 %v9216_v29  ;;  %v9521_v32 = vsub.f32 %v13204_v37, %v9520_v18 }
0x25e4   :  { %9551 = vmatpush.msra.mxu2 %v13185_v28  ;;  %9596 = vmatpush.msra.mxu3 %v13174_v33 }
0x25e5   :  { %9633 = vmatpush.msrb.mxu0 %v9508_v21 }
0x25e6   :  { %9554 = vmatpush.msra.mxu2 %v13188_v15  ;;  %9598 = vmatpush.msra.mxu3 %v13176_v36 }
0x25e7   :  { %9637 = vmatpush.msrb.mxu0 %v9514_v38 }
0x25e8   :  { %9557 = vmatpush.msra.mxu2 %v13191_v7  ;;  %9600 = vmatpush.msra.mxu3 %v13195_v3  ;;  %v13357_v7 = vand.u32 4294901760, %v9687_v62 }
0x25e9   :  { %9641 = vmatpush.msrb.mxu0 %v9520_v18 }
0x25ea   :  { %9560 = vmatpush.msra.mxu2 %v13198_v56  ;;  %9602 = vmatpush.msra.mxu3 %v13211_v48  ;;  %v9686_v56 = vld [vmem:[%s13438_s11] sm:$0xff]  ;;  %v13370_v60 = vsub.f32 %v9687_v62, %v13357_v7 }
0x25eb   :  { %9396 = vmatmul.f32.vlgmr.msrb.gmra.mxu2 %v9216_v29  ;;  %v9504_v29 = vand.u32 4294901760, %v9503_v1  ;;  %9645 = vmatpush.msrb.mxu0 %v9526_v11  ;;  %v13367_v17 = vand.u32 4294901760, %v9686_v56 }
0x25ec   :  { %9563 = vmatpush.msra.mxu2 %v13201_v30  ;;  %v9777_v21 = vand.u32 4294901760, %v13370_v60 }
0x25ed   :  { %9505 = vmatpush.msra.mxu1 %v9504_v29 }
0x25ee   :  { %9566 = vmatpush.msra.mxu2 %v13204_v37  ;;  %v9778_v47 = vsub.f32 %v13370_v60, %v9777_v21 }
0x25ef   :  { %9511 = vmatpush.msra.mxu1 %v9510_v9 }
0x25f0   :  { %9569 = vmatpush.msra.mxu2 %v13216_v50  ;;  %v9779_v18 = vand.u32 4294901760, %v9778_v47 }
0x25f2   :  { %9572 = vmatpush.msra.mxu2 %v13244_v22 }
0x25f4   :  { %9707 = vmatpush.msrb.mxu2 %v13252_v52 }
0x25f6   :  { %9709 = vmatpush.msrb.mxu2 %v13254_v57 }
0x2629   :  { %v9155_v61 = vpop.permute.xlu2 %9154 }
0x262a   :  { %v9157_v5 = vadd.f32 %v9155_v61, %v9147_v35  ;;  %v9532_v35 = vand.u32 4294901760, %v13244_v22  ;;  %v13264_v61 = vsub.f32 %v9693_v41, %v13252_v52 }
0x262c   :  { %10269 = vtanh.f32 %v9157_v5  ;;  %v13267_v5 = vsub.f32 %v9692_v63, %v13254_v57  ;;  %9649 = vmatpush.msrb.mxu0 %v9532_v35 }
0x2632   :  { %v10270_v40 = vpop.eup %10269 }
0x2633   :  { %9160 = vrot.lane.b32.xlu0 %v10270_v40, %s10347_s3  ;;  %v9516_v40 = vand.u32 4294901760, %v9515_v26 }
0x2635   :  { %9517 = vmatpush.msra.mxu1 %v9516_v40 }
0x263b   :  { %9172 = vrot.lane.b32.xlu0 %v13894_v49, %s10347_s3  ;;  %v9527_v49 = vsub.f32 %v13216_v50, %v9526_v11  ;;  %v13376_v50 = vsub.f32 %v9686_v56, %v13367_v17 }
0x263d   :  { %v9783_v1 = vand.u32 4294901760, %v13376_v50 }
0x263f   :  { %v9784_v41 = vsub.f32 %v13376_v50, %v9783_v1 }
0x2641   :  { %v9785_v63 = vand.u32 4294901760, %v9784_v41 }
0x265a   :  { %v9321_v46 = vpop.f32.mrf.mxu0 }
0x265c   :  { %v9352_v59 = vpop.f32.mrf.mxu1 }
0x265e   :  { %v9283_v44 = vpop.f32.mrf.mxu3 }
0x2666   :  { %v9222_v27 = vpop.f32.mrf.mxu2  ;;  %v9426_v4 = vpop.f32.mrf.mxu3 }
0x2667   :  { %v9223_v45 = vadd.f32 %v10020_v43, %v9222_v27  ;;  %v9741_v43 = vand.u32 4294901760, %v13264_v61  ;;  %v9522_v27 = vand.u32 4294901760, %v9521_v32 }
0x2669   :  { %v9284_v42 = vadd.f32 %v9283_v44, %v9223_v45  ;;  %v9747_v44 = vand.u32 4294901760, %v13267_v5  ;;  %v9533_v45 = vsub.f32 %v13244_v22, %v9532_v35  ;;  %9523 = vmatpush.msra.mxu1 %v9522_v27 }
0x266b   :  { %v9322_v31 = vadd.f32 %v9321_v46, %v9284_v42  ;;  %v9742_v42 = vsub.f32 %v13264_v61, %v9741_v43  ;;  %v9748_v46 = vsub.f32 %v13267_v5, %v9747_v44 }
0x266d   :  { %v9353_v13 = vadd.f32 %v9352_v59, %v9322_v31  ;;  %v9528_v31 = vand.u32 4294901760, %v9527_v49  ;;  %v9743_v59 = vand.u32 4294901760, %v9742_v42  ;;  %v10022_v42 = vld [vmem:[%s13439_s12] ss:$0 sm:$0xff]  ;;  %s10351_s12 = smov [#allocation8]  }
0x266e   :  { %v9397_v0 = vpop.f32.mrf.mxu2  ;;  %s9964_s19 = sshll.u32 %s10351_s12, 4  ;;  %s9965_s19 = int_to_ptr.vmem [resolvable:$true] %s9964_s19 }
0x266f   :  { %v9398_v14 = vadd.f32 %v9397_v0, %v9353_v13  ;;  %v9691_v13 = vld [vmem:[%s13438_s11 + $0x28] sm:$0xff]  ;;  %v9749_v0 = vand.u32 4294901760, %v9748_v46  ;;  %9744 = vmatpush.msrb.mxu3 %v9743_v59  ;;  %9529 = vmatpush.msra.mxu1 %v9528_v31 }
0x2671   :  { %v9427_v2 = vadd.f32 %v9426_v4, %v9398_v14  ;;  %v9534_v14 = vand.u32 4294901760, %v9533_v45  ;;  %v13297_v4 = vand.u32 4294901760, %v9691_v13  ;;  %9750 = vmatpush.msrb.mxu3 %v9749_v0 }
0x2673   :  { %9430 = vst.msk [vmem:[#allocation4] sm:$0x3] %vm9429_vm6, %v9427_v2  ;;  %9711 = vmatpush.msrb.mxu2 %v13297_v4  ;;  %9535 = vmatpush.msra.mxu1 %v9534_v14  ;;  %v13328_v8 = vsub.f32 %v9691_v13, %v13297_v4 }
0x2674   :  { %9947 = dma.vmem_to_hbm [thread:$0]  %s9943_s4, 32, %s9945_s28, [#allocation5]  }
0x2675   :  { %9664 = vmatpush.msrb.mxu1 %v13157_v12  ;;  %v9689_v12 = vld [vmem:[%s13438_s11 + $0x18] sm:$0xff] }
0x2677   :  { %9666 = vmatpush.msrb.mxu1 %v13159_v16  ;;  %v9753_v16 = vand.u32 4294901760, %v13328_v8 }
0x2679   :  { %9668 = vmatpush.msrb.mxu1 %v13161_v54  ;;  %v13335_v54 = vand.u32 4294901760, %v9689_v12  ;;  %v9754_v20 = vsub.f32 %v13328_v8, %v9753_v16 }
0x267b   :  { %9670 = vmatpush.msrb.mxu1 %v13172_v23  ;;  %v9755_v25 = vand.u32 4294901760, %v9754_v20 }
0x267d   :  { %9672 = vmatpush.msrb.mxu1 %v13174_v33  ;;  %v13346_v33 = vand.u32 4294901760, %v9688_v55  ;;  %9756 = vmatpush.msrb.mxu3 %v9755_v25 }
0x267f   :  { %9674 = vmatpush.msrb.mxu1 %v13176_v36  ;;  %v13349_v36 = vsub.f32 %v9689_v12, %v13335_v54 }
0x2681   :  { %9676 = vmatpush.msrb.mxu1 %v13195_v3  ;;  %v9765_v15 = vand.u32 4294901760, %v13349_v36  ;;  %v13360_v3 = vsub.f32 %v9688_v55, %v13346_v33 }
0x2683   :  { %9678 = vmatpush.msrb.mxu1 %v13211_v48  ;;  %v9766_v37 = vsub.f32 %v13349_v36, %v9765_v15  ;;  %v9771_v34 = vand.u32 4294901760, %v13360_v3 }
0x2685   :  { %v9767_v48 = vand.u32 4294901760, %v9766_v37  ;;  %v9772_v10 = vsub.f32 %v13360_v3, %v9771_v34 }
0x2687   :  { %v9773_v38 = vand.u32 4294901760, %v9772_v10 }
0x26a5   :  { %v9161_v2 = vpop.permute.xlu0 %9160 }
0x26a6   :  { %v9163_v6 = vmul.f32 %v9161_v2, %v13133_v24  ;;  %v9690_v24 = vld [vmem:[%s13438_s11 + $0x20] sm:$0xff] }
0x26a7   :  { %v13325_v39 = vand.u32 4294901760, %v9690_v24 }
0x26a8   :  { %9169 = vrot.lane.b32.xlu2 %v9163_v6, %s10348_s16 }
0x26a9   :  { %9713 = vmatpush.msrb.mxu2 %v13325_v39  ;;  %v13338_v53 = vsub.f32 %v9690_v24, %v13325_v39 }
0x26ab   :  { %9715 = vmatpush.msrb.mxu2 %v13335_v54  ;;  %v9759_v23 = vand.u32 4294901760, %v13338_v53 }
0x26ad   :  { %v9760_v28 = vsub.f32 %v13338_v53, %v9759_v23  ;;  %9717 = vmatpush.msrb.mxu2 %v13346_v33  ;;  %v9173_v51 = vpop.permute.xlu0 %9172 }
0x26af   :  { %v9761_v30 = vand.u32 4294901760, %v9760_v28  ;;  %9719 = vmatpush.msrb.mxu2 %v13357_v7 }
0x26b1   :  { %9762 = vmatpush.msrb.mxu3 %v9761_v30  ;;  %9721 = vmatpush.msrb.mxu2 %v13367_v17 }
0x26b3   :  { %9768 = vmatpush.msrb.mxu3 %v9767_v48 }
0x26b5   :  { %9774 = vmatpush.msrb.mxu3 %v9773_v38 }
0x26b7   :  { %9780 = vmatpush.msrb.mxu3 %v9779_v18 }
0x26b9   :  { %9786 = vmatpush.msrb.mxu3 %v9785_v63 }
0x2702   :  { %v9170_v19 = vpop.permute.xlu2 %9169 }
0x2703   :  { %v9175_v58 = vsel %vm665_vm9, %v9170_v19, %v9173_v51  ;;  %vm9684_vm9 = vcmask 50176  }
0x2704   :  { %v9444_v22 = vrot.slane %v9175_v58, 6 }
0x2706   :  { %v9445_v11 = vsel %vm676_vm11, %v9444_v22, 0  ;;  %vm9935_vm11 = vcmask 66560  }
0x2707   :  { %v9471_v29 = vand.u32 4294901760, %v9445_v11 }
0x2709   :  { %v9472_v26 = vsub.f32 %v9445_v11, %v9471_v29  ;;  %9537 = vmatmul.f32.vlgmr.msra.gmra.mxu1 %v9471_v29 }
0x270a   :  { %9839 = vmatpush.msra.mxu1 %v13252_v52 }
0x270b   :  { %9575 = vmatmul.f32.vlgmr.msra.gmra.mxu2 %v9472_v26  ;;  %v9473_v32 = vand.u32 4294901760, %v9472_v26 }
0x270c   :  { %9841 = vmatpush.msra.mxu1 %v13254_v57  ;;  %9872 = vmatpush.msra.mxu2 %v9741_v43 }
0x270d   :  { %9606 = vmatmul.f32.vlgmr.msra.gmra.mxu3 %v9473_v32  ;;  %v9474_v9 = vsub.f32 %v9472_v26, %v9473_v32 }
0x270e   :  { %9843 = vmatpush.msra.mxu1 %v13297_v4  ;;  %9876 = vmatpush.msra.mxu2 %v9747_v44 }
0x270f   :  { %9915 = vmatpush.msra.mxu3 %v13252_v52  ;;  %v9475_v35 = vand.u32 4294901760, %v9474_v9  ;;  %v10021_v52 = vld [vmem:[%s13437_s10] ss:$0 sm:$0xff]  ;;  %s9955_s10 = sshll.u32 %s13441_s14, 4  ;;  %s9966_s14 = sshll.u32 %s13442_s15, 4  ;;  %s9956_s10 = int_to_ptr.hbm [resolvable:$true] %s9955_s10  ;;  %s9967_s14 = int_to_ptr.hbm [resolvable:$true] %s9966_s14 }
0x2710   :  { %9845 = vmatpush.msra.mxu1 %v13325_v39  ;;  %9880 = vmatpush.msra.mxu2 %v9753_v16 }
0x2711   :  { %9917 = vmatpush.msra.mxu3 %v13254_v57  ;;  %9476 = vmatmul.f32.vlgmr.msra.gmra.mxu0 %v9475_v35 }
0x2712   :  { %9680 = vmatmul.f32.vlgmr.msrb.gmra.mxu1 %v9471_v29  ;;  %9802 = vmatpush.msra.mxu0 %v13264_v61 }
0x2713   :  { %9847 = vmatpush.msra.mxu1 %v13335_v54  ;;  %9884 = vmatpush.msra.mxu2 %v9759_v23 }
0x2714   :  { %9919 = vmatpush.msra.mxu3 %v13297_v4  ;;  %9727 = vmatmul.f32.vlgmr.msrb.gmra.mxu2 %v9475_v35 }
0x2715   :  { %9805 = vmatpush.msra.mxu0 %v13267_v5  ;;  %9849 = vmatpush.msra.mxu1 %v13346_v33 }
0x2716   :  { %9888 = vmatpush.msra.mxu2 %v9765_v15  ;;  %9921 = vmatpush.msra.mxu3 %v13325_v39 }
0x2717   :  { %9788 = vmatmul.f32.vlgmr.msrb.gmra.mxu3 %v9471_v29  ;;  %9808 = vmatpush.msra.mxu0 %v13328_v8 }
0x2718   :  { %9851 = vmatpush.msra.mxu1 %v13357_v7  ;;  %9892 = vmatpush.msra.mxu2 %v9771_v34 }
0x2719   :  { %9923 = vmatpush.msra.mxu3 %v13335_v54  ;;  %9811 = vmatpush.msra.mxu0 %v13338_v53 }
0x271a   :  { %9853 = vmatpush.msra.mxu1 %v13367_v17  ;;  %9896 = vmatpush.msra.mxu2 %v9777_v21 }
0x271b   :  { %9925 = vmatpush.msra.mxu3 %v13346_v33  ;;  %9651 = vmatmul.f32.vlgmr.msrb.gmra.mxu0 %v9471_v29 }
0x271c   :  { %9857 = vmatmul.f32.vlgmr.msra.gmra.mxu1 %v9473_v32  ;;  %9814 = vmatpush.msra.mxu0 %v13349_v36 }
0x271d   :  { %9900 = vmatpush.msra.mxu2 %v9783_v1  ;;  %9927 = vmatpush.msra.mxu3 %v13357_v7 }
0x271e   :  { %9902 = vmatmul.f32.vlgmr.msra.gmra.mxu2 %v9471_v29  ;;  %9817 = vmatpush.msra.mxu0 %v13360_v3 }
0x271f   :  { %9929 = vmatpush.msra.mxu3 %v13367_v17 }
0x2720   :  { %9931 = vmatmul.f32.vlgmr.msra.gmra.mxu3 %v9471_v29  ;;  %9820 = vmatpush.msra.mxu0 %v13370_v60 }
0x2722   :  { %9823 = vmatpush.msra.mxu0 %v13376_v50 }
0x2723   :  { %9826 = vmatmul.f32.vlgmr.msra.gmra.mxu0 %v9472_v26 }
0x2786   :  { %v9538_v57 = vpop.f32.mrf.mxu1 }
0x278e   :  { %v9477_v61 = vpop.f32.mrf.mxu0  ;;  %v9576_v5 = vpop.f32.mrf.mxu2 }
0x278f   :  { %v9478_v40 = vadd.f32 %v10021_v52, %v9477_v61  ;;  %v9681_v45 = vpop.f32.mrf.mxu1 }
0x2790   :  { %v9607_v43 = vpop.f32.mrf.mxu3 }
0x2791   :  { %v9539_v49 = vadd.f32 %v9538_v57, %v9478_v40 }
0x2793   :  { %v9577_v44 = vadd.f32 %v9576_v5, %v9539_v49 }
0x2795   :  { %v9608_v27 = vadd.f32 %v9607_v43, %v9577_v44 }
0x2797   :  { %v9728_v31 = vpop.f32.mrf.mxu2 }
0x2798   :  { %v9652_v46 = vpop.f32.mrf.mxu0  ;;  %v9729_v0 = vadd.f32 %v10022_v42, %v9728_v31 }
0x2799   :  { %v9653_v59 = vadd.f32 %v9652_v46, %v9608_v27  ;;  %v9858_v24 = vpop.f32.mrf.mxu1 }
0x279a   :  { %v9789_v14 = vpop.f32.mrf.mxu3 }
0x279b   :  { %v9682_v13 = vadd.f32 %v9681_v45, %v9653_v59  ;;  %v9790_v4 = vadd.f32 %v9789_v14, %v9729_v0 }
0x279d   :  { %9685 = vst.msk [vmem:[#allocation6] sm:$0x3] %vm9684_vm9, %v9682_v13 }
0x279e   :  { %9958 = dma.vmem_to_hbm [thread:$0]  %s9954_s17, 32, %s9956_s10, [#allocation7]  }
0x27a0   :  { %v9827_v2 = vpop.f32.mrf.mxu0 }
0x27a1   :  { %v9828_v6 = vadd.f32 %v9827_v2, %v9790_v4  ;;  %v9903_v8 = vpop.f32.mrf.mxu2 }
0x27a3   :  { %v9859_v39 = vadd.f32 %v9858_v24, %v9828_v6  ;;  %v9932_v16 = vpop.f32.mrf.mxu3 }
0x27a5   :  { %v9904_v12 = vadd.f32 %v9903_v8, %v9859_v39 }
0x27a7   :  { %v9933_v54 = vadd.f32 %v9932_v16, %v9904_v12 }
0x27a9   :  { %9936 = vst.msk [vmem:[#allocation8] sm:$0x3] %vm9935_vm11, %v9933_v54 }
0x27aa   :  { %9969 = dma.vmem_to_hbm [thread:$0]  %s9965_s19, 32, %s9967_s14, [#allocation7]  }
0x27ab   :  { %10343 = dma.done.wait [#allocation5], 32  }
0x27ac   :  { %10344 = vsyncadd [#allocation5], 4294967264 }
0x27ad   :  { %10345 = dma.done.wait [#allocation7], 64  }
0x27ae   :  { %10346 = vsyncadd [#allocation7], 4294967232 }
0x27af   :  { %9982 = vsyncpa [#allocation5], 1 }
0x27b0   :  { %9983 = vsyncpa [#allocation7], 1 }

</bundles_post_ra>
